<compile_context>
chip_gen: v5e
topology: v5e:2x2
jax: 0.10.0
libtpu: 0.0.40
codegen_flags: <defaults>
</compile_context>

<pallas_src>
import functools

import jax
import jax.numpy as jnp
from jax.experimental import pallas as pl
from jax.experimental.pallas import tpu as pltpu


_LANE = 128


def _cdiv(a, b):
    return -(-a // b)


def _choose_padding(num_heads, head_dim, lane=_LANE):
    """Pick the cheaper lane-dense padding.

    Scheme A pads head_dim; scheme B adds zero-weight dummy heads.  Returns
    (H_pad, dh_pad) with H_pad * dh_pad a multiple of `lane`.  Prefers the smaller
    padded channel count (it drives the dominant QKV/proj FLOPs and weight bytes);
    ties go to fewer heads (fewer softmax passes, deeper per-head matmuls).
    """
    dh_a = head_dim
    while (num_heads * dh_a) % lane:
        dh_a += 1
    h_b = num_heads
    while (h_b * head_dim) % lane:
        h_b += 1
    if h_b * head_dim < num_heads * dh_a:
        return h_b, head_dim          # add dummy heads
    return num_heads, dh_a            # pad head_dim


def prepare_params(wqkv_t, bqkv, wproj_t, bproj, rel_bias, *, dim, num_heads, scale):
    """One-time host-side parameter transform.

    - folds the qk `scale` into the Q third of the qkv weight/bias,
    - pads to a lane-dense layout (C_p = H_p * dh_p, multiple of 128), choosing the
      cheaper of padding head_dim vs. adding zero dummy heads,
    - dummy heads get zero qkv weights/bias, zero proj rows and zero rel_bias rows,
      so they contribute exactly nothing to the output,
    - matmul weights are cast to bf16 (biases stay f32; added to f32 accumulators).
    """
    C = dim
    dh = C // num_heads
    H_p, dh_p = _choose_padding(num_heads, dh)
    C_p = H_p * dh_p

    # Fold scale into q (output columns [0:C] of the (in, out) qkv weight + bias).
    wqkv_t = wqkv_t.at[:, :C].multiply(scale)
    bqkv = bqkv.at[:, :C].multiply(scale)

    # qkv weight: (C, 3C) viewed as (C, 3, H, dh) -> pad -> (C_p, 3*C_p)
    w = wqkv_t.reshape(C, 3, num_heads, dh)
    w = jnp.pad(w, ((0, C_p - C), (0, 0), (0, H_p - num_heads), (0, dh_p - dh)))
    wqkv_p = w.reshape(C_p, 3 * C_p).astype(jnp.bfloat16)

    # qkv bias: (1, 3C) viewed as (3, H, dh) -> pad -> (1, 3*C_p)
    b = bqkv.reshape(3, num_heads, dh)
    b = jnp.pad(b, ((0, 0), (0, H_p - num_heads), (0, dh_p - dh)))
    bqkv_p = b.reshape(1, 3 * C_p).astype(jnp.float32)

    # proj weight: (C, C) with input rows structured as (H, dh) -> pad -> (C_p, C_p)
    wp = wproj_t.reshape(num_heads, dh, C)
    wp = jnp.pad(wp, ((0, H_p - num_heads), (0, dh_p - dh), (0, C_p - C)))
    wproj_p = wp.reshape(C_p, C_p).astype(jnp.bfloat16)

    bproj_p = jnp.pad(bproj, ((0, 0), (0, C_p - C))).astype(jnp.float32)

    # relative position bias: (H, N, N) -> (H_p, N, N); dummy heads get zeros.
    rel_bias_p = jnp.pad(rel_bias.astype(jnp.float32),
                         ((0, H_p - num_heads), (0, 0), (0, 0)))
    return wqkv_p, bqkv_p, wproj_p, bproj_p, rel_bias_p, H_p, dh_p, C_p


def _window_attention_kernel(x_ref, wqkv_ref, bqkv_ref, wproj_ref, bproj_ref,
                             relbias_ref, o_ref, ctx_ref, *, num_heads):
    """One grid step = TB windows (TB*N rows through the MXU).

    x_ref:       (TB, N, C)   bf16   tokens (C = padded, lane-dense channel dim)
    wqkv_ref:    (C, 3C)      bf16   qkv weight (in, out), q-scale pre-folded
    bqkv_ref:    (1, 3C)      f32    qkv bias (q-scale pre-folded)
    wproj_ref:   (C, C)       bf16   proj weight (in, out)
    bproj_ref:   (1, C)       f32    proj bias
    relbias_ref: (H, N, N)    f32    relative position bias per head
    o_ref:       (TB, N, C)   bf16   output
    ctx_ref:     (TB*N, C)    bf16   VMEM scratch collecting all heads' contexts
    """
    TB, N, C = x_ref.shape
    dh = C // num_heads

    # Fused QKV projection over all TB windows at once: (TB*N, C) @ (C, 3C) on the MXU.
    x = x_ref[...].reshape(TB * N, C)
    qkv = jnp.dot(x, wqkv_ref[...], preferred_element_type=jnp.float32)     # (TB*N, 3C)
    # f32 bias add, then a single bf16 cast: halves the live/spilled intermediate.
    qkv = (qkv + bqkv_ref[...]).astype(jnp.bfloat16)
    qkv = qkv.reshape(TB, N, 3 * C)

    for h in range(num_heads):
        q_h = qkv[:, :, h * dh:(h + 1) * dh]                                # (TB, N, dh)
        k_h = qkv[:, :, C + h * dh:C + (h + 1) * dh]
        v_h = qkv[:, :, 2 * C + h * dh:2 * C + (h + 1) * dh]

        # Scores, batched over the TB windows; qk scale already folded into Wq.
        s = jax.lax.dot_general(q_h, k_h, (((2,), (2,)), ((0,), (0,))),
                                preferred_element_type=jnp.float32)         # (TB, N, N)
        s = s + relbias_ref[h][None]

        # Numerically stable softmax in f32; normalize via EUP approx reciprocal.
        s = s - jnp.max(s, axis=-1, keepdims=True)
        p = jnp.exp(s)
        p = p * pl.reciprocal(jnp.sum(p, axis=-1, keepdims=True), approx=True)

        # Context for this head, batched over windows.
        ctx = jax.lax.dot_general(p.astype(jnp.bfloat16), v_h,
                                  (((2,), (1,)), ((0,), (0,))),
                                  preferred_element_type=jnp.float32)       # (TB, N, dh)

        # Park the head's context in its column slice; the single full-depth
        # projection below replaces the old per-head K=dh matmuls + f32 adds.
        ctx_ref[:, h * dh:(h + 1) * dh] = ctx.reshape(TB * N, dh).astype(jnp.bfloat16)

    # ONE (TB*N, C) @ (C, C) projection at full MXU contraction depth.
    out = jnp.dot(ctx_ref[...], wproj_ref[...], preferred_element_type=jnp.float32)
    out = out + bproj_ref[...]
    o_ref[...] = out.reshape(TB, N, C).astype(o_ref.dtype)


def _default_target_rows():
    # v5e's MXU is 128-wide and it sits closest to its HBM roofline: 256 rows/step
    # is enough there; v6e/v7x have 256-granule MXUs -> target 512 rows/step.
    try:
        kind = jax.devices()[0].device_kind.lower()
    except Exception:
        return 512
    if "v5 lite" in kind or "v5e" in kind or "v5lite" in kind:
        return 256
    return 512


def window_attention(x, wqkv_t, bqkv, wproj_t, bproj, rel_bias, *,
                     num_heads, scale, block_windows=None):
    """Forward of WindowAttention (mask=None, eval-mode dropout).  Call under jit so
    the host-side pad/cast of x and the final slice fuse with neighbouring ops (or,
    better, keep activations in the padded bf16 layout between Swin blocks)."""
    B_, N, C = x.shape

    # One-time host transforms: scale folding, lane-dense padding, bf16 weights.
    wqkv_p, bqkv_p, wproj_p, bproj_p, relbias_p, H_p, dh_p, C_p = prepare_params(
        wqkv_t, bqkv, wproj_t, bproj, rel_bias,
        dim=C, num_heads=num_heads, scale=scale)

    # Windows per grid step: target ~512 matmul rows (~256 on v5e).  Keep the grid at
    # >= 2 steps so both v7x TensorCores get work, and pad B_ with dummy windows
    # instead of collapsing to tb=1 for awkward/prime B_.
    if block_windows is None:
        block_windows = max(1, _default_target_rows() // N)
    tb = max(1, min(block_windows, B_))
    if B_ > 1 and _cdiv(B_, tb) < 2:
        tb = _cdiv(B_, 2)
    grid_b = _cdiv(B_, tb)
    B_pad = grid_b * tb

    x_p = jnp.pad(x, ((0, B_pad - B_), (0, 0), (0, C_p - C))).astype(jnp.bfloat16)

    flops = (2 * B_pad * N * C_p * (3 * C_p)        # qkv projection
             + 4 * B_pad * H_p * N * N * dh_p       # scores + context
             + 2 * B_pad * N * C_p * C_p)           # output projection
    bytes_accessed = (x_p.size * 2 + wqkv_p.size * 2 + wproj_p.size * 2
                      + bqkv_p.size * 4 + bproj_p.size * 4 + relbias_p.size * 4
                      + B_pad * N * C_p * 2)        # bf16 output

    kernel = functools.partial(_window_attention_kernel, num_heads=H_p)
    out_p = pl.pallas_call(
        kernel,
        out_shape=jax.ShapeDtypeStruct((B_pad, N, C_p), jnp.bfloat16),
        grid_spec=pltpu.PrefetchScalarGridSpec(
            num_scalar_prefetch=0,
            grid=(grid_b,),
            in_specs=[
                pl.BlockSpec((tb, N, C_p), lambda b: (b, 0, 0)),     # x (bf16, padded)
                # Constant index maps -> weights stay VMEM-resident across steps.
                pl.BlockSpec((C_p, 3 * C_p), lambda b: (0, 0)),      # qkv weight
                pl.BlockSpec((1, 3 * C_p), lambda b: (0, 0)),        # qkv bias
                pl.BlockSpec((C_p, C_p), lambda b: (0, 0)),          # proj weight
                pl.BlockSpec((1, C_p), lambda b: (0, 0)),            # proj bias
                pl.BlockSpec((H_p, N, N), lambda b: (0, 0, 0)),      # rel. position bias
            ],
            out_specs=pl.BlockSpec((tb, N, C_p), lambda b: (b, 0, 0)),
            scratch_shapes=[pltpu.VMEM((tb * N, C_p), jnp.bfloat16)],
        ),
        compiler_params=pltpu.CompilerParams(
            # Window axis is fully independent -> shards across the 2 TCs on v7x.
            dimension_semantics=("parallel",),
            # Below v7x's 64 MiB physical VMEM; plenty of headroom on v5e/v6e.
            vmem_limit_bytes=48 * 1024 * 1024,
        ),
        cost_estimate=pl.CostEstimate(flops=int(flops),
                                      transcendentals=int(B_pad * H_p * N * N),
                                      bytes_accessed=int(bytes_accessed)),
    )(x_p, wqkv_p, bqkv_p, wproj_p, bproj_p, relbias_p)

    # Strip window/channel padding (padded columns are exactly zero; dummy windows
    # are simply dropped).  Under the caller's jit this fuses with downstream ops.
    return out_p[:B_, :, :C].astype(x.dtype)


def build_relative_position_index(window_size):
    Wh, Ww = window_size
    coords_h = jnp.arange(Wh)
    coords_w = jnp.arange(Ww)
    coords = jnp.stack(jnp.meshgrid(coords_h, coords_w, indexing="ij"))    # (2, Wh, Ww)
    coords_flatten = coords.reshape(2, -1)                                  # (2, N)
    rel = coords_flatten[:, :, None] - coords_flatten[:, None, :]           # (2, N, N)
    rel = rel.transpose(1, 2, 0)                                            # (N, N, 2)
    rel = rel.at[:, :, 0].add(Wh - 1)
    rel = rel.at[:, :, 1].add(Ww - 1)
    rel = rel.at[:, :, 0].multiply(2 * Ww - 1)
    return rel.sum(-1)                                                      # (N, N)


def reference_window_attention(x, wqkv_t, bqkv, wproj_t, bproj, rel_bias, *, num_heads, scale):
    """Pure-JAX f32 reference mirroring the PyTorch forward (mask=None, eval mode)."""
    B_, N, C = x.shape
    dh = C // num_heads
    qkv = x @ wqkv_t + bqkv                                      # (B_, N, 3C)
    qkv = qkv.reshape(B_, N, 3, num_heads, dh).transpose(2, 0, 3, 1, 4)
    q, k, v = qkv[0] * scale, qkv[1], qkv[2]                     # (B_, H, N, dh)
    attn = jnp.einsum("bhnd,bhmd->bhnm", q, k)
    attn = attn + rel_bias[None]                                 # (B_, H, N, N)
    attn = jax.nn.softmax(attn, axis=-1)
    out = jnp.einsum("bhnm,bhmd->bhnd", attn, v)
    out = out.transpose(0, 2, 1, 3).reshape(B_, N, C)
    return out @ wproj_t + bproj


if __name__ == "__main__":
    # Module configuration (small but consistent with the forward).
    dim = 32
    window_size = (4, 4)
    num_heads = 4
    head_dim = dim // num_heads
    scale = head_dim ** (-0.5)

    Wh, Ww = window_size
    N = Wh * Ww
    batch = 4
    num_windows = 8
    B_ = batch * num_windows          # num_windows * B = 32

    key = jax.random.PRNGKey(0)
    k_x, k_tab, k_wqkv, k_bqkv, k_wproj, k_bproj = jax.random.split(key, 6)

    # Input: (num_windows*B, N, C)
    x = jax.random.normal(k_x, (B_, N, dim), dtype=jnp.float32)

    # Parameters (deterministic synthetic init; linear layers stored transposed (in, out)).
    table = 0.02 * jax.random.truncated_normal(
        k_tab, -2.0, 2.0, ((2 * Wh - 1) * (2 * Ww - 1), num_heads), dtype=jnp.float32)
    init = dim ** (-0.5)
    wqkv_t = init * jax.random.normal(k_wqkv, (dim, 3 * dim), dtype=jnp.float32)
    bqkv = init * jax.random.normal(k_bqkv, (1, 3 * dim), dtype=jnp.float32)
    wproj_t = init * jax.random.normal(k_wproj, (dim, dim), dtype=jnp.float32)
    bproj = init * jax.random.normal(k_bproj, (1, dim), dtype=jnp.float32)

    # Precompute the relative position bias (parameter-only gather -> glue, not hot path).
    rel_idx = build_relative_position_index(window_size)              # (N, N)
    rel_bias = table[rel_idx.reshape(-1)].reshape(N, N, num_heads)    # (N, N, H)
    rel_bias = rel_bias.transpose(2, 0, 1)                            # (H, N, N)

    # jit so the wrapper's pad/cast and the final slice fuse around the kernel.
    wa = jax.jit(functools.partial(window_attention, num_heads=num_heads, scale=scale))
    out = jax.block_until_ready(wa(x, wqkv_t, bqkv, wproj_t, bproj, rel_bias))

    ref = reference_window_attention(x, wqkv_t, bqkv, wproj_t, bproj, rel_bias,
                                     num_heads=num_heads, scale=scale)
    assert out.shape == (B_, N, dim)
    max_err = float(jnp.max(jnp.abs(out - ref)))
    # bf16 matmul operands, bf16 output and approx reciprocal vs. a pure-f32 reference.
    assert jnp.allclose(out, ref, atol=5e-2, rtol=5e-2), max_err

    print("KERNEL_OK")
</pallas_src>

<mosaic_0001>
module attributes {stable_mosaic.version = 11 : i64} {
  func.func @_window_attention_kernel(%arg0: i32, %arg1: memref<16x16x128xbf16, #tpu.memory_space<vmem>>, %arg2: memref<128x384xbf16, #tpu.memory_space<vmem>>, %arg3: memref<1x384xf32, #tpu.memory_space<vmem>>, %arg4: memref<128x128xbf16, #tpu.memory_space<vmem>>, %arg5: memref<1x128xf32, #tpu.memory_space<vmem>>, %arg6: memref<4x16x16xf32, #tpu.memory_space<vmem>>, %arg7: memref<16x16x128xbf16, #tpu.memory_space<vmem>>, %arg8: memref<256x128xbf16, #tpu.memory_space<vmem>>) attributes {dimension_semantics = [#tpu.dimension_semantics<parallel>], iteration_bounds = array<i64: 2>, scalar_prefetch = 0 : i64, scratch_operands = 1 : i64, tpu.core_type = #tpu.core_type<tc>, window_params = [{transform_indices = @transform_0, window_bounds = array<i64: 16, 16, 128>}, {pipeline_mode = #tpu.pipeline_mode<synchronous>, transform_indices = @transform_1, window_bounds = array<i64: 128, 384>}, {pipeline_mode = #tpu.pipeline_mode<synchronous>, transform_indices = @transform_2, window_bounds = array<i64: 1, 384>}, {pipeline_mode = #tpu.pipeline_mode<synchronous>, transform_indices = @transform_3, window_bounds = array<i64: 128, 128>}, {pipeline_mode = #tpu.pipeline_mode<synchronous>, transform_indices = @transform_4, window_bounds = array<i64: 1, 128>}, {pipeline_mode = #tpu.pipeline_mode<synchronous>, transform_indices = @transform_5, window_bounds = array<i64: 4, 16, 16>}, {transform_indices = @transform_6, window_bounds = array<i64: 16, 16, 128>}]} {
    %c0 = arith.constant 0 : index
    %c0_0 = arith.constant 0 : index
    %c0_1 = arith.constant 0 : index
    %0 = vector.load %arg1[%c0, %c0_0, %c0_1] : memref<16x16x128xbf16, #tpu.memory_space<vmem>>, vector<16x16x128xbf16>
    %1 = vector.shape_cast %0 : vector<16x16x128xbf16> to vector<256x128xbf16>
    %c0_2 = arith.constant 0 : index
    %c0_3 = arith.constant 0 : index
    %2 = vector.load %arg2[%c0_2, %c0_3] : memref<128x384xbf16, #tpu.memory_space<vmem>>, vector<128x384xbf16>
    %cst = arith.constant dense<0.000000e+00> : vector<256x384xf32>
    %3 = tpu.matmul %1, %2, %cst {dimension_numbers = #tpu.dot_dimension_numbers<[1], [0], [0], [1], [0, 0, 1, 1], [], []>} : vector<256x128xbf16>, vector<128x384xbf16>, vector<256x384xf32> -> vector<256x384xf32>
    %c0_4 = arith.constant 0 : index
    %c0_5 = arith.constant 0 : index
    %4 = vector.load %arg3[%c0_4, %c0_5] : memref<1x384xf32, #tpu.memory_space<vmem>>, vector<1x384xf32>
    %5 = vector.broadcast %4 : vector<1x384xf32> to vector<256x384xf32>
    %6 = arith.addf %3, %5 : vector<256x384xf32>
    %7 = arith.truncf %6 : vector<256x384xf32> to vector<256x384xbf16>
    %8 = vector.shape_cast %7 : vector<256x384xbf16> to vector<16x16x384xbf16>
    %9 = vector.extract_strided_slice %8 {offsets = [0, 0, 0], sizes = [16, 16, 32], strides = [1, 1, 1]} : vector<16x16x384xbf16> to vector<16x16x32xbf16>
    %10 = vector.extract_strided_slice %8 {offsets = [0, 0, 128], sizes = [16, 16, 32], strides = [1, 1, 1]} : vector<16x16x384xbf16> to vector<16x16x32xbf16>
    %11 = vector.extract_strided_slice %8 {offsets = [0, 0, 256], sizes = [16, 16, 32], strides = [1, 1, 1]} : vector<16x16x384xbf16> to vector<16x16x32xbf16>
    %cst_6 = arith.constant dense<0.000000e+00> : vector<16x16x16xf32>
    %12 = tpu.matmul %9, %10, %cst_6 {dimension_numbers = #tpu.dot_dimension_numbers<[2], [2], [1], [1], [0, 0, 0, 1, 1, 1], [0], [0]>} : vector<16x16x32xbf16>, vector<16x16x32xbf16>, vector<16x16x16xf32> -> vector<16x16x16xf32>
    %c0_7 = arith.constant 0 : index
    %c0_8 = arith.constant 0 : index
    %c0_9 = arith.constant 0 : index
    %13 = vector.load %arg6[%c0_7, %c0_8, %c0_9] : memref<4x16x16xf32, #tpu.memory_space<vmem>>, vector<1x16x16xf32>
    %14 = vector.shape_cast %13 : vector<1x16x16xf32> to vector<16x16xf32>
    %15 = vector.shape_cast %14 : vector<16x16xf32> to vector<1x16x16xf32>
    %16 = vector.broadcast %15 : vector<1x16x16xf32> to vector<16x16x16xf32>
    %17 = arith.addf %12, %16 : vector<16x16x16xf32>
    %cst_10 = arith.constant dense<0xFF800000> : vector<16x16xf32>
    %18 = vector.multi_reduction <maximumf>, %17, %cst_10 [2] : vector<16x16x16xf32> to vector<16x16xf32>
    %19 = vector.shape_cast %18 : vector<16x16xf32> to vector<16x16x1xf32>
    %20 = vector.broadcast %19 : vector<16x16x1xf32> to vector<16x16x16xf32>
    %21 = arith.subf %17, %20 : vector<16x16x16xf32>
    %22 = math.exp %21 : vector<16x16x16xf32>
    %cst_11 = arith.constant dense<0.000000e+00> : vector<16x16xf32>
    %23 = vector.multi_reduction <add>, %22, %cst_11 [2] : vector<16x16x16xf32> to vector<16x16xf32>
    %24 = vector.shape_cast %23 : vector<16x16xf32> to vector<16x16x1xf32>
    %25 = tpu.reciprocal %24 {approx = true} : vector<16x16x1xf32> -> vector<16x16x1xf32>
    %26 = vector.broadcast %25 : vector<16x16x1xf32> to vector<16x16x16xf32>
    %27 = arith.mulf %22, %26 : vector<16x16x16xf32>
    %28 = arith.truncf %27 : vector<16x16x16xf32> to vector<16x16x16xbf16>
    %cst_12 = arith.constant dense<0.000000e+00> : vector<16x16x32xf32>
    %29 = tpu.matmul %28, %11, %cst_12 {dimension_numbers = #tpu.dot_dimension_numbers<[2], [1], [1], [2], [0, 0, 0, 1, 1, 2], [0], [0]>} : vector<16x16x16xbf16>, vector<16x16x32xbf16>, vector<16x16x32xf32> -> vector<16x16x32xf32>
    %30 = vector.shape_cast %29 : vector<16x16x32xf32> to vector<256x32xf32>
    %31 = arith.truncf %30 : vector<256x32xf32> to vector<256x32xbf16>
    %c0_13 = arith.constant 0 : index
    %c0_14 = arith.constant 0 : index
    %32 = vector.load %arg8[%c0_13, %c0_14] : memref<256x128xbf16, #tpu.memory_space<vmem>>, vector<256x32xbf16>
    tpu.vector_store %arg8[%c0_13, %c0_14], %31 {strides = array<i32>} : memref<256x128xbf16, #tpu.memory_space<vmem>>, vector<256x32xbf16>,
    %33 = vector.extract_strided_slice %8 {offsets = [0, 0, 32], sizes = [16, 16, 32], strides = [1, 1, 1]} : vector<16x16x384xbf16> to vector<16x16x32xbf16>
    %34 = vector.extract_strided_slice %8 {offsets = [0, 0, 160], sizes = [16, 16, 32], strides = [1, 1, 1]} : vector<16x16x384xbf16> to vector<16x16x32xbf16>
    %35 = vector.extract_strided_slice %8 {offsets = [0, 0, 288], sizes = [16, 16, 32], strides = [1, 1, 1]} : vector<16x16x384xbf16> to vector<16x16x32xbf16>
    %cst_15 = arith.constant dense<0.000000e+00> : vector<16x16x16xf32>
    %36 = tpu.matmul %33, %34, %cst_15 {dimension_numbers = #tpu.dot_dimension_numbers<[2], [2], [1], [1], [0, 0, 0, 1, 1, 1], [0], [0]>} : vector<16x16x32xbf16>, vector<16x16x32xbf16>, vector<16x16x16xf32> -> vector<16x16x16xf32>
    %c1 = arith.constant 1 : index
    %c0_16 = arith.constant 0 : index
    %c0_17 = arith.constant 0 : index
    %37 = vector.load %arg6[%c1, %c0_16, %c0_17] : memref<4x16x16xf32, #tpu.memory_space<vmem>>, vector<1x16x16xf32>
    %38 = vector.shape_cast %37 : vector<1x16x16xf32> to vector<16x16xf32>
    %39 = vector.shape_cast %38 : vector<16x16xf32> to vector<1x16x16xf32>
    %40 = vector.broadcast %39 : vector<1x16x16xf32> to vector<16x16x16xf32>
    %41 = arith.addf %36, %40 : vector<16x16x16xf32>
    %cst_18 = arith.constant dense<0xFF800000> : vector<16x16xf32>
    %42 = vector.multi_reduction <maximumf>, %41, %cst_18 [2] : vector<16x16x16xf32> to vector<16x16xf32>
    %43 = vector.shape_cast %42 : vector<16x16xf32> to vector<16x16x1xf32>
    %44 = vector.broadcast %43 : vector<16x16x1xf32> to vector<16x16x16xf32>
    %45 = arith.subf %41, %44 : vector<16x16x16xf32>
    %46 = math.exp %45 : vector<16x16x16xf32>
    %cst_19 = arith.constant dense<0.000000e+00> : vector<16x16xf32>
    %47 = vector.multi_reduction <add>, %46, %cst_19 [2] : vector<16x16x16xf32> to vector<16x16xf32>
    %48 = vector.shape_cast %47 : vector<16x16xf32> to vector<16x16x1xf32>
    %49 = tpu.reciprocal %48 {approx = true} : vector<16x16x1xf32> -> vector<16x16x1xf32>
    %50 = vector.broadcast %49 : vector<16x16x1xf32> to vector<16x16x16xf32>
    %51 = arith.mulf %46, %50 : vector<16x16x16xf32>
    %52 = arith.truncf %51 : vector<16x16x16xf32> to vector<16x16x16xbf16>
    %cst_20 = arith.constant dense<0.000000e+00> : vector<16x16x32xf32>
    %53 = tpu.matmul %52, %35, %cst_20 {dimension_numbers = #tpu.dot_dimension_numbers<[2], [1], [1], [2], [0, 0, 0, 1, 1, 2], [0], [0]>} : vector<16x16x16xbf16>, vector<16x16x32xbf16>, vector<16x16x32xf32> -> vector<16x16x32xf32>
    %54 = vector.shape_cast %53 : vector<16x16x32xf32> to vector<256x32xf32>
    %55 = arith.truncf %54 : vector<256x32xf32> to vector<256x32xbf16>
    %c0_21 = arith.constant 0 : index
    %c32 = arith.constant 32 : index
    %56 = vector.load %arg8[%c0_21, %c32] : memref<256x128xbf16, #tpu.memory_space<vmem>>, vector<256x32xbf16>
    tpu.vector_store %arg8[%c0_21, %c32], %55 {strides = array<i32>} : memref<256x128xbf16, #tpu.memory_space<vmem>>, vector<256x32xbf16>,
    %57 = vector.extract_strided_slice %8 {offsets = [0, 0, 64], sizes = [16, 16, 32], strides = [1, 1, 1]} : vector<16x16x384xbf16> to vector<16x16x32xbf16>
    %58 = vector.extract_strided_slice %8 {offsets = [0, 0, 192], sizes = [16, 16, 32], strides = [1, 1, 1]} : vector<16x16x384xbf16> to vector<16x16x32xbf16>
    %59 = vector.extract_strided_slice %8 {offsets = [0, 0, 320], sizes = [16, 16, 32], strides = [1, 1, 1]} : vector<16x16x384xbf16> to vector<16x16x32xbf16>
    %cst_22 = arith.constant dense<0.000000e+00> : vector<16x16x16xf32>
    %60 = tpu.matmul %57, %58, %cst_22 {dimension_numbers = #tpu.dot_dimension_numbers<[2], [2], [1], [1], [0, 0, 0, 1, 1, 1], [0], [0]>} : vector<16x16x32xbf16>, vector<16x16x32xbf16>, vector<16x16x16xf32> -> vector<16x16x16xf32>
    %c2 = arith.constant 2 : index
    %c0_23 = arith.constant 0 : index
    %c0_24 = arith.constant 0 : index
    %61 = vector.load %arg6[%c2, %c0_23, %c0_24] : memref<4x16x16xf32, #tpu.memory_space<vmem>>, vector<1x16x16xf32>
    %62 = vector.shape_cast %61 : vector<1x16x16xf32> to vector<16x16xf32>
    %63 = vector.shape_cast %62 : vector<16x16xf32> to vector<1x16x16xf32>
    %64 = vector.broadcast %63 : vector<1x16x16xf32> to vector<16x16x16xf32>
    %65 = arith.addf %60, %64 : vector<16x16x16xf32>
    %cst_25 = arith.constant dense<0xFF800000> : vector<16x16xf32>
    %66 = vector.multi_reduction <maximumf>, %65, %cst_25 [2] : vector<16x16x16xf32> to vector<16x16xf32>
    %67 = vector.shape_cast %66 : vector<16x16xf32> to vector<16x16x1xf32>
    %68 = vector.broadcast %67 : vector<16x16x1xf32> to vector<16x16x16xf32>
    %69 = arith.subf %65, %68 : vector<16x16x16xf32>
    %70 = math.exp %69 : vector<16x16x16xf32>
    %cst_26 = arith.constant dense<0.000000e+00> : vector<16x16xf32>
    %71 = vector.multi_reduction <add>, %70, %cst_26 [2] : vector<16x16x16xf32> to vector<16x16xf32>
    %72 = vector.shape_cast %71 : vector<16x16xf32> to vector<16x16x1xf32>
    %73 = tpu.reciprocal %72 {approx = true} : vector<16x16x1xf32> -> vector<16x16x1xf32>
    %74 = vector.broadcast %73 : vector<16x16x1xf32> to vector<16x16x16xf32>
    %75 = arith.mulf %70, %74 : vector<16x16x16xf32>
    %76 = arith.truncf %75 : vector<16x16x16xf32> to vector<16x16x16xbf16>
    %cst_27 = arith.constant dense<0.000000e+00> : vector<16x16x32xf32>
    %77 = tpu.matmul %76, %59, %cst_27 {dimension_numbers = #tpu.dot_dimension_numbers<[2], [1], [1], [2], [0, 0, 0, 1, 1, 2], [0], [0]>} : vector<16x16x16xbf16>, vector<16x16x32xbf16>, vector<16x16x32xf32> -> vector<16x16x32xf32>
    %78 = vector.shape_cast %77 : vector<16x16x32xf32> to vector<256x32xf32>
    %79 = arith.truncf %78 : vector<256x32xf32> to vector<256x32xbf16>
    %c0_28 = arith.constant 0 : index
    %c64 = arith.constant 64 : index
    %80 = vector.load %arg8[%c0_28, %c64] : memref<256x128xbf16, #tpu.memory_space<vmem>>, vector<256x32xbf16>
    tpu.vector_store %arg8[%c0_28, %c64], %79 {strides = array<i32>} : memref<256x128xbf16, #tpu.memory_space<vmem>>, vector<256x32xbf16>,
    %81 = vector.extract_strided_slice %8 {offsets = [0, 0, 96], sizes = [16, 16, 32], strides = [1, 1, 1]} : vector<16x16x384xbf16> to vector<16x16x32xbf16>
    %82 = vector.extract_strided_slice %8 {offsets = [0, 0, 224], sizes = [16, 16, 32], strides = [1, 1, 1]} : vector<16x16x384xbf16> to vector<16x16x32xbf16>
    %83 = vector.extract_strided_slice %8 {offsets = [0, 0, 352], sizes = [16, 16, 32], strides = [1, 1, 1]} : vector<16x16x384xbf16> to vector<16x16x32xbf16>
    %cst_29 = arith.constant dense<0.000000e+00> : vector<16x16x16xf32>
    %84 = tpu.matmul %81, %82, %cst_29 {dimension_numbers = #tpu.dot_dimension_numbers<[2], [2], [1], [1], [0, 0, 0, 1, 1, 1], [0], [0]>} : vector<16x16x32xbf16>, vector<16x16x32xbf16>, vector<16x16x16xf32> -> vector<16x16x16xf32>
    %c3 = arith.constant 3 : index
    %c0_30 = arith.constant 0 : index
    %c0_31 = arith.constant 0 : index
    %85 = vector.load %arg6[%c3, %c0_30, %c0_31] : memref<4x16x16xf32, #tpu.memory_space<vmem>>, vector<1x16x16xf32>
    %86 = vector.shape_cast %85 : vector<1x16x16xf32> to vector<16x16xf32>
    %87 = vector.shape_cast %86 : vector<16x16xf32> to vector<1x16x16xf32>
    %88 = vector.broadcast %87 : vector<1x16x16xf32> to vector<16x16x16xf32>
    %89 = arith.addf %84, %88 : vector<16x16x16xf32>
    %cst_32 = arith.constant dense<0xFF800000> : vector<16x16xf32>
    %90 = vector.multi_reduction <maximumf>, %89, %cst_32 [2] : vector<16x16x16xf32> to vector<16x16xf32>
    %91 = vector.shape_cast %90 : vector<16x16xf32> to vector<16x16x1xf32>
    %92 = vector.broadcast %91 : vector<16x16x1xf32> to vector<16x16x16xf32>
    %93 = arith.subf %89, %92 : vector<16x16x16xf32>
    %94 = math.exp %93 : vector<16x16x16xf32>
    %cst_33 = arith.constant dense<0.000000e+00> : vector<16x16xf32>
    %95 = vector.multi_reduction <add>, %94, %cst_33 [2] : vector<16x16x16xf32> to vector<16x16xf32>
    %96 = vector.shape_cast %95 : vector<16x16xf32> to vector<16x16x1xf32>
    %97 = tpu.reciprocal %96 {approx = true} : vector<16x16x1xf32> -> vector<16x16x1xf32>
    %98 = vector.broadcast %97 : vector<16x16x1xf32> to vector<16x16x16xf32>
    %99 = arith.mulf %94, %98 : vector<16x16x16xf32>
    %100 = arith.truncf %99 : vector<16x16x16xf32> to vector<16x16x16xbf16>
    %cst_34 = arith.constant dense<0.000000e+00> : vector<16x16x32xf32>
    %101 = tpu.matmul %100, %83, %cst_34 {dimension_numbers = #tpu.dot_dimension_numbers<[2], [1], [1], [2], [0, 0, 0, 1, 1, 2], [0], [0]>} : vector<16x16x16xbf16>, vector<16x16x32xbf16>, vector<16x16x32xf32> -> vector<16x16x32xf32>
    %102 = vector.shape_cast %101 : vector<16x16x32xf32> to vector<256x32xf32>
    %103 = arith.truncf %102 : vector<256x32xf32> to vector<256x32xbf16>
    %c0_35 = arith.constant 0 : index
    %c96 = arith.constant 96 : index
    %104 = vector.load %arg8[%c0_35, %c96] : memref<256x128xbf16, #tpu.memory_space<vmem>>, vector<256x32xbf16>
    tpu.vector_store %arg8[%c0_35, %c96], %103 {strides = array<i32>} : memref<256x128xbf16, #tpu.memory_space<vmem>>, vector<256x32xbf16>,
    %c0_36 = arith.constant 0 : index
    %c0_37 = arith.constant 0 : index
    %105 = vector.load %arg8[%c0_36, %c0_37] : memref<256x128xbf16, #tpu.memory_space<vmem>>, vector<256x128xbf16>
    %c0_38 = arith.constant 0 : index
    %c0_39 = arith.constant 0 : index
    %106 = vector.load %arg4[%c0_38, %c0_39] : memref<128x128xbf16, #tpu.memory_space<vmem>>, vector<128x128xbf16>
    %cst_40 = arith.constant dense<0.000000e+00> : vector<256x128xf32>
    %107 = tpu.matmul %105, %106, %cst_40 {dimension_numbers = #tpu.dot_dimension_numbers<[1], [0], [0], [1], [0, 0, 1, 1], [], []>} : vector<256x128xbf16>, vector<128x128xbf16>, vector<256x128xf32> -> vector<256x128xf32>
    %c0_41 = arith.constant 0 : index
    %c0_42 = arith.constant 0 : index
    %108 = vector.load %arg5[%c0_41, %c0_42] : memref<1x128xf32, #tpu.memory_space<vmem>>, vector<1x128xf32>
    %109 = vector.broadcast %108 : vector<1x128xf32> to vector<256x128xf32>
    %110 = arith.addf %107, %109 : vector<256x128xf32>
    %111 = vector.shape_cast %110 : vector<256x128xf32> to vector<16x16x128xf32>
    %112 = arith.truncf %111 : vector<16x16x128xf32> to vector<16x16x128xbf16>
    %c0_43 = arith.constant 0 : index
    %c0_44 = arith.constant 0 : index
    %c0_45 = arith.constant 0 : index
    %113 = vector.load %arg7[%c0_43, %c0_44, %c0_45] : memref<16x16x128xbf16, #tpu.memory_space<vmem>>, vector<16x16x128xbf16>
    tpu.vector_store %arg7[%c0_43, %c0_44, %c0_45], %112 {strides = array<i32>} : memref<16x16x128xbf16, #tpu.memory_space<vmem>>, vector<16x16x128xbf16>,
    return
  }
  func.func @transform_0(%arg0: i32) -> (i32, i32, i32) {
    %c0_i32 = arith.constant 0 : i32
    %c0_i32_0 = arith.constant 0 : i32
    %c0_i32_1 = arith.constant 0 : i32
    return %arg0, %c0_i32, %c0_i32_0 : i32, i32, i32
  }
  func.func @transform_1(%arg0: i32) -> (i32, i32) {
    %c0_i32 = arith.constant 0 : i32
    %c0_i32_0 = arith.constant 0 : i32
    %c0_i32_1 = arith.constant 0 : i32
    return %c0_i32, %c0_i32_0 : i32, i32
  }
  func.func @transform_2(%arg0: i32) -> (i32, i32) {
    %c0_i32 = arith.constant 0 : i32
    %c0_i32_0 = arith.constant 0 : i32
    %c0_i32_1 = arith.constant 0 : i32
    return %c0_i32, %c0_i32_0 : i32, i32
  }
  func.func @transform_3(%arg0: i32) -> (i32, i32) {
    %c0_i32 = arith.constant 0 : i32
    %c0_i32_0 = arith.constant 0 : i32
    %c0_i32_1 = arith.constant 0 : i32
    return %c0_i32, %c0_i32_0 : i32, i32
  }
  func.func @transform_4(%arg0: i32) -> (i32, i32) {
    %c0_i32 = arith.constant 0 : i32
    %c0_i32_0 = arith.constant 0 : i32
    %c0_i32_1 = arith.constant 0 : i32
    return %c0_i32, %c0_i32_0 : i32, i32
  }
  func.func @transform_5(%arg0: i32) -> (i32, i32, i32) {
    %c0_i32 = arith.constant 0 : i32
    %c0_i32_0 = arith.constant 0 : i32
    %c0_i32_1 = arith.constant 0 : i32
    %c0_i32_2 = arith.constant 0 : i32
    return %c0_i32, %c0_i32_0, %c0_i32_1 : i32, i32, i32
  }
  func.func @transform_6(%arg0: i32) -> (i32, i32, i32) {
    %c0_i32 = arith.constant 0 : i32
    %c0_i32_0 = arith.constant 0 : i32
    %c0_i32_1 = arith.constant 0 : i32
    return %arg0, %c0_i32, %c0_i32_0 : i32, i32, i32
  }
}

</mosaic_0001>

<bundles_post_ra>
// kernel: window_attention.1
= control target key start
LH: loop header
LB: loop body
LE: loop exit
PB: predicated region body
PF: predicated region fallthrough
CT: control target
= control target key end

     0   :  { %s8263_s21 = smov 0   ;;  %s12065_s0 = inlined_call_operand.vmem [shape: bf16[32,16,128], index: 0, kind: input, shape index: {}]   ;;  %s12066_s1 = inlined_call_operand.vmem [shape: bf16[128,384], index: 1, kind: input, shape index: {}]   ;;  %s12067_s2 = inlined_call_operand.vmem [shape: f32[1,384], index: 2, kind: input, shape index: {}]   ;;  %s12068_s3 = inlined_call_operand.vmem [shape: bf16[128,128], index: 3, kind: input, shape index: {}]   ;;  %s12069_s4 = inlined_call_operand.vmem [shape: f32[1,128], index: 4, kind: input, shape index: {}]   ;;  %s12070_s5 = inlined_call_operand.vmem [shape: f32[4,16,16], index: 5, kind: input, shape index: {}]   ;;  %s12071_s6 = inlined_call_operand.vmem [shape: bf16[32,16,128], index: 6, kind: output, shape index: {}]  }
   0x1 LB: > { %s7104_s22 = sadd.s32 4294967295, %s8223_s21   ;;  %p7108_p0 = scmp.ge.s32.totalorder %s8223_s21, 1  ;;  %s8223_s21 = sphi %s8263_s21, %s16_s21  }
   0x2   : > { %p214_p1 = scmp.lt.s32.totalorder %s8223_s21, 3 }
   0x4   : > { %p215_p2 = pnand %p7108_p0, %p214_p1 }
   0x6   : > { %218 = sbr.rel (%p215_p2) target bundleno = 3794 (0xed2), region = 44 }
   0xb   : > { %v7265_v0 = vld [vmem:[%s12066_s1 + $0xa8] sm:$0xf]  ;;  %v7547_v1 = vld [vmem:[%s12066_s1 + $0xb0] sm:$0xf0]  ;;  %v7273_v2 = vld [vmem:[%s12066_s1 + $0xb0] sm:$0xf] }
   0xc   : > { %v7266_v3 = vor.u32 %v7547_v1, %v7265_v0  ;;  %v7548_v4 = vld [vmem:[%s12066_s1 + $0xb8] sm:$0xf0]  ;;  %v7253_v5 = vld [vmem:[%s12066_s1 + $0x90] sm:$0xf]  ;;  %v7261_v8 = vld [vmem:[%s12066_s1 + $0x98] sm:$0xf] }
   0xd   : > { %v7544_v6 = vld [vmem:[%s12066_s1 + $0x98] sm:$0xf0]  ;;  %v7274_v7 = vor.u32 %v7548_v4, %v7273_v2  ;;  %v7545_v9 = vld [vmem:[%s12066_s1 + $0xa0] sm:$0xf0]  ;;  %v7241_v12 = vld [vmem:[%s12066_s1 + $0x78] sm:$0xf] }
   0xe   : > { %7668 = vmatpush.bf16.msra.mxu1 %v7266_v3  ;;  %v7254_v10 = vor.u32 %v7544_v6, %v7253_v5  ;;  %557 = vmatpush.bf16.msra.mxu0 %v7266_v3  ;;  %v7262_v11 = vor.u32 %v7545_v9, %v7261_v8  ;;  %v7541_v13 = vld [vmem:[%s12066_s1 + $0x80] sm:$0xf0]  ;;  %v7249_v14 = vld [vmem:[%s12066_s1 + $0x80] sm:$0xf]  ;;  %v7542_v15 = vld [vmem:[%s12066_s1 + $0x88] sm:$0xf0] }
   0xf   : > { %735 = vmatpush.bf16.msra.mxu2 %v7274_v7  ;;  %v7242_v16 = vor.u32 %v7541_v13, %v7241_v12  ;;  %v7250_v17 = vor.u32 %v7542_v15, %v7249_v14  ;;  %v7229_v18 = vld [vmem:[%s12066_s1 + $0x60] sm:$0xf]  ;;  %v7538_v19 = vld [vmem:[%s12066_s1 + $0x68] sm:$0xf0]  ;;  %v7237_v20 = vld [vmem:[%s12066_s1 + $0x68] sm:$0xf] }
  0x10   : > { %v7539_v21 = vld [vmem:[%s12066_s1 + $0x70] sm:$0xf0]  ;;  %v7230_v22 = vor.u32 %v7538_v19, %v7229_v18  ;;  %v7217_v24 = vld [vmem:[%s12066_s1 + $0x48] sm:$0xf]  ;;  %v7225_v26 = vld [vmem:[%s12066_s1 + $0x50] sm:$0xf] }
  0x11   : > { %v7238_v23 = vor.u32 %v7539_v21, %v7237_v20  ;;  %v7535_v25 = vld [vmem:[%s12066_s1 + $0x50] sm:$0xf0]  ;;  %v7536_v27 = vld [vmem:[%s12066_s1 + $0x58] sm:$0xf0]  ;;  %s7109_s17 = sshll.u32 %s7104_s22, 4  ;;  %s8225_s15 = smov 64  }
  0x12   : > { %7669 = vmatpush.bf16.msra.mxu1 %v7254_v10  ;;  %558 = vmatpush.bf16.msra.mxu0 %v7254_v10  ;;  %v7218_v28 = vor.u32 %v7535_v25, %v7217_v24  ;;  %v7226_v29 = vor.u32 %v7536_v27, %v7225_v26  ;;  %v7205_v30 = vld [vmem:[%s12066_s1 + $0x30] sm:$0xf]  ;;  %v7532_v31 = vld [vmem:[%s12066_s1 + $0x38] sm:$0xf0]  ;;  %p247_p3 = scmp.lt.s32.totalorder %s7109_s17, 31  ;;  %s8226_s16 = smov 96  }
  0x13   : > { %736 = vmatpush.bf16.msra.mxu2 %v7262_v11  ;;  %v7213_v32 = vld [vmem:[%s12066_s1 + $0x38] sm:$0xf]  ;;  %v7533_v33 = vld [vmem:[%s12066_s1 + $0x40] sm:$0xf0]  ;;  %v7206_v34 = vor.u32 %v7532_v31, %v7205_v30  ;;  %v7201_v38 = vld [vmem:[%s12066_s1 + $0x20] sm:$0xf] }
  0x14   : > { %v7214_v35 = vor.u32 %v7533_v33, %v7213_v32  ;;  %v7193_v36 = vld [vmem:[%s12066_s1 + $0x18] sm:$0xf]  ;;  %v7529_v37 = vld [vmem:[%s12066_s1 + $0x20] sm:$0xf0]  ;;  %s12563_s17 = smov (!%p247_p3, %s7109_s17), 31  ;;  %s8227_s19 = smov 32  }
  0x15   : > { %v7530_v39 = vld [vmem:[%s12066_s1 + $0x28] sm:$0xf0]  ;;  %v7194_v40 = vor.u32 %v7529_v37, %v7193_v36  ;;  %v7181_v41 = vld [vmem:[%s12066_s1] sm:$0xf]  ;;  %v7189_v44 = vld [vmem:[%s12066_s1 + $0x8] sm:$0xf] }
  0x16   : > { %7670 = vmatpush.bf16.msra.mxu1 %v7242_v16  ;;  %559 = vmatpush.bf16.msra.mxu0 %v7242_v16  ;;  %v7202_v42 = vor.u32 %v7530_v39, %v7201_v38  ;;  %v7526_v43 = vld [vmem:[%s12066_s1 + $0x8] sm:$0xf0]  ;;  %s7507_s18 = sshll.u32 %s12563_s17, 3  ;;  %v7527_v45 = vld [vmem:[%s12066_s1 + $0x10] sm:$0xf0]  ;;  %vm900_vm0 = vcmask 261120  }
  0x17   : > { %737 = vmatpush.bf16.msra.mxu2 %v7250_v17  ;;  %v7546_v46 = vld [vmem:[%s12066_s1 + $0xac] sm:$0xf]  ;;  %v7267_v47 = vld [vmem:[%s12066_s1 + $0xb4] sm:$0xf0]  ;;  %v7182_v48 = vor.u32 %v7526_v43, %v7181_v41  ;;  %s8383_s28 = scalar_lea.vmem %s12065_s0, %s7507_s18  ;;  %v7190_v49 = vor.u32 %v7527_v45, %v7189_v44  ;;  %v7543_v51 = vld [vmem:[%s12066_s1 + $0x94] sm:$0xf]  ;;  %s12009_s14 = scalar_lea.vmem %s12071_s6, %s7507_s18 }
  0x18   : > { %v7270_v50 = vor.u32 %v7546_v46, %v7267_v47  ;;  %v7255_v52 = vld [vmem:[%s12066_s1 + $0x9c] sm:$0xf0]  ;;  %v8392_v53 = vld [vmem:[%s8383_s28 + $0x68] sm:$0xff]  ;;  %v7540_v56 = vld [vmem:[%s12066_s1 + $0x7c] sm:$0xf]  ;;  %vm1371_vm1 = vcmask 130048  }
  0x19   : > { %v7509_v54 = vld [vmem:[%s8383_s28] sm:$0xff]  ;;  %v7258_v55 = vor.u32 %v7543_v51, %v7255_v52  ;;  %v7243_v57 = vld [vmem:[%s12066_s1 + $0x84] sm:$0xf0]  ;;  %v7231_v60 = vld [vmem:[%s12066_s1 + $0x6c] sm:$0xf0]  ;;  %vm2236_vm2 = vcmask 257024  }
  0x1a   : > { %7671 = vmatpush.bf16.msra.mxu1 %v7230_v22  ;;  %560 = vmatpush.bf16.msra.mxu0 %v7230_v22  ;;  %v7246_v58 = vor.u32 %v7540_v56, %v7243_v57  ;;  %v7537_v59 = vld [vmem:[%s12066_s1 + $0x64] sm:$0xf]  ;;  %v7534_v62 = vld [vmem:[%s12066_s1 + $0x4c] sm:$0xf]  ;;  %v7219_v63 = vld [vmem:[%s12066_s1 + $0x54] sm:$0xf0] }
  0x1b   : > { %738 = vmatpush.bf16.msra.mxu2 %v7238_v23  ;;  %v7234_v61 = vor.u32 %v7537_v59, %v7231_v60  ;;  %v7222_v0 = vor.u32 %v7534_v62, %v7219_v63  ;;  %v7531_v1 = vld [vmem:[%s12066_s1 + $0x34] sm:$0xf]  ;;  %v7207_v2 = vld [vmem:[%s12066_s1 + $0x3c] sm:$0xf0]  ;;  %v7510_v4 = vld [vmem:[%s8383_s28 + $0x8] sm:$0xff]  ;;  %vm3712_vm3 = vcmask 519424  }
  0x1c   : > { %v8421_v3 = vld [vmem:[%s8383_s28 + $0x70] sm:$0xff]  ;;  %v7210_v5 = vor.u32 %v7531_v1, %v7207_v2  ;;  %v7528_v6 = vld [vmem:[%s12066_s1 + $0x1c] sm:$0xf]  ;;  %v7195_v7 = vld [vmem:[%s12066_s1 + $0x24] sm:$0xf0]  ;;  %vm5188_vm4 = vcmask 781824  }
  0x1d   : > { %v7198_v8 = vor.u32 %v7528_v6, %v7195_v7  ;;  %v7525_v9 = vld [vmem:[%s12066_s1 + $0x4] sm:$0xf]  ;;  %v7183_v10 = vld [vmem:[%s12066_s1 + $0xc] sm:$0xf0]  ;;  %v8438_v12 = vld [vmem:[%s8383_s28 + $0x78] sm:$0xff]  ;;  %vm6664_vm5 = vcmask 1044224  }
  0x1e   : > { %7672 = vmatpush.bf16.msra.mxu1 %v7218_v28  ;;  %561 = vmatpush.bf16.msra.mxu0 %v7218_v28  ;;  %v7186_v11 = vor.u32 %v7525_v9, %v7183_v10  ;;  %v7511_v13 = vld [vmem:[%s8383_s28 + $0x10] sm:$0xff]  ;;  %v7512_v14 = vld [vmem:[%s8383_s28 + $0x18] sm:$0xff]  ;;  %v7513_v15 = vld [vmem:[%s8383_s28 + $0x20] sm:$0xff] }
  0x1f   : > { %739 = vmatpush.bf16.msra.mxu2 %v7226_v29  ;;  %v7514_v16 = vld [vmem:[%s8383_s28 + $0x28] sm:$0xff]  ;;  %v7515_v17 = vld [vmem:[%s8383_s28 + $0x30] sm:$0xff]  ;;  %v7516_v18 = vld [vmem:[%s8383_s28 + $0x38] sm:$0xff] }
  0x20   : > { %v7517_v20 = vld [vmem:[%s8383_s28 + $0x40] sm:$0xff]  ;;  %v8462_v33 = vld [vmem:[%s8383_s28 + $0x48] sm:$0xff] }
  0x21   : > { %v325_v21 = vld [vmem:[%s12067_s2] sm:$0x7] }
  0x22   : > { %7673 = vmatpush.bf16.msra.mxu1 %v7206_v34  ;;  %562 = vmatpush.bf16.msra.mxu0 %v7206_v34  ;;  %v8453_v22 = vperm.slane %v325_v21, 2 }
  0x23   : > { %740 = vmatpush.bf16.msra.mxu2 %v7214_v35 }
  0x26   : > { %7674 = vmatpush.bf16.msra.mxu1 %v7194_v40  ;;  %563 = vmatpush.bf16.msra.mxu0 %v7194_v40 }
  0x27   : > { %741 = vmatpush.bf16.msra.mxu2 %v7202_v42 }
  0x2a   : > { %7675 = vmatpush.bf16.msra.mxu1 %v7182_v48  ;;  %564 = vmatpush.bf16.msra.mxu0 %v7182_v48 }
  0x2b   : > { %742 = vmatpush.bf16.msra.mxu2 %v7190_v49 }
  0x2d   : > { %630 = vmatmul.bf16.vlgmr.msra.gmra.mxu1 %v8392_v53  ;;  %565 = vmatmul.bf16.vlgmr.msra.gmra.mxu0 %v7509_v54 }
  0x2e   : > { %646 = vmatpush.bf16.msrb.mxu1 %v7270_v50  ;;  %743 = vmatmul.bf16.vlgmr.msra.gmra.mxu2 %v7509_v54 }
  0x32   : > { %647 = vmatpush.bf16.msrb.mxu1 %v7258_v55  ;;  %v8491_v55 = vperm.slane %v325_v21, 1 }
  0x36   : > { %648 = vmatpush.bf16.msrb.mxu1 %v7246_v58 }
  0x3a   : > { %649 = vmatpush.bf16.msrb.mxu1 %v7234_v61  ;;  %v8496_v61 = vld [vmem:[%s8383_s28 + $0x50] sm:$0xff] }
  0x3d   : > { %635 = vmatmul.bf16.gmra.mxu1 %v8421_v3  ;;  %570 = vmatmul.bf16.gmra.mxu0 %v7510_v4 }
  0x3e   : > { %650 = vmatpush.bf16.msrb.mxu1 %v7222_v0  ;;  %748 = vmatmul.bf16.gmra.mxu2 %v7510_v4 }
  0x42   : > { %651 = vmatpush.bf16.msrb.mxu1 %v7210_v5 }
  0x46   : > { %652 = vmatpush.bf16.msrb.mxu1 %v7198_v8 }
  0x4a   : > { %653 = vmatpush.bf16.msrb.mxu1 %v7186_v11 }
  0x4d   : > { %640 = vmatmul.bf16.gmra.mxu1 %v8438_v12  ;;  %575 = vmatmul.bf16.gmra.mxu0 %v7511_v13 }
  0x4e   : > { %753 = vmatmul.bf16.gmra.mxu2 %v7511_v13 }
  0x5d   : > { %654 = vmatmul.bf16.vlgmr.msrb.gmra.mxu1 %v7509_v54  ;;  %580 = vmatmul.bf16.gmra.mxu0 %v7512_v14  ;;  %v8489_v54 = vperm.slane %v325_v21, 0 }
  0x5e   : > { %758 = vmatmul.bf16.gmra.mxu2 %v7512_v14 }
  0x6d   : > { %659 = vmatmul.bf16.gmra.mxu1 %v7510_v4  ;;  %585 = vmatmul.bf16.gmra.mxu0 %v7513_v15 }
  0x6e   : > { %763 = vmatmul.bf16.gmra.mxu2 %v7513_v15 }
  0x7d   : > { %664 = vmatmul.bf16.gmra.mxu1 %v7511_v13  ;;  %590 = vmatmul.bf16.gmra.mxu0 %v7514_v16 }
  0x7e   : > { %768 = vmatmul.bf16.gmra.mxu2 %v7514_v16 }
  0x8d   : > { %669 = vmatmul.bf16.gmra.mxu1 %v7512_v14  ;;  %595 = vmatmul.bf16.gmra.mxu0 %v7515_v17 }
  0x8e   : > { %773 = vmatmul.bf16.gmra.mxu2 %v7515_v17 }
  0x9d   : > { %674 = vmatmul.bf16.gmra.mxu1 %v7513_v15  ;;  %600 = vmatmul.bf16.gmra.mxu0 %v7516_v18 }
  0x9e   : > { %778 = vmatmul.bf16.gmra.mxu2 %v7516_v18 }
  0xaa   : > { %v8447_v19 = vpop.f32.mrf.mxu1  ;;  %v566_v28 = vpop.f32.mrf.mxu0 }
  0xab   : > { %v567_v57 = vadd.f32 %v566_v28, %v8489_v54  ;;  %v8524_v28 = vld [vmem:[%s8383_s28 + $0x58] sm:$0xff] }
  0xad   : > { %679 = vmatmul.bf16.gmra.mxu1 %v7514_v16  ;;  %605 = vmatmul.bf16.gmra.mxu0 %v7517_v20 }
  0xae   : > { %783 = vmatmul.bf16.gmra.mxu2 %v7517_v20 }
  0xb1   : > { %v744_v23 = vpop.f32.mrf.mxu2 }
  0xb2   : > { %v8455_v24 = vpop.f32.mrf.mxu1  ;;  %v745_v25 = vadd.f32 %v744_v23, %v8453_v22  ;;  %v568_v38 = vpop.f32.mrf.mxu0 }
  0xb3   : > { %v569_v8 = vadd.f32 %v568_v38, %v8489_v54 }
  0xb4   : > { %v825_v26 = vpack.c.bf16 %v745_v25, %v745_v25 }
  0xb6   : > { %v1763_v31 = vunpack.c.l.b16 %v825_v26 }
  0xb9   : > { %v746_v27 = vpop.f32.mrf.mxu2 }
  0xba   : > { %v747_v29 = vadd.f32 %v746_v27, %v8453_v22  ;;  %v8459_v30 = vpop.f32.mrf.mxu1  ;;  %v571_v44 = vpop.f32.mrf.mxu0 }
  0xbc   : > { %v827_v32 = vpack.c.bf16 %v747_v29, %v747_v29  ;;  %v572_v29 = vadd.f32 %v571_v44, %v8489_v54 }
  0xbd   : > { %684 = vmatmul.bf16.gmra.mxu1 %v7515_v17  ;;  %610 = vmatmul.bf16.gmra.mxu0 %v8462_v33 }
  0xbe   : > { %v1764_v34 = vunpack.c.l.b16 %v827_v32  ;;  %788 = vmatmul.bf16.gmra.mxu2 %v8462_v33 }
  0xc0   : > { %v8466_v35 = vpack.c.b16 %v1764_v34, %v1763_v31 }
  0xc1   : > { %v749_v36 = vpop.f32.mrf.mxu2 }
  0xc2   : > { %12120 = vst [vmem:[#allocation3_spill] sm:$0xff] %v8466_v35  ;;  %v8468_v37 = vpop.f32.mrf.mxu1  ;;  %4633 = vrot.lane.b32.xlu2 %v8466_v35, %s8225_s15  ;;  %3157 = vrot.lane.b32.xlu1 %v8466_v35, %s8226_s16  ;;  %v750_v39 = vadd.f32 %v749_v36, %v8453_v22  ;;  %v8486_v51 = vpop.f32.mrf.mxu0 }
  0xc4   : > { %v829_v40 = vpack.c.bf16 %v750_v39, %v750_v39 }
  0xc6   : > { %v1791_v45 = vunpack.c.l.b16 %v829_v40 }
  0xc9   : > { %v751_v41 = vpop.f32.mrf.mxu2 }
  0xca   : > { %v752_v42 = vadd.f32 %v751_v41, %v8453_v22  ;;  %v8476_v43 = vpop.f32.mrf.mxu1  ;;  %v8499_v63 = vpop.f32.mrf.mxu0 }
  0xcc   : > { %v831_v46 = vpack.c.bf16 %v752_v42, %v752_v42 }
  0xcd   : > { %689 = vmatmul.bf16.gmra.mxu1 %v7516_v18  ;;  %615 = vmatmul.bf16.gmra.mxu0 %v8496_v61 }
  0xce   : > { %v1792_v47 = vunpack.c.l.b16 %v831_v46  ;;  %793 = vmatmul.bf16.gmra.mxu2 %v8496_v61 }
  0xd0   : > { %v8478_v48 = vpack.c.b16 %v1792_v47, %v1791_v45  ;;  %v574_v45 = vadd.f32 %v8486_v51, %v8489_v54 }
  0xd1   : > { %v754_v49 = vpop.f32.mrf.mxu2 }
  0xd2   : > { %12121 = vst [vmem:[#allocation4_spill] sm:$0xff] %v8478_v48  ;;  %v8480_v50 = vpop.f32.mrf.mxu1  ;;  %3182 = vrot.lane.b32.xlu0 %v8478_v48, %s8226_s16  ;;  %4658 = vrot.lane.b32.xlu1 %v8478_v48, %s8225_s15  ;;  %v755_v52 = vadd.f32 %v754_v49, %v8453_v22  ;;  %v8510_v10 = vpop.f32.mrf.mxu0 }
  0xd4   : > { %v833_v56 = vpack.c.bf16 %v755_v52, %v755_v52 }
  0xd6   : > { %v1819_v0 = vunpack.c.l.b16 %v833_v56 }
  0xd9   : > { %v756_v58 = vpop.f32.mrf.mxu2 }
  0xda   : > { %v757_v59 = vadd.f32 %v756_v58, %v8453_v22  ;;  %v655_v60 = vpop.f32.mrf.mxu1  ;;  %v8530_v34 = vpop.f32.mrf.mxu0 }
  0xdb   : > { %v656_v62 = vadd.f32 %v655_v60, %v8491_v55 }
  0xdc   : > { %v835_v1 = vpack.c.bf16 %v757_v59, %v757_v59 }
  0xdd   : > { %v824_v2 = vpack.c.bf16 %v656_v62, %v567_v57  ;;  %694 = vmatmul.bf16.gmra.mxu1 %v7517_v20  ;;  %620 = vmatmul.bf16.gmra.mxu0 %v8524_v28 }
  0xde   : > { %v1820_v4 = vunpack.c.l.b16 %v835_v1  ;;  %798 = vmatmul.bf16.gmra.mxu2 %v8524_v28  ;;  %v577_v1 = vadd.f32 %v8499_v63, %v8489_v54 }
  0xdf   : > { %3748 = vrot.lane.b32.xlu2 %v824_v2, %s8225_s15  ;;  %2272 = vrot.lane.b32.xlu1 %v824_v2, %s8226_s16  ;;  %v892_v14 = vrot.slane %v824_v2, 4  ;;  %v894_v15 = vunpack.c.l.b16 %v824_v2 }
  0xe0   : > { %v8505_v5 = vpack.c.b16 %v1820_v4, %v1819_v0 }
  0xe1   : > { %v759_v6 = vpop.f32.mrf.mxu2  ;;  %v897_v23 = vunpack.c.l.b16 %v892_v14 }
  0xe2   : > { %12122 = vst [vmem:[#allocation5_spill] sm:$0xff] %v8505_v5  ;;  %v657_v7 = vpop.f32.mrf.mxu1  ;;  %1833 = vmatpush.bf16.msra.mxu1 %v8505_v5  ;;  %v760_v11 = vadd.f32 %v759_v6, %v8453_v22  ;;  %v8549_v49 = vpop.f32.mrf.mxu0 }
  0xe3   : > { %v658_v9 = vadd.f32 %v657_v7, %v8491_v55 }
  0xe4   : > { %v837_v18 = vpack.c.bf16 %v760_v11, %v760_v11 }
  0xe5   : > { %v8513_v13 = vpack.c.bf16 %v658_v9, %v569_v8  ;;  %v8570_v9 = vld [vmem:[%s8383_s28 + $0x60] sm:$0xff] }
  0xe6   : > { %v1847_v36 = vunpack.c.l.b16 %v837_v18 }
  0xe7   : > { %3750 = vrot.lane.b32.xlu0 %v8513_v13, %s8225_s15  ;;  %5224 = vrot.lane.b32.xlu2 %v824_v2, %s8227_s19  ;;  %v895_v16 = vunpack.c.l.b16 %v8513_v13  ;;  %v893_v17 = vrot.slane %v8513_v13, 4 }
  0xe9   : > { %v761_v20 = vpop.f32.mrf.mxu2  ;;  %v8520_v21 = vpack.c.b16 %v895_v16, %v894_v15  ;;  %v898_v25 = vunpack.c.l.b16 %v893_v17 }
  0xea   : > { %v762_v26 = vadd.f32 %v761_v20, %v8453_v22  ;;  %v660_v27 = vpop.f32.mrf.mxu1  ;;  %v8567_v6 = vpop.f32.mrf.mxu0 }
  0xeb   : > { %v661_v31 = vadd.f32 %v660_v27, %v8491_v55  ;;  %3754 = vrot.lane.b32.xlu1 %v8520_v21, %s8225_s15  ;;  %v899_v32 = vpack.c.b16 %v898_v25, %v897_v23 }
  0xec   : > { %v839_v38 = vpack.c.bf16 %v762_v26, %v762_v26 }
  0xed   : > { %699 = vmatmul.bf16.gmra.mxu1 %v8462_v33  ;;  %v905_v39 = vsel %vm900_vm0, %v899_v32, 0  ;;  %v8536_v41 = vpack.c.bf16 %v661_v31, %v572_v29  ;;  %625 = vmatmul.bf16.gmra.mxu0 %v8570_v9 }
  0xee   : > { %v1848_v40 = vunpack.c.l.b16 %v839_v38  ;;  %914 = vmatpush.bf16.xpose.msra.mxu3 %v905_v39  ;;  %803 = vmatmul.bf16.gmra.mxu2 %v8570_v9 }
  0xef   : > { %5226 = vrot.lane.b32.xlu0 %v8513_v13, %s8227_s19  ;;  %3207 = vrot.lane.b32.xlu2 %v8505_v5, %s8226_s16  ;;  %v923_v47 = vrot.slane %v8536_v41, 4  ;;  %v925_v14 = vunpack.c.l.b16 %v8536_v41 }
  0xf0   : > { %v8542_v42 = vpack.c.b16 %v1848_v40, %v1847_v36  ;;  %v582_v40 = vadd.f32 %v8530_v34, %v8489_v54 }
  0xf1   : > { %v764_v44 = vpop.f32.mrf.mxu2  ;;  %v928_v57 = vunpack.c.l.b16 %v923_v47 }
  0xf2   : > { %12123 = vst [vmem:[#allocation6_spill] sm:$0xff] %v8542_v42  ;;  %v662_v46 = vpop.f32.mrf.mxu1  ;;  %1861 = vmatpush.bf16.msrb.mxu1 %v8542_v42  ;;  %v765_v52 = vadd.f32 %v764_v44, %v8453_v22  ;;  %v8595_v26 = vpop.f32.mrf.mxu0 }
  0xf3   : > { %v663_v33 = vadd.f32 %v662_v46, %v8491_v55 }
  0xf4   : > { %v841_v58 = vpack.c.bf16 %v765_v52, %v765_v52 }
  0xf5   : > { %v8552_v56 = vpack.c.bf16 %v663_v33, %v574_v45  ;;  %7275 = vmatmul.msk.bf16.vlgmr.msra.gmra.mxu3 %vm900_vm0, %v8520_v21 }
  0xf6   : > { %v1875_v7 = vunpack.c.l.b16 %v841_v58 }
  0xf7   : > { %4683 = vrot.lane.b32.xlu2 %v8505_v5, %s8225_s15  ;;  %2305 = vrot.lane.b32.xlu1 %v8552_v56, %s8226_s16  ;;  %v924_v51 = vrot.slane %v8552_v56, 4  ;;  %v926_v15 = vunpack.c.l.b16 %v8552_v56 }
  0xf8   : > { %2278 = vrot.lane.b32.xlu0 %v8520_v21, %s8226_s16 }
  0xf9   : > { %v766_v59 = vpop.f32.mrf.mxu2  ;;  %v929_v60 = vunpack.c.l.b16 %v924_v51  ;;  %v8588_v18 = vpack.c.b16 %v926_v15, %v925_v14 }
  0xfa   : > { %v767_v62 = vadd.f32 %v766_v59, %v8453_v22  ;;  %v665_v0 = vpop.f32.mrf.mxu1  ;;  %v8613_v46 = vpop.f32.mrf.mxu0 }
  0xfb   : > { %v666_v2 = vadd.f32 %v665_v0, %v8491_v55  ;;  %v930_v4 = vpack.c.b16 %v929_v60, %v928_v57 }
  0xfc   : > { %v843_v8 = vpack.c.bf16 %v767_v62, %v767_v62 }
  0xfd   : > { %704 = vmatmul.bf16.gmra.mxu1 %v8496_v61  ;;  %v935_v11 = vsel %vm900_vm0, %v930_v4, 0  ;;  %v8577_v63 = vpack.c.bf16 %v666_v2, %v577_v1  ;;  %v579_v61 = vadd.f32 %v8510_v10, %v8489_v54 }
  0xfe   : > { %v1876_v16 = vunpack.c.l.b16 %v843_v8  ;;  %944 = vmatpush.bf16.xpose.msrb.mxu3 %v935_v11  ;;  %808 = vmatmul.bf16.gmra.mxu2 %v8392_v53 }
  0xff   : > { %12124 = vst [vmem:[#allocation7_spill] sm:$0xff] %v8577_v63  ;;  %2274 = vrot.lane.b32.xlu2 %v8513_v13, %s8226_s16  ;;  %v953_v25 = vrot.slane %v8577_v63, 4  ;;  %v955_v47 = vunpack.c.l.b16 %v8577_v63 }
 0x100   : > { %v8582_v17 = vpack.c.b16 %v1876_v16, %v1875_v7  ;;  %3232 = vrot.lane.b32.xlu0 %v8542_v42, %s8226_s16 }
 0x101   : > { %v769_v20 = vpop.f32.mrf.mxu2  ;;  %v958_v29 = vunpack.c.l.b16 %v953_v25 }
 0x102   : > { %12125 = vst [vmem:[#allocation8_spill] sm:$0xff] %v8582_v17  ;;  %3257 = vrot.lane.b32.xlu1 %v8582_v17, %s8226_s16  ;;  %v667_v23 = vpop.f32.mrf.mxu1  ;;  %1889 = vmatpush.bf16.msrb.mxu2 %v8582_v17  ;;  %v770_v36 = vadd.f32 %v769_v20, %v8453_v22  ;;  %v8634_v4 = vpop.f32.mrf.mxu0 }
 0x103   : > { %v668_v13 = vadd.f32 %v667_v23, %v8491_v55 }
 0x104   : > { %v845_v51 = vpack.c.bf16 %v770_v36, %v770_v36 }
 0x105   : > { %v8597_v27 = vpack.c.bf16 %v668_v13, %v579_v61  ;;  %7276 = vmatmul.msk.bf16.vlgmr.msrb.gmra.mxu3 %vm900_vm0, %v8588_v18  ;;  %v587_v13 = vadd.f32 %v8567_v6, %v8489_v54 }
 0x106   : > { %v1903_v60 = vunpack.c.l.b16 %v845_v51 }
 0x107   : > { %2303 = vrot.lane.b32.xlu2 %v8536_v41, %s8226_s16  ;;  %v954_v10 = vrot.slane %v8597_v27, 4  ;;  %v956_v52 = vunpack.c.l.b16 %v8597_v27 }
 0x108   : > { %3781 = vrot.lane.b32.xlu0 %v8552_v56, %s8225_s15 }
 0x109   : > { %v959_v31 = vunpack.c.l.b16 %v954_v10  ;;  %v771_v32 = vpop.f32.mrf.mxu2  ;;  %v8628_v34 = vpack.c.b16 %v956_v52, %v955_v47 }
 0x10a   : > { %2336 = vrot.lane.b32.xlu1 %v8597_v27, %s8226_s16  ;;  %v670_v38 = vpop.f32.mrf.mxu1  ;;  %v772_v39 = vadd.f32 %v771_v32, %v8453_v22  ;;  %v8654_v32 = vpop.f32.mrf.mxu0 }
 0x10b   : > { %v671_v44 = vadd.f32 %v670_v38, %v8491_v55  ;;  %v960_v45 = vpack.c.b16 %v959_v31, %v958_v29  ;;  %12126 = vst [vmem:[#allocation9_spill] sm:$0xff] %v8628_v34 }
 0x10c   : > { %v847_v57 = vpack.c.bf16 %v772_v39, %v772_v39 }
 0x10d   : > { %709 = vmatmul.bf16.gmra.mxu1 %v8524_v28  ;;  %v965_v33 = vsel %vm900_vm0, %v960_v45, 0  ;;  %v8619_v58 = vpack.c.bf16 %v671_v44, %v582_v40  ;;  %v584_v28 = vadd.f32 %v8549_v49, %v8489_v54 }
 0x10e   : > { %974 = vmatpush.bf16.xpose.msra.mxu3 %v965_v33  ;;  %v1904_v62 = vunpack.c.l.b16 %v847_v57  ;;  %813 = vmatmul.bf16.gmra.mxu2 %v8421_v3 }
 0x10f   : > { %3779 = vrot.lane.b32.xlu2 %v8536_v41, %s8225_s15  ;;  %v983_v2 = vrot.slane %v8619_v58, 4  ;;  %v985_v38 = vunpack.c.l.b16 %v8619_v58 }
 0x110   : > { %2309 = vrot.lane.b32.xlu0 %v8588_v18, %s8226_s16  ;;  %v8641_v49 = vpack.c.b16 %v1904_v62, %v1903_v60 }
 0x111   : > { %v774_v59 = vpop.f32.mrf.mxu2  ;;  %v988_v14 = vunpack.c.l.b16 %v983_v2 }
 0x112   : > { %3812 = vrot.lane.b32.xlu1 %v8597_v27, %s8225_s15  ;;  %v672_v0 = vpop.f32.mrf.mxu1  ;;  %v775_v7 = vadd.f32 %v774_v59, %v8453_v22 }
 0x113   : > { %v673_v1 = vadd.f32 %v672_v0, %v8491_v55 }
 0x114   : > { %v849_v15 = vpack.c.bf16 %v775_v7, %v775_v7 }
 0x115   : > { %v8637_v8 = vpack.c.bf16 %v673_v1, %v584_v28  ;;  %7277 = vmatmul.msk.bf16.vlgmr.msra.gmra.mxu3 %vm900_vm0, %v8628_v34  ;;  %v592_v1 = vadd.f32 %v8613_v46, %v8489_v54 }
 0x116   : > { %v1931_v29 = vunpack.c.l.b16 %v849_v15 }
 0x117   : > { %4708 = vrot.lane.b32.xlu2 %v8542_v42, %s8225_s15  ;;  %v984_v11 = vrot.slane %v8637_v8, 4  ;;  %v986_v39 = vunpack.c.l.b16 %v8637_v8 }
 0x118   : > { %3785 = vrot.lane.b32.xlu0 %v8588_v18, %s8225_s15 }
 0x119   : > { %v989_v16 = vunpack.c.l.b16 %v984_v11  ;;  %v776_v61 = vpop.f32.mrf.mxu2  ;;  %v8671_v45 = vpack.c.b16 %v986_v39, %v985_v38 }
 0x11a   : > { %4758 = vrot.lane.b32.xlu1 %v8641_v49, %s8225_s15  ;;  %v675_v20 = vpop.f32.mrf.mxu1  ;;  %v777_v23 = vadd.f32 %v776_v61, %v8453_v22 }
 0x11b   : > { %v676_v25 = vadd.f32 %v675_v20, %v8491_v55  ;;  %v990_v10 = vpack.c.b16 %v989_v16, %v988_v14 }
 0x11c   : > { %v851_v31 = vpack.c.bf16 %v777_v23, %v777_v23 }
 0x11d   : > { %714 = vmatmul.bf16.gmra.mxu1 %v8570_v9  ;;  %v995_v36 = vsel %vm900_vm0, %v990_v10, 0  ;;  %v8660_v44 = vpack.c.bf16 %v676_v25, %v587_v13  ;;  %v589_v9 = vadd.f32 %v8595_v26, %v8489_v54  ;;  %v598_v26 = vpop.f32.mrf.mxu0 }
 0x11e   : > { %1004 = vmatpush.bf16.xpose.msrb.mxu3 %v995_v36  ;;  %v1932_v40 = vunpack.c.l.b16 %v851_v31  ;;  %818 = vmatmul.bf16.gmra.mxu2 %v8438_v12 }
 0x11f   : > { %2334 = vrot.lane.b32.xlu2 %v8577_v63, %s8226_s16  ;;  %v1013_v51 = vrot.slane %v8660_v44, 4  ;;  %v1015_v14 = vunpack.c.l.b16 %v8660_v44 }
 0x120   : > { %3810 = vrot.lane.b32.xlu0 %v8577_v63, %s8225_s15  ;;  %v8667_v6 = vpack.c.b16 %v1932_v40, %v1931_v29 }
 0x121   : > { %v8673_v33 = vpop.f32.mrf.mxu2  ;;  %v1018_v59 = vunpack.c.l.b16 %v1013_v51 }
 0x122   : > { %12127 = vst [vmem:[#allocation10_spill] sm:$0xff] %v8667_v6  ;;  %2367 = vrot.lane.b32.xlu1 %v8637_v8, %s8226_s16  ;;  %v677_v47 = vpop.f32.mrf.mxu1  ;;  %1945 = vmatpush.bf16.msrb.mxu0 %v8667_v6 }
 0x123   : > { %v678_v52 = vadd.f32 %v677_v47, %v8491_v55 }
 0x125   : > { %v8680_v57 = vpack.c.bf16 %v678_v52, %v589_v9  ;;  %7278 = vmatmul.msk.bf16.vlgmr.msrb.gmra.mxu3 %vm900_vm0, %v8671_v45  ;;  %v601_v46 = vpop.f32.mrf.mxu0  ;;  %v597_v52 = vadd.f32 %v8654_v32, %v8489_v54 }
 0x127   : > { %2365 = vrot.lane.b32.xlu2 %v8619_v58, %s8226_s16  ;;  %v1014_v28 = vrot.slane %v8680_v57, 4  ;;  %v1016_v15 = vunpack.c.l.b16 %v8680_v57 }
 0x128   : > { %4733 = vrot.lane.b32.xlu0 %v8582_v17, %s8225_s15 }
 0x129   : > { %v1019_v60 = vunpack.c.l.b16 %v1014_v28  ;;  %v781_v62 = vpop.f32.mrf.mxu2  ;;  %v8707_v61 = vpack.c.b16 %v1016_v15, %v1015_v14 }
 0x12a   : > { %3843 = vrot.lane.b32.xlu1 %v8637_v8, %s8225_s15  ;;  %v680_v0 = vpop.f32.mrf.mxu1 }
 0x12b   : > { %v681_v2 = vadd.f32 %v680_v0, %v8491_v55  ;;  %v1020_v7 = vpack.c.b16 %v1019_v60, %v1018_v59 }
 0x12d   : > { %719 = vmatmul.bf16.gmra.mxu1 %v8392_v53  ;;  %v1025_v11 = vsel %vm900_vm0, %v1020_v7, 0  ;;  %v8698_v16 = vpack.c.bf16 %v681_v2, %v592_v1  ;;  %v594_v53 = vadd.f32 %v8634_v4, %v8489_v54  ;;  %v603_v9 = vpop.f32.mrf.mxu0 }
 0x12e   : > { %1034 = vmatpush.bf16.xpose.msra.mxu3 %v1025_v11 }
 0x12f   : > { %12128 = vst [vmem:[#allocation11_spill] sm:$0xff] %v8698_v16  ;;  %3282 = vrot.lane.b32.xlu2 %v8641_v49, %s8226_s16  ;;  %v1043_v25 = vrot.slane %v8698_v16, 4  ;;  %v1045_v1 = vunpack.c.l.b16 %v8698_v16 }
 0x130   : > { %2340 = vrot.lane.b32.xlu0 %v8628_v34, %s8226_s16 }
 0x131   : > { %v784_v20 = vpop.f32.mrf.mxu2  ;;  %v1048_v31 = vunpack.c.l.b16 %v1043_v25 }
 0x132   : > { %3847 = vrot.lane.b32.xlu1 %v8671_v45, %s8225_s15  ;;  %v682_v23 = vpop.f32.mrf.mxu1  ;;  %v785_v10 = vadd.f32 %v784_v20, %v8453_v22 }
 0x133   : > { %v683_v13 = vadd.f32 %v682_v23, %v8491_v55  ;;  %v780_v23 = vadd.f32 %v8673_v33, %v8453_v22 }
 0x134   : > { %v857_v36 = vpack.c.bf16 %v785_v10, %v785_v10 }
 0x135   : > { %v8714_v29 = vpack.c.bf16 %v683_v13, %v594_v53  ;;  %7279 = vmatmul.msk.bf16.vlgmr.msra.gmra.mxu3 %vm900_vm0, %v8707_v61  ;;  %v782_v13 = vadd.f32 %v781_v62, %v8453_v22  ;;  %v606_v25 = vpop.f32.mrf.mxu0 }
 0x136   : > { %v1987_v59 = vunpack.c.l.b16 %v857_v36 }
 0x137   : > { %2396 = vrot.lane.b32.xlu2 %v8660_v44, %s8226_s16  ;;  %v1044_v4 = vrot.slane %v8714_v29, 4  ;;  %v1046_v2 = vunpack.c.l.b16 %v8714_v29  ;;  %v855_v36 = vpack.c.bf16 %v782_v13, %v782_v13 }
 0x138   : > { %3816 = vrot.lane.b32.xlu0 %v8628_v34, %s8225_s15 }
 0x139   : > { %v1049_v38 = vunpack.c.l.b16 %v1044_v4  ;;  %v786_v39 = vpop.f32.mrf.mxu2  ;;  %v8742_v14 = vpack.c.b16 %v1046_v2, %v1045_v1 }
 0x13a   : > { %3872 = vrot.lane.b32.xlu1 %v8660_v44, %s8225_s15  ;;  %v685_v40 = vpop.f32.mrf.mxu1  ;;  %v787_v47 = vadd.f32 %v786_v39, %v8453_v22 }
 0x13b   : > { %v686_v51 = vadd.f32 %v685_v40, %v8491_v55  ;;  %v1050_v28 = vpack.c.b16 %v1049_v38, %v1048_v31  ;;  %12131 = vst [vmem:[#allocation14_spill] sm:$0xff] %v8742_v14  ;;  %v853_v31 = vpack.c.bf16 %v780_v23, %v780_v23  ;;  %v602_v38 = vadd.f32 %v601_v46, %v8489_v54 }
 0x13c   : > { %v859_v60 = vpack.c.bf16 %v787_v47, %v787_v47 }
 0x13d   : > { %724 = vmatmul.bf16.gmra.mxu1 %v8421_v3  ;;  %v1055_v0 = vsel %vm900_vm0, %v1050_v28, 0  ;;  %v8733_v11 = vpack.c.bf16 %v686_v51, %v597_v52  ;;  %v599_v3 = vadd.f32 %v598_v26, %v8489_v54  ;;  %v1959_v47 = vunpack.c.l.b16 %v853_v31 }
 0x13e   : > { %1064 = vmatpush.bf16.xpose.msrb.mxu3 %v1055_v0  ;;  %v1988_v7 = vunpack.c.l.b16 %v859_v60  ;;  %v1960_v52 = vunpack.c.l.b16 %v855_v36  ;;  %v608_v0 = vpop.f32.mrf.mxu0  ;;  %v607_v31 = vadd.f32 %v606_v25, %v8489_v54 }
 0x13f   : > { %12129 = vst [vmem:[#allocation12_spill] sm:$0xff] %v8733_v11  ;;  %3874 = vrot.lane.b32.xlu2 %v8680_v57, %s8225_s15  ;;  %v1073_v20 = vrot.slane %v8733_v11, 4  ;;  %v1075_v28 = vunpack.c.l.b16 %v8733_v11  ;;  %v609_v25 = vadd.f32 %v608_v0, %v8489_v54 }
 0x140   : > { %3841 = vrot.lane.b32.xlu0 %v8619_v58, %s8225_s15  ;;  %v8739_v32 = vpack.c.b16 %v1988_v7, %v1987_v59  ;;  %v8773_v46 = vpack.c.b16 %v1960_v52, %v1959_v47 }
 0x141   : > { %v1078_v4 = vunpack.c.l.b16 %v1073_v20  ;;  %v789_v60 = vpop.f32.mrf.mxu2 }
 0x142   : > { %12130 = vst [vmem:[#allocation13_spill] sm:$0xff] %v8739_v32  ;;  %2398 = vrot.lane.b32.xlu1 %v8680_v57, %s8226_s16  ;;  %v687_v15 = vpop.f32.mrf.mxu1  ;;  %2001 = vmatpush.bf16.msra.mxu2 %v8739_v32 }
 0x143   : > { %v688_v53 = vadd.f32 %v687_v15, %v8491_v55 }
 0x145   : > { %v8752_v10 = vpack.c.bf16 %v688_v53, %v599_v3  ;;  %7280 = vmatmul.msk.bf16.vlgmr.msrb.gmra.mxu3 %vm900_vm0, %v8742_v14 }
 0x146   : > { %v611_v13 = vpop.f32.mrf.mxu0 }
 0x147   : > { %12132 = vst [vmem:[#allocation15_spill] sm:$0xff] %v8752_v10  ;;  %2427 = vrot.lane.b32.xlu2 %v8698_v16, %s8226_s16  ;;  %v1074_v26 = vrot.slane %v8752_v10, 4  ;;  %v1076_v59 = vunpack.c.l.b16 %v8752_v10 }
 0x148   : > { %2371 = vrot.lane.b32.xlu0 %v8671_v45, %s8226_s16 }
 0x149   : > { %v1079_v33 = vunpack.c.l.b16 %v1074_v26  ;;  %v8778_v2 = vpack.c.b16 %v1076_v59, %v1075_v28  ;;  %v791_v23 = vpop.f32.mrf.mxu2 }
 0x14a   : > { %3878 = vrot.lane.b32.xlu1 %v8707_v61, %s8225_s15  ;;  %v690_v62 = vpop.f32.mrf.mxu1  ;;  %v792_v59 = vadd.f32 %v791_v23, %v8453_v22 }
 0x14b   : > { %v691_v39 = vadd.f32 %v690_v62, %v8491_v55  ;;  %v1080_v40 = vpack.c.b16 %v1079_v33, %v1078_v4  ;;  %12133 = vst [vmem:[#allocation16_spill] sm:$0xff] %v8778_v2 }
 0x14d   : > { %729 = vmatmul.bf16.gmra.mxu1 %v8438_v12  ;;  %v1085_v51 = vsel %vm900_vm0, %v1080_v40, 0  ;;  %v8769_v1 = vpack.c.bf16 %v691_v39, %v602_v38  ;;  %v604_v12 = vadd.f32 %v603_v9, %v8489_v54 }
 0x14e   : > { %1094 = vmatpush.bf16.xpose.msra.mxu3 %v1085_v51  ;;  %v790_v51 = vadd.f32 %v789_v60, %v8453_v22  ;;  %v863_v60 = vpack.c.bf16 %v792_v59, %v792_v59 }
 0x14f   : > { %3903 = vrot.lane.b32.xlu2 %v8698_v16, %s8225_s15  ;;  %v1103_v15 = vrot.slane %v8769_v1, 4  ;;  %v1105_v38 = vunpack.c.l.b16 %v8769_v1  ;;  %v9078_v16 = vpop.permute.xlu1 %3157 }
 0x150   : > { %3307 = vrot.lane.b32.xlu0 %v8667_v6, %s8226_s16  ;;  %v861_v0 = vpack.c.bf16 %v790_v51, %v790_v51  ;;  %12157 = vst [vmem:[#allocation40_spill] sm:$0xff] %v9078_v16 }
 0x151   : > { %v1108_v20 = vunpack.c.l.b16 %v1103_v15  ;;  %v794_v47 = vpop.f32.mrf.mxu2 }
 0x152   : > { %3332 = vrot.lane.b32.xlu1 %v8773_v46, %s8226_s16  ;;  %v692_v7 = vpop.f32.mrf.mxu1 }
 0x153   : > { %v693_v3 = vadd.f32 %v692_v7, %v8491_v55  ;;  %v795_v7 = vadd.f32 %v794_v47, %v8453_v22 }
 0x155   : > { %v8784_v53 = vpack.c.bf16 %v693_v3, %v604_v12  ;;  %7281 = vmatmul.msk.bf16.vlgmr.msra.gmra.mxu3 %vm900_vm0, %v8778_v2  ;;  %v613_v12 = vpop.f32.mrf.mxu0 }
 0x157   : > { %12134 = vst [vmem:[#allocation17_spill] sm:$0xff] %v8784_v53  ;;  %3909 = vrot.lane.b32.xlu2 %v8742_v14, %s8225_s15  ;;  %v1104_v9 = vrot.slane %v8784_v53, 4  ;;  %v1106_v39 = vunpack.c.l.b16 %v8784_v53 }
 0x158   : > { %4783 = vrot.lane.b32.xlu0 %v8667_v6, %s8225_s15 }
 0x159   : > { %v1109_v26 = vunpack.c.l.b16 %v1104_v9  ;;  %v8807_v52 = vpack.c.b16 %v1106_v39, %v1105_v38 }
 0x15a   : > { %2429 = vrot.lane.b32.xlu1 %v8714_v29, %s8226_s16  ;;  %v695_v4 = vpop.f32.mrf.mxu1 }
 0x15b   : > { %v696_v36 = vadd.f32 %v695_v4, %v8491_v55  ;;  %v1110_v33 = vpack.c.b16 %v1109_v26, %v1108_v20  ;;  %v865_v20 = vpack.c.bf16 %v795_v7, %v795_v7  ;;  %v796_v4 = vpop.f32.mrf.mxu2 }
 0x15d   : > { %v1115_v62 = vsel %vm900_vm0, %v1110_v33, 0  ;;  %v8800_v40 = vpack.c.bf16 %v696_v36, %v607_v31  ;;  %v797_v31 = vadd.f32 %v796_v4, %v8453_v22  ;;  %v2015_v33 = vunpack.c.l.b16 %v861_v0  ;;  %v616_v59 = vpop.f32.mrf.mxu0 }
 0x15e   : > { %1124 = vmatpush.bf16.xpose.msrb.mxu3 %v1115_v62  ;;  %v2016_v62 = vunpack.c.l.b16 %v863_v60  ;;  %v2043_v39 = vunpack.c.l.b16 %v865_v20 }
 0x15f   : > { %2458 = vrot.lane.b32.xlu2 %v8733_v11, %s8226_s16  ;;  %v1133_v15 = vrot.slane %v8800_v40, 4  ;;  %v867_v47 = vpack.c.bf16 %v797_v31, %v797_v31 }
 0x160   : > { %2402 = vrot.lane.b32.xlu0 %v8707_v61, %s8226_s16  ;;  %v8833_v60 = vpack.c.b16 %v2016_v62, %v2015_v33 }
 0x161   : > { %v1138_v26 = vunpack.c.l.b16 %v1133_v15  ;;  %v2044_v7 = vunpack.c.l.b16 %v867_v47  ;;  %v1135_v15 = vunpack.c.l.b16 %v8800_v40 }
 0x162   : > { %3934 = vrot.lane.b32.xlu1 %v8733_v11, %s8225_s15  ;;  %v697_v28 = vpop.f32.mrf.mxu1 }
 0x163   : > { %v698_v3 = vadd.f32 %v697_v28, %v8491_v55 }
 0x165   : > { %v8816_v9 = vpack.c.bf16 %v698_v3, %v609_v25  ;;  %7282 = vmatmul.msk.bf16.vlgmr.msrb.gmra.mxu3 %vm900_vm0, %v8807_v52  ;;  %v612_v25 = vadd.f32 %v611_v13, %v8489_v54  ;;  %v614_v13 = vadd.f32 %v613_v12, %v8489_v54  ;;  %v618_v62 = vpop.f32.mrf.mxu0 }
 0x167   : > { %12135 = vst [vmem:[#allocation18_spill] sm:$0xff] %v8816_v9  ;;  %3357 = vrot.lane.b32.xlu2 %v8739_v32, %s8226_s16  ;;  %v1134_v23 = vrot.slane %v8816_v9, 4  ;;  %v1136_v0 = vunpack.c.l.b16 %v8816_v9 }
 0x168   : > { %4808 = vrot.lane.b32.xlu0 %v8773_v46, %s8225_s15 }
 0x169   : > { %v1139_v36 = vunpack.c.l.b16 %v1134_v23  ;;  %v8835_v23 = vpack.c.b16 %v2044_v7, %v2043_v39 }
 0x16a   : > { %2460 = vrot.lane.b32.xlu1 %v8752_v10, %s8226_s16  ;;  %v700_v38 = vpop.f32.mrf.mxu1 }
 0x16b   : > { %v701_v51 = vadd.f32 %v700_v38, %v8491_v55  ;;  %v1140_v28 = vpack.c.b16 %v1139_v36, %v1138_v26  ;;  %12136 = vst [vmem:[#allocation19_spill] sm:$0xff] %v8835_v23  ;;  %2057 = vmatpush.bf16.msra.mxu0 %v8835_v23  ;;  %v8845_v26 = vpack.c.b16 %v1136_v0, %v1135_v15 }
 0x16d   : > { %v1145_v3 = vsel %vm900_vm0, %v1140_v28, 0  ;;  %v8837_v20 = vpack.c.bf16 %v701_v51, %v612_v25  ;;  %v617_v25 = vadd.f32 %v616_v59, %v8489_v54  ;;  %v619_v59 = vadd.f32 %v618_v62, %v8489_v54 }
 0x16e   : > { %1154 = vmatpush.bf16.xpose.msra.mxu3 %v1145_v3 }
 0x16f   : > { %12137 = vst [vmem:[#allocation20_spill] sm:$0xff] %v8837_v20  ;;  %3936 = vrot.lane.b32.xlu2 %v8752_v10, %s8225_s15  ;;  %v1163_v36 = vrot.slane %v8837_v20, 4  ;;  %v1165_v3 = vunpack.c.l.b16 %v8837_v20 }
 0x170   : > { %3905 = vrot.lane.b32.xlu0 %v8714_v29, %s8225_s15 }
 0x171   : > { %v1168_v38 = vunpack.c.l.b16 %v1163_v36 }
 0x172   : > { %4858 = vrot.lane.b32.xlu1 %v8833_v60, %s8225_s15  ;;  %v702_v4 = vpop.f32.mrf.mxu1 }
 0x173   : > { %v703_v31 = vadd.f32 %v702_v4, %v8491_v55 }
 0x175   : > { %v8851_v33 = vpack.c.bf16 %v703_v31, %v614_v13  ;;  %7283 = vmatmul.msk.bf16.vlgmr.msra.gmra.mxu3 %vm900_vm0, %v8845_v26  ;;  %v621_v13 = vpop.f32.mrf.mxu0 }
 0x177   : > { %12138 = vst [vmem:[#allocation21_spill] sm:$0xff] %v8851_v33  ;;  %2489 = vrot.lane.b32.xlu2 %v8769_v1, %s8226_s16  ;;  %v1164_v12 = vrot.slane %v8851_v33, 4  ;;  %v1166_v15 = vunpack.c.l.b16 %v8851_v33 }
 0x178   : > { %2433 = vrot.lane.b32.xlu0 %v8742_v14, %s8226_s16 }
 0x179   : > { %v1169_v39 = vunpack.c.l.b16 %v1164_v12  ;;  %v8874_v4 = vpack.c.b16 %v1166_v15, %v1165_v3  ;;  %v799_v12 = vpop.f32.mrf.mxu2 }
 0x17a   : > { %2491 = vrot.lane.b32.xlu1 %v8784_v53, %s8226_s16  ;;  %v705_v47 = vpop.f32.mrf.mxu1 }
 0x17b   : > { %v706_v51 = vadd.f32 %v705_v47, %v8491_v55  ;;  %v1170_v28 = vpack.c.b16 %v1169_v39, %v1168_v38 }
 0x17d   : > { %v1175_v7 = vsel %vm900_vm0, %v1170_v28, 0  ;;  %v8867_v0 = vpack.c.bf16 %v706_v51, %v617_v25  ;;  %v623_v28 = vpop.f32.mrf.mxu0 }
 0x17e   : > { %1184 = vmatpush.bf16.xpose.msrb.mxu3 %v1175_v7  ;;  %v622_v7 = vadd.f32 %v621_v13, %v8489_v54  ;;  %v624_v13 = vadd.f32 %v623_v28, %v8489_v54 }
 0x17f   : > { %12139 = vst [vmem:[#allocation22_spill] sm:$0xff] %v8867_v0  ;;  %3965 = vrot.lane.b32.xlu2 %v8769_v1, %s8225_s15  ;;  %v1193_v38 = vrot.slane %v8867_v0, 4 }
 0x180   : > { %4833 = vrot.lane.b32.xlu0 %v8739_v32, %s8225_s15 }
 0x181   : > { %v1198_v47 = vunpack.c.l.b16 %v1193_v38  ;;  %v801_v38 = vpop.f32.mrf.mxu2 }
 0x182   : > { %3971 = vrot.lane.b32.xlu1 %v8807_v52, %s8225_s15  ;;  %v707_v31 = vpop.f32.mrf.mxu1 }
 0x183   : > { %v708_v36 = vadd.f32 %v707_v31, %v8491_v55  ;;  %v1195_v31 = vunpack.c.l.b16 %v8867_v0 }
 0x185   : > { %v8880_v39 = vpack.c.bf16 %v708_v36, %v619_v59  ;;  %7284 = vmatmul.msk.bf16.vlgmr.msrb.gmra.mxu3 %vm900_vm0, %v8874_v4 }
 0x187   : > { %12140 = vst [vmem:[#allocation23_spill] sm:$0xff] %v8880_v39  ;;  %2520 = vrot.lane.b32.xlu2 %v8800_v40, %s8226_s16  ;;  %v1194_v62 = vrot.slane %v8880_v39, 4  ;;  %v1196_v36 = vunpack.c.l.b16 %v8880_v39 }
 0x188   : > { %2464 = vrot.lane.b32.xlu0 %v8778_v2, %s8226_s16 }
 0x189   : > { %v1199_v25 = vunpack.c.l.b16 %v1194_v62  ;;  %v8903_v62 = vpack.c.b16 %v1196_v36, %v1195_v31  ;;  %v800_v31 = vadd.f32 %v799_v12, %v8453_v22  ;;  %v802_v36 = vadd.f32 %v801_v38, %v8453_v22 }
 0x18a   : > { %3996 = vrot.lane.b32.xlu1 %v8800_v40, %s8225_s15  ;;  %v710_v51 = vpop.f32.mrf.mxu1 }
 0x18b   : > { %v711_v3 = vadd.f32 %v710_v51, %v8491_v55  ;;  %v1200_v15 = vpack.c.b16 %v1199_v25, %v1198_v47  ;;  %12142 = vst [vmem:[#allocation25_spill] sm:$0xff] %v8903_v62  ;;  %v869_v32 = vpack.c.bf16 %v800_v31, %v800_v31  ;;  %v871_v17 = vpack.c.bf16 %v802_v36, %v802_v36 }
 0x18d   : > { %v1205_v59 = vsel %vm900_vm0, %v1200_v15, 0  ;;  %v8896_v5 = vpack.c.bf16 %v711_v3, %v622_v7  ;;  %v626_v7 = vpop.f32.mrf.mxu0  ;;  %v804_v15 = vpop.f32.mrf.mxu2  ;;  %v2072_v31 = vunpack.c.l.b16 %v871_v17 }
 0x18e   : > { %1214 = vmatpush.bf16.xpose.msra.mxu3 %v1205_v59 }
 0x18f   : > { %12141 = vst [vmem:[#allocation24_spill] sm:$0xff] %v8896_v5  ;;  %3998 = vrot.lane.b32.xlu2 %v8816_v9, %s8225_s15  ;;  %v1223_v51 = vrot.slane %v8896_v5, 4  ;;  %v1225_v12 = vunpack.c.l.b16 %v8896_v5 }
 0x190   : > { %3940 = vrot.lane.b32.xlu0 %v8778_v2, %s8225_s15 }
 0x191   : > { %v1228_v59 = vunpack.c.l.b16 %v1223_v51 }
 0x192   : > { %3407 = vrot.lane.b32.xlu1 %v8835_v23, %s8226_s16  ;;  %v712_v47 = vpop.f32.mrf.mxu1 }
 0x193   : > { %v713_v25 = vadd.f32 %v712_v47, %v8491_v55 }
 0x195   : > { %v8909_v3 = vpack.c.bf16 %v713_v25, %v624_v13  ;;  %7285 = vmatmul.msk.bf16.vlgmr.msra.gmra.mxu3 %vm900_vm0, %v8903_v62  ;;  %v627_v25 = vadd.f32 %v626_v7, %v8489_v54  ;;  %v628_v38 = vpop.f32.mrf.mxu0  ;;  %v806_v7 = vpop.f32.mrf.mxu2 }
 0x197   : > { %12143 = vst [vmem:[#allocation26_spill] sm:$0xff] %v8909_v3  ;;  %2551 = vrot.lane.b32.xlu2 %v8837_v20, %s8226_s16  ;;  %v1224_v28 = vrot.slane %v8909_v3, 4  ;;  %v1226_v2 = vunpack.c.l.b16 %v8909_v3 }
 0x198   : > { %3382 = vrot.lane.b32.xlu0 %v8833_v60, %s8226_s16 }
 0x199   : > { %v1229_v47 = vunpack.c.l.b16 %v1224_v28  ;;  %v8927_v28 = vpop.f32.mrf.mxu3  ;;  %v8936_v36 = vpack.c.b16 %v1226_v2, %v1225_v12 }
 0x19a   : > { %2522 = vrot.lane.b32.xlu1 %v8816_v9, %s8226_s16  ;;  %v715_v13 = vpop.f32.mrf.mxu1 }
 0x19b   : > { %v716_v6 = vadd.f32 %v715_v13, %v8491_v55  ;;  %v1230_v42 = vpack.c.b16 %v1229_v47, %v1228_v59  ;;  %v2071_v59 = vunpack.c.l.b16 %v869_v32  ;;  %12144 = vst [vmem:[#allocation27_spill] sm:$0xff] %v8936_v36  ;;  %v805_v47 = vadd.f32 %v804_v15, %v8453_v22 }
 0x19c   : > { %v807_v13 = vadd.f32 %v806_v7, %v8453_v22 }
 0x19d   : > { %v1235_v51 = vsel %vm900_vm0, %v1230_v42, 0  ;;  %v8929_v11 = vpack.c.bf16 %v716_v6, %v627_v25  ;;  %v629_v42 = vadd.f32 %v628_v38, %v8489_v54  ;;  %v873_v17 = vpack.c.bf16 %v805_v47, %v805_v47 }
 0x19e   : > { %1244 = vmatpush.bf16.xpose.msrb.mxu3 %v1235_v51  ;;  %v875_v2 = vpack.c.bf16 %v807_v13, %v807_v13 }
 0x19f   : > { %4027 = vrot.lane.b32.xlu2 %v8837_v20, %s8225_s15  ;;  %v1253_v51 = vrot.slane %v8929_v11, 4  ;;  %v8944_v20 = vpack.c.b16 %v2072_v31, %v2071_v59  ;;  %v2099_v59 = vunpack.c.l.b16 %v873_v17  ;;  %v632_v17 = vadd.f32 %v8447_v19, %v8489_v54 }
 0x1a0   : > { %3967 = vrot.lane.b32.xlu0 %v8784_v53, %s8225_s15  ;;  %v2100_v31 = vunpack.c.l.b16 %v875_v2 }
 0x1a1   : > { %12145 = vst [vmem:[#allocation28_spill] sm:$0xff] %v8944_v20  ;;  %v1258_v12 = vunpack.c.l.b16 %v1253_v51  ;;  %v8955_v38 = vpop.f32.mrf.mxu3 }
 0x1a2   : > { %2553 = vrot.lane.b32.xlu1 %v8851_v33, %s8226_s16  ;;  %v717_v6 = vpop.f32.mrf.mxu1  ;;  %v8963_v53 = vpack.c.b16 %v2100_v31, %v2099_v59 }
 0x1a3   : > { %v718_v25 = vadd.f32 %v717_v6, %v8491_v55  ;;  %v1255_v6 = vunpack.c.l.b16 %v8929_v11 }
 0x1a5   : > { %v8946_v32 = vpack.c.bf16 %v718_v25, %v629_v42  ;;  %7286 = vmatmul.msk.bf16.vlgmr.msrb.gmra.mxu3 %vm900_vm0, %v8936_v36 }
 0x1a7   : > { %12146 = vst [vmem:[#allocation29_spill] sm:$0xff] %v8946_v32  ;;  %3432 = vrot.lane.b32.xlu2 %v8944_v20, %s8226_s16  ;;  %v1254_v15 = vrot.slane %v8946_v32, 4  ;;  %v1256_v13 = vunpack.c.l.b16 %v8946_v32 }
 0x1a8   : > { %2495 = vrot.lane.b32.xlu0 %v8807_v52, %s8226_s16 }
 0x1a9   : > { %v1259_v7 = vunpack.c.l.b16 %v1254_v15  ;;  %v8973_v15 = vpack.c.b16 %v1256_v13, %v1255_v6  ;;  %v946_v59 = vpop.f32.mrf.mxu3 }
 0x1aa   : > { %4033 = vrot.lane.b32.xlu1 %v8874_v4, %s8225_s15  ;;  %v720_v42 = vpop.f32.mrf.mxu1 }
 0x1ab   : > { %v1260_v47 = vpack.c.b16 %v1259_v7, %v1258_v12  ;;  %v721_v25 = vadd.f32 %v720_v42, %v8491_v55  ;;  %12148 = vst [vmem:[#allocation31_spill] sm:$0xff] %v8973_v15  ;;  %v634_v7 = vadd.f32 %v8455_v24, %v8489_v54 }
 0x1ad   : > { %v1265_v51 = vsel %vm900_vm0, %v1260_v47, 0  ;;  %v8971_v2 = vpack.c.bf16 %v721_v25, %v632_v17 }
 0x1ae   : > { %1274 = vmatpush.bf16.xpose.msra.mxu3 %v1265_v51 }
 0x1af   : > { %4908 = vrot.lane.b32.xlu2 %v8944_v20, %s8225_s15  ;;  %12147 = vst [vmem:[#allocation30_spill] sm:$0xff] %v8971_v2  ;;  %v1283_v42 = vrot.slane %v8971_v2, 4 }
 0x1b0   : > { %2526 = vrot.lane.b32.xlu0 %v8845_v26, %s8226_s16 }
 0x1b1   : > { %v1288_v6 = vunpack.c.l.b16 %v1283_v42  ;;  %v8992_v51 = vpop.f32.mrf.mxu3  ;;  %v1285_v42 = vunpack.c.l.b16 %v8971_v2 }
 0x1b2   : > { %4933 = vrot.lane.b32.xlu1 %v8963_v53, %s8225_s15  ;;  %v722_v12 = vpop.f32.mrf.mxu1 }
 0x1b3   : > { %v723_v19 = vadd.f32 %v722_v12, %v8491_v55 }
 0x1b5   : > { %v8980_v31 = vpack.c.bf16 %v723_v19, %v634_v7  ;;  %7287 = vmatmul.msk.bf16.vlgmr.msra.gmra.mxu3 %vm900_vm0, %v8973_v15  ;;  %v637_v7 = vadd.f32 %v8459_v30, %v8489_v54 }
 0x1b7   : > { %12149 = vst [vmem:[#allocation32_spill] sm:$0xff] %v8980_v31  ;;  %2582 = vrot.lane.b32.xlu2 %v8867_v0, %s8226_s16  ;;  %v1284_v47 = vrot.slane %v8980_v31, 4  ;;  %v1286_v19 = vunpack.c.l.b16 %v8980_v31 }
 0x1b8   : > { %4002 = vrot.lane.b32.xlu0 %v8845_v26, %s8225_s15 }
 0x1b9   : > { %v1289_v24 = vunpack.c.l.b16 %v1284_v47 }
 0x1ba   : > { %2584 = vrot.lane.b32.xlu1 %v8880_v39, %s8226_s16  ;;  %v725_v13 = vpop.f32.mrf.mxu1 }
 0x1bb   : > { %v1290_v25 = vpack.c.b16 %v1289_v24, %v1288_v6  ;;  %v726_v17 = vadd.f32 %v725_v13, %v8491_v55  ;;  %v639_v24 = vadd.f32 %v8468_v37, %v8489_v54 }
 0x1bd   : > { %v1295_v12 = vsel %vm900_vm0, %v1290_v25, 0  ;;  %v9004_v47 = vpack.c.bf16 %v726_v17, %v637_v7  ;;  %v9009_v25 = vpack.c.b16 %v1286_v19, %v1285_v42 }
 0x1be   : > { %1304 = vmatpush.bf16.xpose.msrb.mxu3 %v1295_v12 }
 0x1bf   : > { %4058 = vrot.lane.b32.xlu2 %v8867_v0, %s8225_s15  ;;  %12150 = vst [vmem:[#allocation33_spill] sm:$0xff] %v9004_v47  ;;  %v1313_v12 = vrot.slane %v9004_v47, 4  ;;  %v976_v0 = vpop.f32.mrf.mxu3  ;;  %v1315_v34 = vunpack.c.l.b16 %v9004_v47 }
 0x1c0   : > { %4029 = vrot.lane.b32.xlu0 %v8851_v33, %s8225_s15  ;;  %12151 = vst [vmem:[#allocation34_spill] sm:$0xff] %v9009_v25 }
 0x1c1   : > { %v1318_v37 = vunpack.c.l.b16 %v1313_v12 }
 0x1c2   : > { %v727_v6 = vpop.f32.mrf.mxu1 }
 0x1c3   : > { %v728_v13 = vadd.f32 %v727_v6, %v8491_v55 }
 0x1c5   : > { %v9011_v30 = vpack.c.bf16 %v728_v13, %v639_v24  ;;  %7288 = vmatmul.msk.bf16.vlgmr.msrb.gmra.mxu3 %vm900_vm0, %v9009_v25  ;;  %v642_v13 = vadd.f32 %v8476_v43, %v8489_v54 }
 0x1c7   : > { %12152 = vst [vmem:[#allocation35_spill] sm:$0xff] %v9011_v30  ;;  %2613 = vrot.lane.b32.xlu2 %v8896_v5, %s8226_s16  ;;  %v1314_v17 = vrot.slane %v9011_v30, 4  ;;  %v1316_v63 = vunpack.c.l.b16 %v9011_v30  ;;  %v9026_v10 = vpop.f32.mrf.mxu3 }
 0x1c8   : > { %2557 = vrot.lane.b32.xlu0 %v8874_v4, %s8226_s16 }
 0x1c9   : > { %v1319_v7 = vunpack.c.l.b16 %v1314_v17  ;;  %v644_v17 = vadd.f32 %v8480_v50, %v8489_v54  ;;  %v9048_v54 = vld [vmem:[%s12070_s5] sm:$0xff] }
 0x1ca   : > { %v730_v19 = vpop.f32.mrf.mxu1 }
 0x1cb   : > { %v1320_v42 = vpack.c.b16 %v1319_v7, %v1318_v37  ;;  %v731_v6 = vadd.f32 %v730_v19, %v8491_v55  ;;  %v9034_v7 = vpack.c.b16 %v1316_v63, %v1315_v34 }
 0x1cd   : > { %v1325_v24 = vsel %vm900_vm0, %v1320_v42, 0  ;;  %v9029_v33 = vpack.c.bf16 %v731_v6, %v642_v13  ;;  %12154 = vst [vmem:[#allocation37_spill] sm:$0xff] %v9034_v7 }
 0x1ce   : > { %1334 = vmatpush.bf16.xpose.msra.mxu3 %v1325_v24 }
 0x1cf   : > { %12153 = vst [vmem:[#allocation36_spill] sm:$0xff] %v9029_v33  ;;  %v1343_v43 = vrot.slane %v9029_v33, 4  ;;  %v9042_v13 = vpop.f32.mrf.mxu3  ;;  %v1345_v34 = vunpack.c.l.b16 %v9029_v33 }
 0x1d1   : > { %v1348_v24 = vunpack.c.l.b16 %v1343_v43 }
 0x1d2   : > { %v732_v12 = vpop.f32.mrf.mxu1 }
 0x1d3   : > { %v733_v37 = vadd.f32 %v732_v12, %v8491_v55  ;;  %v9051_v55 = vadd.f32 %v946_v59, %v9048_v54  ;;  %v809_v12 = vpop.f32.mrf.mxu2  ;;  %v9066_v59 = vadd.f32 %v976_v0, %v9048_v54 }
 0x1d5   : > { %v9036_v19 = vpack.c.bf16 %v733_v37, %v644_v17  ;;  %7289 = vmatmul.msk.bf16.vlgmr.msra.gmra.mxu3 %vm900_vm0, %v9034_v7 }
 0x1d7   : > { %12155 = vst [vmem:[#allocation38_spill] sm:$0xff] %v9036_v19  ;;  %v1344_v42 = vrot.slane %v9036_v19, 4  ;;  %v1346_v63 = vunpack.c.l.b16 %v9036_v19  ;;  %v9060_v37 = vpop.f32.mrf.mxu3 }
 0x1d9   : > { %v1349_v6 = vunpack.c.l.b16 %v1344_v42  ;;  %v9058_v17 = vpack.c.b16 %v1346_v63, %v1345_v34  ;;  %v9070_v42 = vadd.f32 %v8927_v28, %v9048_v54 }
 0x1db   : > { %v1350_v9 = vpack.c.b16 %v1349_v6, %v1348_v24  ;;  %12156 = vst [vmem:[#allocation39_spill] sm:$0xff] %v9058_v17  ;;  %v811_v43 = vpop.f32.mrf.mxu2  ;;  %v810_v24 = vadd.f32 %v809_v12, %v8453_v22  ;;  %v1372_v63 = vsel %vm1371_vm1, %v9070_v42, -inf }
 0x1dc   : > { %v812_v6 = vadd.f32 %v811_v43, %v8453_v22  ;;  %v9084_v43 = vpop.permute.xlu1 %4658 }
 0x1dd   : > { %v1355_v50 = vsel %vm900_vm0, %v1350_v9, 0  ;;  %v1378_v9 = vsel %vm1371_vm1, %v9051_v55, -inf  ;;  %v877_v34 = vpack.c.bf16 %v810_v24, %v810_v24  ;;  %12159 = vst [vmem:[#allocation42_spill] sm:$0xff] %v9084_v43 }
 0x1de   : > { %1364 = vmatpush.bf16.xpose.msrb.mxu3 %v1355_v50  ;;  %v1384_v50 = vsel %vm1371_vm1, %v9066_v59, -inf  ;;  %v879_v0 = vpack.c.bf16 %v812_v6, %v812_v6 }
 0x1e4   : > { %1379 = vmax.xlane.f32.xlu1 %v1378_v9  ;;  %v814_v9 = vpop.f32.mrf.mxu2 }
 0x1e5   : > { %7290 = vmatmul.msk.bf16.vlgmr.msrb.gmra.mxu3 %vm900_vm0, %v9058_v17 }
 0x1e6   : > { %1777 = vmatpush.bf16.msra.mxu3 %v8466_v35  ;;  %v2127_v35 = vunpack.c.l.b16 %v877_v34 }
 0x1ea   : > { %1805 = vmatpush.bf16.msrb.mxu3 %v8478_v48  ;;  %v2128_v48 = vunpack.c.l.b16 %v879_v0  ;;  %v9098_v0 = vpop.permute.xlu0 %3182 }
 0x1eb   : > { %12161 = vst [vmem:[#allocation44_spill] sm:$0xff] %v9098_v0 }
 0x1ec   : > { %v9080_v28 = vpack.c.b16 %v2128_v48, %v2127_v35  ;;  %v816_v12 = vpop.f32.mrf.mxu2 }
 0x1ed   : > { %v817_v14 = vadd.f32 %v816_v12, %v8453_v22  ;;  %v9106_v12 = vpop.permute.xlu2 %4633 }
 0x1ee   : > { %12158 = vst [vmem:[#allocation41_spill] sm:$0xff] %v9080_v28 }
 0x1ef   : > { %v883_v6 = vpack.c.bf16 %v817_v14, %v817_v14  ;;  %12164 = vst [vmem:[#allocation47_spill] sm:$0xff] %v9106_v12 }
 0x1f0   : > { %1385 = vmax.xlane.f32.xlu2 %v1384_v50  ;;  %v815_v50 = vadd.f32 %v814_v9, %v8453_v22 }
 0x1f1   : > { %v2156_v48 = vunpack.c.l.b16 %v883_v6 }
 0x1f2   : > { %1373 = vmax.xlane.f32.xlu0 %v1372_v63  ;;  %v881_v24 = vpack.c.bf16 %v815_v50, %v815_v50  ;;  %v9094_v63 = vpop.permute.xlu1 %2272  ;;  %v9104_v14 = vpop.permute.xlu0 %3750 }
 0x1f3   : > { %12163 = vst [vmem:[#allocation46_spill] sm:$0xff] %v9104_v14 }
 0x1f4   : > { %v2155_v35 = vunpack.c.l.b16 %v881_v24 }
 0x1f5   : > { %v9110_v43 = vpop.permute.xlu2 %3748 }
 0x1f6   : > { %v9096_v34 = vpack.c.b16 %v2156_v48, %v2155_v35  ;;  %12166 = vst [vmem:[#allocation49_spill] sm:$0xff] %v9110_v43  ;;  %v9119_v35 = vld [vmem:[%s12070_s5 + $0x8] sm:$0xff] }
 0x1f7   : > { %v9131_v43 = vadd.f32 %v8955_v38, %v9119_v35 }
 0x1f8   : > { %12160 = vst [vmem:[#allocation43_spill] sm:$0xff] %v9096_v34 }
 0x1fa   : > { %v9102_v9 = vpop.permute.xlu1 %3754  ;;  %v9112_v24 = vpop.permute.xlu0 %5226 }
 0x1fb   : > { %12162 = vst [vmem:[#allocation45_spill] sm:$0xff] %v9102_v9  ;;  %v9125_v9 = vadd.f32 %v8992_v51, %v9119_v35  ;;  %v9143_v51 = vadd.f32 %v9026_v10, %v9119_v35 }
 0x1fc   : > { %12167 = vst [vmem:[#allocation50_spill] sm:$0xff] %v9112_v24 }
 0x1fd   : > { %3482 = vrot.lane.b32.xlu1 %v9080_v28, %s8226_s16  ;;  %v9121_v48 = vpop.permute.xlu2 %5224  ;;  %v1381_v14 = vsel %vm1371_vm1, %v9125_v9, -inf  ;;  %v1387_v16 = vsel %vm1371_vm1, %v9143_v51, -inf }
 0x1fe   : > { %12169 = vst [vmem:[#allocation52_spill] sm:$0xff] %v9121_v48 }
 0x202   : > { %v9108_v50 = vpop.permute.xlu1 %2305  ;;  %v9127_v12 = vpop.permute.xlu0 %2278 }
 0x203   : > { %12165 = vst [vmem:[#allocation48_spill] sm:$0xff] %v9108_v50 }
 0x204   : > { %12170 = vst [vmem:[#allocation53_spill] sm:$0xff] %v9127_v12 }
 0x205   : > { %4958 = vrot.lane.b32.xlu1 %v9080_v28, %s8225_s15  ;;  %v9139_v48 = vpop.permute.xlu2 %3207 }
 0x206   : > { %3457 = vrot.lane.b32.xlu0 %v8963_v53, %s8226_s16  ;;  %12172 = vst [vmem:[#allocation55_spill] sm:$0xff] %v9139_v48 }
 0x208   : > { %2644 = vrot.lane.b32.xlu2 %v8929_v11, %s8226_s16 }
 0x20a   : > { %v9114_v6 = vpop.permute.xlu1 %3257  ;;  %v9145_v0 = vpop.permute.xlu0 %3232 }
 0x20b   : > { %12168 = vst [vmem:[#allocation51_spill] sm:$0xff] %v9114_v6  ;;  %v1375_v6 = vsel %vm1371_vm1, %v9131_v43, -inf }
 0x20c   : > { %12173 = vst [vmem:[#allocation56_spill] sm:$0xff] %v9145_v0  ;;  %v819_v0 = vpop.f32.mrf.mxu2 }
 0x20d   : > { %v9151_v12 = vpop.permute.xlu2 %4683 }
 0x20e   : > { %12175 = vst [vmem:[#allocation58_spill] sm:$0xff] %v9151_v12 }
 0x210   : > { %3507 = vrot.lane.b32.xlu2 %v9096_v34, %s8226_s16 }
 0x212   : > { %v9133_v24 = vpop.permute.xlu1 %2336 }
 0x213   : > { %12171 = vst [vmem:[#allocation54_spill] sm:$0xff] %v9133_v24 }
 0x21a   : > { %v9147_v38 = vpop.permute.xlu1 %3812 }
 0x21b   : > { %12174 = vst [vmem:[#allocation57_spill] sm:$0xff] %v9147_v38 }
 0x222   : > { %v9155_v24 = vpop.permute.xlu1 %4758 }
 0x223   : > { %12177 = vst [vmem:[#allocation60_spill] sm:$0xff] %v9155_v24 }
 0x22a   : > { %v9165_v38 = vpop.permute.xlu1 %2367 }
 0x22b   : > { %12179 = vst [vmem:[#allocation62_spill] sm:$0xff] %v9165_v38 }
 0x22f   : > { %1382 = vmax.xlane.f32.xlu1 %v1381_v14  ;;  %v9153_v14 = vpop.permute.xlu0 %3781 }
 0x230   : > { %1376 = vmax.xlane.f32.xlu0 %v1375_v6  ;;  %12176 = vst [vmem:[#allocation59_spill] sm:$0xff] %v9153_v14  ;;  %v9159_v6 = vpop.permute.xlu2 %2274 }
 0x232   : > { %v9179_v12 = vpop.permute.xlu1 %3843 }
 0x233   : > { %12182 = vst [vmem:[#allocation65_spill] sm:$0xff] %v9179_v12 }
 0x237   : > { %v9163_v10 = vpop.permute.xlu0 %2309 }
 0x238   : > { %12178 = vst [vmem:[#allocation61_spill] sm:$0xff] %v9163_v10  ;;  %v821_v10 = vpop.f32.mrf.mxu2 }
 0x239   : > { %1388 = vmax.xlane.f32.xlu2 %v1387_v16  ;;  %v9173_v16 = vpop.permute.xlu2 %2303 }
 0x23a   : > { %12180 = vst [vmem:[#allocation63_spill] sm:$0xff] %v9173_v16 }
 0x23f   : > { %v9175_v24 = vpop.permute.xlu0 %3785 }
 0x240   : > { %12181 = vst [vmem:[#allocation64_spill] sm:$0xff] %v9175_v24 }
 0x241   : > { %v9185_v14 = vpop.permute.xlu2 %3779 }
 0x242   : > { %12183 = vst [vmem:[#allocation66_spill] sm:$0xff] %v9185_v14 }
 0x244   : > { %4060 = vrot.lane.b32.xlu0 %v8880_v39, %s8225_s15  ;;  %v9191_v39 = vpop.permute.xlu1 %3847 }
 0x245   : > { %12185 = vst [vmem:[#allocation68_spill] sm:$0xff] %v9191_v39 }
 0x248   : > { %2615 = vrot.lane.b32.xlu1 %v8909_v3, %s8226_s16 }
 0x249   : > { %v9199_v24 = vpop.permute.xlu2 %4708 }
 0x24a   : > { %12186 = vst [vmem:[#allocation69_spill] sm:$0xff] %v9199_v24 }
 0x24c   : > { %2588 = vrot.lane.b32.xlu0 %v8903_v62, %s8226_s16 }
 0x250   : > { %4091 = vrot.lane.b32.xlu1 %v8909_v3, %s8225_s15  ;;  %v9189_v3 = vpop.permute.xlu0 %3810 }
 0x251   : > { %4122 = vrot.lane.b32.xlu2 %v8946_v32, %s8225_s15  ;;  %12184 = vst [vmem:[#allocation67_spill] sm:$0xff] %v9189_v3  ;;  %v9211_v39 = vpop.permute.xlu2 %2334 }
 0x252   : > { %12189 = vst [vmem:[#allocation72_spill] sm:$0xff] %v9211_v39 }
 0x254   : > { %4064 = vrot.lane.b32.xlu0 %v8903_v62, %s8225_s15 }
 0x258   : > { %4095 = vrot.lane.b32.xlu1 %v8936_v36, %s8225_s15  ;;  %v9201_v12 = vpop.permute.xlu0 %4733 }
 0x259   : > { %4126 = vrot.lane.b32.xlu2 %v8973_v15, %s8225_s15  ;;  %12187 = vst [vmem:[#allocation70_spill] sm:$0xff] %v9201_v12  ;;  %v9219_v24 = vpop.permute.xlu2 %2365 }
 0x25a   : > { %12192 = vst [vmem:[#allocation75_spill] sm:$0xff] %v9219_v24 }
 0x25c   : > { %4089 = vrot.lane.b32.xlu0 %v8896_v5, %s8225_s15  ;;  %v9205_v5 = vpop.permute.xlu1 %3872 }
 0x25d   : > { %12188 = vst [vmem:[#allocation71_spill] sm:$0xff] %v9205_v5 }
 0x260   : > { %4120 = vrot.lane.b32.xlu1 %v8929_v11, %s8225_s15  ;;  %v9213_v3 = vpop.permute.xlu0 %2340 }
 0x261   : > { %2675 = vrot.lane.b32.xlu2 %v8971_v2, %s8226_s16  ;;  %12190 = vst [vmem:[#allocation73_spill] sm:$0xff] %v9213_v3  ;;  %v9225_v14 = vpop.permute.xlu2 %3282 }
 0x262   : > { %12195 = vst [vmem:[#allocation78_spill] sm:$0xff] %v9225_v14 }
 0x264   : > { %2619 = vrot.lane.b32.xlu0 %v8936_v36, %s8226_s16  ;;  %v9217_v36 = vpop.permute.xlu1 %2398 }
 0x265   : > { %12191 = vst [vmem:[#allocation74_spill] sm:$0xff] %v9217_v36 }
 0x268   : > { %2646 = vrot.lane.b32.xlu1 %v8946_v32, %s8226_s16  ;;  %v9221_v12 = vpop.permute.xlu0 %3816 }
 0x269   : > { %4151 = vrot.lane.b32.xlu2 %v8971_v2, %s8225_s15  ;;  %12193 = vst [vmem:[#allocation76_spill] sm:$0xff] %v9221_v12  ;;  %v9233_v2 = vadd.f32 %v9060_v37, %v9119_v35  ;;  %v9235_v48 = vpop.permute.xlu2 %2396  ;;  %v9241_v12 = vadd.f32 %v9042_v13, %v9048_v54 }
 0x26a   : > { %12198 = vst [vmem:[#allocation81_spill] sm:$0xff] %v9235_v48 }
 0x26b   : > { %v1390_v37 = vsel %vm1371_vm1, %v9241_v12, -inf }
 0x26c   : > { %2650 = vrot.lane.b32.xlu0 %v8973_v15, %s8226_s16  ;;  %v9223_v5 = vpop.permute.xlu1 %3878 }
 0x26d   : > { %12194 = vst [vmem:[#allocation77_spill] sm:$0xff] %v9223_v5 }
 0x270   : > { %v9227_v62 = vpop.permute.xlu0 %3841 }
 0x271   : > { %4157 = vrot.lane.b32.xlu2 %v9009_v25, %s8225_s15  ;;  %12196 = vst [vmem:[#allocation79_spill] sm:$0xff] %v9227_v62  ;;  %v1393_v62 = vsel %vm1371_vm1, %v9233_v2, -inf }
 0x274   : > { %v9229_v15 = vpop.permute.xlu1 %3332 }
 0x275   : > { %12197 = vst [vmem:[#allocation80_spill] sm:$0xff] %v9229_v15  ;;  %v1036_v15 = vpop.f32.mrf.mxu3 }
 0x276   : > { %v9248_v14 = vadd.f32 %v1036_v15, %v9048_v54 }
 0x278   : > { %v9237_v3 = vpop.permute.xlu0 %2371  ;;  %v1396_v13 = vsel %vm1371_vm1, %v9248_v14, -inf }
 0x279   : > { %12199 = vst [vmem:[#allocation82_spill] sm:$0xff] %v9237_v3  ;;  %v9252_v3 = vpop.permute.xlu2 %3874 }
 0x27a   : > { %12201 = vst [vmem:[#allocation84_spill] sm:$0xff] %v9252_v3 }
 0x27c   : > { %v9243_v5 = vpop.permute.xlu1 %2429 }
 0x27d   : > { %12200 = vst [vmem:[#allocation83_spill] sm:$0xff] %v9243_v5  ;;  %v820_v5 = vadd.f32 %v819_v0, %v8453_v22 }
 0x27f   : > { %v885_v15 = vpack.c.bf16 %v820_v5, %v820_v5 }
 0x280   : > { %v9254_v48 = vpop.permute.xlu0 %3307 }
 0x281   : > { %12202 = vst [vmem:[#allocation85_spill] sm:$0xff] %v9254_v48  ;;  %v9262_v32 = vpop.permute.xlu2 %2427 }
 0x282   : > { %12204 = vst [vmem:[#allocation87_spill] sm:$0xff] %v9262_v32 }
 0x284   : > { %v9260_v36 = vpop.permute.xlu1 %3934 }
 0x285   : > { %12203 = vst [vmem:[#allocation86_spill] sm:$0xff] %v9260_v36 }
 0x288   : > { %v9264_v50 = vpop.permute.xlu0 %4783 }
 0x289   : > { %12205 = vst [vmem:[#allocation88_spill] sm:$0xff] %v9264_v50  ;;  %v1038_v50 = vpop.f32.mrf.mxu3 }
 0x28c   : > { %v9266_v3 = vpop.permute.xlu1 %2460 }
 0x28d   : > { %12206 = vst [vmem:[#allocation89_spill] sm:$0xff] %v9266_v3 }
 0x290   : > { %v9276_v5 = vpop.permute.xlu0 %2402 }
 0x291   : > { %12209 = vst [vmem:[#allocation92_spill] sm:$0xff] %v9276_v5 }
 0x292   : > { %1394 = vmax.xlane.f32.xlu1 %v1393_v62  ;;  %v822_v62 = vadd.f32 %v821_v10, %v8453_v22  ;;  %v9274_v22 = vpop.permute.xlu2 %3903 }
 0x293   : > { %12208 = vst [vmem:[#allocation91_spill] sm:$0xff] %v9274_v22  ;;  %v1066_v22 = vpop.f32.mrf.mxu3 }
 0x294   : > { %v887_v39 = vpack.c.bf16 %v822_v62, %v822_v62  ;;  %v9278_v0 = vpop.permute.xlu1 %4858 }
 0x295   : > { %12210 = vst [vmem:[#allocation93_spill] sm:$0xff] %v9278_v0 }
 0x296   : > { %1391 = vmax.xlane.f32.xlu0 %v1390_v37  ;;  %v2183_v37 = vunpack.c.l.b16 %v885_v15  ;;  %v2184_v16 = vunpack.c.l.b16 %v887_v39 }
 0x298   : > { %v9268_v48 = vpack.c.b16 %v2184_v16, %v2183_v37  ;;  %v9288_v10 = vpop.permute.xlu0 %4808 }
 0x299   : > { %12212 = vst [vmem:[#allocation95_spill] sm:$0xff] %v9288_v10 }
 0x29a   : > { %1397 = vmax.xlane.f32.xlu2 %v1396_v13  ;;  %12207 = vst [vmem:[#allocation90_spill] sm:$0xff] %v9268_v48  ;;  %v9286_v39 = vpop.permute.xlu2 %3909 }
 0x29b   : > { %12211 = vst [vmem:[#allocation94_spill] sm:$0xff] %v9286_v39 }
 0x29c   : > { %v9290_v16 = vpop.permute.xlu1 %2491 }
 0x29d   : > { %12213 = vst [vmem:[#allocation96_spill] sm:$0xff] %v9290_v16 }
 0x2a0   : > { %v9300_v62 = vpop.permute.xlu0 %3905 }
 0x2a1   : > { %12215 = vst [vmem:[#allocation98_spill] sm:$0xff] %v9300_v62 }
 0x2a2   : > { %v9298_v13 = vpop.permute.xlu2 %2458 }
 0x2a3   : > { %12214 = vst [vmem:[#allocation97_spill] sm:$0xff] %v9298_v13 }
 0x2a4   : > { %v9304_v15 = vpop.permute.xlu1 %3971 }
 0x2a5   : > { %12216 = vst [vmem:[#allocation99_spill] sm:$0xff] %v9304_v15 }
 0x2a8   : > { %v9308_v0 = vpop.permute.xlu0 %2433 }
 0x2a9   : > { %12218 = vst [vmem:[#allocation101_spill] sm:$0xff] %v9308_v0 }
 0x2aa   : > { %3532 = vrot.lane.b32.xlu0 %v9268_v48, %s8226_s16  ;;  %v9306_v37 = vpop.permute.xlu2 %3357 }
 0x2ab   : > { %2677 = vrot.lane.b32.xlu1 %v8980_v31, %s8226_s16  ;;  %12217 = vst [vmem:[#allocation100_spill] sm:$0xff] %v9306_v37  ;;  %v9326_v37 = vadd.f32 %v1066_v22, %v9048_v54 }
 0x2ac   : > { %v9310_v10 = vpop.permute.xlu1 %3996 }
 0x2ad   : > { %12219 = vst [vmem:[#allocation102_spill] sm:$0xff] %v9310_v10  ;;  %v1068_v10 = vpop.f32.mrf.mxu3 }
 0x2b0   : > { %v9314_v39 = vpop.permute.xlu0 %4833 }
 0x2b1   : > { %12221 = vst [vmem:[#allocation104_spill] sm:$0xff] %v9314_v39  ;;  %v1402_v39 = vsel %vm1371_vm1, %v9326_v37, -inf }
 0x2b2   : > { %4153 = vrot.lane.b32.xlu0 %v8980_v31, %s8225_s15  ;;  %2706 = vrot.lane.b32.xlu2 %v9004_v47, %s8226_s16 }
 0x2b3   : > { %2708 = vrot.lane.b32.xlu1 %v9011_v30, %s8226_s16 }
 0x2b4   : > { %v9316_v36 = vpop.permute.xlu1 %3407 }
 0x2b5   : > { %12222 = vst [vmem:[#allocation105_spill] sm:$0xff] %v9316_v36  ;;  %v9335_v36 = vadd.f32 %v1068_v10, %v9119_v35 }
 0x2b7   : > { %v1405_v22 = vsel %vm1371_vm1, %v9335_v36, -inf }
 0x2b8   : > { %v9323_v15 = vpop.permute.xlu0 %2464 }
 0x2b9   : > { %12224 = vst [vmem:[#allocation107_spill] sm:$0xff] %v9323_v15 }
 0x2ba   : > { %2681 = vrot.lane.b32.xlu0 %v9009_v25, %s8226_s16  ;;  %4182 = vrot.lane.b32.xlu2 %v9004_v47, %s8225_s15  ;;  %v9312_v47 = vpop.permute.xlu2 %3936  ;;  %v9321_v25 = vadd.f32 %v1038_v50, %v9119_v35 }
 0x2bb   : > { %4188 = vrot.lane.b32.xlu1 %v9034_v7, %s8225_s15  ;;  %12220 = vst [vmem:[#allocation103_spill] sm:$0xff] %v9312_v47 }
 0x2bc   : > { %v9328_v31 = vpop.permute.xlu1 %2522  ;;  %v1399_v47 = vsel %vm1371_vm1, %v9321_v25, -inf }
 0x2bd   : > { %12225 = vst [vmem:[#allocation108_spill] sm:$0xff] %v9328_v31 }
 0x2c2   : > { %2737 = vrot.lane.b32.xlu2 %v9029_v33, %s8226_s16  ;;  %v9318_v62 = vpop.permute.xlu2 %2489 }
 0x2c3   : > { %12223 = vst [vmem:[#allocation106_spill] sm:$0xff] %v9318_v62  ;;  %v9339_v62 = vpop.permute.xlu0 %3940 }
 0x2c4   : > { %12227 = vst [vmem:[#allocation110_spill] sm:$0xff] %v9339_v62  ;;  %v9343_v16 = vpop.permute.xlu1 %2553 }
 0x2c5   : > { %12228 = vst [vmem:[#allocation111_spill] sm:$0xff] %v9343_v16 }
 0x2ca   : > { %v9337_v50 = vpop.permute.xlu2 %3965 }
 0x2cb   : > { %12226 = vst [vmem:[#allocation109_spill] sm:$0xff] %v9337_v50 }
 0x2cc   : > { %v9349_v0 = vpop.permute.xlu1 %4033 }
 0x2cd   : > { %12231 = vst [vmem:[#allocation114_spill] sm:$0xff] %v9349_v0 }
 0x2d2   : > { %v9345_v15 = vpop.permute.xlu2 %2520 }
 0x2d3   : > { %12229 = vst [vmem:[#allocation112_spill] sm:$0xff] %v9345_v15 }
 0x2d4   : > { %v9359_v62 = vpop.permute.xlu1 %4933 }
 0x2d5   : > { %12234 = vst [vmem:[#allocation117_spill] sm:$0xff] %v9359_v62 }
 0x2dc   : > { %v9373_v0 = vpop.permute.xlu1 %2584 }
 0x2dd   : > { %12237 = vst [vmem:[#allocation120_spill] sm:$0xff] %v9373_v0 }
 0x2e4   : > { %1400 = vmax.xlane.f32.xlu0 %v1399_v47  ;;  %v9347_v47 = vpop.permute.xlu0 %3382  ;;  %v9381_v50 = vpop.xlane.xlu1 %1379 }
 0x2e5   : > { %1403 = vmax.xlane.f32.xlu1 %v1402_v39  ;;  %12230 = vst [vmem:[#allocation113_spill] sm:$0xff] %v9347_v47  ;;  %v9353_v39 = vpop.permute.xlu2 %3998 }
 0x2e6   : > { %12232 = vst [vmem:[#allocation115_spill] sm:$0xff] %v9353_v39 }
 0x2eb   : > { %1406 = vmax.xlane.f32.xlu2 %v1405_v22 }
 0x2ec   : > { %v9355_v10 = vpop.permute.xlu0 %3967  ;;  %v9383_v39 = vpop.permute.xlu1 %3482 }
 0x2ed   : > { %12233 = vst [vmem:[#allocation116_spill] sm:$0xff] %v9355_v10  ;;  %v9365_v22 = vpop.permute.xlu2 %2551 }
 0x2ee   : > { %12235 = vst [vmem:[#allocation118_spill] sm:$0xff] %v9365_v22 }
 0x2ef   : > { %12240 = vst [vmem:[#allocation123_spill] sm:$0xff] %v9383_v39 }
 0x2f4   : > { %v9389_v5 = vpop.permute.xlu1 %4958 }
 0x2f5   : > { %v9377_v62 = vpop.permute.xlu2 %4027  ;;  %12243 = vst [vmem:[#allocation126_spill] sm:$0xff] %v9389_v5 }
 0x2f6   : > { %12238 = vst [vmem:[#allocation121_spill] sm:$0xff] %v9377_v62 }
 0x2f8   : > { %4184 = vrot.lane.b32.xlu0 %v9011_v30, %s8225_s15  ;;  %v9369_v30 = vpop.permute.xlu0 %2495 }
 0x2f9   : > { %12236 = vst [vmem:[#allocation119_spill] sm:$0xff] %v9369_v30 }
 0x2fe   : > { %4213 = vrot.lane.b32.xlu1 %v9029_v33, %s8225_s15  ;;  %v1096_v33 = vpop.f32.mrf.mxu3 }
 0x300   : > { %2712 = vrot.lane.b32.xlu0 %v9034_v7, %s8226_s16  ;;  %v9379_v7 = vpop.permute.xlu0 %2526 }
 0x301   : > { %12239 = vst [vmem:[#allocation122_spill] sm:$0xff] %v9379_v7  ;;  %v9398_v7 = vpop.xlane.xlu1 %1382 }
 0x303   : > { %4215 = vrot.lane.b32.xlu2 %v9036_v19, %s8225_s15 }
 0x306   : > { %2739 = vrot.lane.b32.xlu1 %v9036_v19, %s8226_s16  ;;  %v1098_v10 = vpop.f32.mrf.mxu3  ;;  %v9385_v19 = vpop.permute.xlu2 %3432 }
 0x307   : > { %12241 = vst [vmem:[#allocation124_spill] sm:$0xff] %v9385_v19  ;;  %v9403_v19 = vadd.f32 %v1096_v33, %v9048_v54 }
 0x308   : > { %2743 = vrot.lane.b32.xlu0 %v9058_v17, %s8226_s16  ;;  %v9387_v47 = vpop.permute.xlu0 %4002 }
 0x309   : > { %12242 = vst [vmem:[#allocation125_spill] sm:$0xff] %v9387_v47 }
 0x30e   : > { %4219 = vrot.lane.b32.xlu1 %v9058_v17, %s8225_s15  ;;  %v1126_v30 = vpop.f32.mrf.mxu3  ;;  %v9391_v22 = vpop.permute.xlu2 %4908 }
 0x30f   : > { %12244 = vst [vmem:[#allocation127_spill] sm:$0xff] %v9391_v22  ;;  %v9396_v17 = vadd.f32 %v1126_v30, %v9048_v54  ;;  %v1408_v22 = vsel %vm1371_vm1, %v9403_v19, -inf  ;;  %v9412_v30 = vadd.f32 %v1098_v10, %v9119_v35 }
 0x310   : > { %v9393_v0 = vpop.permute.xlu0 %4029 }
 0x311   : > { %12245 = vst [vmem:[#allocation128_spill] sm:$0xff] %v9393_v0  ;;  %v1414_v39 = vsel %vm1371_vm1, %v9396_v17, -inf  ;;  %v9414_v0 = vpop.permute.xlu1 %2615 }
 0x312   : > { %12248 = vst [vmem:[#allocation131_spill] sm:$0xff] %v9414_v0 }
 0x316   : > { %v1128_v62 = vpop.f32.mrf.mxu3  ;;  %v9405_v47 = vpop.permute.xlu2 %2582 }
 0x317   : > { %12246 = vst [vmem:[#allocation129_spill] sm:$0xff] %v9405_v47 }
 0x318   : > { %v9407_v5 = vpop.permute.xlu0 %2557 }
 0x319   : > { %12247 = vst [vmem:[#allocation130_spill] sm:$0xff] %v9407_v5  ;;  %v9420_v47 = vpop.permute.xlu1 %4091 }
 0x31a   : > { %12250 = vst [vmem:[#allocation133_spill] sm:$0xff] %v9420_v47 }
 0x31e   : > { %v1156_v16 = vpop.f32.mrf.mxu3  ;;  %v9418_v33 = vpop.permute.xlu2 %4058 }
 0x31f   : > { %12249 = vst [vmem:[#allocation132_spill] sm:$0xff] %v9418_v33 }
 0x320   : > { %v1374_v15 = vpop.xlane.xlu0 %1373 }
 0x326   : > { %v1158_v5 = vpop.f32.mrf.mxu3  ;;  %v9424_v13 = vpop.permute.xlu2 %2613 }
 0x327   : > { %12252 = vst [vmem:[#allocation135_spill] sm:$0xff] %v9424_v13 }
 0x328   : > { %v9422_v31 = vpop.permute.xlu0 %3457 }
 0x329   : > { %12251 = vst [vmem:[#allocation134_spill] sm:$0xff] %v9422_v31 }
 0x32c   : > { %1415 = vmax.xlane.f32.xlu2 %v1414_v39  ;;  %v1411_v39 = vsel %vm1371_vm1, %v9412_v30, -inf }
 0x32e   : > { %v1186_v0 = vpop.f32.mrf.mxu3 }
 0x330   : > { %v1377_v10 = vpop.xlane.xlu0 %1376 }
 0x332   : > { %1409 = vmax.xlane.f32.xlu0 %v1408_v22  ;;  %v9430_v22 = vpop.permute.xlu1 %4095 }
 0x333   : > { %12253 = vst [vmem:[#allocation136_spill] sm:$0xff] %v9430_v22  ;;  %v1468_v22 = vsub.f32 %v9070_v42, %v1374_v15  ;;  %v1469_v15 = vsub.f32 %v9131_v43, %v1377_v10 }
 0x336   : > { %v9440_v31 = vpop.f32.mrf.mxu3 }
 0x338   : > { %1412 = vmax.xlane.f32.xlu1 %v1411_v39  ;;  %v1386_v39 = vpop.xlane.xlu2 %1385  ;;  %v9434_v47 = vpop.permute.xlu0 %4060 }
 0x339   : > { %12254 = vst [vmem:[#allocation137_spill] sm:$0xff] %v9434_v47  ;;  %v1500_v47 = vmul.f32 1.442695, %v1468_v22 }
 0x33a   : > { %v9436_v33 = vpop.permute.xlu1 %4120 }
 0x33b   : > { %12255 = vst [vmem:[#allocation138_spill] sm:$0xff] %v9436_v33  ;;  %7704 = vpow2.f32 %v1500_v47  ;;  %v9469_v47 = vadd.f32 %v1158_v5, %v9119_v35 }
 0x342   : > { %v9449_v13 = vpop.permute.xlu1 %2646 }
 0x343   : > { %12258 = vst [vmem:[#allocation141_spill] sm:$0xff] %v9449_v13  ;;  %v9476_v13 = vadd.f32 %v1128_v62, %v9119_v35  ;;  %v9493_v62 = vadd.f32 %v1156_v16, %v9048_v54 }
 0x344   : > { %5255 = vrot.lane.b32.xlu2 %v8536_v41, %s8227_s19  ;;  %v9442_v41 = vpop.permute.xlu2 %2644 }
 0x345   : > { %12256 = vst [vmem:[#allocation139_spill] sm:$0xff] %v9442_v41  ;;  %v1417_v43 = vsel %vm1371_vm1, %v9476_v13, -inf }
 0x346   : > { %5230 = vrot.lane.b32.xlu0 %v8520_v21, %s8227_s19  ;;  %v9444_v21 = vpop.permute.xlu0 %2588 }
 0x347   : > { %12257 = vst [vmem:[#allocation140_spill] sm:$0xff] %v9444_v21  ;;  %v9459_v21 = vpop.eup %7704 }
 0x34a   : > { %v1395_v32 = vpop.xlane.xlu1 %1394 }
 0x34c   : > { %v9453_v33 = vpop.permute.xlu2 %3507 }
 0x34d   : > { %12259 = vst [vmem:[#allocation142_spill] sm:$0xff] %v9453_v33  ;;  %v1502_v33 = vmul.f32 1.442695, %v1469_v15 }
 0x34e   : > { %5350 = vrot.lane.b32.xlu0 %v8680_v57, %s8227_s19  ;;  %v9451_v57 = vpop.f32.mrf.mxu3 }
 0x34f   : > { %7706 = vpow2.f32 %v1502_v33 }
 0x351   : > { %5257 = vrot.lane.b32.xlu1 %v8552_v56, %s8227_s19  ;;  %v9455_v56 = vpop.permute.xlu0 %4064 }
 0x352   : > { %12260 = vst [vmem:[#allocation143_spill] sm:$0xff] %v9455_v56  ;;  %v9461_v24 = vpop.permute.xlu1 %2677 }
 0x353   : > { %12261 = vst [vmem:[#allocation144_spill] sm:$0xff] %v9461_v24  ;;  %v1423_v24 = vsel %vm1371_vm1, %v9469_v47, -inf }
 0x354   : > { %v9457_v41 = vpop.xlane.xlu2 %1388 }
 0x355   : > { %v9490_v15 = vpop.eup %7706 }
 0x356   : > { %v1218_v3 = vpop.f32.mrf.mxu3 }
 0x357   : > { %v9529_v34 = vadd.f32 %v1218_v3, %v9119_v35 }
 0x359   : > { %5348 = vrot.lane.b32.xlu1 %v8660_v44, %s8227_s19  ;;  %v1564_v44 = vsel %vm1371_vm1, %v9459_v21, 0.0  ;;  %v9465_v42 = vpop.permute.xlu0 %4089 }
 0x35a   : > { %12262 = vst [vmem:[#allocation145_spill] sm:$0xff] %v9465_v42  ;;  %v9480_v38 = vpop.permute.xlu1 %2708  ;;  %v1472_v42 = vsub.f32 %v9066_v59, %v1386_v39 }
 0x35b   : > { %12264 = vst [vmem:[#allocation147_spill] sm:$0xff] %v9480_v38 }
 0x35c   : > { %v9473_v56 = vpop.permute.xlu2 %4122 }
 0x35d   : > { %12263 = vst [vmem:[#allocation146_spill] sm:$0xff] %v9473_v56 }
 0x35e   : > { %v9471_v22 = vpop.f32.mrf.mxu3 }
 0x362   : > { %v9496_v56 = vpop.permute.xlu1 %4188 }
 0x363   : > { %12267 = vst [vmem:[#allocation150_spill] sm:$0xff] %v9496_v56 }
 0x364   : > { %v9488_v10 = vpop.permute.xlu2 %4126 }
 0x365   : > { %12266 = vst [vmem:[#allocation149_spill] sm:$0xff] %v9488_v10  ;;  %v9505_v10 = vadd.f32 %v1186_v0, %v9048_v54  ;;  %v1475_v0 = vsub.f32 %v9233_v2, %v1395_v32 }
 0x366   : > { %v9486_v5 = vpop.f32.mrf.mxu3 }
 0x367   : > { %12269 = vst [vmem:[#allocation152_spill] sm:$0xff] %v9505_v10  ;;  %v1426_v39 = vsel %vm1371_vm1, %v9505_v10, -inf }
 0x36a   : > { %v1404_v59 = vpop.xlane.xlu1 %1403 }
 0x36b   : > { %v1478_v3 = vsub.f32 %v9326_v37, %v1404_v59 }
 0x36c   : > { %v9507_v38 = vpop.permute.xlu2 %2675 }
 0x36d   : > { %1565 = vadd.xlane.f32.xlu2 %v1564_v44  ;;  %v9482_v44 = vpop.permute.xlu0 %2619  ;;  %12270 = vst [vmem:[#allocation153_spill] sm:$0xff] %v9507_v38  ;;  %v1514_v38 = vmul.f32 1.442695, %v1475_v0 }
 0x36e   : > { %12265 = vst [vmem:[#allocation148_spill] sm:$0xff] %v9482_v44  ;;  %v1420_v44 = vsel %vm1371_vm1, %v9493_v62, -inf  ;;  %v1276_v16 = vpop.f32.mrf.mxu3 }
 0x375   : > { %1424 = vmax.xlane.f32.xlu2 %v1423_v24  ;;  %v1567_v24 = vsel %vm1371_vm1, %v9490_v15, 0.0  ;;  %v9500_v33 = vpop.permute.xlu0 %2650 }
 0x376   : > { %12268 = vst [vmem:[#allocation151_spill] sm:$0xff] %v9500_v33  ;;  %v9522_v33 = vpop.permute.xlu1 %4213 }
 0x377   : > { %12272 = vst [vmem:[#allocation155_spill] sm:$0xff] %v9522_v33 }
 0x378   : > { %1418 = vmax.xlane.f32.xlu0 %v1417_v43  ;;  %v1508_v43 = vmul.f32 1.442695, %v1472_v42  ;;  %v9517_v42 = vpop.f32.mrf.mxu3 }
 0x37a   : > { %7708 = vpow2.f32 %v1508_v43 }
 0x37b   : > { %7710 = vpow2.f32 %v1514_v38 }
 0x37e   : > { %v9537_v2 = vpop.permute.xlu1 %2739 }
 0x37f   : > { %12275 = vst [vmem:[#allocation158_spill] sm:$0xff] %v9537_v2 }
 0x380   : > { %1568 = vadd.xlane.f32.xlu0 %v1567_v24  ;;  %v9511_v24 = vpop.xlane.xlu0 %1391  ;;  %v9513_v56 = vpop.eup %7708 }
 0x381   : > { %v1576_v43 = vsel %vm1371_vm1, %v9513_v56, 0.0  ;;  %v9533_v10 = vpop.f32.mrf.mxu3 }
 0x383   : > { %1421 = vmax.xlane.f32.xlu1 %v1420_v44  ;;  %v9520_v44 = vpop.permute.xlu2 %4151 }
 0x384   : > { %12271 = vst [vmem:[#allocation154_spill] sm:$0xff] %v9520_v44  ;;  %v1520_v44 = vmul.f32 1.442695, %v1478_v3 }
 0x386   : > { %7712 = vpow2.f32 %v1520_v44 }
 0x388   : > { %1427 = vmax.xlane.f32.xlu0 %v1426_v39  ;;  %v9526_v39 = vpop.permute.xlu0 %3532 }
 0x389   : > { %12273 = vst [vmem:[#allocation156_spill] sm:$0xff] %v9526_v39  ;;  %v9553_v39 = vpop.permute.xlu1 %4219 }
 0x38a   : > { %12277 = vst [vmem:[#allocation160_spill] sm:$0xff] %v9553_v39 }
 0x38b   : > { %v9535_v32 = vpop.permute.xlu2 %4157 }
 0x38c   : > { %12274 = vst [vmem:[#allocation157_spill] sm:$0xff] %v9535_v32  ;;  %v9551_v32 = vadd.f32 %v1276_v16, %v9048_v54 }
 0x38d   : > { %5008 = vrot.lane.b32.xlu2 %v9268_v48, %s8225_s15  ;;  %v1435_v48 = vsel %vm1371_vm1, %v9529_v34, -inf }
 0x38e   : > { %v1444_v37 = vsel %vm1371_vm1, %v9551_v32, -inf }
 0x390   : > { %1577 = vadd.xlane.f32.xlu0 %v1576_v43  ;;  %v9539_v33 = vpop.permute.xlu0 %4153  ;;  %v9541_v43 = vpop.eup %7710 }
 0x391   : > { %12276 = vst [vmem:[#allocation159_spill] sm:$0xff] %v9539_v33  ;;  %v1585_v38 = vsel %vm1371_vm1, %v9541_v43, 0.0  ;;  %v1471_v33 = vsub.f32 %v9125_v9, %v9398_v7  ;;  %v9563_v3 = vpop.eup %7712 }
 0x392   : > { %v1594_v9 = vsel %vm1371_vm1, %v9563_v3, 0.0 }
 0x393   : > { %v9548_v0 = vpop.xlane.xlu2 %1397  ;;  %v1506_v59 = vmul.f32 1.442695, %v1471_v33 }
 0x395   : > { %7714 = vpow2.f32 %v1506_v59 }
 0x398   : > { %1436 = vmax.xlane.f32.xlu0 %v1435_v48  ;;  %v1308_v48 = vpop.f32.mrf.mxu3  ;;  %v9557_v2 = vpop.permute.xlu0 %2681 }
 0x399   : > { %12278 = vst [vmem:[#allocation161_spill] sm:$0xff] %v9557_v2  ;;  %v1470_v2 = vsub.f32 %v9051_v55, %v9381_v50 }
 0x39b   : > { %v9572_v44 = vpop.eup %7714 }
 0x39c   : > { %4883 = vrot.lane.b32.xlu1 %v8835_v23, %s8225_s15 }
 0x3a0   : > { %1586 = vadd.xlane.f32.xlu0 %v1585_v38  ;;  %v9561_v38 = vpop.permute.xlu2 %2706  ;;  %v9565_v16 = vpop.f32.mrf.mxu3 }
 0x3a1   : > { %12279 = vst [vmem:[#allocation162_spill] sm:$0xff] %v9561_v38  ;;  %v9567_v39 = vpop.xlane.xlu0 %1400 }
 0x3a8   : > { %1445 = vmax.xlane.f32.xlu0 %v1444_v37  ;;  %v9575_v37 = vadd.f32 %v1308_v48, %v9119_v35  ;;  %v9579_v38 = vpop.permute.xlu2 %4182  ;;  %v9591_v48 = vadd.f32 %v9451_v57, %v9048_v54 }
 0x3a9   : > { %12281 = vst [vmem:[#allocation164_spill] sm:$0xff] %v9579_v38  ;;  %v9581_v59 = vpop.permute.xlu0 %4184 }
 0x3aa   : > { %12280 = vst [vmem:[#allocation163_spill] sm:$0xff] %v9575_v37  ;;  %v1432_v50 = vsel %vm1371_vm1, %v9591_v48, -inf }
 0x3ab   : > { %v1413_v23 = vpop.xlane.xlu1 %1412  ;;  %12282 = vst [vmem:[#allocation165_spill] sm:$0xff] %v9581_v59 }
 0x3ac   : > { %v1481_v7 = vsub.f32 %v9412_v30, %v1413_v23  ;;  %v1573_v23 = vsel %vm1371_vm1, %v9572_v44, 0.0  ;;  %v9585_v30 = vpop.f32.mrf.mxu3 }
 0x3ae   : > { %v1526_v33 = vmul.f32 1.442695, %v1481_v7  ;;  %v1453_v7 = vsel %vm1371_vm1, %v9575_v37, -inf }
 0x3b0   : > { %1595 = vadd.xlane.f32.xlu0 %v1594_v9  ;;  %7716 = vpow2.f32 %v1526_v33  ;;  %v1504_v9 = vmul.f32 1.442695, %v1470_v2  ;;  %v9597_v38 = vpop.permute.xlu2 %2737 }
 0x3b1   : > { %12283 = vst [vmem:[#allocation166_spill] sm:$0xff] %v9597_v38  ;;  %v9599_v33 = vpop.permute.xlu0 %2712 }
 0x3b2   : > { %7718 = vpow2.f32 %v1504_v9  ;;  %12284 = vst [vmem:[#allocation167_spill] sm:$0xff] %v9599_v33  ;;  %v1473_v9 = vsub.f32 %v9143_v51, %v9457_v41 }
 0x3b4   : > { %v1366_v2 = vpop.f32.mrf.mxu3  ;;  %v1510_v33 = vmul.f32 1.442695, %v1473_v9  ;;  %v9636_v9 = vadd.f32 %v9471_v22, %v9048_v54 }
 0x3b5   : > { %v9606_v57 = vadd.f32 %v1366_v2, %v9048_v54 }
 0x3b6   : > { %1574 = vadd.xlane.f32.xlu2 %v1573_v23  ;;  %v9593_v55 = vpop.eup %7716  ;;  %7720 = vpow2.f32 %v1510_v33 }
 0x3b7   : > { %v1603_v23 = vsel %vm1371_vm1, %v9593_v55, 0.0  ;;  %12285 = vst [vmem:[#allocation168_spill] sm:$0xff] %v9606_v57  ;;  %v1462_v38 = vsel %vm1371_vm1, %v9606_v57, -inf }
 0x3b8   : > { %1454 = vmax.xlane.f32.xlu0 %v1453_v7  ;;  %v9603_v7 = vpop.eup %7718  ;;  %v1407_v59 = vpop.xlane.xlu2 %1406 }
 0x3b9   : > { %v9618_v37 = vpop.permute.xlu0 %2743  ;;  %v1479_v22 = vsub.f32 %v9335_v36, %v1407_v59 }
 0x3ba   : > { %12286 = vst [vmem:[#allocation169_spill] sm:$0xff] %v9618_v37 }
 0x3be   : > { %1433 = vmax.xlane.f32.xlu2 %v1432_v50  ;;  %v1570_v50 = vsel %vm1371_vm1, %v9603_v7, 0.0 }
 0x3c0   : > { %1604 = vadd.xlane.f32.xlu0 %v1603_v23  ;;  %v9616_v23 = vadd.f32 %v9440_v31, %v9119_v35  ;;  %v9622_v41 = vpop.permute.xlu2 %4215 }
 0x3c1   : > { %12287 = vst [vmem:[#allocation170_spill] sm:$0xff] %v9622_v41  ;;  %v9624_v2 = vpop.xlane.xlu0 %1409 }
 0x3c2   : > { %v1429_v51 = vsel %vm1371_vm1, %v9616_v23, -inf }
 0x3c6   : > { %1571 = vadd.xlane.f32.xlu1 %v1570_v50  ;;  %v9626_v50 = vpop.eup %7720 }
 0x3c7   : > { %v1579_v31 = vsel %vm1371_vm1, %v9626_v50, 0.0 }
 0x3c8   : > { %1463 = vmax.xlane.f32.xlu0 %v1462_v38  ;;  %v1476_v38 = vsub.f32 %v9248_v14, %v9548_v0  ;;  %v1438_v14 = vsel %vm1371_vm1, %v9636_v9, -inf }
 0x3c9   : > { %v9638_v41 = vpop.permute.xlu0 %5230 }
 0x3ca   : > { %v1516_v33 = vmul.f32 1.442695, %v1476_v38  ;;  %12288 = vst [vmem:[#allocation171_spill] sm:$0xff] %v9638_v41  ;;  %v9651_v38 = vpop.permute.xlu1 %5257  ;;  %v1522_v41 = vmul.f32 1.442695, %v1479_v22 }
 0x3cb   : > { %12291 = vst [vmem:[#allocation174_spill] sm:$0xff] %v9651_v38 }
 0x3cc   : > { %7722 = vpow2.f32 %v1516_v33 }
 0x3cd   : > { %7724 = vpow2.f32 %v1522_v41 }
 0x3ce   : > { %1430 = vmax.xlane.f32.xlu1 %v1429_v51  ;;  %v1416_v51 = vpop.xlane.xlu2 %1415 }
 0x3d2   : > { %v9644_v0 = vpop.eup %7722  ;;  %v9665_v59 = vpop.permute.xlu1 %5348 }
 0x3d3   : > { %v1588_v33 = vsel %vm1371_vm1, %v9644_v0, 0.0  ;;  %12292 = vst [vmem:[#allocation175_spill] sm:$0xff] %v9665_v59  ;;  %v9667_v22 = vpop.eup %7724 }
 0x3d4   : > { %v1597_v41 = vsel %vm1371_vm1, %v9667_v22, 0.0 }
 0x3d6   : > { %1580 = vadd.xlane.f32.xlu1 %v1579_v31  ;;  %5317 = vrot.lane.b32.xlu2 %v8619_v58, %s8227_s19  ;;  %v9646_v31 = vpop.permute.xlu2 %5255  ;;  %v9648_v58 = vpop.permute.xlu0 %5350 }
 0x3d7   : > { %12289 = vst [vmem:[#allocation172_spill] sm:$0xff] %v9646_v31 }
 0x3d8   : > { %12290 = vst [vmem:[#allocation173_spill] sm:$0xff] %v9648_v58  ;;  %v1474_v58 = vsub.f32 %v9241_v12, %v9511_v24 }
 0x3dc   : > { %5381 = vrot.lane.b32.xlu0 %v8714_v29, %s8227_s19  ;;  %v9657_v29 = vadd.f32 %v9517_v42, %v9119_v35  ;;  %v1482_v42 = vsub.f32 %v9396_v17, %v1416_v51 }
 0x3de   : > { %1439 = vmax.xlane.f32.xlu1 %v1438_v14  ;;  %v1447_v36 = vsel %vm1371_vm1, %v9657_v29, -inf  ;;  %v1528_v24 = vmul.f32 1.442695, %v1482_v42 }
 0x3e0   : > { %v1566_v14 = vpop.xlane.xlu2 %1565 }
 0x3e1   : > { %7726 = vrcp.f32 %v1566_v14 }
 0x3e6   : > { %1589 = vadd.xlane.f32.xlu1 %v1588_v33  ;;  %v1512_v33 = vmul.f32 1.442695, %v1474_v58  ;;  %v9676_v58 = vadd.f32 %v9565_v16, %v9048_v54 }
 0x3e7   : > { %v7727_v38 = vpop.eup %7726 }
 0x3e8   : > { %v1692_v57 = vmul.f32 %v7727_v38, %v9459_v21  ;;  %v1456_v42 = vsel %vm1371_vm1, %v9676_v58, -inf }
 0x3eb   : > { %v9659_v37 = vpop.xlane.xlu0 %1418 }
 0x3ee   : > { %1448 = vmax.xlane.f32.xlu1 %v1447_v36 }
 0x3f3   : > { %v1569_v31 = vpop.xlane.xlu0 %1568 }
 0x3f4   : > { %7728 = vrcp.f32 %v1569_v31  ;;  %v1724_v31 = vpack.c.bf16 %v1692_v57, %v1692_v57 }
 0x3f5   : > { %7730 = vpow2.f32 %v1512_v33 }
 0x3f6   : > { %1598 = vadd.xlane.f32.xlu1 %v1597_v41  ;;  %v1422_v12 = vpop.xlane.xlu1 %1421  ;;  %7732 = vpow2.f32 %v1528_v24 }
 0x3f7   : > { %v1484_v14 = vsub.f32 %v9493_v62, %v1422_v12  ;;  %v1758_v62 = vunpack.c.l.b16 %v1724_v31 }
 0x3f9   : > { %v1532_v36 = vmul.f32 1.442695, %v1484_v14 }
 0x3fa   : > { %v7729_v17 = vpop.eup %7728 }
 0x3fb   : > { %v9678_v51 = vpop.eup %7730  ;;  %v1693_v33 = vmul.f32 %v7729_v17, %v9490_v15  ;;  %7734 = vpow2.f32 %v1532_v36  ;;  %v9691_v15 = vadd.f32 %v9486_v5, %v9119_v35  ;;  %v1368_v36 = vpop.f32.mrf.mxu3 }
 0x3fc   : > { %v1582_v21 = vsel %vm1371_vm1, %v9678_v51, 0.0  ;;  %v9685_v38 = vpop.eup %7732  ;;  %v9702_v5 = vadd.f32 %v1368_v36, %v9119_v35 }
 0x3fd   : > { %v1725_v41 = vpack.c.bf16 %v1693_v33, %v1693_v33  ;;  %v1606_v57 = vsel %vm1371_vm1, %v9685_v38, 0.0  ;;  %v1441_v17 = vsel %vm1371_vm1, %v9691_v15, -inf  ;;  %v1425_v33 = vpop.xlane.xlu2 %1424 }
 0x3fe   : > { %1457 = vmax.xlane.f32.xlu1 %v1456_v42  ;;  %v1465_v31 = vsel %vm1371_vm1, %v9702_v5, -inf  ;;  %v9714_v42 = vpop.xlane.xlu0 %1427 }
 0x3ff   : > { %v1759_v16 = vunpack.c.l.b16 %v1725_v41  ;;  %1583 = vadd.xlane.f32.xlu2 %v1582_v21 }
 0x401   : > { %v1760_v12 = vpack.c.b16 %v1759_v16, %v1758_v62  ;;  %v9687_v14 = vpop.eup %7734  ;;  %v1477_v62 = vsub.f32 %v9321_v25, %v9567_v39 }
 0x402   : > { %v1612_v24 = vsel %vm1371_vm1, %v9687_v14, 0.0 }
 0x403   : > { %7291 = vmatmul.msk.bf16.vlgmr.msra.gmra.mxu3 %vm1371_vm1, %v1760_v12 }
 0x404   : > { %1917 = vmatpush.bf16.msra.mxu3 %v8641_v49 }
 0x405   : > { %v9712_v41 = vpop.permute.xlu2 %5008 }
 0x406   : > { %1607 = vadd.xlane.f32.xlu1 %v1606_v57  ;;  %1613 = vadd.xlane.f32.xlu0 %v1612_v24  ;;  %12293 = vst [vmem:[#allocation176_spill] sm:$0xff] %v9712_v41  ;;  %v1578_v16 = vpop.xlane.xlu0 %1577  ;;  %v1518_v57 = vmul.f32 1.442695, %v1477_v62 }
 0x407   : > { %1442 = vmax.xlane.f32.xlu2 %v1441_v17 }
 0x40e   : > { %1466 = vmax.xlane.f32.xlu1 %v1465_v31  ;;  %v9716_v35 = vpop.permute.xlu1 %4883  ;;  %v9724_v59 = vpop.xlane.xlu0 %1436 }
 0x41a   : > { %5323 = vrot.lane.b32.xlu0 %v8671_v45, %s8227_s19 }
 0x41f   : > { %5319 = vrot.lane.b32.xlu2 %v8637_v8, %s8227_s19 }
 0x427   : > { %5472 = vrot.lane.b32.xlu1 %v8800_v40, %s8227_s19  ;;  %v1485_v40 = vsub.f32 %v9469_v47, %v1425_v33 }
 0x429   : > { %v1575_v21 = vpop.xlane.xlu2 %1574  ;;  %v1534_v41 = vmul.f32 1.442695, %v1485_v40 }
 0x42a   : > { %7736 = vrcp.f32 %v1575_v21 }
 0x430   : > { %v7737_v12 = vpop.eup %7736 }
 0x431   : > { %v1695_v8 = vmul.f32 %v7737_v12, %v9572_v44 }
 0x433   : > { %v1727_v36 = vpack.c.bf16 %v1695_v8, %v1695_v8  ;;  %v1587_v8 = vpop.xlane.xlu0 %1586 }
 0x439   : > { %v1572_v45 = vpop.xlane.xlu1 %1571 }
 0x43a   : > { %7738 = vrcp.f32 %v1572_v45  ;;  %v1787_v45 = vunpack.c.l.b16 %v1727_v36 }
 0x43b   : > { %7740 = vpow2.f32 %v1518_v57 }
 0x43c   : > { %7742 = vrcp.f32 %v1578_v16  ;;  %v9734_v16 = vadd.f32 %v9533_v10, %v9048_v54 }
 0x440   : > { %v7739_v24 = vpop.eup %7738 }
 0x441   : > { %v1694_v17 = vmul.f32 %v7739_v24, %v9603_v7  ;;  %v1431_v31 = vpop.xlane.xlu1 %1430  ;;  %v9726_v39 = vpop.eup %7740  ;;  %v1450_v24 = vsel %vm1371_vm1, %v9734_v16, -inf }
 0x442   : > { %v1487_v21 = vsub.f32 %v9616_v23, %v1431_v31  ;;  %v1591_v33 = vsel %vm1371_vm1, %v9726_v39, 0.0  ;;  %v7743_v23 = vpop.eup %7742 }
 0x443   : > { %v1726_v25 = vpack.c.bf16 %v1694_v17, %v1694_v17 }
 0x444   : > { %v1538_v62 = vmul.f32 1.442695, %v1487_v21 }
 0x445   : > { %v1786_v44 = vunpack.c.l.b16 %v1726_v25 }
 0x446   : > { %7744 = vpow2.f32 %v1538_v62 }
 0x447   : > { %7746 = vpow2.f32 %v1534_v41  ;;  %v1788_v47 = vpack.c.b16 %v1787_v45, %v1786_v44  ;;  %v1696_v41 = vmul.f32 %v7743_v23, %v9513_v56  ;;  %v9749_v44 = vpop.xlane.xlu0 %1445 }
 0x448   : > { %1592 = vadd.xlane.f32.xlu2 %v1591_v33 }
 0x449   : > { %v1581_v7 = vpop.xlane.xlu1 %1580  ;;  %7292 = vmatmul.msk.bf16.vlgmr.msrb.gmra.mxu3 %vm1371_vm1, %v1788_v47  ;;  %v1728_v54 = vpack.c.bf16 %v1696_v41, %v1696_v41 }
 0x44a   : > { %7748 = vrcp.f32 %v1581_v7  ;;  %2029 = vmatpush.bf16.msrb.mxu3 %v8833_v60 }
 0x44b   : > { %v1814_v62 = vunpack.c.l.b16 %v1728_v54 }
 0x44c   : > { %v9736_v12 = vpop.eup %7744 }
 0x44d   : > { %v9738_v57 = vpop.eup %7746  ;;  %v1621_v40 = vsel %vm1371_vm1, %v9736_v12, 0.0 }
 0x44e   : > { %1622 = vadd.xlane.f32.xlu0 %v1621_v40  ;;  %v1615_v17 = vsel %vm1371_vm1, %v9738_v57, 0.0 }
 0x44f   : > { %v1596_v23 = vpop.xlane.xlu0 %1595 }
 0x450   : > { %v7749_v36 = vpop.eup %7748  ;;  %1451 = vmax.xlane.f32.xlu2 %v1450_v24 }
 0x451   : > { %v1697_v10 = vmul.f32 %v7749_v36, %v9626_v50  ;;  %v1440_v31 = vpop.xlane.xlu1 %1439  ;;  %1616 = vadd.xlane.f32.xlu1 %v1615_v17 }
 0x452   : > { %v1490_v56 = vsub.f32 %v9636_v9, %v1440_v31  ;;  %v1434_v9 = vpop.xlane.xlu2 %1433 }
 0x453   : > { %v1729_v21 = vpack.c.bf16 %v1697_v10, %v1697_v10 }
 0x454   : > { %v1544_v25 = vmul.f32 1.442695, %v1490_v56 }
 0x455   : > { %v1815_v45 = vunpack.c.l.b16 %v1729_v21 }
 0x456   : > { %7750 = vpow2.f32 %v1544_v25 }
 0x457   : > { %v1816_v47 = vpack.c.b16 %v1815_v45, %v1814_v62  ;;  %7752 = vrcp.f32 %v1596_v23 }
 0x459   : > { %v9751_v33 = vpop.xlane.xlu1 %1589  ;;  %7293 = vmatmul.msk.bf16.vlgmr.msra.gmra.mxu1 %vm1371_vm1, %v1816_v47 }
 0x45a   : > { %1973 = vmatpush.bf16.msra.mxu1 %v8773_v46  ;;  %v9762_v54 = vpop.permute.xlu2 %5317 }
 0x45b   : > { %12294 = vst [vmem:[#allocation177_spill] sm:$0xff] %v9762_v54 }
 0x45c   : > { %v9755_v7 = vpop.eup %7750 }
 0x45d   : > { %v1630_v50 = vsel %vm1371_vm1, %v9755_v7, 0.0  ;;  %v7753_v17 = vpop.eup %7752 }
 0x45e   : > { %1631 = vadd.xlane.f32.xlu0 %v1630_v50  ;;  %v1702_v31 = vmul.f32 %v7753_v17, %v9563_v3 }
 0x460   : > { %v1734_v21 = vpack.c.bf16 %v1702_v31, %v1702_v31  ;;  %v1488_v31 = vsub.f32 %v9591_v48, %v1434_v9 }
 0x461   : > { %v1449_v41 = vpop.xlane.xlu1 %1448 }
 0x462   : > { %v1493_v40 = vsub.f32 %v9657_v29, %v1449_v41  ;;  %v1898_v47 = vunpack.c.l.b16 %v1734_v21 }
 0x464   : > { %v1550_v24 = vmul.f32 1.442695, %v1493_v40 }
 0x466   : > { %7754 = vpow2.f32 %v1550_v24 }
 0x468   : > { %5261 = vrot.lane.b32.xlu2 %v8588_v18, %s8227_s19 }
 0x469   : > { %v1599_v36 = vpop.xlane.xlu1 %1598 }
 0x46a   : > { %7756 = vrcp.f32 %v1599_v36  ;;  %5288 = vrot.lane.b32.xlu1 %v8597_v27, %s8227_s19  ;;  %v1480_v36 = vsub.f32 %v9403_v19, %v9624_v2 }
 0x46b   : > { %7758 = vrcp.f32 %v1587_v8 }
 0x46c   : > { %v9766_v10 = vpop.eup %7754 }
 0x46d   : > { %v1639_v29 = vsel %vm1371_vm1, %v9766_v10, 0.0 }
 0x46e   : > { %1640 = vadd.xlane.f32.xlu0 %v1639_v29 }
 0x470   : > { %v7757_v56 = vpop.eup %7756 }
 0x471   : > { %v1703_v18 = vmul.f32 %v7757_v56, %v9667_v22  ;;  %v7759_v62 = vpop.eup %7758  ;;  %v1458_v48 = vpop.xlane.xlu1 %1457 }
 0x472   : > { %v1584_v25 = vpop.xlane.xlu2 %1583  ;;  %v1699_v27 = vmul.f32 %v7759_v62, %v9541_v43  ;;  %v1524_v43 = vmul.f32 1.442695, %v1480_v36 }
 0x473   : > { %v1735_v45 = vpack.c.bf16 %v1703_v18, %v1703_v18  ;;  %7760 = vrcp.f32 %v1584_v25 }
 0x474   : > { %v1731_v3 = vpack.c.bf16 %v1699_v27, %v1699_v27  ;;  %7762 = vpow2.f32 %v1524_v43 }
 0x475   : > { %v1899_v50 = vunpack.c.l.b16 %v1735_v45 }
 0x476   : > { %v1843_v24 = vunpack.c.l.b16 %v1731_v3 }
 0x477   : > { %v1900_v23 = vpack.c.b16 %v1899_v50, %v1898_v47 }
 0x479   : > { %v7761_v8 = vpop.eup %7760  ;;  %7296 = vmatmul.msk.bf16.vlgmr.msra.gmra.mxu3 %vm1371_vm1, %v1900_v23  ;;  %v9800_v50 = vpop.xlane.xlu1 %1607 }
 0x47a   : > { %v1698_v41 = vmul.f32 %v7761_v8, %v9678_v51  ;;  %2141 = vmatpush.bf16.msra.mxu3 %v9080_v28  ;;  %v1540_v51 = vmul.f32 1.442695, %v1488_v31  ;;  %v1443_v56 = vpop.xlane.xlu2 %1442  ;;  %v9785_v2 = vpop.eup %7762  ;;  %v1496_v8 = vsub.f32 %v9676_v58, %v1458_v48 }
 0x47b   : > { %v1491_v19 = vsub.f32 %v9691_v15, %v1443_v56  ;;  %v1600_v62 = vsel %vm1371_vm1, %v9785_v2, 0.0  ;;  %v8216_v15 = vld [vmem:[%s12070_s5 + $0x8] sm:$0xff] }
 0x47c   : > { %v1730_v40 = vpack.c.bf16 %v1698_v41, %v1698_v41  ;;  %7764 = vpow2.f32 %v1540_v51  ;;  %v9798_v47 = vadd.f32 %v8216_v15, %v9585_v30  ;;  %v1556_v41 = vmul.f32 1.442695, %v1496_v8 }
 0x47e   : > { %v1842_v22 = vunpack.c.l.b16 %v1730_v40  ;;  %v1459_v23 = vsel %vm1371_vm1, %v9798_v47, -inf  ;;  %v9809_v40 = vpop.xlane.xlu0 %1454 }
 0x480   : > { %v1844_v17 = vpack.c.b16 %v1843_v24, %v1842_v22 }
 0x481   : > { %v1467_v30 = vpop.xlane.xlu1 %1466 }
 0x482   : > { %5441 = vrot.lane.b32.xlu0 %v8769_v1, %s8227_s19  ;;  %7294 = vmatmul.msk.bf16.vlgmr.msrb.gmra.mxu1 %vm1371_vm1, %v1844_v17  ;;  %v1546_v1 = vmul.f32 1.442695, %v1491_v19  ;;  %v9787_v25 = vpop.eup %7764  ;;  %v1499_v24 = vsub.f32 %v9702_v5, %v1467_v30  ;;  %v9824_v51 = vpop.permute.xlu2 %5319 }
 0x483   : > { %2085 = vmatpush.bf16.msrb.mxu1 %v8944_v20  ;;  %v1624_v45 = vsel %vm1371_vm1, %v9787_v25, 0.0  ;;  %12295 = vst [vmem:[#allocation178_spill] sm:$0xff] %v9824_v51 }
 0x484   : > { %7766 = vpow2.f32 %v1546_v1  ;;  %v1562_v22 = vmul.f32 1.442695, %v1499_v24 }
 0x485   : > { %7768 = vpow2.f32 %v1556_v41  ;;  %v1483_v41 = vsub.f32 %v9476_v13, %v9659_v37  ;;  %v2277_v13 = vrot.slane %v9159_v6, 4 }
 0x486   : > { %v1779_v29 = vpop.f32.mrf.mxu3  ;;  %v9814_v17 = vpop.xlane.xlu0 %1604  ;;  %7770 = vpow2.f32 %v1562_v22 }
 0x487   : > { %v2204_v21 = vpack.c.bf16 %v1779_v29, %v1779_v29  ;;  %7772 = vrcp.f32 %v9751_v33  ;;  %v1530_v24 = vmul.f32 1.442695, %v1483_v41  ;;  %v12299_v41 = vld [vmem:[#allocation18_spill] sm:$0xff] }
 0x489   : > { %2237 = vst.msk [vmem:[#allocation2] sm:$0xf] %vm2236_vm2, %v2204_v21 }
 0x48a   : > { %v9802_v27 = vpop.eup %7766 }
 0x48b   : > { %v1633_v3 = vsel %vm1371_vm1, %v9802_v27, 0.0  ;;  %v9812_v36 = vpop.eup %7768 }
 0x48c   : > { %v1648_v58 = vsel %vm1371_vm1, %v9812_v36, 0.0  ;;  %v9818_v31 = vpop.eup %7770 }
 0x48d   : > { %v1657_v5 = vsel %vm1371_vm1, %v9818_v31, 0.0  ;;  %v7773_v21 = vpop.eup %7772 }
 0x48e   : > { %v1781_v9 = vpop.f32.mrf.mxu3  ;;  %v9822_v43 = vpop.xlane.xlu0 %1463  ;;  %v1700_v48 = vmul.f32 %v7773_v21, %v9644_v0  ;;  %v2281_v21 = vunpack.c.l.b16 %v2277_v13 }
 0x48f   : > { %v2205_v18 = vpack.c.bf16 %v1781_v9, %v1781_v9 }
 0x490   : > { %v1732_v1 = vpack.c.bf16 %v1700_v48, %v1700_v48 }
 0x491   : > { %2238 = vst.msk [vmem:[#allocation2 + $0x4] sm:$0xf] %vm2236_vm2, %v2205_v18  ;;  %1601 = vadd.xlane.f32.xlu2 %v1600_v62 }
 0x492   : > { %v1870_v8 = vunpack.c.l.b16 %v1732_v1 }
 0x494   : > { %1625 = vadd.xlane.f32.xlu1 %v1624_v45 }
 0x496   : > { %v9829_v29 = vpop.permute.xlu0 %5381 }
 0x499   : > { %1460 = vmax.xlane.f32.xlu2 %v1459_v23  ;;  %v9831_v19 = vpop.permute.xlu1 %5472 }
 0x49a   : > { %12296 = vst [vmem:[#allocation179_spill] sm:$0xff] %v9831_v19 }
 0x49c   : > { %1634 = vadd.xlane.f32.xlu1 %v1633_v3 }
 0x49e   : > { %v1614_v9 = vpop.xlane.xlu0 %1613 }
 0x4ac   : > { %1649 = vadd.xlane.f32.xlu0 %v1648_v58 }
 0x4b1   : > { %5354 = vrot.lane.b32.xlu2 %v8707_v61, %s8227_s19 }
 0x4b4   : > { %1658 = vadd.xlane.f32.xlu0 %v1657_v5 }
 0x4bb   : > { %v1593_v56 = vpop.xlane.xlu2 %1592 }
 0x4bc   : > { %7774 = vrcp.f32 %v1593_v56  ;;  %v2276_v56 = vrot.slane %v9094_v63, 4 }
 0x4be   : > { %v2280_v1 = vunpack.c.l.b16 %v2276_v56 }
 0x4c2   : > { %v7775_v61 = vpop.eup %7774 }
 0x4c3   : > { %v1701_v18 = vmul.f32 %v7775_v61, %v9726_v39  ;;  %v1452_v62 = vpop.xlane.xlu2 %1451 }
 0x4c4   : > { %v1617_v45 = vpop.xlane.xlu1 %1616  ;;  %v1494_v15 = vsub.f32 %v9734_v16, %v1452_v62  ;;  %v2282_v62 = vpack.c.b16 %v2281_v21, %v2280_v1 }
 0x4c5   : > { %v1733_v23 = vpack.c.bf16 %v1701_v18, %v1701_v18  ;;  %7776 = vrcp.f32 %v1617_v45 }
 0x4c6   : > { %7778 = vrcp.f32 %v1614_v9  ;;  %v1552_v33 = vmul.f32 1.442695, %v1494_v15 }
 0x4c7   : > { %v1871_v3 = vunpack.c.l.b16 %v1733_v23  ;;  %v2287_v23 = vsel %vm900_vm0, %v2282_v62, 0  ;;  %v12301_v62 = vld [vmem:[#allocation152_spill] sm:$0xff] }
 0x4c8   : > { %7780 = vpow2.f32 %v1552_v33  ;;  %5478 = vrot.lane.b32.xlu0 %v8845_v26, %s8227_s19 }
 0x4c9   : > { %v1872_v0 = vpack.c.b16 %v1871_v3, %v1870_v8  ;;  %7782 = vpow2.f32 %v1530_v24  ;;  %v12298_v3 = vld [vmem:[#allocation11_spill] sm:$0xff] }
 0x4ca   : > { %7784 = vrcp.f32 %v9814_v17 }
 0x4cb   : > { %v7777_v30 = vpop.eup %7776  ;;  %7295 = vmatmul.msk.bf16.vlgmr.msrb.gmra.mxu2 %vm1371_vm1, %v1872_v0  ;;  %v9872_v0 = vpop.permute.xlu2 %5261 }
 0x4cc   : > { %v7779_v39 = vpop.eup %7778  ;;  %2113 = vmatpush.bf16.msrb.mxu2 %v8963_v53  ;;  %v1807_v16 = vpop.f32.mrf.mxu3  ;;  %v1709_v22 = vmul.f32 %v7777_v30, %v9738_v57 }
 0x4cd   : > { %v2206_v58 = vpack.c.bf16 %v1807_v16, %v1807_v16  ;;  %v1708_v37 = vmul.f32 %v7779_v39, %v9687_v14 }
 0x4ce   : > { %v9843_v5 = vpop.eup %7780  ;;  %v1741_v57 = vpack.c.bf16 %v1709_v22, %v1709_v22 }
 0x4cf   : > { %2239 = vst.msk [vmem:[#allocation2 + $0x8] sm:$0xf] %vm2236_vm2, %v2206_v58  ;;  %v1642_v26 = vsel %vm1371_vm1, %v9843_v5, 0.0  ;;  %v1740_v48 = vpack.c.bf16 %v1708_v37, %v1708_v37  ;;  %v9853_v14 = vpop.eup %7782 }
 0x4d0   : > { %5596 = vrot.lane.b32.xlu0 %v8929_v11, %s8227_s19  ;;  %1643 = vadd.xlane.f32.xlu1 %v1642_v26  ;;  %v1983_v6 = vunpack.c.l.b16 %v1741_v57  ;;  %v1609_v63 = vsel %vm1371_vm1, %v9853_v14, 0.0  ;;  %v7785_v58 = vpop.eup %7784 }
 0x4d1   : > { %v1982_v45 = vunpack.c.l.b16 %v1740_v48  ;;  %v1705_v26 = vmul.f32 %v7785_v58, %v9593_v55 }
 0x4d3   : > { %v1984_v11 = vpack.c.b16 %v1983_v6, %v1982_v45  ;;  %v1737_v57 = vpack.c.bf16 %v1705_v26, %v1705_v26  ;;  %v1486_v45 = vsub.f32 %v12301_v62, %v9714_v42  ;;  %v12303_v42 = vld [vmem:[#allocation21_spill] sm:$0xff] }
 0x4d4   : > { %v1809_v61 = vpop.f32.mrf.mxu3 }
 0x4d5   : > { %v2207_v9 = vpack.c.bf16 %v1809_v61, %v1809_v61  ;;  %v1536_v55 = vmul.f32 1.442695, %v1486_v45  ;;  %v12309_v45 = vld [vmem:[#allocation90_spill] sm:$0xff] }
 0x4d6   : > { %v1835_v18 = vpop.f32.mrf.mxu1 }
 0x4d7   : > { %2240 = vst.msk [vmem:[#allocation2 + $0xc] sm:$0xf] %vm2236_vm2, %v2207_v9  ;;  %v2208_v15 = vpack.c.bf16 %v1835_v18, %v1835_v18  ;;  %v1927_v9 = vunpack.c.l.b16 %v1737_v57 }
 0x4d8   : > { %5447 = vrot.lane.b32.xlu0 %v8807_v52, %s8227_s19  ;;  %v12297_v52 = vld [vmem:[#allocation14_spill] sm:$0xff] }
 0x4d9   : > { %2241 = vst.msk [vmem:[#allocation2 + $0x10] sm:$0xf] %vm2236_vm2, %v2208_v15 }
 0x4da   : > { %1610 = vadd.xlane.f32.xlu2 %v1609_v63  ;;  %12300 = vst [vmem:[#allocation14_spill] sm:$0xff] %v9872_v0 }
 0x4db   : > { %7299 = vmatmul.msk.bf16.vlgmr.msra.gmra.mxu2 %vm1371_vm1, %v1984_v11  ;;  %v12302_v11 = vld [vmem:[#allocation43_spill] sm:$0xff] }
 0x4dc   : > { %2296 = vmatpush.bf16.xpose.msra.mxu2 %v2287_v23 }
 0x4de   : > { %v1837_v33 = vpop.f32.mrf.mxu1 }
 0x4df   : > { %v2209_v8 = vpack.c.bf16 %v1837_v33, %v1837_v33  ;;  %v12304_v33 = vld [vmem:[#allocation9_spill] sm:$0xff] }
 0x4e0   : > { %5509 = vrot.lane.b32.xlu0 %v8874_v4, %s8227_s19 }
 0x4e1   : > { %2242 = vst.msk [vmem:[#allocation2 + $0x14] sm:$0xf] %vm2236_vm2, %v2209_v8  ;;  %v9900_v8 = vpop.permute.xlu1 %5288 }
 0x4e9   : > { %5385 = vrot.lane.b32.xlu1 %v12297_v52, %s8227_s19  ;;  %v12305_v52 = vld [vmem:[#allocation15_spill] sm:$0xff] }
 0x4f2   : > { %5379 = vrot.lane.b32.xlu2 %v12298_v3, %s8227_s19  ;;  %v12306_v3 = vld [vmem:[#allocation7_spill] sm:$0xff] }
 0x4fa   : > { %5474 = vrot.lane.b32.xlu2 %v12299_v41, %s8227_s19  ;;  %v9906_v41 = vpop.permute.xlu0 %5323 }
 0x4fb   : > { %12307 = vst [vmem:[#allocation11_spill] sm:$0xff] %v9906_v41 }
 0x4fc   : > { %v1919_v30 = vpop.f32.mrf.mxu3 }
 0x4fd   : > { %v2214_v39 = vpack.c.bf16 %v1919_v30, %v1919_v30 }
 0x4ff   : > { %2247 = vst.msk [vmem:[#allocation2 + $0x28] sm:$0xf] %vm2236_vm2, %v2214_v39  ;;  %v1863_v4 = vpop.f32.mrf.mxu1 }
 0x500   : > { %v2210_v24 = vpack.c.bf16 %v1863_v4, %v1863_v4 }
 0x502   : > { %2243 = vst.msk [vmem:[#allocation2 + $0x18] sm:$0xf] %vm2236_vm2, %v2210_v24  ;;  %v9913_v4 = vpop.xlane.xlu0 %1622 }
 0x504   : > { %v1921_v16 = vpop.f32.mrf.mxu3  ;;  %v1602_v22 = vpop.xlane.xlu2 %1601 }
 0x505   : > { %v2215_v13 = vpack.c.bf16 %v1921_v16, %v1921_v16  ;;  %7786 = vrcp.f32 %v1602_v22 }
 0x507   : > { %2248 = vst.msk [vmem:[#allocation2 + $0x2c] sm:$0xf] %vm2236_vm2, %v2215_v13  ;;  %v1865_v37 = vpop.f32.mrf.mxu1  ;;  %v9911_v39 = vpop.xlane.xlu1 %1625 }
 0x508   : > { %v2211_v56 = vpack.c.bf16 %v1865_v37, %v1865_v37 }
 0x50a   : > { %2244 = vst.msk [vmem:[#allocation2 + $0x1c] sm:$0xf] %vm2236_vm2, %v2211_v56 }
 0x50b   : > { %v7787_v17 = vpop.eup %7786 }
 0x50c   : > { %v1704_v21 = vmul.f32 %v7787_v17, %v9785_v2  ;;  %v1461_v48 = vpop.xlane.xlu2 %1460  ;;  %v1632_v17 = vpop.xlane.xlu0 %1631 }
 0x50d   : > { %v1497_v61 = vsub.f32 %v9798_v47, %v1461_v48 }
 0x50e   : > { %v1736_v1 = vpack.c.bf16 %v1704_v21, %v1704_v21 }
 0x50f   : > { %v1558_v6 = vmul.f32 1.442695, %v1497_v61  ;;  %v1635_v37 = vpop.xlane.xlu1 %1634 }
 0x510   : > { %v1926_v18 = vunpack.c.l.b16 %v1736_v1 }
 0x511   : > { %7788 = vpow2.f32 %v1558_v6 }
 0x512   : > { %v1928_v15 = vpack.c.b16 %v1927_v9, %v1926_v18  ;;  %7790 = vpow2.f32 %v1536_v55 }
 0x513   : > { %7792 = vrcp.f32 %v9800_v50 }
 0x514   : > { %7297 = vmatmul.msk.bf16.vlgmr.msrb.gmra.mxu0 %vm1371_vm1, %v1928_v15  ;;  %v9908_v30 = vpop.permute.xlu2 %5354 }
 0x515   : > { %2169 = vmatpush.bf16.msrb.mxu0 %v12302_v11  ;;  %12308 = vst [vmem:[#allocation18_spill] sm:$0xff] %v9908_v30 }
 0x517   : > { %v9886_v63 = vpop.eup %7788 }
 0x518   : > { %v1651_v2 = vsel %vm1371_vm1, %v9886_v63, 0.0  ;;  %v9890_v47 = vpop.eup %7790 }
 0x519   : > { %1652 = vadd.xlane.f32.xlu1 %v1651_v2  ;;  %v1618_v23 = vsel %vm1371_vm1, %v9890_v47, 0.0  ;;  %v7793_v16 = vpop.eup %7792  ;;  %v12310_v2 = vld [vmem:[#allocation62_spill] sm:$0xff] }
 0x51a   : > { %v1706_v13 = vmul.f32 %v7793_v16, %v9685_v38  ;;  %v1489_v38 = vsub.f32 %v9529_v34, %v9724_v59  ;;  %v1492_v34 = vsub.f32 %v9551_v32, %v9749_v44  ;;  %v12311_v59 = vld [vmem:[#allocation75_spill] sm:$0xff] }
 0x51c   : > { %v1738_v56 = vpack.c.bf16 %v1706_v13, %v1706_v13  ;;  %v1542_v62 = vmul.f32 1.442695, %v1489_v38  ;;  %v1548_v16 = vmul.f32 1.442695, %v1492_v34  ;;  %v12315_v34 = vld [vmem:[#allocation63_spill] sm:$0xff] }
 0x51e   : > { %v1954_v61 = vunpack.c.l.b16 %v1738_v56  ;;  %v12312_v56 = vld [vmem:[#allocation163_spill] sm:$0xff] }
 0x51f   : > { %v1495_v32 = vsub.f32 %v12312_v56, %v9809_v40 }
 0x523   : > { %1619 = vadd.xlane.f32.xlu2 %v1618_v23  ;;  %v2370_v23 = vrot.slane %v12310_v2, 4 }
 0x532   : > { %5505 = vrot.lane.b32.xlu1 %v12303_v42, %s8227_s19 }
 0x53a   : > { %5292 = vrot.lane.b32.xlu1 %v12304_v33, %s8227_s19  ;;  %v2369_v33 = vrot.slane %v12311_v59, 4  ;;  %v2307_v59 = vrot.slane %v12315_v34, 4  ;;  %v12322_v34 = vld [vmem:[#allocation72_spill] sm:$0xff] }
 0x53b   : > { %4983 = vrot.lane.b32.xlu2 %v12302_v11, %s8225_s15 }
 0x542   : > { %5412 = vrot.lane.b32.xlu1 %v12305_v52, %s8227_s19 }
 0x543   : > { %5286 = vrot.lane.b32.xlu2 %v12306_v3, %s8227_s19  ;;  %v2374_v3 = vunpack.c.l.b16 %v2370_v23 }
 0x54d   : > { %v1611_v24 = vpop.xlane.xlu2 %1610 }
 0x54e   : > { %7794 = vrcp.f32 %v1611_v24  ;;  %v1891_v22 = vpop.f32.mrf.mxu2 }
 0x54f   : > { %v2212_v58 = vpack.c.bf16 %v1891_v22, %v1891_v22  ;;  %7796 = vrcp.f32 %v1635_v37 }
 0x550   : > { %7798 = vrcp.f32 %v1632_v17 }
 0x551   : > { %2245 = vst.msk [vmem:[#allocation2 + $0x20] sm:$0xf] %vm2236_vm2, %v2212_v58  ;;  %7800 = vpow2.f32 %v1542_v62  ;;  %v2373_v58 = vunpack.c.l.b16 %v2369_v33 }
 0x552   : > { %7802 = vpow2.f32 %v1548_v16 }
 0x554   : > { %v7795_v26 = vpop.eup %7794 }
 0x555   : > { %v1707_v57 = vmul.f32 %v7795_v26, %v9853_v14  ;;  %v7797_v9 = vpop.eup %7796  ;;  %v2375_v26 = vpack.c.b16 %v2374_v3, %v2373_v58 }
 0x556   : > { %v1893_v50 = vpop.f32.mrf.mxu2  ;;  %v7799_v18 = vpop.eup %7798  ;;  %v1715_v15 = vmul.f32 %v7797_v9, %v9802_v27 }
 0x557   : > { %v1739_v21 = vpack.c.bf16 %v1707_v57, %v1707_v57  ;;  %v2213_v48 = vpack.c.bf16 %v1893_v50, %v1893_v50  ;;  %v1714_v42 = vmul.f32 %v7799_v18, %v9755_v7  ;;  %v9930_v37 = vpop.eup %7800  ;;  %v2380_v57 = vsel %vm900_vm0, %v2375_v26, 0  ;;  %v12313_v18 = vld [vmem:[#allocation17_spill] sm:$0xff]  ;;  %v12316_v26 = vld [vmem:[#allocation168_spill] sm:$0xff] }
 0x558   : > { %v1747_v52 = vpack.c.bf16 %v1715_v15, %v1715_v15  ;;  %v1627_v17 = vsel %vm1371_vm1, %v9930_v37, 0.0  ;;  %v1554_v50 = vmul.f32 1.442695, %v1495_v32 }
 0x559   : > { %v1955_v1 = vunpack.c.l.b16 %v1739_v21  ;;  %2246 = vst.msk [vmem:[#allocation2 + $0x24] sm:$0xf] %vm2236_vm2, %v2213_v48  ;;  %v1746_v24 = vpack.c.bf16 %v1714_v42, %v1714_v42  ;;  %v9939_v21 = vpop.eup %7802 }
 0x55a   : > { %v2067_v27 = vunpack.c.l.b16 %v1747_v52  ;;  %7804 = vpow2.f32 %v1554_v50  ;;  %v1636_v48 = vsel %vm1371_vm1, %v9939_v21, 0.0  ;;  %v1641_v50 = vpop.xlane.xlu0 %1640 }
 0x55b   : > { %v1956_v6 = vpack.c.b16 %v1955_v1, %v1954_v61  ;;  %v2066_v7 = vunpack.c.l.b16 %v1746_v24  ;;  %v9947_v1 = vpop.permute.xlu2 %5379  ;;  %7806 = vrcp.f32 %v9913_v4  ;;  %v2311_v24 = vunpack.c.l.b16 %v2307_v59 }
 0x55c   : > { %v2338_v59 = vrot.slane %v12322_v34, 4 }
 0x55d   : > { %7298 = vmatmul.msk.bf16.vlgmr.msra.gmra.mxu1 %vm1371_vm1, %v1956_v6  ;;  %v2068_v44 = vpack.c.b16 %v2067_v27, %v2066_v7  ;;  %v1498_v7 = vsub.f32 %v12316_v26, %v9822_v43 }
 0x55e   : > { %2197 = vmatpush.bf16.msra.mxu1 %v12309_v45  ;;  %v2003_v14 = vpop.f32.mrf.mxu2 }
 0x55f   : > { %v2220_v55 = vpack.c.bf16 %v2003_v14, %v2003_v14  ;;  %v1560_v56 = vmul.f32 1.442695, %v1498_v7 }
 0x560   : > { %v9943_v61 = vpop.eup %7804 }
 0x561   : > { %2253 = vst.msk [vmem:[#allocation2 + $0x40] sm:$0xf] %vm2236_vm2, %v2220_v55  ;;  %v1645_v40 = vsel %vm1371_vm1, %v9943_v61, 0.0  ;;  %v7807_v14 = vpop.eup %7806  ;;  %v12314_v55 = vld [vmem:[#allocation48_spill] sm:$0xff] }
 0x562   : > { %v2308_v2 = vrot.slane %v12314_v55, 4  ;;  %v1711_v23 = vmul.f32 %v7807_v14, %v9736_v12  ;;  %v12321_v55 = vld [vmem:[#allocation54_spill] sm:$0xff] }
 0x563   : > { %v9949_v38 = vpop.permute.xlu2 %5474 }
 0x564   : > { %v2312_v33 = vunpack.c.l.b16 %v2308_v2  ;;  %v1743_v52 = vpack.c.bf16 %v1711_v23, %v1711_v23  ;;  %v2339_v2 = vrot.slane %v12321_v55, 4 }
 0x566   : > { %v2005_v22 = vpop.f32.mrf.mxu2  ;;  %v2011_v58 = vunpack.c.l.b16 %v1743_v52 }
 0x567   : > { %v2221_v13 = vpack.c.bf16 %v2005_v22, %v2005_v22  ;;  %v2313_v22 = vpack.c.b16 %v2312_v33, %v2311_v24  ;;  %v2343_v24 = vunpack.c.l.b16 %v2339_v2 }
 0x569   : > { %2254 = vst.msk [vmem:[#allocation2 + $0x44] sm:$0xf] %vm2236_vm2, %v2221_v13  ;;  %v2318_v12 = vsel %vm900_vm0, %v2313_v22, 0 }
 0x56c   : > { %1628 = vadd.xlane.f32.xlu2 %v1627_v17  ;;  %v1644_v17 = vpop.xlane.xlu1 %1643 }
 0x56d   : > { %7302 = vmatmul.msk.bf16.vlgmr.msrb.gmra.mxu1 %vm1371_vm1, %v2068_v44 }
 0x56e   : > { %2389 = vmatpush.bf16.xpose.msrb.mxu1 %v2380_v57  ;;  %v12317_v57 = vld [vmem:[#allocation20_spill] sm:$0xff] }
 0x574   : > { %1637 = vadd.xlane.f32.xlu2 %v1636_v48 }
 0x57c   : > { %1646 = vadd.xlane.f32.xlu2 %v1645_v40 }
 0x591   : > { %v1947_v6 = vpop.f32.mrf.mxu0 }
 0x592   : > { %v2216_v9 = vpack.c.bf16 %v1947_v6, %v1947_v6  ;;  %v9975_v6 = vpop.permute.xlu1 %5385 }
 0x593   : > { %12318 = vst [vmem:[#allocation152_spill] sm:$0xff] %v9975_v6 }
 0x594   : > { %2249 = vst.msk [vmem:[#allocation2 + $0x30] sm:$0xf] %vm2236_vm2, %v2216_v9  ;;  %5443 = vrot.lane.b32.xlu2 %v12313_v18, %s8227_s19  ;;  %v12319_v9 = vld [vmem:[#allocation29_spill] sm:$0xff]  ;;  %v9980_v18 = vpop.permute.xlu0 %5441 }
 0x595   : > { %12320 = vst [vmem:[#allocation21_spill] sm:$0xff] %v9980_v18 }
 0x596   : > { %v1620_v62 = vpop.xlane.xlu2 %1619 }
 0x597   : > { %7808 = vrcp.f32 %v1620_v62 }
 0x598   : > { %7810 = vpow2.f32 %v1560_v56 }
 0x599   : > { %v1949_v15 = vpop.f32.mrf.mxu0  ;;  %7812 = vrcp.f32 %v9911_v39 }
 0x59a   : > { %v2217_v42 = vpack.c.bf16 %v1949_v15, %v1949_v15 }
 0x59c   : > { %2250 = vst.msk [vmem:[#allocation2 + $0x34] sm:$0xf] %vm2236_vm2, %v2217_v42  ;;  %v1653_v42 = vpop.xlane.xlu1 %1652  ;;  %v1650_v52 = vpop.xlane.xlu0 %1649 }
 0x59d   : > { %v7809_v4 = vpop.eup %7808 }
 0x59e   : > { %v1710_v3 = vmul.f32 %v7809_v4, %v9890_v47  ;;  %v9964_v32 = vpop.eup %7810  ;;  %v9968_v44 = vpop.permute.xlu2 %4983  ;;  %v12323_v4 = vld [vmem:[#allocation12_spill] sm:$0xff] }
 0x59f   : > { %v1654_v47 = vsel %vm1371_vm1, %v9964_v32, 0.0  ;;  %v7813_v14 = vpop.eup %7812 }
 0x5a0   : > { %v1742_v16 = vpack.c.bf16 %v1710_v3, %v1710_v3  ;;  %v1712_v39 = vmul.f32 %v7813_v14, %v9787_v25  ;;  %v2342_v25 = vunpack.c.l.b16 %v2338_v59 }
 0x5a2   : > { %v2010_v27 = vunpack.c.l.b16 %v1742_v16  ;;  %v1744_v16 = vpack.c.bf16 %v1712_v39, %v1712_v39  ;;  %v2344_v56 = vpack.c.b16 %v2343_v24, %v2342_v25 }
 0x5a4   : > { %v2012_v13 = vpack.c.b16 %v2011_v58, %v2010_v27 }
 0x5a6   : > { %7300 = vmatmul.msk.bf16.vlgmr.msrb.gmra.mxu3 %vm1371_vm1, %v2012_v13  ;;  %v9972_v48 = vpop.permute.xlu2 %5286  ;;  %v12324_v13 = vld [vmem:[#allocation74_spill] sm:$0xff] }
 0x5a7   : > { %2327 = vmatpush.bf16.xpose.msrb.mxu3 %v2318_v12  ;;  %v2401_v12 = vrot.slane %v12324_v13, 4 }
 0x5a9   : > { %v2405_v14 = vunpack.c.l.b16 %v2401_v12  ;;  %v12329_v12 = vld [vmem:[#allocation97_spill] sm:$0xff] }
 0x5bd   : > { %1655 = vadd.xlane.f32.xlu2 %v1654_v47  ;;  %v2038_v47 = vunpack.c.l.b16 %v1744_v16 }
 0x5d5   : > { %5503 = vrot.lane.b32.xlu2 %v12317_v57, %s8227_s19 }
 0x5da   : > { %v1975_v43 = vpop.f32.mrf.mxu1 }
 0x5db   : > { %v2218_v40 = vpack.c.bf16 %v1975_v43, %v1975_v43  ;;  %v12325_v43 = vld [vmem:[#allocation81_spill] sm:$0xff] }
 0x5dd   : > { %2251 = vst.msk [vmem:[#allocation2 + $0x38] sm:$0xf] %vm2236_vm2, %v2218_v40  ;;  %5598 = vrot.lane.b32.xlu2 %v12319_v9, %s8227_s19  ;;  %v2400_v40 = vrot.slane %v12325_v43, 4 }
 0x5df   : > { %v1629_v62 = vpop.xlane.xlu2 %1628 }
 0x5e0   : > { %7814 = vrcp.f32 %v1629_v62 }
 0x5e1   : > { %7816 = vrcp.f32 %v1641_v50 }
 0x5e2   : > { %v1977_v15 = vpop.f32.mrf.mxu1  ;;  %7818 = vrcp.f32 %v1653_v42 }
 0x5e3   : > { %v2219_v23 = vpack.c.bf16 %v1977_v15, %v1977_v15 }
 0x5e5   : > { %2252 = vst.msk [vmem:[#allocation2 + $0x3c] sm:$0xf] %vm2236_vm2, %v2219_v23  ;;  %5410 = vrot.lane.b32.xlu2 %v12323_v4, %s8227_s19  ;;  %v2404_v23 = vunpack.c.l.b16 %v2400_v40  ;;  %v12326_v4 = vld [vmem:[#allocation83_spill] sm:$0xff] }
 0x5e6   : > { %v7815_v33 = vpop.eup %7814 }
 0x5e7   : > { %v7817_v3 = vpop.eup %7816  ;;  %v1713_v22 = vmul.f32 %v7815_v33, %v9930_v37  ;;  %v1638_v58 = vpop.xlane.xlu2 %1637  ;;  %v2406_v59 = vpack.c.b16 %v2405_v14, %v2404_v23  ;;  %v2432_v33 = vrot.slane %v12326_v4, 4  ;;  %v12331_v23 = vld [vmem:[#allocation112_spill] sm:$0xff] }
 0x5e8   : > { %7820 = vrcp.f32 %v1638_v58  ;;  %v1717_v26 = vmul.f32 %v7817_v3, %v9766_v10  ;;  %v7819_v9 = vpop.eup %7818  ;;  %v2349_v10 = vsel %vm900_vm0, %v2344_v56, 0 }
 0x5e9   : > { %7822 = vrcp.f32 %v1650_v52  ;;  %v1745_v27 = vpack.c.bf16 %v1713_v22, %v1713_v22  ;;  %v1721_v42 = vmul.f32 %v7819_v9, %v9886_v63  ;;  %v12327_v52 = vld [vmem:[#allocation89_spill] sm:$0xff] }
 0x5ea   : > { %7824 = vrcp.f32 %v1644_v17  ;;  %v2087_v7 = vpop.f32.mrf.mxu1  ;;  %v1749_v15 = vpack.c.bf16 %v1717_v26, %v1717_v26  ;;  %v2463_v3 = vrot.slane %v12327_v52, 4  ;;  %v2462_v26 = vrot.slane %v12329_v12, 4 }
 0x5eb   : > { %v2039_v57 = vunpack.c.l.b16 %v1745_v27  ;;  %v2226_v50 = vpack.c.bf16 %v2087_v7, %v2087_v7  ;;  %v12328_v27 = vld [vmem:[#allocation87_spill] sm:$0xff]  ;;  %v1753_v7 = vpack.c.bf16 %v1721_v42, %v1721_v42  ;;  %v2524_v42 = vrot.slane %v12331_v23, 4 }
 0x5ec   : > { %v2095_v24 = vunpack.c.l.b16 %v1749_v15  ;;  %v2431_v13 = vrot.slane %v12328_v27, 4  ;;  %v2466_v9 = vunpack.c.l.b16 %v2462_v26  ;;  %v12335_v27 = vld [vmem:[#allocation129_spill] sm:$0xff] }
 0x5ed   : > { %v2040_v62 = vpack.c.b16 %v2039_v57, %v2038_v47  ;;  %2259 = vst.msk [vmem:[#allocation2 + $0x58] sm:$0xf] %vm2236_vm2, %v2226_v50  ;;  %v2436_v47 = vunpack.c.l.b16 %v2432_v33  ;;  %v2467_v57 = vunpack.c.l.b16 %v2463_v3  ;;  %v2528_v52 = vunpack.c.l.b16 %v2524_v42  ;;  %v12343_v42 = vld [vmem:[#allocation153_spill] sm:$0xff] }
 0x5ee   : > { %v7821_v37 = vpop.eup %7820 }
 0x5ef   : > { %v7823_v55 = vpop.eup %7822  ;;  %v1716_v2 = vmul.f32 %v7821_v37, %v9939_v21  ;;  %v1647_v39 = vpop.xlane.xlu2 %1646  ;;  %7301 = vmatmul.msk.bf16.vlgmr.msra.gmra.mxu0 %vm1371_vm1, %v2040_v62  ;;  %v2151_v62 = vunpack.c.l.b16 %v1753_v7  ;;  %v2468_v15 = vpack.c.b16 %v2467_v57, %v2466_v9  ;;  %v12336_v7 = vld [vmem:[#allocation53_spill] sm:$0xff] }
 0x5f0   : > { %v7825_v17 = vpop.eup %7824  ;;  %7826 = vrcp.f32 %v1647_v39  ;;  %2358 = vmatpush.bf16.xpose.msra.mxu0 %v2349_v10  ;;  %v1720_v21 = vmul.f32 %v7823_v55, %v9812_v36  ;;  %v2411_v36 = vsel %vm900_vm0, %v2406_v59, 0  ;;  %v12330_v55 = vld [vmem:[#allocation108_spill] sm:$0xff] }
 0x5f1   : > { %v1748_v34 = vpack.c.bf16 %v1716_v2, %v1716_v2  ;;  %v1718_v22 = vmul.f32 %v7825_v17, %v9843_v5  ;;  %v2435_v5 = vunpack.c.l.b16 %v2431_v13  ;;  %v2525_v2 = vrot.slane %v12330_v55, 4 }
 0x5f2   : > { %v2089_v16 = vpop.f32.mrf.mxu1  ;;  %v1752_v50 = vpack.c.bf16 %v1720_v21, %v1720_v21  ;;  %v2473_v33 = vsel %vm900_vm0, %v2468_v15, 0  ;;  %v12333_v21 = vld [vmem:[#allocation120_spill] sm:$0xff]  ;;  %v2586_v13 = vrot.slane %v12335_v27, 4 }
 0x5f3   : > { %v2094_v58 = vunpack.c.l.b16 %v1748_v34  ;;  %v2227_v25 = vpack.c.bf16 %v2089_v16, %v2089_v16  ;;  %v1750_v43 = vpack.c.bf16 %v1718_v22, %v1718_v22  ;;  %v2437_v14 = vpack.c.b16 %v2436_v47, %v2435_v5 }
 0x5f4   : > { %v2150_v39 = vunpack.c.l.b16 %v1752_v50  ;;  %v2529_v4 = vunpack.c.l.b16 %v2525_v2  ;;  %v2587_v22 = vrot.slane %v12333_v21, 4  ;;  %v2590_v47 = vunpack.c.l.b16 %v2586_v13 }
 0x5f5   : > { %v2096_v63 = vpack.c.b16 %v2095_v24, %v2094_v58  ;;  %2260 = vst.msk [vmem:[#allocation2 + $0x5c] sm:$0xf] %vm2236_vm2, %v2227_v25  ;;  %v2122_v10 = vunpack.c.l.b16 %v1750_v43  ;;  %v2442_v59 = vsel %vm900_vm0, %v2437_v14, 0  ;;  %v12332_v24 = vld [vmem:[#allocation111_spill] sm:$0xff]  ;;  %v12334_v58 = vld [vmem:[#allocation118_spill] sm:$0xff]  ;;  %v12337_v43 = vld [vmem:[#allocation141_spill] sm:$0xff] }
 0x5f6   : > { %v7827_v56 = vpop.eup %7826  ;;  %v2152_v34 = vpack.c.b16 %v2151_v62, %v2150_v39  ;;  %v2530_v3 = vpack.c.b16 %v2529_v4, %v2528_v52  ;;  %v2556_v16 = vrot.slane %v12332_v24, 4  ;;  %v2555_v25 = vrot.slane %v12334_v58, 4  ;;  %v12339_v62 = vld [vmem:[#allocation61_spill] sm:$0xff]  ;;  %v12341_v39 = vld [vmem:[#allocation144_spill] sm:$0xff] }
 0x5f7   : > { %v1719_v40 = vmul.f32 %v7827_v56, %v9943_v61  ;;  %7303 = vmatmul.msk.bf16.vlgmr.msrb.gmra.mxu2 %vm1371_vm1, %v2096_v63  ;;  %v2591_v26 = vunpack.c.l.b16 %v2587_v22  ;;  %v12345_v52 = vld [vmem:[#allocation92_spill] sm:$0xff]  ;;  %v12346_v58 = vld [vmem:[#allocation101_spill] sm:$0xff] }
 0x5f8   : > { %2420 = vmatpush.bf16.xpose.msrb.mxu2 %v2411_v36  ;;  %v2560_v12 = vunpack.c.l.b16 %v2556_v16  ;;  %v2535_v63 = vsel %vm900_vm0, %v2530_v3, 0  ;;  %v2559_v56 = vunpack.c.l.b16 %v2555_v25  ;;  %v12338_v36 = vld [vmem:[#allocation139_spill] sm:$0xff] }
 0x5f9   : > { %v1751_v37 = vpack.c.bf16 %v1719_v40, %v1719_v40  ;;  %v2592_v50 = vpack.c.b16 %v2591_v26, %v2590_v47  ;;  %v2649_v40 = vrot.slane %v12337_v43, 4  ;;  %v2648_v5 = vrot.slane %v12338_v36, 4  ;;  %v12347_v25 = vld [vmem:[#allocation107_spill] sm:$0xff]  ;;  %v1659_v26 = vpop.xlane.xlu0 %1658  ;;  %v12353_v43 = vld [vmem:[#allocation44_spill] sm:$0xff] }
 0x5fa   : > { %v2561_v57 = vpack.c.b16 %v2560_v12, %v2559_v56  ;;  %v12348_v12 = vld [vmem:[#allocation122_spill] sm:$0xff]  ;;  %7828 = vrcp.f32 %v1659_v26 }
 0x5fb   : > { %v2123_v17 = vunpack.c.l.b16 %v1751_v37  ;;  %v2653_v9 = vunpack.c.l.b16 %v2649_v40  ;;  %v12340_v37 = vld [vmem:[#allocation73_spill] sm:$0xff]  ;;  %v2597_v15 = vsel %vm900_vm0, %v2592_v50, 0  ;;  %v2652_v55 = vunpack.c.l.b16 %v2648_v5  ;;  %v12352_v50 = vld [vmem:[#allocation140_spill] sm:$0xff]  ;;  %v12354_v40 = vld [vmem:[#allocation55_spill] sm:$0xff] }
 0x5fc   : > { %v2566_v14 = vsel %vm900_vm0, %v2561_v57, 0  ;;  %v12351_v57 = vld [vmem:[#allocation130_spill] sm:$0xff] }
 0x5fd   : > { %v2124_v61 = vpack.c.b16 %v2123_v17, %v2122_v10  ;;  %v2654_v2 = vpack.c.b16 %v2653_v9, %v2652_v55  ;;  %v2680_v10 = vrot.slane %v12341_v39, 4  ;;  %v12342_v17 = vld [vmem:[#allocation147_spill] sm:$0xff] }
 0x5fe   : > { %v2711_v23 = vrot.slane %v12342_v17, 4 }
 0x5ff   : > { %7304 = vmatmul.msk.bf16.vlgmr.msra.gmra.mxu3 %vm1371_vm1, %v2124_v61  ;;  %7305 = vmatmul.msk.bf16.vlgmr.msrb.gmra.mxu0 %vm1371_vm1, %v2152_v34  ;;  %v2679_v34 = vrot.slane %v12343_v42, 4  ;;  %v12344_v61 = vld [vmem:[#allocation162_spill] sm:$0xff]  ;;  %v2659_v3 = vsel %vm900_vm0, %v2654_v2, 0  ;;  %v12358_v42 = vld [vmem:[#allocation51_spill] sm:$0xff] }
 0x600   : > { %2451 = vmatpush.bf16.xpose.msra.mxu3 %v2442_v59  ;;  %2482 = vmatpush.bf16.xpose.msrb.mxu0 %v2473_v33  ;;  %v2710_v4 = vrot.slane %v12344_v61, 4  ;;  %v2684_v59 = vunpack.c.l.b16 %v2680_v10  ;;  %v2715_v33 = vunpack.c.l.b16 %v2711_v23  ;;  %v7829_v5 = vpop.eup %7828  ;;  %v12356_v2 = vld [vmem:[#allocation106_spill] sm:$0xff]  ;;  %v12357_v10 = vld [vmem:[#allocation151_spill] sm:$0xff] }
 0x601   : > { %v2683_v24 = vunpack.c.l.b16 %v2679_v34  ;;  %v2493_v39 = vrot.slane %v12356_v2, 4 }
 0x602   : > { %v2714_v16 = vunpack.c.l.b16 %v2710_v4 }
 0x603   : > { %v2685_v21 = vpack.c.b16 %v2684_v59, %v2683_v24  ;;  %v2497_v4 = vunpack.c.l.b16 %v2493_v39  ;;  %v12360_v24 = vld [vmem:[#allocation167_spill] sm:$0xff] }
 0x604   : > { %v2716_v22 = vpack.c.b16 %v2715_v33, %v2714_v16  ;;  %v12361_v16 = vld [vmem:[#allocation78_spill] sm:$0xff] }
 0x605   : > { %v2690_v27 = vsel %vm900_vm0, %v2685_v21, 0  ;;  %v12362_v21 = vld [vmem:[#allocation85_spill] sm:$0xff] }
 0x606   : > { %v2721_v13 = vsel %vm900_vm0, %v2716_v22, 0  ;;  %v12363_v22 = vld [vmem:[#allocation131_spill] sm:$0xff] }
 0x607   : > { %7309 = vmatmul.msk.bf16.vlgmr.msra.gmra.mxu2 %vm900_vm0, %v12336_v7  ;;  %v10043_v7 = vpop.permute.xlu2 %5443 }
 0x608   : > { %2544 = vmatpush.bf16.xpose.msra.mxu2 %v2535_v63  ;;  %12349 = vst [vmem:[#allocation9_spill] sm:$0xff] %v10043_v7  ;;  %v12350_v63 = vld [vmem:[#allocation40_spill] sm:$0xff] }
 0x60f   : > { %7310 = vmatmul.msk.bf16.vlgmr.msrb.gmra.mxu3 %vm900_vm0, %v12339_v62  ;;  %7311 = vmatmul.msk.bf16.vlgmr.msra.gmra.mxu0 %vm900_vm0, %v12340_v37  ;;  %v1723_v37 = vmul.f32 %v7829_v5, %v9818_v31 }
 0x610   : > { %2575 = vmatpush.bf16.xpose.msrb.mxu3 %v2566_v14  ;;  %2606 = vmatpush.bf16.xpose.msra.mxu0 %v2597_v15  ;;  %v12355_v14 = vld [vmem:[#allocation96_spill] sm:$0xff] }
 0x611   : > { %v2494_v15 = vrot.slane %v12355_v14, 4  ;;  %v1755_v17 = vpack.c.bf16 %v1723_v37, %v1723_v37 }
 0x613   : > { %v2498_v34 = vunpack.c.l.b16 %v2494_v15  ;;  %v2179_v59 = vunpack.c.l.b16 %v1755_v17  ;;  %v12369_v15 = vld [vmem:[#allocation148_spill] sm:$0xff] }
 0x615   : > { %v2499_v33 = vpack.c.b16 %v2498_v34, %v2497_v4  ;;  %v12371_v34 = vld [vmem:[#allocation169_spill] sm:$0xff] }
 0x617   : > { %7313 = vmatmul.msk.bf16.vlgmr.msrb.gmra.mxu2 %vm900_vm0, %v12345_v52 }
 0x618   : > { %2668 = vmatpush.bf16.xpose.msrb.mxu2 %v2659_v3  ;;  %v12359_v3 = vld [vmem:[#allocation161_spill] sm:$0xff] }
 0x61f   : > { %7314 = vmatmul.msk.bf16.vlgmr.msra.gmra.mxu3 %vm900_vm0, %v12346_v58  ;;  %7315 = vmatmul.msk.bf16.vlgmr.msrb.gmra.mxu0 %vm900_vm0, %v12347_v25  ;;  %v2618_v58 = vrot.slane %v12363_v22, 4  ;;  %v12364_v25 = vld [vmem:[#allocation135_spill] sm:$0xff] }
 0x620   : > { %2699 = vmatpush.bf16.xpose.msra.mxu3 %v2690_v27  ;;  %2730 = vmatpush.bf16.xpose.msrb.mxu0 %v2721_v13  ;;  %v2617_v27 = vrot.slane %v12364_v25, 4  ;;  %v10106_v25 = vld [vmem:[%s12070_s5 + $0x18] sm:$0xff] }
 0x621   : > { %v2622_v13 = vunpack.c.l.b16 %v2618_v58 }
 0x627   : > { %7317 = vmatmul.msk.bf16.vlgmr.msra.gmra.mxu2 %vm900_vm0, %v12348_v12  ;;  %v2621_v12 = vunpack.c.l.b16 %v2617_v27 }
 0x628   : > { %3170 = vmatpush.bf16.msra.mxu2 %v12350_v63  ;;  %v12365_v63 = vld [vmem:[#allocation82_spill] sm:$0xff] }
 0x629   : > { %v2031_v56 = vpop.f32.mrf.mxu3  ;;  %v2623_v26 = vpack.c.b16 %v2622_v13, %v2621_v12 }
 0x62a   : > { %v2222_v47 = vpack.c.bf16 %v2031_v56, %v2031_v56 }
 0x62b   : > { %v2628_v56 = vsel %vm900_vm0, %v2623_v26, 0 }
 0x62c   : > { %2255 = vst.msk [vmem:[#allocation2 + $0x48] sm:$0xf] %vm2236_vm2, %v2222_v47  ;;  %v12366_v47 = vld [vmem:[#allocation158_spill] sm:$0xff] }
 0x62f   : > { %7318 = vmatmul.msk.bf16.vlgmr.msrb.gmra.mxu3 %vm900_vm0, %v12351_v57  ;;  %7319 = vmatmul.msk.bf16.vlgmr.msra.gmra.mxu0 %vm900_vm0, %v12352_v50  ;;  %v2742_v57 = vrot.slane %v12366_v47, 4  ;;  %v12367_v50 = vld [vmem:[#allocation166_spill] sm:$0xff] }
 0x630   : > { %3195 = vmatpush.bf16.msrb.mxu3 %v12353_v43  ;;  %3220 = vmatpush.bf16.msra.mxu0 %v12354_v40  ;;  %v1656_v36 = vpop.xlane.xlu2 %1655  ;;  %v2741_v43 = vrot.slane %v12367_v50, 4 }
 0x631   : > { %7830 = vrcp.f32 %v1656_v36  ;;  %v2033_v9 = vpop.f32.mrf.mxu3  ;;  %v2746_v40 = vunpack.c.l.b16 %v2742_v57 }
 0x632   : > { %v2223_v62 = vpack.c.bf16 %v2033_v9, %v2033_v9  ;;  %v2745_v36 = vunpack.c.l.b16 %v2741_v43  ;;  %v12368_v9 = vld [vmem:[#allocation119_spill] sm:$0xff] }
 0x634   : > { %2256 = vst.msk [vmem:[#allocation2 + $0x4c] sm:$0xf] %vm2236_vm2, %v2223_v62  ;;  %v2747_v5 = vpack.c.b16 %v2746_v40, %v2745_v36 }
 0x636   : > { %v2752_v62 = vsel %vm900_vm0, %v2747_v5, 0 }
 0x637   : > { %v7831_v55 = vpop.eup %7830  ;;  %7321 = vmatmul.msk.bf16.vlgmr.msrb.gmra.mxu2 %vm900_vm0, %v12357_v10 }
 0x638   : > { %v1722_v23 = vmul.f32 %v7831_v55, %v9964_v32  ;;  %3270 = vmatpush.bf16.msrb.mxu2 %v12358_v42  ;;  %v2504_v32 = vsel %vm900_vm0, %v2499_v33, 0  ;;  %v12370_v55 = vld [vmem:[#allocation56_spill] sm:$0xff] }
 0x63a   : > { %v1754_v61 = vpack.c.bf16 %v1722_v23, %v1722_v23 }
 0x63c   : > { %v2178_v31 = vunpack.c.l.b16 %v1754_v61  ;;  %v12372_v61 = vld [vmem:[#allocation80_spill] sm:$0xff] }
 0x63e   : > { %v2180_v52 = vpack.c.b16 %v2179_v59, %v2178_v31 }
 0x63f   : > { %7322 = vmatmul.msk.bf16.vlgmr.msra.gmra.mxu3 %vm900_vm0, %v12359_v3  ;;  %7323 = vmatmul.msk.bf16.vlgmr.msrb.gmra.mxu0 %vm900_vm0, %v12360_v24  ;;  %v10095_v24 = vld [vmem:[%s12070_s5 + $0x10] sm:$0xff] }
 0x640   : > { %3295 = vmatpush.bf16.msra.mxu3 %v12361_v16  ;;  %3320 = vmatpush.bf16.msrb.mxu0 %v12362_v21 }
 0x641   : > { %7306 = vmatmul.msk.bf16.vlgmr.msra.gmra.mxu1 %vm1371_vm1, %v2180_v52 }
 0x642   : > { %2513 = vmatpush.bf16.xpose.msra.mxu1 %v2504_v32 }
 0x651   : > { %7312 = vmatmul.msk.bf16.vlgmr.msrb.gmra.mxu1 %vm900_vm0, %v12365_v63 }
 0x652   : > { %2637 = vmatpush.bf16.xpose.msrb.mxu1 %v2628_v56 }
 0x661   : > { %7316 = vmatmul.msk.bf16.vlgmr.msra.gmra.mxu1 %vm900_vm0, %v12368_v9 }
 0x662   : > { %2761 = vmatpush.bf16.xpose.msra.mxu1 %v2752_v62 }
 0x66c   : > { %v2059_v37 = vpop.f32.mrf.mxu0 }
 0x66d   : > { %v2224_v14 = vpack.c.bf16 %v2059_v37, %v2059_v37 }
 0x66f   : > { %2257 = vst.msk [vmem:[#allocation2 + $0x50] sm:$0xf] %vm2236_vm2, %v2224_v14 }
 0x671   : > { %7320 = vmatmul.msk.bf16.vlgmr.msrb.gmra.mxu1 %vm900_vm0, %v12369_v15 }
 0x672   : > { %3245 = vmatpush.bf16.msrb.mxu1 %v12370_v55 }
 0x674   : > { %v2061_v2 = vpop.f32.mrf.mxu0 }
 0x675   : > { %v2225_v39 = vpack.c.bf16 %v2061_v2, %v2061_v2 }
 0x677   : > { %2258 = vst.msk [vmem:[#allocation2 + $0x54] sm:$0xf] %vm2236_vm2, %v2225_v39 }
 0x67a   : > { %v2115_v10 = vpop.f32.mrf.mxu2 }
 0x67b   : > { %v2228_v17 = vpack.c.bf16 %v2115_v10, %v2115_v10 }
 0x67c   : > { %v2171_v23 = vpop.f32.mrf.mxu0 }
 0x67d   : > { %2261 = vst.msk [vmem:[#allocation2 + $0x60] sm:$0xf] %vm2236_vm2, %v2228_v17  ;;  %v2232_v42 = vpack.c.bf16 %v2171_v23, %v2171_v23 }
 0x67f   : > { %2265 = vst.msk [vmem:[#allocation2 + $0x70] sm:$0xf] %vm2236_vm2, %v2232_v42 }
 0x681   : > { %7324 = vmatmul.msk.bf16.vlgmr.msra.gmra.mxu1 %vm900_vm0, %v12371_v34 }
 0x682   : > { %3345 = vmatpush.bf16.msra.mxu1 %v12372_v61  ;;  %v2117_v4 = vpop.f32.mrf.mxu2  ;;  %v2143_v59 = vpop.f32.mrf.mxu3 }
 0x683   : > { %v2229_v31 = vpack.c.bf16 %v2117_v4, %v2117_v4  ;;  %v2230_v33 = vpack.c.bf16 %v2143_v59, %v2143_v59 }
 0x684   : > { %v2173_v52 = vpop.f32.mrf.mxu0 }
 0x685   : > { %2262 = vst.msk [vmem:[#allocation2 + $0x64] sm:$0xf] %vm2236_vm2, %v2229_v31  ;;  %v2233_v3 = vpack.c.bf16 %v2173_v52, %v2173_v52 }
 0x686   : > { %2263 = vst.msk [vmem:[#allocation2 + $0x68] sm:$0xf] %vm2236_vm2, %v2230_v33 }
 0x687   : > { %2266 = vst.msk [vmem:[#allocation2 + $0x74] sm:$0xf] %vm2236_vm2, %v2233_v3 }
 0x68a   : > { %v2145_v16 = vpop.f32.mrf.mxu3  ;;  %v2298_v21 = vpop.f32.mrf.mxu2 }
 0x68b   : > { %v2231_v32 = vpack.c.bf16 %v2145_v16, %v2145_v16  ;;  %v10098_v22 = vadd.f32 %v10095_v24, %v2298_v21 }
 0x68c   : > { %v2360_v63 = vpop.f32.mrf.mxu0 }
 0x68d   : > { %2264 = vst.msk [vmem:[#allocation2 + $0x6c] sm:$0xf] %vm2236_vm2, %v2231_v32  ;;  %v2768_v58 = vsel %vm1371_vm1, %v10098_v22, -inf  ;;  %v10119_v57 = vadd.f32 %v10095_v24, %v2360_v63 }
 0x68e   : > { %2769 = vmax.xlane.f32.xlu2 %v2768_v58 }
 0x68f   : > { %v2780_v37 = vsel %vm1371_vm1, %v10119_v57, -inf }
 0x692   : > { %v2300_v27 = vpop.f32.mrf.mxu2  ;;  %v2329_v13 = vpop.f32.mrf.mxu3 }
 0x693   : > { %v10109_v12 = vadd.f32 %v10106_v25, %v2300_v27  ;;  %v10112_v26 = vadd.f32 %v10095_v24, %v2329_v13 }
 0x694   : > { %v2362_v62 = vpop.f32.mrf.mxu0 }
 0x695   : > { %v2774_v56 = vsel %vm1371_vm1, %v10112_v26, -inf  ;;  %v2771_v47 = vsel %vm1371_vm1, %v10109_v12, -inf  ;;  %v10134_v14 = vadd.f32 %v10106_v25, %v2362_v62 }
 0x696   : > { %2775 = vmax.xlane.f32.xlu0 %v2774_v56  ;;  %2772 = vmax.xlane.f32.xlu1 %v2771_v47 }
 0x697   : > { %v2783_v17 = vsel %vm1371_vm1, %v10134_v14, -inf }
 0x69a   : > { %v2331_v50 = vpop.f32.mrf.mxu3  ;;  %v2422_v43 = vpop.f32.mrf.mxu2 }
 0x69b   : > { %v10122_v40 = vadd.f32 %v10106_v25, %v2331_v50  ;;  %v10125_v36 = vadd.f32 %v10095_v24, %v2422_v43 }
 0x69c   : > { %v2484_v27 = vpop.f32.mrf.mxu0 }
 0x69d   : > { %v2792_v5 = vsel %vm1371_vm1, %v10125_v36, -inf  ;;  %v2777_v9 = vsel %vm1371_vm1, %v10122_v40, -inf  ;;  %v10171_v50 = vadd.f32 %v10095_v24, %v2484_v27 }
 0x69e   : > { %2793 = vmax.xlane.f32.xlu0 %v2792_v5  ;;  %2778 = vmax.xlane.f32.xlu2 %v2777_v9 }
 0x69f   : > { %2781 = vmax.xlane.f32.xlu1 %v2780_v37  ;;  %v2804_v37 = vsel %vm1371_vm1, %v10171_v50, -inf }
 0x6a2   : > { %v2424_v15 = vpop.f32.mrf.mxu2  ;;  %v2453_v55 = vpop.f32.mrf.mxu3 }
 0x6a3   : > { %v10137_v2 = vadd.f32 %v10106_v25, %v2424_v15  ;;  %v10140_v39 = vadd.f32 %v10095_v24, %v2453_v55 }
 0x6a4   : > { %v2486_v47 = vpop.f32.mrf.mxu0 }
 0x6a5   : > { %v2795_v10 = vsel %vm1371_vm1, %v10137_v2, -inf  ;;  %v2798_v23 = vsel %vm1371_vm1, %v10140_v39, -inf  ;;  %v10181_v55 = vadd.f32 %v10106_v25, %v2486_v47 }
 0x6a6   : > { %2796 = vmax.xlane.f32.xlu2 %v2795_v10  ;;  %2784 = vmax.xlane.f32.xlu0 %v2783_v17 }
 0x6a7   : > { %2799 = vmax.xlane.f32.xlu1 %v2798_v23 }
 0x6aa   : > { %v2455_v42 = vpop.f32.mrf.mxu3  ;;  %v2546_v34 = vpop.f32.mrf.mxu2 }
 0x6ab   : > { %v10149_v61 = vadd.f32 %v10106_v25, %v2455_v42  ;;  %v10152_v4 = vadd.f32 %v10095_v24, %v2546_v34 }
 0x6ac   : > { %v2608_v15 = vpop.f32.mrf.mxu0 }
 0x6ad   : > { %v2801_v59 = vsel %vm1371_vm1, %v10149_v61, -inf  ;;  %v2816_v31 = vsel %vm1371_vm1, %v10152_v4, -inf }
 0x6ae   : > { %2802 = vmax.xlane.f32.xlu0 %v2801_v59 }
 0x6af   : > { %2817 = vmax.xlane.f32.xlu1 %v2816_v31  ;;  %v2807_v31 = vsel %vm1371_vm1, %v10181_v55, -inf }
 0x6b2   : > { %v2548_v33 = vpop.f32.mrf.mxu2  ;;  %v2577_v43 = vpop.f32.mrf.mxu3 }
 0x6b3   : > { %v10159_v52 = vadd.f32 %v10106_v25, %v2548_v33  ;;  %v10184_v10 = vadd.f32 %v10095_v24, %v2577_v43  ;;  %v10193_v33 = vpop.permute.xlu0 %5478 }
 0x6b4   : > { %12373 = vst [vmem:[#allocation15_spill] sm:$0xff] %v10193_v33 }
 0x6b5   : > { %v2819_v3 = vsel %vm1371_vm1, %v10159_v52, -inf }
 0x6b6   : > { %2820 = vmax.xlane.f32.xlu0 %v2819_v3  ;;  %v2822_v3 = vsel %vm1371_vm1, %v10184_v10, -inf }
 0x6ba   : > { %v2579_v42 = vpop.f32.mrf.mxu3  ;;  %v2670_v34 = vpop.f32.mrf.mxu2 }
 0x6bb   : > { %v10206_v27 = vadd.f32 %v10095_v24, %v2670_v34 }
 0x6be   : > { %v2199_v16 = vpop.f32.mrf.mxu1 }
 0x6bf   : > { %v2234_v21 = vpack.c.bf16 %v2199_v16, %v2199_v16  ;;  %v10197_v16 = vpop.permute.xlu2 %5503 }
 0x6c0   : > { %12374 = vst [vmem:[#allocation7_spill] sm:$0xff] %v10197_v16 }
 0x6c1   : > { %2267 = vst.msk [vmem:[#allocation2 + $0x78] sm:$0xf] %vm2236_vm2, %v2234_v21  ;;  %v10200_v21 = vadd.f32 %v10095_v24, %v2608_v15  ;;  %v10216_v15 = vpop.permute.xlu1 %5505 }
 0x6c2   : > { %v2672_v43 = vpop.f32.mrf.mxu2  ;;  %12376 = vst [vmem:[#allocation75_spill] sm:$0xff] %v10216_v15 }
 0x6c6   : > { %v2201_v32 = vpop.f32.mrf.mxu1 }
 0x6c7   : > { %v2235_v58 = vpack.c.bf16 %v2201_v32, %v2201_v32  ;;  %v10203_v32 = vadd.f32 %v10106_v25, %v2579_v42 }
 0x6c9   : > { %2268 = vst.msk [vmem:[#allocation2 + $0x7c] sm:$0xf] %vm2236_vm2, %v2235_v58  ;;  %v2610_v58 = vpop.f32.mrf.mxu0  ;;  %v2825_v47 = vsel %vm1371_vm1, %v10203_v32, -inf  ;;  %v10243_v11 = vpop.permute.xlu1 %5292 }
 0x6ca   : > { %12379 = vst [vmem:[#allocation48_spill] sm:$0xff] %v10243_v11 }
 0x6ce   : > { %v2391_v13 = vpop.f32.mrf.mxu1 }
 0x6cf   : > { %v10166_v63 = vadd.f32 %v10095_v24, %v2391_v13 }
 0x6d1   : > { %v2786_v56 = vsel %vm1371_vm1, %v10166_v63, -inf  ;;  %v10267_v7 = vpop.permute.xlu1 %5412 }
 0x6d2   : > { %2787 = vmax.xlane.f32.xlu2 %v2786_v56  ;;  %v2828_v56 = vsel %vm1371_vm1, %v10200_v21, -inf  ;;  %12382 = vst [vmem:[#allocation20_spill] sm:$0xff] %v10267_v7 }
 0x6d6   : > { %v2393_v5 = vpop.f32.mrf.mxu1 }
 0x6d7   : > { %v10174_v9 = vadd.f32 %v10106_v25, %v2393_v5  ;;  %v2701_v5 = vpop.f32.mrf.mxu3 }
 0x6d8   : > { %v10222_v42 = vadd.f32 %v10095_v24, %v2701_v5 }
 0x6d9   : > { %v2789_v62 = vsel %vm1371_vm1, %v10174_v9, -inf }
 0x6da   : > { %2790 = vmax.xlane.f32.xlu1 %v2789_v62  ;;  %2805 = vmax.xlane.f32.xlu2 %v2804_v37  ;;  %v2840_v62 = vsel %vm1371_vm1, %v10206_v27, -inf  ;;  %v10214_v37 = vpop.permute.xlu0 %5596 }
 0x6db   : > { %12375 = vst [vmem:[#allocation62_spill] sm:$0xff] %v10214_v37 }
 0x6de   : > { %v2515_v17 = vpop.f32.mrf.mxu1 }
 0x6df   : > { %v10187_v23 = vadd.f32 %v10095_v24, %v2515_v17  ;;  %v10219_v17 = vadd.f32 %v10106_v25, %v2672_v43  ;;  %v2703_v28 = vpop.f32.mrf.mxu3 }
 0x6e0   : > { %v10263_v41 = vadd.f32 %v10106_v25, %v2703_v28 }
 0x6e1   : > { %v2810_v59 = vsel %vm1371_vm1, %v10187_v23, -inf }
 0x6e2   : > { %2811 = vmax.xlane.f32.xlu0 %v2810_v59  ;;  %2808 = vmax.xlane.f32.xlu1 %v2807_v31  ;;  %v10227_v31 = vpop.permute.xlu2 %5598  ;;  %v2849_v28 = vsel %vm1371_vm1, %v10263_v41, -inf }
 0x6e3   : > { %2823 = vmax.xlane.f32.xlu2 %v2822_v3  ;;  %12377 = vst [vmem:[#allocation163_spill] sm:$0xff] %v10227_v31  ;;  %v2732_v3 = vpop.f32.mrf.mxu0 }
 0x6e6   : > { %v2517_v13 = vpop.f32.mrf.mxu1 }
 0x6e7   : > { %v10225_v34 = vadd.f32 %v10106_v25, %v2517_v13  ;;  %v10238_v13 = vpop.permute.xlu0 %5447 }
 0x6e8   : > { %12378 = vst [vmem:[#allocation17_spill] sm:$0xff] %v10238_v13  ;;  %v10257_v13 = vadd.f32 %v10095_v24, %v2732_v3 }
 0x6e9   : > { %v2813_v43 = vsel %vm1371_vm1, %v10225_v34, -inf }
 0x6ea   : > { %2829 = vmax.xlane.f32.xlu0 %v2828_v56  ;;  %2826 = vmax.xlane.f32.xlu1 %v2825_v47  ;;  %v2846_v56 = vsel %vm1371_vm1, %v10222_v42, -inf  ;;  %v2843_v47 = vsel %vm1371_vm1, %v10219_v17, -inf }
 0x6eb   : > { %2841 = vmax.xlane.f32.xlu2 %v2840_v62  ;;  %v10241_v62 = vadd.f32 %v10106_v25, %v2610_v58 }
 0x6ed   : > { %v2831_v58 = vsel %vm1371_vm1, %v10241_v62, -inf }
 0x6ee   : > { %v2639_v59 = vpop.f32.mrf.mxu1 }
 0x6ef   : > { %v10236_v5 = vadd.f32 %v10095_v24, %v2639_v59  ;;  %v10265_v18 = vpop.permute.xlu0 %5509 }
 0x6f0   : > { %12381 = vst [vmem:[#allocation168_spill] sm:$0xff] %v10265_v18 }
 0x6f1   : > { %v2834_v59 = vsel %vm1371_vm1, %v10236_v5, -inf }
 0x6f2   : > { %2847 = vmax.xlane.f32.xlu0 %v2846_v56  ;;  %2844 = vmax.xlane.f32.xlu1 %v2843_v47  ;;  %v10248_v56 = vpop.permute.xlu2 %5410 }
 0x6f3   : > { %2814 = vmax.xlane.f32.xlu2 %v2813_v43  ;;  %12380 = vst [vmem:[#allocation63_spill] sm:$0xff] %v10248_v56  ;;  %v2734_v43 = vpop.f32.mrf.mxu0 }
 0x6f6   : > { %v2641_v45 = vpop.f32.mrf.mxu1 }
 0x6f7   : > { %v10246_v20 = vadd.f32 %v10106_v25, %v2641_v45  ;;  %v10260_v45 = vadd.f32 %v10106_v25, %v2734_v43 }
 0x6f9   : > { %v2837_v47 = vsel %vm1371_vm1, %v10246_v20, -inf }
 0x6fa   : > { %2838 = vmax.xlane.f32.xlu0 %v2837_v47  ;;  %2835 = vmax.xlane.f32.xlu1 %v2834_v59  ;;  %v2855_v59 = vsel %vm1371_vm1, %v10260_v45, -inf }
 0x6fb   : > { %2832 = vmax.xlane.f32.xlu2 %v2831_v58  ;;  %v2852_v58 = vsel %vm1371_vm1, %v10257_v13, -inf }
 0x6fe   : > { %v2763_v11 = vpop.f32.mrf.mxu1 }
 0x6ff   : > { %v10277_v56 = vadd.f32 %v10095_v24, %v2763_v11 }
 0x701   : > { %v2770_v47 = vpop.xlane.xlu2 %2769 }
 0x702   : > { %v2864_v3 = vsub.f32 %v10098_v22, %v2770_v47  ;;  %2856 = vmax.xlane.f32.xlu0 %v2855_v59  ;;  %2853 = vmax.xlane.f32.xlu1 %v2852_v58  ;;  %v2858_v59 = vsel %vm1371_vm1, %v10277_v56, -inf }
 0x703   : > { %2850 = vmax.xlane.f32.xlu2 %v2849_v28 }
 0x704   : > { %v2896_v43 = vmul.f32 1.442695, %v2864_v3 }
 0x706   : > { %7832 = vpow2.f32 %v2896_v43  ;;  %v2765_v7 = vpop.f32.mrf.mxu1 }
 0x707   : > { %v10280_v18 = vadd.f32 %v10106_v25, %v2765_v7 }
 0x709   : > { %v2773_v33 = vpop.xlane.xlu1 %2772  ;;  %v2861_v6 = vsel %vm1371_vm1, %v10280_v18, -inf  ;;  %v2776_v22 = vpop.xlane.xlu0 %2775 }
 0x70a   : > { %v2865_v47 = vsub.f32 %v10109_v12, %v2773_v33  ;;  %2862 = vmax.xlane.f32.xlu1 %v2861_v6  ;;  %v2866_v58 = vsub.f32 %v10112_v26, %v2776_v22 }
 0x70b   : > { %2859 = vmax.xlane.f32.xlu2 %v2858_v59 }
 0x70c   : > { %v10288_v11 = vpop.eup %7832  ;;  %v2898_v24 = vmul.f32 1.442695, %v2865_v47  ;;  %v2900_v3 = vmul.f32 1.442695, %v2866_v58 }
 0x70d   : > { %v2960_v7 = vsel %vm1371_vm1, %v10288_v11, 0.0 }
 0x70e   : > { %7834 = vpow2.f32 %v2898_v24  ;;  %2961 = vadd.xlane.f32.xlu0 %v2960_v7 }
 0x70f   : > { %7836 = vpow2.f32 %v2900_v3 }
 0x711   : > { %v2779_v25 = vpop.xlane.xlu2 %2778  ;;  %v2794_v28 = vpop.xlane.xlu0 %2793 }
 0x712   : > { %v2867_v6 = vsub.f32 %v10122_v40, %v2779_v25  ;;  %v2782_v12 = vpop.xlane.xlu1 %2781  ;;  %v2872_v33 = vsub.f32 %v10125_v36, %v2794_v28 }
 0x713   : > { %v2868_v26 = vsub.f32 %v10119_v57, %v2782_v12 }
 0x714   : > { %v10295_v43 = vpop.eup %7834  ;;  %v2902_v22 = vmul.f32 1.442695, %v2867_v6  ;;  %v2912_v47 = vmul.f32 1.442695, %v2872_v33 }
 0x715   : > { %v10297_v59 = vpop.eup %7836  ;;  %v2904_v58 = vmul.f32 1.442695, %v2868_v26  ;;  %v2963_v24 = vsel %vm1371_vm1, %v10295_v43, 0.0 }
 0x716   : > { %7838 = vpow2.f32 %v2902_v22  ;;  %2964 = vadd.xlane.f32.xlu2 %v2963_v24  ;;  %v2966_v40 = vsel %vm1371_vm1, %v10297_v59, 0.0 }
 0x717   : > { %7840 = vpow2.f32 %v2904_v58  ;;  %2967 = vadd.xlane.f32.xlu1 %v2966_v40 }
 0x718   : > { %7842 = vpow2.f32 %v2912_v47 }
 0x719   : > { %v2797_v36 = vpop.xlane.xlu2 %2796  ;;  %v2785_v57 = vpop.xlane.xlu0 %2784 }
 0x71a   : > { %v2873_v3 = vsub.f32 %v10137_v2, %v2797_v36  ;;  %v2800_v7 = vpop.xlane.xlu1 %2799  ;;  %v2869_v25 = vsub.f32 %v10134_v14, %v2785_v57 }
 0x71b   : > { %v2874_v28 = vsub.f32 %v10140_v39, %v2800_v7 }
 0x71c   : > { %v10306_v6 = vpop.eup %7838  ;;  %v2914_v12 = vmul.f32 1.442695, %v2873_v3  ;;  %v2906_v33 = vmul.f32 1.442695, %v2869_v25 }
 0x71d   : > { %v10308_v26 = vpop.eup %7840  ;;  %v2916_v22 = vmul.f32 1.442695, %v2874_v28  ;;  %v2969_v58 = vsel %vm1371_vm1, %v10306_v6, 0.0 }
 0x71e   : > { %v10312_v47 = vpop.eup %7842  ;;  %7844 = vpow2.f32 %v2914_v12  ;;  %2970 = vadd.xlane.f32.xlu0 %v2969_v58  ;;  %v2972_v2 = vsel %vm1371_vm1, %v10308_v26, 0.0 }
 0x71f   : > { %7846 = vpow2.f32 %v2916_v22  ;;  %2973 = vadd.xlane.f32.xlu2 %v2972_v2  ;;  %v2984_v14 = vsel %vm1371_vm1, %v10312_v47, 0.0 }
 0x720   : > { %7848 = vpow2.f32 %v2906_v33  ;;  %2985 = vadd.xlane.f32.xlu1 %v2984_v14 }
 0x721   : > { %v2803_v39 = vpop.xlane.xlu0 %2802 }
 0x722   : > { %v2818_v24 = vpop.xlane.xlu1 %2817  ;;  %v2875_v40 = vsub.f32 %v10149_v61, %v2803_v39 }
 0x723   : > { %v2880_v36 = vsub.f32 %v10152_v4, %v2818_v24 }
 0x724   : > { %v10320_v57 = vpop.eup %7844  ;;  %v2918_v3 = vmul.f32 1.442695, %v2875_v40 }
 0x725   : > { %v10322_v7 = vpop.eup %7846  ;;  %v2928_v25 = vmul.f32 1.442695, %v2880_v36  ;;  %v2987_v28 = vsel %vm1371_vm1, %v10320_v57, 0.0 }
 0x726   : > { %v10326_v12 = vpop.eup %7848  ;;  %7850 = vpow2.f32 %v2918_v3  ;;  %2988 = vadd.xlane.f32.xlu0 %v2987_v28  ;;  %v2990_v33 = vsel %vm1371_vm1, %v10322_v7, 0.0 }
 0x727   : > { %7852 = vpow2.f32 %v2928_v25  ;;  %2991 = vadd.xlane.f32.xlu2 %v2990_v33  ;;  %v2975_v61 = vsel %vm1371_vm1, %v10326_v12, 0.0 }
 0x728   : > { %2976 = vadd.xlane.f32.xlu1 %v2975_v61 }
 0x729   : > { %v2821_v4 = vpop.xlane.xlu0 %2820 }
 0x72a   : > { %v2881_v22 = vsub.f32 %v10159_v52, %v2821_v4 }
 0x72c   : > { %v10333_v58 = vpop.eup %7850  ;;  %v2930_v2 = vmul.f32 1.442695, %v2881_v22 }
 0x72d   : > { %v10335_v14 = vpop.eup %7852  ;;  %v2993_v39 = vsel %vm1371_vm1, %v10333_v58, 0.0 }
 0x72e   : > { %7854 = vpow2.f32 %v2930_v2  ;;  %v3008_v24 = vsel %vm1371_vm1, %v10335_v14, 0.0 }
 0x72f   : > { %3009 = vadd.xlane.f32.xlu2 %v3008_v24  ;;  %v12383_v24 = vld [vmem:[#allocation30_spill] sm:$0xff] }
 0x730   : > { %2994 = vadd.xlane.f32.xlu1 %v2993_v39 }
 0x734   : > { %v10341_v40 = vpop.eup %7854 }
 0x735   : > { %v3011_v36 = vsel %vm1371_vm1, %v10341_v40, 0.0 }
 0x738   : > { %3012 = vadd.xlane.f32.xlu1 %v3011_v36 }
 0x745   : > { %v2788_v52 = vpop.xlane.xlu2 %2787 }
 0x746   : > { %v2870_v3 = vsub.f32 %v10166_v63, %v2788_v52 }
 0x748   : > { %v2908_v25 = vmul.f32 1.442695, %v2870_v3 }
 0x74a   : > { %7856 = vpow2.f32 %v2908_v25 }
 0x74d   : > { %v2791_v28 = vpop.xlane.xlu1 %2790  ;;  %v2806_v33 = vpop.xlane.xlu2 %2805 }
 0x74e   : > { %v2871_v61 = vsub.f32 %v10174_v9, %v2791_v28  ;;  %v2876_v4 = vsub.f32 %v10171_v50, %v2806_v33 }
 0x750   : > { %v10348_v22 = vpop.eup %7856  ;;  %v2910_v2 = vmul.f32 1.442695, %v2871_v61  ;;  %v2920_v39 = vmul.f32 1.442695, %v2876_v4 }
 0x751   : > { %5627 = vrot.lane.b32.xlu1 %v12383_v24, %s8227_s19  ;;  %v2978_v36 = vsel %vm1371_vm1, %v10348_v22, 0.0 }
 0x752   : > { %7858 = vpow2.f32 %v2910_v2  ;;  %2979 = vadd.xlane.f32.xlu0 %v2978_v36 }
 0x753   : > { %7860 = vpow2.f32 %v2920_v39 }
 0x755   : > { %v2809_v63 = vpop.xlane.xlu1 %2808  ;;  %v2812_v52 = vpop.xlane.xlu0 %2811 }
 0x756   : > { %v2877_v3 = vsub.f32 %v10181_v55, %v2809_v63  ;;  %v2824_v9 = vpop.xlane.xlu2 %2823 }
 0x757   : > { %v2882_v50 = vsub.f32 %v10184_v10, %v2824_v9 }
 0x758   : > { %v10356_v25 = vpop.eup %7858  ;;  %v2922_v28 = vmul.f32 1.442695, %v2877_v3 }
 0x759   : > { %v10358_v33 = vpop.eup %7860  ;;  %v2932_v61 = vmul.f32 1.442695, %v2882_v50  ;;  %v2981_v4 = vsel %vm1371_vm1, %v10356_v25, 0.0 }
 0x75a   : > { %7862 = vpow2.f32 %v2922_v28  ;;  %2982 = vadd.xlane.f32.xlu2 %v2981_v4  ;;  %v2996_v2 = vsel %vm1371_vm1, %v10358_v33, 0.0 }
 0x75b   : > { %7864 = vpow2.f32 %v2932_v61  ;;  %2997 = vadd.xlane.f32.xlu0 %v2996_v2 }
 0x75d   : > { %v2827_v55 = vpop.xlane.xlu1 %2826  ;;  %v2830_v39 = vpop.xlane.xlu0 %2829 }
 0x75e   : > { %v2883_v10 = vsub.f32 %v10203_v32, %v2827_v55  ;;  %v2842_v24 = vpop.xlane.xlu2 %2841 }
 0x75f   : > { %v2888_v36 = vsub.f32 %v10206_v27, %v2842_v24 }
 0x760   : > { %v10366_v63 = vpop.eup %7862  ;;  %v2934_v3 = vmul.f32 1.442695, %v2883_v10 }
 0x761   : > { %v10368_v9 = vpop.eup %7864  ;;  %v2944_v50 = vmul.f32 1.442695, %v2888_v36  ;;  %v2999_v28 = vsel %vm1371_vm1, %v10366_v63, 0.0  ;;  %v2878_v36 = vsub.f32 %v10187_v23, %v2812_v52  ;;  %v2884_v23 = vsub.f32 %v10200_v21, %v2830_v39 }
 0x762   : > { %7866 = vpow2.f32 %v2934_v3  ;;  %3000 = vadd.xlane.f32.xlu2 %v2999_v28  ;;  %v3014_v61 = vsel %vm1371_vm1, %v10368_v9, 0.0 }
 0x763   : > { %7868 = vpow2.f32 %v2944_v50  ;;  %3015 = vadd.xlane.f32.xlu0 %v3014_v61  ;;  %v2924_v28 = vmul.f32 1.442695, %v2878_v36 }
 0x765   : > { %v2845_v32 = vpop.xlane.xlu1 %2844  ;;  %v2848_v4 = vpop.xlane.xlu0 %2847 }
 0x766   : > { %v2889_v27 = vsub.f32 %v10219_v17, %v2845_v32  ;;  %v10375_v2 = vpop.xlane.xlu2 %2814 }
 0x768   : > { %v10377_v55 = vpop.eup %7866  ;;  %v2946_v10 = vmul.f32 1.442695, %v2889_v27 }
 0x769   : > { %v10379_v24 = vpop.eup %7868  ;;  %v3017_v3 = vsel %vm1371_vm1, %v10377_v55, 0.0 }
 0x76a   : > { %7870 = vpow2.f32 %v2946_v10  ;;  %3018 = vadd.xlane.f32.xlu2 %v3017_v3  ;;  %v3032_v50 = vsel %vm1371_vm1, %v10379_v24, 0.0  ;;  %v2936_v10 = vmul.f32 1.442695, %v2884_v23 }
 0x76b   : > { %3033 = vadd.xlane.f32.xlu0 %v3032_v50  ;;  %7872 = vpow2.f32 %v2924_v28  ;;  %v2890_v50 = vsub.f32 %v10222_v42, %v2848_v4 }
 0x76c   : > { %7874 = vpow2.f32 %v2936_v10 }
 0x76d   : > { %v10386_v17 = vpop.xlane.xlu1 %2835  ;;  %v2839_v32 = vpop.xlane.xlu0 %2838  ;;  %v2948_v21 = vmul.f32 1.442695, %v2890_v50 }
 0x76e   : > { %v10388_v61 = vpop.xlane.xlu2 %2832  ;;  %v2887_v23 = vsub.f32 %v10246_v20, %v2839_v32  ;;  %v12385_v20 = vld [vmem:[#allocation31_spill] sm:$0xff] }
 0x76f   : > { %7876 = vpow2.f32 %v2948_v21 }
 0x770   : > { %v10390_v27 = vpop.eup %7870  ;;  %v2942_v4 = vmul.f32 1.442695, %v2887_v23 }
 0x771   : > { %v3035_v52 = vsel %vm1371_vm1, %v10390_v27, 0.0  ;;  %v10395_v3 = vpop.eup %7872 }
 0x772   : > { %3036 = vadd.xlane.f32.xlu2 %v3035_v52  ;;  %v3002_v28 = vsel %vm1371_vm1, %v10395_v3, 0.0  ;;  %v10404_v39 = vpop.eup %7874  ;;  %v12384_v52 = vld [vmem:[#allocation32_spill] sm:$0xff] }
 0x773   : > { %v3020_v42 = vsel %vm1371_vm1, %v10404_v39, 0.0 }
 0x775   : > { %v10399_v36 = vpop.xlane.xlu1 %2853  ;;  %v2857_v0 = vpop.xlane.xlu0 %2856 }
 0x776   : > { %v10397_v30 = vpop.xlane.xlu2 %2850  ;;  %v10415_v50 = vpop.eup %7876 }
 0x777   : > { %v3038_v31 = vsel %vm1371_vm1, %v10415_v50, 0.0 }
 0x77b   : > { %3003 = vadd.xlane.f32.xlu1 %v3002_v28  ;;  %v2893_v28 = vsub.f32 %v10260_v45, %v2857_v0 }
 0x77d   : > { %v10411_v10 = vpop.xlane.xlu1 %2862 }
 0x77e   : > { %v10409_v37 = vpop.xlane.xlu2 %2859 }
 0x77f   : > { %5629 = vrot.lane.b32.xlu0 %v12384_v52, %s8227_s19 }
 0x781   : > { %v2962_v15 = vpop.xlane.xlu0 %2961 }
 0x782   : > { %7878 = vrcp.f32 %v2962_v15 }
 0x783   : > { %3021 = vadd.xlane.f32.xlu1 %v3020_v42  ;;  %7880 = vpow2.f32 %v2942_v4  ;;  %v2954_v42 = vmul.f32 1.442695, %v2893_v28 }
 0x788   : > { %v7879_v21 = vpop.eup %7878 }
 0x789   : > { %v2965_v52 = vpop.xlane.xlu2 %2964  ;;  %v3088_v15 = vmul.f32 %v7879_v21, %v10288_v11  ;;  %v10423_v23 = vpop.eup %7880 }
 0x78a   : > { %5602 = vrot.lane.b32.xlu2 %v12385_v20, %s8227_s19  ;;  %7882 = vrcp.f32 %v2965_v52  ;;  %v2968_v32 = vpop.xlane.xlu1 %2967  ;;  %v3029_v52 = vsel %vm1371_vm1, %v10423_v23, 0.0 }
 0x78b   : > { %3039 = vadd.xlane.f32.xlu1 %v3038_v31  ;;  %7884 = vrcp.f32 %v2968_v32  ;;  %v3120_v0 = vpack.c.bf16 %v3088_v15, %v3088_v15 }
 0x78c   : > { %7886 = vpow2.f32 %v2954_v42 }
 0x78d   : > { %v3154_v28 = vunpack.c.l.b16 %v3120_v0 }
 0x790   : > { %v7883_v4 = vpop.eup %7882 }
 0x791   : > { %v3089_v45 = vmul.f32 %v7883_v4, %v10295_v43  ;;  %v2971_v16 = vpop.xlane.xlu0 %2970  ;;  %v7885_v54 = vpop.eup %7884  ;;  %v2879_v43 = vsub.f32 %v10225_v34, %v10375_v2 }
 0x792   : > { %v2974_v20 = vpop.xlane.xlu2 %2973  ;;  %7888 = vrcp.f32 %v2971_v16  ;;  %v3090_v21 = vmul.f32 %v7885_v54, %v10297_v59  ;;  %v10429_v32 = vpop.eup %7886  ;;  %v12386_v54 = vld [vmem:[#allocation100_spill] sm:$0xff] }
 0x793   : > { %v3121_v51 = vpack.c.bf16 %v3089_v45, %v3089_v45  ;;  %v2986_v31 = vpop.xlane.xlu1 %2985  ;;  %3030 = vadd.xlane.f32.xlu1 %v3029_v52  ;;  %v2926_v59 = vmul.f32 1.442695, %v2879_v43 }
 0x794   : > { %7890 = vrcp.f32 %v2986_v31  ;;  %v3122_v4 = vpack.c.bf16 %v3090_v21, %v3090_v21 }
 0x795   : > { %v3155_v11 = vunpack.c.l.b16 %v3121_v51  ;;  %7892 = vrcp.f32 %v2974_v20  ;;  %v3047_v51 = vsel %vm1371_vm1, %v10429_v32, 0.0 }
 0x796   : > { %v3179_v2 = vunpack.c.l.b16 %v3122_v4 }
 0x797   : > { %v3156_v42 = vpack.c.b16 %v3155_v11, %v3154_v28 }
 0x798   : > { %v7889_v15 = vpop.eup %7888 }
 0x799   : > { %v3091_v19 = vmul.f32 %v7889_v15, %v10306_v6  ;;  %7325 = vmatmul.msk.bf16.vlgmr.msra.gmra.mxu2 %vm1371_vm1, %v3156_v42  ;;  %v2989_v16 = vpop.xlane.xlu0 %2988  ;;  %v2885_v6 = vsub.f32 %v10241_v62, %v10388_v61  ;;  %v12387_v61 = vld [vmem:[#allocation113_spill] sm:$0xff] }
 0x79a   : > { %v7891_v45 = vpop.eup %7890  ;;  %v2992_v52 = vpop.xlane.xlu2 %2991  ;;  %3370 = vmatpush.bf16.msra.mxu2 %v12386_v54  ;;  %7894 = vrcp.f32 %v2989_v16 }
 0x79b   : > { %v3123_v0 = vpack.c.bf16 %v3091_v19, %v3091_v19  ;;  %v2977_v20 = vpop.xlane.xlu1 %2976  ;;  %3048 = vadd.xlane.f32.xlu1 %v3047_v51  ;;  %v7893_v34 = vpop.eup %7892  ;;  %v3096_v31 = vmul.f32 %v7891_v45, %v10312_v47  ;;  %v2886_v19 = vsub.f32 %v10236_v5, %v10386_v17  ;;  %v2938_v43 = vmul.f32 1.442695, %v2885_v6 }
 0x79c   : > { %7896 = vrcp.f32 %v2977_v20  ;;  %v3092_v11 = vmul.f32 %v7893_v34, %v10308_v26 }
 0x79d   : > { %v3180_v28 = vunpack.c.l.b16 %v3123_v0  ;;  %7898 = vrcp.f32 %v2992_v52  ;;  %v3128_v15 = vpack.c.bf16 %v3096_v31, %v3096_v31  ;;  %v2940_v54 = vmul.f32 1.442695, %v2886_v19 }
 0x79e   : > { %7900 = vpow2.f32 %v2926_v59  ;;  %v3124_v47 = vpack.c.bf16 %v3092_v11, %v3092_v11  ;;  %v2891_v0 = vsub.f32 %v10263_v41, %v10397_v30  ;;  %v2892_v31 = vsub.f32 %v10257_v13, %v10399_v36  ;;  %v12388_v41 = vld [vmem:[#allocation134_spill] sm:$0xff] }
 0x79f   : > { %v3181_v21 = vpack.c.b16 %v3180_v28, %v3179_v2  ;;  %v3254_v5 = vunpack.c.l.b16 %v3128_v15  ;;  %v12389_v15 = vld [vmem:[#allocation105_spill] sm:$0xff] }
 0x7a0   : > { %v7895_v42 = vpop.eup %7894  ;;  %v3204_v20 = vunpack.c.l.b16 %v3124_v47  ;;  %v2952_v13 = vmul.f32 1.442695, %v2892_v31  ;;  %v2894_v47 = vsub.f32 %v10277_v56, %v10409_v37 }
 0x7a1   : > { %v3097_v16 = vmul.f32 %v7895_v42, %v10320_v57  ;;  %7326 = vmatmul.msk.bf16.vlgmr.msrb.gmra.mxu3 %vm1371_vm1, %v3181_v21  ;;  %v2950_v21 = vmul.f32 1.442695, %v2891_v0 }
 0x7a2   : > { %v7897_v62 = vpop.eup %7896  ;;  %3395 = vmatpush.bf16.msrb.mxu3 %v12387_v61  ;;  %v3010_v52 = vpop.xlane.xlu2 %3009  ;;  %v2956_v56 = vmul.f32 1.442695, %v2894_v47 }
 0x7a3   : > { %v3093_v4 = vmul.f32 %v7897_v62, %v10326_v12  ;;  %v3129_v45 = vpack.c.bf16 %v3097_v16, %v3097_v16  ;;  %v2995_v26 = vpop.xlane.xlu1 %2994  ;;  %v7899_v51 = vpop.eup %7898  ;;  %v12390_v16 = vld [vmem:[#allocation46_spill] sm:$0xff] }
 0x7a4   : > { %7902 = vrcp.f32 %v2995_v26  ;;  %v10448_v59 = vpop.eup %7900  ;;  %v3098_v34 = vmul.f32 %v7899_v51, %v10322_v7  ;;  %v3753_v62 = vrot.slane %v12390_v16, 4  ;;  %v12391_v26 = vld [vmem:[#allocation49_spill] sm:$0xff] }
 0x7a5   : > { %7904 = vpow2.f32 %v2938_v43  ;;  %v3125_v17 = vpack.c.bf16 %v3093_v4, %v3093_v4  ;;  %v3255_v57 = vunpack.c.l.b16 %v3129_v45  ;;  %v3005_v2 = vsel %vm1371_vm1, %v10448_v59, 0.0 }
 0x7a6   : > { %7906 = vrcp.f32 %v3010_v52  ;;  %v3130_v7 = vpack.c.bf16 %v3098_v34, %v3098_v34  ;;  %v3752_v51 = vrot.slane %v12391_v26, 4  ;;  %v3757_v37 = vunpack.c.l.b16 %v3753_v62  ;;  %v12392_v34 = vld [vmem:[#allocation123_spill] sm:$0xff] }
 0x7a7   : > { %v3205_v12 = vunpack.c.l.b16 %v3125_v17  ;;  %v3256_v6 = vpack.c.b16 %v3255_v57, %v3254_v5  ;;  %7908 = vpow2.f32 %v2940_v54  ;;  %v2895_v54 = vsub.f32 %v10280_v18, %v10411_v10  ;;  %v12393_v18 = vld [vmem:[#allocation22_spill] sm:$0xff]  ;;  %v12395_v26 = vld [vmem:[#allocation23_spill] sm:$0xff] }
 0x7a8   : > { %v3279_v4 = vunpack.c.l.b16 %v3130_v7  ;;  %v3756_v10 = vunpack.c.l.b16 %v3752_v51 }
 0x7a9   : > { %v3206_v28 = vpack.c.b16 %v3205_v12, %v3204_v20  ;;  %3006 = vadd.xlane.f32.xlu0 %v3005_v2  ;;  %7329 = vmatmul.msk.bf16.vlgmr.msrb.gmra.mxu2 %vm1371_vm1, %v3256_v6  ;;  %v2958_v12 = vmul.f32 1.442695, %v2895_v54 }
 0x7aa   : > { %v7903_v11 = vpop.eup %7902  ;;  %3470 = vmatpush.bf16.msrb.mxu2 %v12388_v41  ;;  %v3758_v31 = vpack.c.b16 %v3757_v37, %v3756_v10 }
 0x7ab   : > { %v10459_v30 = vpop.eup %7904  ;;  %v3099_v42 = vmul.f32 %v7903_v11, %v10333_v58  ;;  %7327 = vmatmul.msk.bf16.vlgmr.msra.gmra.mxu0 %vm1371_vm1, %v3206_v28  ;;  %v3013_v19 = vpop.xlane.xlu1 %3012 }
 0x7ac   : > { %v7907_v43 = vpop.eup %7906  ;;  %3420 = vmatpush.bf16.msra.mxu0 %v12389_v15  ;;  %7910 = vrcp.f32 %v3013_v19  ;;  %v3023_v52 = vsel %vm1371_vm1, %v10459_v30, 0.0  ;;  %v3763_v7 = vsel %vm900_vm0, %v3758_v31, 0 }
 0x7ad   : > { %v3131_v36 = vpack.c.bf16 %v3099_v42, %v3099_v42  ;;  %7912 = vpow2.f32 %v2950_v21  ;;  %v10465_v61 = vpop.eup %7908  ;;  %v3104_v58 = vmul.f32 %v7907_v43, %v10335_v14  ;;  %v12394_v42 = vld [vmem:[#allocation25_spill] sm:$0xff] }
 0x7ae   : > { %7914 = vpow2.f32 %v2952_v13  ;;  %v3026_v57 = vsel %vm1371_vm1, %v10465_v61, 0.0 }
 0x7af   : > { %v3280_v45 = vunpack.c.l.b16 %v3131_v36  ;;  %v3136_v0 = vpack.c.bf16 %v3104_v58, %v3104_v58  ;;  %7916 = vpow2.f32 %v2956_v56 }
 0x7b0   : > { %7918 = vpow2.f32 %v2958_v12  ;;  %v12397_v12 = vld [vmem:[#allocation124_spill] sm:$0xff] }
 0x7b1   : > { %v3281_v5 = vpack.c.b16 %v3280_v45, %v3279_v4  ;;  %3024 = vadd.xlane.f32.xlu0 %v3023_v52  ;;  %v3354_v28 = vunpack.c.l.b16 %v3136_v0 }
 0x7b2   : > { %v7911_v17 = vpop.eup %7910 }
 0x7b3   : > { %v3105_v14 = vmul.f32 %v7911_v17, %v10341_v40  ;;  %7330 = vmatmul.msk.bf16.vlgmr.msra.gmra.mxu3 %vm1371_vm1, %v3281_v5  ;;  %3027 = vadd.xlane.f32.xlu2 %v3026_v57  ;;  %v10479_v20 = vpop.eup %7912 }
 0x7b4   : > { %3495 = vmatpush.bf16.msra.mxu3 %v12392_v34  ;;  %5534 = vrot.lane.b32.xlu1 %v12393_v18, %s8227_s19  ;;  %v10484_v2 = vpop.eup %7914  ;;  %v3041_v40 = vsel %vm1371_vm1, %v10479_v20, 0.0 }
 0x7b5   : > { %v3137_v6 = vpack.c.bf16 %v3105_v14, %v3105_v14  ;;  %v3044_v41 = vsel %vm1371_vm1, %v10484_v2, 0.0  ;;  %v10494_v19 = vpop.eup %7916 }
 0x7b6   : > { %v10496_v43 = vpop.eup %7918  ;;  %v3050_v15 = vsel %vm1371_vm1, %v10494_v19, 0.0 }
 0x7b7   : > { %v3355_v11 = vunpack.c.l.b16 %v3137_v6  ;;  %v3053_v13 = vsel %vm1371_vm1, %v10496_v43, 0.0 }
 0x7b9   : > { %v3356_v21 = vpack.c.b16 %v3355_v11, %v3354_v28  ;;  %3042 = vadd.xlane.f32.xlu0 %v3041_v40  ;;  %v12398_v28 = vld [vmem:[#allocation59_spill] sm:$0xff] }
 0x7ba   : > { %v3784_v11 = vrot.slane %v12398_v28, 4 }
 0x7bb   : > { %7333 = vmatmul.msk.bf16.vlgmr.msra.gmra.mxu2 %vm1371_vm1, %v3356_v21  ;;  %3045 = vadd.xlane.f32.xlu2 %v3044_v41  ;;  %v12399_v41 = vld [vmem:[#allocation66_spill] sm:$0xff] }
 0x7bc   : > { %3772 = vmatpush.bf16.xpose.msra.mxu2 %v3763_v7  ;;  %5540 = vrot.lane.b32.xlu1 %v12394_v42, %s8227_s19  ;;  %v3783_v7 = vrot.slane %v12399_v41, 4 }
 0x7c1   : > { %3051 = vadd.xlane.f32.xlu0 %v3050_v15 }
 0x7c3   : > { %3054 = vadd.xlane.f32.xlu2 %v3053_v13  ;;  %v3788_v13 = vunpack.c.l.b16 %v3784_v11  ;;  %v12405_v11 = vld [vmem:[#allocation115_spill] sm:$0xff] }
 0x7c5   : > { %v2980_v36 = vpop.xlane.xlu0 %2979 }
 0x7c6   : > { %7920 = vrcp.f32 %v2980_v36 }
 0x7cc   : > { %v7921_v62 = vpop.eup %7920 }
 0x7cd   : > { %v2983_v16 = vpop.xlane.xlu2 %2982  ;;  %v3094_v4 = vmul.f32 %v7921_v62, %v10348_v22  ;;  %v12396_v22 = vld [vmem:[#allocation16_spill] sm:$0xff] }
 0x7ce   : > { %7922 = vrcp.f32 %v2983_v16  ;;  %v2998_v47 = vpop.xlane.xlu0 %2997 }
 0x7cf   : > { %7924 = vrcp.f32 %v2998_v47  ;;  %v3126_v45 = vpack.c.bf16 %v3094_v4, %v3094_v4  ;;  %v3787_v4 = vunpack.c.l.b16 %v3783_v7 }
 0x7d1   : > { %v3229_v57 = vunpack.c.l.b16 %v3126_v45  ;;  %v3789_v45 = vpack.c.b16 %v3788_v13, %v3787_v4 }
 0x7d4   : > { %v7923_v58 = vpop.eup %7922 }
 0x7d5   : > { %v3095_v52 = vmul.f32 %v7923_v58, %v10356_v25  ;;  %5536 = vrot.lane.b32.xlu0 %v12395_v26, %s8227_s19  ;;  %v3001_v51 = vpop.xlane.xlu2 %3000  ;;  %v7925_v54 = vpop.eup %7924  ;;  %v12401_v58 = vld [vmem:[#allocation142_spill] sm:$0xff] }
 0x7d6   : > { %7926 = vrcp.f32 %v3001_v51  ;;  %v3016_v5 = vpop.xlane.xlu0 %3015  ;;  %v3100_v56 = vmul.f32 %v7925_v54, %v10358_v33 }
 0x7d7   : > { %v3127_v17 = vpack.c.bf16 %v3095_v52, %v3095_v52  ;;  %7928 = vrcp.f32 %v3016_v5  ;;  %v12402_v52 = vld [vmem:[#allocation71_spill] sm:$0xff] }
 0x7d8   : > { %v3132_v34 = vpack.c.bf16 %v3100_v56, %v3100_v56  ;;  %v3876_v26 = vrot.slane %v12402_v52, 4 }
 0x7d9   : > { %v3230_v37 = vunpack.c.l.b16 %v3127_v17  ;;  %v12403_v17 = vld [vmem:[#allocation84_spill] sm:$0xff] }
 0x7da   : > { %v3304_v33 = vunpack.c.l.b16 %v3132_v34  ;;  %v3880_v56 = vunpack.c.l.b16 %v3876_v26 }
 0x7db   : > { %v3231_v0 = vpack.c.b16 %v3230_v37, %v3229_v57  ;;  %5416 = vrot.lane.b32.xlu2 %v12396_v22, %s8227_s19  ;;  %v3877_v57 = vrot.slane %v12403_v17, 4 }
 0x7dc   : > { %v7927_v14 = vpop.eup %7926 }
 0x7dd   : > { %v3101_v25 = vmul.f32 %v7927_v14, %v10366_v63  ;;  %v3019_v18 = vpop.xlane.xlu2 %3018  ;;  %7328 = vmatmul.msk.bf16.vlgmr.msrb.gmra.mxu1 %vm1371_vm1, %v3231_v0  ;;  %v7929_v10 = vpop.eup %7928  ;;  %v12400_v63 = vld [vmem:[#allocation34_spill] sm:$0xff]  ;;  %v3794_v14 = vsel %vm900_vm0, %v3789_v45, 0  ;;  %v3881_v34 = vunpack.c.l.b16 %v3877_v57  ;;  %v12409_v45 = vld [vmem:[#allocation77_spill] sm:$0xff] }
 0x7de   : > { %7930 = vrcp.f32 %v3019_v18  ;;  %3445 = vmatpush.bf16.msrb.mxu1 %v12397_v12  ;;  %v3034_v6 = vpop.xlane.xlu0 %3033  ;;  %v3106_v21 = vmul.f32 %v7929_v10, %v10368_v9 }
 0x7df   : > { %v3133_v31 = vpack.c.bf16 %v3101_v25, %v3101_v25  ;;  %7932 = vrcp.f32 %v3034_v6  ;;  %v3882_v18 = vpack.c.b16 %v3881_v34, %v3880_v56 }
 0x7e0   : > { %v3138_v36 = vpack.c.bf16 %v3106_v21, %v3106_v21 }
 0x7e1   : > { %v3305_v40 = vunpack.c.l.b16 %v3133_v31  ;;  %v12404_v31 = vld [vmem:[#allocation102_spill] sm:$0xff] }
 0x7e2   : > { %v3379_v51 = vunpack.c.l.b16 %v3138_v36  ;;  %v4000_v28 = vrot.slane %v12404_v31, 4  ;;  %v12408_v36 = vld [vmem:[#allocation146_spill] sm:$0xff]  ;;  %v12411_v31 = vld [vmem:[#allocation47_spill] sm:$0xff] }
 0x7e3   : > { %v3306_v42 = vpack.c.b16 %v3305_v40, %v3304_v33  ;;  %5633 = vrot.lane.b32.xlu2 %v12400_v63, %s8227_s19  ;;  %v10530_v33 = vpop.permute.xlu1 %5627 }
 0x7e4   : > { %v7931_v15 = vpop.eup %7930  ;;  %v4004_v40 = vunpack.c.l.b16 %v4000_v28  ;;  %v12412_v28 = vld [vmem:[#allocation67_spill] sm:$0xff] }
 0x7e5   : > { %v3107_v16 = vmul.f32 %v7931_v15, %v10377_v55  ;;  %v3037_v62 = vpop.xlane.xlu2 %3036  ;;  %7331 = vmatmul.msk.bf16.vlgmr.msrb.gmra.mxu0 %vm1371_vm1, %v3306_v42  ;;  %v7933_v47 = vpop.eup %7932  ;;  %v12406_v42 = vld [vmem:[#allocation45_spill] sm:$0xff]  ;;  %v12407_v15 = vld [vmem:[#allocation138_spill] sm:$0xff] }
 0x7e6   : > { %7934 = vrcp.f32 %v3037_v62  ;;  %3520 = vmatpush.bf16.msrb.mxu0 %v12401_v58  ;;  %v3112_v5 = vmul.f32 %v7933_v47, %v10379_v24  ;;  %v3887_v24 = vsel %vm900_vm0, %v3882_v18, 0  ;;  %v4124_v13 = vrot.slane %v12407_v15, 4 }
 0x7e7   : > { %v3139_v9 = vpack.c.bf16 %v3107_v16, %v3107_v16  ;;  %v4125_v16 = vrot.slane %v12408_v36, 4 }
 0x7e8   : > { %v3144_v0 = vpack.c.bf16 %v3112_v5, %v3112_v5  ;;  %v4128_v62 = vunpack.c.l.b16 %v4124_v13 }
 0x7e9   : > { %v3380_v54 = vunpack.c.l.b16 %v3139_v9  ;;  %v4129_v4 = vunpack.c.l.b16 %v4125_v16 }
 0x7ea   : > { %v3454_v10 = vunpack.c.l.b16 %v3144_v0 }
 0x7eb   : > { %v3381_v37 = vpack.c.b16 %v3380_v54, %v3379_v51  ;;  %v4130_v58 = vpack.c.b16 %v4129_v4, %v4128_v62 }
 0x7ec   : > { %v7935_v55 = vpop.eup %7934 }
 0x7ed   : > { %v3113_v22 = vmul.f32 %v7935_v55, %v10390_v27  ;;  %7334 = vmatmul.msk.bf16.vlgmr.msrb.gmra.mxu3 %vm1371_vm1, %v3381_v37  ;;  %v4001_v27 = vrot.slane %v12405_v11, 4  ;;  %v4135_v52 = vsel %vm900_vm0, %v4130_v58, 0  ;;  %v10542_v57 = vpop.permute.xlu2 %5602  ;;  %v3814_v11 = vrot.slane %v12412_v28, 4 }
 0x7ee   : > { %3803 = vmatpush.bf16.xpose.msrb.mxu3 %v3794_v14  ;;  %v3004_v7 = vpop.xlane.xlu1 %3003 }
 0x7ef   : > { %v3145_v25 = vpack.c.bf16 %v3113_v22, %v3113_v22  ;;  %v4005_v21 = vunpack.c.l.b16 %v4001_v27  ;;  %7936 = vrcp.f32 %v3004_v7  ;;  %v3818_v13 = vunpack.c.l.b16 %v3814_v11 }
 0x7f1   : > { %v3455_v12 = vunpack.c.l.b16 %v3145_v25  ;;  %v4006_v41 = vpack.c.b16 %v4005_v21, %v4004_v40  ;;  %v10537_v9 = vpop.permute.xlu0 %5629 }
 0x7f3   : > { %v3456_v6 = vpack.c.b16 %v3455_v12, %v3454_v10  ;;  %v4011_v63 = vsel %vm900_vm0, %v4006_v41, 0  ;;  %v12410_v12 = vld [vmem:[#allocation125_spill] sm:$0xff] }
 0x7f5   : > { %7337 = vmatmul.msk.bf16.vlgmr.msrb.gmra.mxu2 %vm1371_vm1, %v3456_v6  ;;  %v7937_v5 = vpop.eup %7936 }
 0x7f6   : > { %3896 = vmatpush.bf16.xpose.msrb.mxu2 %v3887_v24  ;;  %v3022_v47 = vpop.xlane.xlu1 %3021  ;;  %v3102_v37 = vmul.f32 %v7937_v5, %v10395_v3 }
 0x7f8   : > { %v3134_v0 = vpack.c.bf16 %v3102_v37, %v3102_v37 }
 0x7fa   : > { %v3329_v40 = vunpack.c.l.b16 %v3134_v0 }
 0x7fe   : > { %v3040_v26 = vpop.xlane.xlu1 %3039 }
 0x805   : > { %7343 = vmatmul.msk.bf16.vlgmr.msra.gmra.mxu2 %vm900_vm0, %v12406_v42 }
 0x806   : > { %4020 = vmatpush.bf16.xpose.msra.mxu2 %v4011_v63  ;;  %v3031_v55 = vpop.xlane.xlu1 %3030 }
 0x80e   : > { %v3049_v36 = vpop.xlane.xlu1 %3048 }
 0x815   : > { %7347 = vmatmul.msk.bf16.vlgmr.msrb.gmra.mxu2 %vm900_vm0, %v12409_v45 }
 0x816   : > { %4144 = vmatpush.bf16.xpose.msrb.mxu2 %v4135_v52 }
 0x81c   : > { %v3007_v51 = vpop.xlane.xlu0 %3006  ;;  %v3172_v54 = vpop.f32.mrf.mxu2 }
 0x81d   : > { %7938 = vrcp.f32 %v3007_v51  ;;  %v3552_v17 = vpack.c.bf16 %v3172_v54, %v3172_v54  ;;  %v12415_v54 = vld [vmem:[#allocation156_spill] sm:$0xff] }
 0x81e   : > { %7940 = vrcp.f32 %v3022_v47 }
 0x81f   : > { %3616 = vrot.lane.b32.xlu1 %v3552_v17, %s8227_s19  ;;  %7942 = vrcp.f32 %v3040_v26 }
 0x823   : > { %v7939_v56 = vpop.eup %7938 }
 0x824   : > { %v3103_v22 = vmul.f32 %v7939_v56, %v10448_v59  ;;  %v3025_v14 = vpop.xlane.xlu0 %3024  ;;  %v3174_v34 = vpop.f32.mrf.mxu2  ;;  %v12413_v59 = vld [vmem:[#allocation57_spill] sm:$0xff] }
 0x825   : > { %v7941_v25 = vpop.eup %7940  ;;  %7944 = vrcp.f32 %v3025_v14  ;;  %v3553_v18 = vpack.c.bf16 %v3174_v34, %v3174_v34  ;;  %v3197_v10 = vpop.f32.mrf.mxu3  ;;  %7351 = vmatmul.msk.bf16.vlgmr.msra.gmra.mxu2 %vm900_vm0, %v12410_v12  ;;  %v3815_v27 = vrot.slane %v12413_v59, 4  ;;  %v12417_v34 = vld [vmem:[#allocation98_spill] sm:$0xff] }
 0x826   : > { %7946 = vrcp.f32 %v3031_v55  ;;  %v3135_v6 = vpack.c.bf16 %v3103_v22, %v3103_v22  ;;  %v3554_v24 = vpack.c.bf16 %v3197_v10, %v3197_v10  ;;  %4646 = vmatpush.bf16.msra.mxu2 %v12411_v31  ;;  %v3028_v3 = vpop.xlane.xlu2 %3027  ;;  %v3108_v21 = vmul.f32 %v7941_v25, %v10404_v39  ;;  %v7943_v42 = vpop.eup %7942  ;;  %v12414_v39 = vld [vmem:[#allocation79_spill] sm:$0xff]  ;;  %v12416_v22 = vld [vmem:[#allocation65_spill] sm:$0xff] }
 0x827   : > { %7948 = vrcp.f32 %v3028_v3  ;;  %3618 = vrot.lane.b32.xlu2 %v3553_v18, %s8227_s19  ;;  %v3819_v62 = vunpack.c.l.b16 %v3815_v27  ;;  %v3845_v26 = vrot.slane %v12414_v39, 4  ;;  %v3846_v14 = vrot.slane %v12416_v22, 4 }
 0x828   : > { %v3330_v41 = vunpack.c.l.b16 %v3135_v6  ;;  %v3222_v7 = vpop.f32.mrf.mxu0  ;;  %3620 = vrot.lane.b32.xlu0 %v3554_v24, %s8227_s19  ;;  %v3140_v47 = vpack.c.bf16 %v3108_v21, %v3108_v21  ;;  %v3908_v25 = vrot.slane %v12417_v34, 4  ;;  %v3114_v10 = vmul.f32 %v7943_v42, %v10415_v50 }
 0x829   : > { %v3556_v51 = vpack.c.bf16 %v3222_v7, %v3222_v7  ;;  %v3849_v31 = vunpack.c.l.b16 %v3845_v26  ;;  %v3850_v27 = vunpack.c.l.b16 %v3846_v14  ;;  %v12421_v26 = vld [vmem:[#allocation86_spill] sm:$0xff] }
 0x82a   : > { %v3331_v63 = vpack.c.b16 %v3330_v41, %v3329_v40  ;;  %v3404_v18 = vunpack.c.l.b16 %v3140_v47  ;;  %v3912_v40 = vunpack.c.l.b16 %v3908_v25  ;;  %v3146_v41 = vpack.c.bf16 %v3114_v10, %v3114_v10  ;;  %v12419_v47 = vld [vmem:[#allocation149_spill] sm:$0xff] }
 0x82b   : > { %v7945_v15 = vpop.eup %7944 }
 0x82c   : > { %v7947_v16 = vpop.eup %7946  ;;  %v3109_v4 = vmul.f32 %v7945_v15, %v10459_v30  ;;  %7332 = vmatmul.msk.bf16.vlgmr.msra.gmra.mxu1 %vm1371_vm1, %v3331_v63  ;;  %v3043_v58 = vpop.xlane.xlu0 %3042  ;;  %v3820_v30 = vpack.c.b16 %v3819_v62, %v3818_v13 }
 0x82d   : > { %v3272_v45 = vpop.f32.mrf.mxu2  ;;  %v7949_v52 = vpop.eup %7948  ;;  %3545 = vmatpush.bf16.msra.mxu1 %v12415_v54  ;;  %7950 = vrcp.f32 %v3043_v58  ;;  %v3111_v12 = vmul.f32 %v7947_v16, %v10423_v23 }
 0x82e   : > { %v3199_v5 = vpop.f32.mrf.mxu3  ;;  %v3560_v17 = vpack.c.bf16 %v3272_v45, %v3272_v45  ;;  %7952 = vrcp.f32 %v3049_v36  ;;  %v3141_v37 = vpack.c.bf16 %v3109_v4, %v3109_v4  ;;  %v3110_v55 = vmul.f32 %v7949_v52, %v10465_v61  ;;  %v3046_v0 = vpop.xlane.xlu2 %3045  ;;  %v12418_v61 = vld [vmem:[#allocation91_spill] sm:$0xff]  ;;  %v12420_v52 = vld [vmem:[#allocation70_spill] sm:$0xff] }
 0x82f   : > { %v3555_v56 = vpack.c.bf16 %v3199_v5, %v3199_v5  ;;  %7954 = vrcp.f32 %v3046_v0  ;;  %3624 = vrot.lane.b32.xlu2 %v3556_v51, %s8227_s19  ;;  %v3907_v24 = vrot.slane %v12418_v61, 4  ;;  %v3143_v7 = vpack.c.bf16 %v3111_v12, %v3111_v12 }
 0x830   : > { %v3405_v6 = vunpack.c.l.b16 %v3141_v37  ;;  %3632 = vrot.lane.b32.xlu0 %v3560_v17, %s8227_s19  ;;  %v3142_v28 = vpack.c.bf16 %v3110_v55, %v3110_v55  ;;  %v3224_v11 = vpop.f32.mrf.mxu0  ;;  %v3825_v23 = vsel %vm900_vm0, %v3820_v30, 0  ;;  %v3851_v36 = vpack.c.b16 %v3850_v27, %v3849_v31  ;;  %v12423_v27 = vld [vmem:[#allocation116_spill] sm:$0xff] }
 0x831   : > { %3622 = vrot.lane.b32.xlu1 %v3555_v56, %s8227_s19  ;;  %v3911_v13 = vunpack.c.l.b16 %v3907_v24  ;;  %v3557_v16 = vpack.c.bf16 %v3224_v11, %v3224_v11  ;;  %v3938_v51 = vrot.slane %v12421_v26, 4  ;;  %v3479_v17 = vunpack.c.l.b16 %v3146_v41  ;;  %v12427_v26 = vld [vmem:[#allocation137_spill] sm:$0xff] }
 0x832   : > { %v3406_v3 = vpack.c.b16 %v3405_v6, %v3404_v18  ;;  %v3429_v4 = vunpack.c.l.b16 %v3142_v28  ;;  %v3430_v37 = vunpack.c.l.b16 %v3143_v7 }
 0x833   : > { %v7951_v59 = vpop.eup %7950  ;;  %v3913_v54 = vpack.c.b16 %v3912_v40, %v3911_v13  ;;  %v3942_v34 = vunpack.c.l.b16 %v3938_v51  ;;  %v3970_v40 = vrot.slane %v12423_v27, 4  ;;  %v4063_v51 = vrot.slane %v12427_v26, 4  ;;  %v12441_v26 = vld [vmem:[#allocation110_spill] sm:$0xff] }
 0x834   : > { %v7953_v21 = vpop.eup %7952  ;;  %v3115_v50 = vmul.f32 %v7951_v59, %v10479_v20  ;;  %7335 = vmatmul.msk.bf16.vlgmr.msra.gmra.mxu0 %vm1371_vm1, %v3406_v3  ;;  %v3052_v42 = vpop.xlane.xlu0 %3051  ;;  %v3431_v30 = vpack.c.b16 %v3430_v37, %v3429_v4 }
 0x835   : > { %v3274_v63 = vpop.f32.mrf.mxu2  ;;  %v7955_v15 = vpop.eup %7954  ;;  %3834 = vmatpush.bf16.xpose.msra.mxu0 %v3825_v23  ;;  %7355 = vmatmul.msk.bf16.vlgmr.msrb.gmra.mxu2 %vm900_vm0, %v12419_v47  ;;  %7956 = vrcp.f32 %v3052_v42  ;;  %v3117_v55 = vmul.f32 %v7953_v21, %v10429_v32  ;;  %v3856_v32 = vsel %vm900_vm0, %v3851_v36, 0  ;;  %v3918_v10 = vsel %vm900_vm0, %v3913_v54, 0  ;;  %v12424_v21 = vld [vmem:[#allocation128_spill] sm:$0xff]  ;;  %v12425_v23 = vld [vmem:[#allocation109_spill] sm:$0xff] }
 0x836   : > { %v3561_v62 = vpack.c.bf16 %v3274_v63, %v3274_v63  ;;  %v3147_v58 = vpack.c.bf16 %v3115_v50, %v3115_v50  ;;  %v3116_v45 = vmul.f32 %v7955_v15, %v10484_v2  ;;  %v3297_v20 = vpop.f32.mrf.mxu3  ;;  %4746 = vmatpush.bf16.msrb.mxu2 %v12420_v52  ;;  %v3055_v39 = vpop.xlane.xlu2 %3054  ;;  %v12422_v2 = vld [vmem:[#allocation103_spill] sm:$0xff]  ;;  %v4032_v41 = vrot.slane %v12424_v21, 4  ;;  %v12426_v63 = vld [vmem:[#allocation121_spill] sm:$0xff] }
 0x837   : > { %v3562_v5 = vpack.c.bf16 %v3297_v20, %v3297_v20  ;;  %7958 = vrcp.f32 %v3055_v39  ;;  %v3939_v0 = vrot.slane %v12422_v2, 4  ;;  %v3149_v18 = vpack.c.bf16 %v3117_v55, %v3117_v55 }
 0x838   : > { %v3480_v56 = vunpack.c.l.b16 %v3147_v58  ;;  %3626 = vrot.lane.b32.xlu0 %v3557_v16, %s8227_s19  ;;  %v3148_v14 = vpack.c.bf16 %v3116_v45, %v3116_v45  ;;  %v3969_v42 = vrot.slane %v12425_v23, 4  ;;  %v3974_v36 = vunpack.c.l.b16 %v3970_v40  ;;  %v12435_v40 = vld [vmem:[#allocation165_spill] sm:$0xff] }
 0x839   : > { %3634 = vrot.lane.b32.xlu1 %v3561_v62, %s8227_s19  ;;  %3636 = vrot.lane.b32.xlu2 %v3562_v5, %s8227_s19  ;;  %v3943_v6 = vunpack.c.l.b16 %v3939_v0  ;;  %v3505_v7 = vunpack.c.l.b16 %v3149_v18  ;;  %v4036_v16 = vunpack.c.l.b16 %v4032_v41  ;;  %v12428_v5 = vld [vmem:[#allocation132_spill] sm:$0xff]  ;;  %v4067_v55 = vunpack.c.l.b16 %v4063_v51 }
 0x83a   : > { %v3481_v22 = vpack.c.b16 %v3480_v56, %v3479_v17  ;;  %v3504_v61 = vunpack.c.l.b16 %v3148_v14  ;;  %v3973_v4 = vunpack.c.l.b16 %v3969_v42  ;;  %v4062_v17 = vrot.slane %v12428_v5, 4  ;;  %v12429_v56 = vld [vmem:[#allocation64_spill] sm:$0xff]  ;;  %v12430_v14 = vld [vmem:[#allocation145_spill] sm:$0xff] }
 0x83b   : > { %v7957_v25 = vpop.eup %7956  ;;  %v3944_v28 = vpack.c.b16 %v3943_v6, %v3942_v34  ;;  %v4093_v34 = vrot.slane %v12430_v14, 4  ;;  %v4187_v21 = vrot.slane %v12435_v40, 4  ;;  %v12436_v41 = vld [vmem:[#allocation164_spill] sm:$0xff] }
 0x83c   : > { %7336 = vmatmul.msk.bf16.vlgmr.msrb.gmra.mxu1 %vm1371_vm1, %v3431_v30  ;;  %7338 = vmatmul.msk.bf16.vlgmr.msra.gmra.mxu3 %vm1371_vm1, %v3481_v22  ;;  %v3118_v50 = vmul.f32 %v7957_v25, %v10494_v19  ;;  %v3506_v15 = vpack.c.b16 %v3505_v7, %v3504_v61  ;;  %v3975_v52 = vpack.c.b16 %v3974_v36, %v3973_v4  ;;  %v4066_v30 = vunpack.c.l.b16 %v4062_v17  ;;  %v12431_v25 = vld [vmem:[#allocation159_spill] sm:$0xff]  ;;  %v12440_v4 = vld [vmem:[#allocation170_spill] sm:$0xff]  ;;  %v12456_v40 = vld [vmem:[#allocation160_spill] sm:$0xff] }
 0x83d   : > { %v7959_v12 = vpop.eup %7958  ;;  %3865 = vmatpush.bf16.xpose.msrb.mxu1 %v3856_v32  ;;  %3927 = vmatpush.bf16.xpose.msra.mxu3 %v3918_v10  ;;  %v3949_v47 = vsel %vm900_vm0, %v3944_v28, 0  ;;  %v4156_v18 = vrot.slane %v12431_v25, 4  ;;  %v12432_v32 = vld [vmem:[#allocation133_spill] sm:$0xff]  ;;  %v4097_v61 = vunpack.c.l.b16 %v4093_v34  ;;  %v4186_v7 = vrot.slane %v12436_v41, 4  ;;  %v12446_v34 = vld [vmem:[#allocation143_spill] sm:$0xff]  ;;  %v12447_v25 = vld [vmem:[#allocation58_spill] sm:$0xff] }
 0x83e   : > { %v3119_v24 = vmul.f32 %v7959_v12, %v10496_v43  ;;  %v3299_v31 = vpop.f32.mrf.mxu3  ;;  %v3372_v3 = vpop.f32.mrf.mxu2  ;;  %v4031_v43 = vrot.slane %v12426_v63, 4  ;;  %v3150_v62 = vpack.c.bf16 %v3118_v50, %v3118_v50  ;;  %v3980_v2 = vsel %vm900_vm0, %v3975_v52, 0  ;;  %v12433_v12 = vld [vmem:[#allocation154_spill] sm:$0xff]  ;;  %v12437_v63 = vld [vmem:[#allocation68_spill] sm:$0xff] }
 0x83f   : > { %v3563_v11 = vpack.c.bf16 %v3299_v31, %v3299_v31  ;;  %v3568_v59 = vpack.c.bf16 %v3372_v3, %v3372_v3  ;;  %v4068_v22 = vpack.c.b16 %v4067_v55, %v4066_v30  ;;  %v4094_v10 = vrot.slane %v12432_v32, 4  ;;  %v12434_v31 = vld [vmem:[#allocation76_spill] sm:$0xff]  ;;  %v12442_v55 = vld [vmem:[#allocation99_spill] sm:$0xff]  ;;  %v10633_v30 = vpop.permute.xlu2 %5416 }
 0x840   : > { %v3151_v13 = vpack.c.bf16 %v3119_v24, %v3119_v24  ;;  %v4035_v19 = vunpack.c.l.b16 %v4031_v43  ;;  %v3529_v54 = vunpack.c.l.b16 %v3150_v62  ;;  %v4155_v6 = vrot.slane %v12433_v12, 4  ;;  %v12438_v43 = vld [vmem:[#allocation94_spill] sm:$0xff]  ;;  %v12439_v62 = vld [vmem:[#allocation155_spill] sm:$0xff]  ;;  %12445 = vst [vmem:[#allocation29_spill] sm:$0xff] %v10633_v30  ;;  %v12448_v12 = vld [vmem:[#allocation136_spill] sm:$0xff] }
 0x841   : > { %3638 = vrot.lane.b32.xlu0 %v3563_v11, %s8227_s19  ;;  %3648 = vrot.lane.b32.xlu2 %v3568_v59, %s8227_s19  ;;  %v4160_v24 = vunpack.c.l.b16 %v4156_v18  ;;  %v4073_v3 = vsel %vm900_vm0, %v4068_v22, 0  ;;  %v4098_v28 = vunpack.c.l.b16 %v4094_v10  ;;  %v4191_v42 = vunpack.c.l.b16 %v4187_v21  ;;  %v12457_v21 = vld [vmem:[#allocation95_spill] sm:$0xff] }
 0x842   : > { %v3530_v58 = vunpack.c.l.b16 %v3151_v13  ;;  %v4037_v39 = vpack.c.b16 %v4036_v16, %v4035_v19  ;;  %v4159_v11 = vunpack.c.l.b16 %v4155_v6  ;;  %v4190_v36 = vunpack.c.l.b16 %v4186_v7  ;;  %v12449_v6 = vld [vmem:[#allocation157_spill] sm:$0xff] }
 0x843   : > { %v4099_v59 = vpack.c.b16 %v4098_v28, %v4097_v61  ;;  %v4218_v19 = vrot.slane %v12440_v4, 4  ;;  %v12450_v61 = vld [vmem:[#allocation69_spill] sm:$0xff]  ;;  %v12453_v28 = vld [vmem:[#allocation150_spill] sm:$0xff] }
 0x844   : > { %7339 = vmatmul.msk.bf16.vlgmr.msrb.gmra.mxu0 %vm1371_vm1, %v3506_v15  ;;  %v3531_v37 = vpack.c.b16 %v3530_v58, %v3529_v54  ;;  %v4042_v0 = vsel %vm900_vm0, %v4037_v39, 0  ;;  %v4161_v27 = vpack.c.b16 %v4160_v24, %v4159_v11  ;;  %v4192_v16 = vpack.c.b16 %v4191_v42, %v4190_v36  ;;  %v12451_v24 = vld [vmem:[#allocation60_spill] sm:$0xff] }
 0x845   : > { %3958 = vmatpush.bf16.xpose.msrb.mxu0 %v3949_v47  ;;  %v4104_v15 = vsel %vm900_vm0, %v4099_v59, 0  ;;  %v4217_v47 = vrot.slane %v12439_v62, 4  ;;  %v4222_v54 = vunpack.c.l.b16 %v4218_v19  ;;  %v12454_v11 = vld [vmem:[#allocation88_spill] sm:$0xff] }
 0x846   : > { %v3374_v45 = vpop.f32.mrf.mxu2  ;;  %v4166_v13 = vsel %vm900_vm0, %v4161_v27, 0  ;;  %v4197_v51 = vsel %vm900_vm0, %v4192_v16, 0 }
 0x847   : > { %v3569_v20 = vpack.c.bf16 %v3374_v45, %v3374_v45  ;;  %v4221_v39 = vunpack.c.l.b16 %v4217_v47  ;;  %v10639_v18 = vpop.permute.xlu2 %5633  ;;  %v10660_v7 = vpop.permute.xlu0 %5536 }
 0x849   : > { %3650 = vrot.lane.b32.xlu0 %v3569_v20, %s8227_s19  ;;  %v4223_v5 = vpack.c.b16 %v4222_v54, %v4221_v39 }
 0x84c   : > { %7340 = vmatmul.msk.bf16.vlgmr.msra.gmra.mxu1 %vm1371_vm1, %v3531_v37  ;;  %7344 = vmatmul.msk.bf16.vlgmr.msrb.gmra.mxu3 %vm900_vm0, %v12429_v56  ;;  %v12443_v56 = vld [vmem:[#allocation114_spill] sm:$0xff] }
 0x84d   : > { %3989 = vmatpush.bf16.xpose.msra.mxu1 %v3980_v2  ;;  %4051 = vmatpush.bf16.xpose.msrb.mxu3 %v4042_v0  ;;  %v4228_v2 = vsel %vm900_vm0, %v4223_v5, 0  ;;  %v12444_v0 = vld [vmem:[#allocation42_spill] sm:$0xff] }
 0x854   : > { %7345 = vmatmul.msk.bf16.vlgmr.msra.gmra.mxu0 %vm900_vm0, %v12434_v31  ;;  %v10648_v31 = vpop.permute.xlu1 %5534 }
 0x855   : > { %4082 = vmatpush.bf16.xpose.msra.mxu0 %v4073_v3  ;;  %12452 = vst [vmem:[#allocation54_spill] sm:$0xff] %v10648_v31 }
 0x85a   : > { %v3247_v50 = vpop.f32.mrf.mxu1 }
 0x85b   : > { %v3558_v23 = vpack.c.bf16 %v3247_v50, %v3247_v50 }
 0x85c   : > { %7346 = vmatmul.msk.bf16.vlgmr.msrb.gmra.mxu1 %vm900_vm0, %v12437_v63  ;;  %7348 = vmatmul.msk.bf16.vlgmr.msra.gmra.mxu3 %vm900_vm0, %v12438_v43  ;;  %v10654_v59 = vpop.permute.xlu1 %5540 }
 0x85d   : > { %4113 = vmatpush.bf16.xpose.msrb.mxu1 %v4104_v15  ;;  %4175 = vmatpush.bf16.xpose.msra.mxu3 %v4166_v13  ;;  %12455 = vst [vmem:[#allocation72_spill] sm:$0xff] %v10654_v59 }
 0x85e   : > { %3628 = vrot.lane.b32.xlu1 %v3558_v23, %s8227_s19 }
 0x862   : > { %v3249_v58 = vpop.f32.mrf.mxu1  ;;  %v3322_v45 = vpop.f32.mrf.mxu0 }
 0x863   : > { %v3559_v20 = vpack.c.bf16 %v3249_v58, %v3249_v58  ;;  %v3564_v52 = vpack.c.bf16 %v3322_v45, %v3322_v45 }
 0x864   : > { %7349 = vmatmul.msk.bf16.vlgmr.msrb.gmra.mxu0 %vm900_vm0, %v12441_v26 }
 0x865   : > { %4206 = vmatpush.bf16.xpose.msrb.mxu0 %v4197_v51  ;;  %3630 = vrot.lane.b32.xlu2 %v3559_v20, %s8227_s19 }
 0x866   : > { %3640 = vrot.lane.b32.xlu1 %v3564_v52, %s8227_s19 }
 0x86a   : > { %v3324_v17 = vpop.f32.mrf.mxu0 }
 0x86b   : > { %v3565_v37 = vpack.c.bf16 %v3324_v17, %v3324_v17 }
 0x86c   : > { %7350 = vmatmul.msk.bf16.vlgmr.msra.gmra.mxu1 %vm900_vm0, %v12442_v55  ;;  %7352 = vmatmul.msk.bf16.vlgmr.msrb.gmra.mxu3 %vm900_vm0, %v12443_v56 }
 0x86d   : > { %4237 = vmatpush.bf16.xpose.msra.mxu1 %v4228_v2  ;;  %4671 = vmatpush.bf16.msrb.mxu3 %v12444_v0 }
 0x86e   : > { %3642 = vrot.lane.b32.xlu1 %v3565_v37, %s8227_s19 }
 0x870   : > { %v3397_v22 = vpop.f32.mrf.mxu3 }
 0x871   : > { %v3570_v14 = vpack.c.bf16 %v3397_v22, %v3397_v22 }
 0x874   : > { %7353 = vmatmul.msk.bf16.vlgmr.msra.gmra.mxu0 %vm900_vm0, %v12446_v34 }
 0x875   : > { %4696 = vmatpush.bf16.msra.mxu0 %v12447_v25 }
 0x876   : > { %3652 = vrot.lane.b32.xlu1 %v3570_v14, %s8227_s19 }
 0x878   : > { %v3472_v32 = vpop.f32.mrf.mxu2  ;;  %v3399_v62 = vpop.f32.mrf.mxu3 }
 0x879   : > { %v3576_v10 = vpack.c.bf16 %v3472_v32, %v3472_v32  ;;  %v3571_v4 = vpack.c.bf16 %v3399_v62, %v3399_v62 }
 0x87c   : > { %7354 = vmatmul.msk.bf16.vlgmr.msrb.gmra.mxu1 %vm900_vm0, %v12448_v12  ;;  %7356 = vmatmul.msk.bf16.vlgmr.msra.gmra.mxu3 %vm900_vm0, %v12449_v6  ;;  %v10689_v6 = vld [vmem:[%s12070_s5 + $0x20] sm:$0xff] }
 0x87d   : > { %4721 = vmatpush.bf16.msrb.mxu1 %v12450_v61  ;;  %4771 = vmatpush.bf16.msra.mxu3 %v12451_v24 }
 0x87e   : > { %3664 = vrot.lane.b32.xlu1 %v3576_v10, %s8227_s19 }
 0x880   : > { %v3474_v20 = vpop.f32.mrf.mxu2 }
 0x881   : > { %v3619_v3 = vpop.permute.xlu2 %3618  ;;  %v3577_v39 = vpack.c.bf16 %v3474_v20, %v3474_v20 }
 0x882   : > { %3714 = vst.msk [vmem:[#allocation2 + $0x4] sm:$0xf] %vm3712_vm3, %v3619_v3 }
 0x884   : > { %7357 = vmatmul.msk.bf16.vlgmr.msrb.gmra.mxu0 %vm900_vm0, %v12453_v28 }
 0x885   : > { %4796 = vmatpush.bf16.msrb.mxu0 %v12454_v11 }
 0x888   : > { %v3774_v12 = vpop.f32.mrf.mxu2 }
 0x889   : > { %v3625_v27 = vpop.permute.xlu2 %3624  ;;  %v10693_v24 = vadd.f32 %v10689_v6, %v3774_v12 }
 0x88a   : > { %3717 = vst.msk [vmem:[#allocation2 + $0x10] sm:$0xf] %vm3712_vm3, %v3625_v27 }
 0x88b   : > { %v4244_v11 = vsel %vm1371_vm1, %v10693_v24, -inf }
 0x88c   : > { %7358 = vmatmul.msk.bf16.vlgmr.msra.gmra.mxu1 %vm900_vm0, %v12456_v40 }
 0x88d   : > { %4821 = vmatpush.bf16.msra.mxu1 %v12457_v21  ;;  %v10703_v21 = vld [vmem:[%s12070_s5 + $0x28] sm:$0xff] }
 0x890   : > { %v3776_v28 = vpop.f32.mrf.mxu2 }
 0x891   : > { %v3617_v41 = vpop.permute.xlu1 %3616 }
 0x892   : > { %3713 = vst.msk [vmem:[#allocation2] sm:$0xf] %vm3712_vm3, %v3617_v41 }
 0x893   : > { %v3637_v50 = vpop.permute.xlu2 %3636 }
 0x894   : > { %3723 = vst.msk [vmem:[#allocation2 + $0x28] sm:$0xf] %vm3712_vm3, %v3637_v50  ;;  %v10708_v50 = vadd.f32 %v10703_v21, %v3776_v28 }
 0x89a   : > { %v3621_v23 = vpop.permute.xlu0 %3620 }
 0x89b   : > { %v3649_v42 = vpop.permute.xlu2 %3648  ;;  %3715 = vst.msk [vmem:[#allocation2 + $0x8] sm:$0xf] %vm3712_vm3, %v3621_v23  ;;  %v3898_v23 = vpop.f32.mrf.mxu2 }
 0x89c   : > { %3729 = vst.msk [vmem:[#allocation2 + $0x40] sm:$0xf] %vm3712_vm3, %v3649_v42 }
 0x8a2   : > { %v3633_v43 = vpop.permute.xlu0 %3632 }
 0x8a3   : > { %v3623_v63 = vpop.permute.xlu1 %3622  ;;  %3721 = vst.msk [vmem:[#allocation2 + $0x20] sm:$0xf] %vm3712_vm3, %v3633_v43  ;;  %v3900_v62 = vpop.f32.mrf.mxu2 }
 0x8a4   : > { %3716 = vst.msk [vmem:[#allocation2 + $0xc] sm:$0xf] %vm3712_vm3, %v3623_v63 }
 0x8a9   : > { %v3347_v15 = vpop.f32.mrf.mxu1 }
 0x8aa   : > { %v3566_v13 = vpack.c.bf16 %v3347_v15, %v3347_v15  ;;  %v3627_v16 = vpop.permute.xlu0 %3626  ;;  %v4247_v15 = vsel %vm1371_vm1, %v10708_v50, -inf }
 0x8ab   : > { %v3635_v36 = vpop.permute.xlu1 %3634  ;;  %3718 = vst.msk [vmem:[#allocation2 + $0x14] sm:$0xf] %vm3712_vm3, %v3627_v16 }
 0x8ac   : > { %3722 = vst.msk [vmem:[#allocation2 + $0x24] sm:$0xf] %vm3712_vm3, %v3635_v36  ;;  %3644 = vrot.lane.b32.xlu2 %v3566_v13, %s8227_s19  ;;  %v10716_v13 = vadd.f32 %v10689_v6, %v3898_v23 }
 0x8b1   : > { %v3422_v47 = vpop.f32.mrf.mxu0  ;;  %v3349_v58 = vpop.f32.mrf.mxu1 }
 0x8b2   : > { %v3572_v19 = vpack.c.bf16 %v3422_v47, %v3422_v47  ;;  %v3567_v26 = vpack.c.bf16 %v3349_v58, %v3349_v58 }
 0x8b3   : > { %v3639_v45 = vpop.permute.xlu0 %3638 }
 0x8b4   : > { %3724 = vst.msk [vmem:[#allocation2 + $0x2c] sm:$0xf] %vm3712_vm3, %v3639_v45  ;;  %3654 = vrot.lane.b32.xlu2 %v3571_v4, %s8227_s19  ;;  %3656 = vrot.lane.b32.xlu0 %v3572_v19, %s8227_s19  ;;  %v4268_v19 = vsel %vm1371_vm1, %v10716_v13, -inf }
 0x8b9   : > { %v3424_v52 = vpop.f32.mrf.mxu0  ;;  %v3447_v5 = vpop.f32.mrf.mxu1 }
 0x8ba   : > { %v3573_v51 = vpack.c.bf16 %v3424_v52, %v3424_v52  ;;  %v3574_v55 = vpack.c.bf16 %v3447_v5, %v3447_v5  ;;  %v10734_v52 = vadd.f32 %v10703_v21, %v3900_v62 }
 0x8bb   : > { %v3651_v54 = vpop.permute.xlu0 %3650 }
 0x8bc   : > { %3730 = vst.msk [vmem:[#allocation2 + $0x44] sm:$0xf] %vm3712_vm3, %v3651_v54  ;;  %3666 = vrot.lane.b32.xlu2 %v3577_v39, %s8227_s19  ;;  %3646 = vrot.lane.b32.xlu0 %v3567_v26, %s8227_s19  ;;  %v4022_v26 = vpop.f32.mrf.mxu2  ;;  %v4271_v5 = vsel %vm1371_vm1, %v10734_v52, -inf }
 0x8bd   : > { %3658 = vrot.lane.b32.xlu1 %v3573_v51, %s8227_s19 }
 0x8bf   : > { %v3497_v17 = vpop.f32.mrf.mxu3  ;;  %v3631_v37 = vpop.permute.xlu2 %3630 }
 0x8c0   : > { %3720 = vst.msk [vmem:[#allocation2 + $0x1c] sm:$0xf] %vm3712_vm3, %v3631_v37  ;;  %v3578_v56 = vpack.c.bf16 %v3497_v17, %v3497_v17 }
 0x8c1   : > { %v3522_v2 = vpop.f32.mrf.mxu0  ;;  %v3449_v0 = vpop.f32.mrf.mxu1 }
 0x8c2   : > { %v3575_v22 = vpack.c.bf16 %v3449_v0, %v3449_v0  ;;  %v3580_v14 = vpack.c.bf16 %v3522_v2, %v3522_v2 }
 0x8c4   : > { %3660 = vrot.lane.b32.xlu2 %v3574_v55, %s8227_s19  ;;  %3668 = vrot.lane.b32.xlu0 %v3578_v56, %s8227_s19  ;;  %v10742_v55 = vadd.f32 %v10689_v6, %v4022_v26 }
 0x8c6   : > { %v4292_v0 = vsel %vm1371_vm1, %v10742_v55, -inf }
 0x8c7   : > { %v3499_v27 = vpop.f32.mrf.mxu3 }
 0x8c8   : > { %v3579_v45 = vpack.c.bf16 %v3499_v27, %v3499_v27 }
 0x8c9   : > { %v3524_v34 = vpop.f32.mrf.mxu0  ;;  %v10695_v3 = vpop.f32.mrf.mxu1 }
 0x8ca   : > { %v3581_v32 = vpack.c.bf16 %v3524_v34, %v3524_v34  ;;  %12458 = vst [vmem:[#allocation12_spill] sm:$0xff] %v10695_v3 }
 0x8cc   : > { %3672 = vrot.lane.b32.xlu2 %v3580_v14, %s8227_s19  ;;  %3662 = vrot.lane.b32.xlu0 %v3575_v22, %s8227_s19  ;;  %v4024_v14 = vpop.f32.mrf.mxu2 }
 0x8cf   : > { %v3805_v43 = vpop.f32.mrf.mxu3 }
 0x8d0   : > { %v3629_v25 = vpop.permute.xlu1 %3628  ;;  %v10721_v16 = vadd.f32 %v10689_v6, %v3805_v43 }
 0x8d1   : > { %3719 = vst.msk [vmem:[#allocation2 + $0x18] sm:$0xf] %vm3712_vm3, %v3629_v25  ;;  %v10705_v41 = vpop.f32.mrf.mxu1  ;;  %v10710_v63 = vpop.f32.mrf.mxu0 }
 0x8d2   : > { %12459 = vst [vmem:[#allocation74_spill] sm:$0xff] %v10705_v41  ;;  %v4250_v58 = vsel %vm1371_vm1, %v10721_v16, -inf }
 0x8d4   : > { %3674 = vrot.lane.b32.xlu0 %v3581_v32, %s8227_s19  ;;  %v10773_v43 = vpop.f32.mrf.mxu2 }
 0x8d7   : > { %v10723_v4 = vpop.f32.mrf.mxu3 }
 0x8d8   : > { %v3641_v10 = vpop.permute.xlu1 %3640 }
 0x8d9   : > { %3725 = vst.msk [vmem:[#allocation2 + $0x30] sm:$0xf] %vm3712_vm3, %v3641_v10  ;;  %v10718_v36 = vpop.f32.mrf.mxu1  ;;  %v3838_v47 = vpop.f32.mrf.mxu0  ;;  %v10756_v10 = vadd.f32 %v10703_v21, %v4024_v14 }
 0x8da   : > { %v10730_v20 = vadd.f32 %v10703_v21, %v3838_v47 }
 0x8db   : > { %v4295_v28 = vsel %vm1371_vm1, %v10756_v10, -inf }
 0x8dc   : > { %v4259_v51 = vsel %vm1371_vm1, %v10730_v20, -inf }
 0x8df   : > { %v3929_v17 = vpop.f32.mrf.mxu3 }
 0x8e0   : > { %v3643_v61 = vpop.permute.xlu1 %3642  ;;  %v10745_v56 = vadd.f32 %v10689_v6, %v3929_v17 }
 0x8e1   : > { %3726 = vst.msk [vmem:[#allocation2 + $0x34] sm:$0xf] %vm3712_vm3, %v3643_v61  ;;  %v3869_v39 = vpop.f32.mrf.mxu1  ;;  %v3960_v54 = vpop.f32.mrf.mxu0 }
 0x8e2   : > { %v4274_v22 = vsel %vm1371_vm1, %v10745_v56, -inf  ;;  %v10753_v32 = vadd.f32 %v10689_v6, %v3960_v54  ;;  %v4148_v54 = vpop.f32.mrf.mxu2 }
 0x8e4   : > { %v4280_v61 = vsel %vm1371_vm1, %v10753_v32, -inf }
 0x8e7   : > { %4245 = vmax.xlane.f32.xlu1 %v4244_v11  ;;  %v10758_v12 = vpop.f32.mrf.mxu3 }
 0x8e8   : > { %v3653_v40 = vpop.permute.xlu1 %3652 }
 0x8e9   : > { %3731 = vst.msk [vmem:[#allocation2 + $0x48] sm:$0xf] %vm3712_vm3, %v3653_v40  ;;  %v3991_v2 = vpop.f32.mrf.mxu1  ;;  %v3962_v25 = vpop.f32.mrf.mxu0  ;;  %v10768_v40 = vadd.f32 %v10703_v21, %v3869_v39 }
 0x8ea   : > { %v10771_v23 = vadd.f32 %v10703_v21, %v3962_v25  ;;  %v10786_v39 = vadd.f32 %v10689_v6, %v3991_v2  ;;  %v10800_v2 = vadd.f32 %v10703_v21, %v4148_v54  ;;  %v10830_v54 = vadd.f32 %v10689_v6, %v10718_v36 }
 0x8ec   : > { %v4283_v47 = vsel %vm1371_vm1, %v10771_v23, -inf  ;;  %v4286_v17 = vsel %vm1371_vm1, %v10786_v39, -inf  ;;  %v4319_v25 = vsel %vm1371_vm1, %v10800_v2, -inf }
 0x8ef   : > { %v4053_v62 = vpop.f32.mrf.mxu3 }
 0x8f0   : > { %v3665_v42 = vpop.permute.xlu1 %3664 }
 0x8f1   : > { %3737 = vst.msk [vmem:[#allocation2 + $0x60] sm:$0xf] %vm3712_vm3, %v3665_v42  ;;  %v10764_v11 = vpop.f32.mrf.mxu1  ;;  %v4084_v42 = vpop.f32.mrf.mxu0 }
 0x8f5   : > { %4248 = vmax.xlane.f32.xlu2 %v4247_v15  ;;  %v4265_v15 = vsel %vm1371_vm1, %v10768_v40, -inf }
 0x8f9   : > { %v10788_v26 = vpop.f32.mrf.mxu0 }
 0x8fd   : > { %4269 = vmax.xlane.f32.xlu2 %v4268_v19 }
 0x8fe   : > { %4251 = vmax.xlane.f32.xlu0 %v4250_v58  ;;  %v10781_v58 = vadd.f32 %v10689_v6, %v4053_v62 }
 0x900   : > { %3670 = vrot.lane.b32.xlu1 %v3579_v45, %s8227_s19  ;;  %v10783_v45 = vpop.f32.mrf.mxu1 }
 0x905   : > { %4260 = vmax.xlane.f32.xlu2 %v4259_v51  ;;  %v4298_v51 = vsel %vm1371_vm1, %v10781_v58, -inf }
 0x906   : > { %v3645_v37 = vpop.permute.xlu2 %3644  ;;  %4272 = vmax.xlane.f32.xlu0 %v4271_v5  ;;  %v10794_v5 = vadd.f32 %v10689_v6, %v10710_v63 }
 0x907   : > { %3727 = vst.msk [vmem:[#allocation2 + $0x38] sm:$0xf] %vm3712_vm3, %v3645_v37 }
 0x908   : > { %v4256_v63 = vsel %vm1371_vm1, %v10794_v5, -inf  ;;  %v4117_v14 = vpop.f32.mrf.mxu1 }
 0x90d   : > { %4293 = vmax.xlane.f32.xlu2 %v4292_v0 }
 0x90e   : > { %v3655_v34 = vpop.permute.xlu2 %3654  ;;  %4275 = vmax.xlane.f32.xlu0 %v4274_v22  ;;  %v10804_v22 = vadd.f32 %v10689_v6, %v4084_v42 }
 0x90f   : > { %3732 = vst.msk [vmem:[#allocation2 + $0x4c] sm:$0xf] %vm3712_vm3, %v3655_v34  ;;  %v4055_v34 = vpop.f32.mrf.mxu3 }
 0x915   : > { %4281 = vmax.xlane.f32.xlu2 %v4280_v61  ;;  %v10812_v61 = vadd.f32 %v10703_v21, %v10723_v4 }
 0x916   : > { %v3667_v27 = vpop.permute.xlu2 %3666  ;;  %4296 = vmax.xlane.f32.xlu0 %v4295_v28  ;;  %v4208_v28 = vpop.f32.mrf.mxu0 }
 0x917   : > { %3738 = vst.msk [vmem:[#allocation2 + $0x64] sm:$0xf] %vm3712_vm3, %v3667_v27  ;;  %v4304_v27 = vsel %vm1371_vm1, %v10804_v22, -inf  ;;  %v10818_v62 = vadd.f32 %v10689_v6, %v4208_v28  ;;  %v4253_v4 = vsel %vm1371_vm1, %v10812_v61, -inf  ;;  %v10847_v28 = vadd.f32 %v10703_v21, %v10758_v12 }
 0x919   : > { %v4277_v12 = vsel %vm1371_vm1, %v10847_v28, -inf }
 0x91d   : > { %4266 = vmax.xlane.f32.xlu2 %v4265_v15 }
 0x91e   : > { %v3661_v19 = vpop.permute.xlu2 %3660  ;;  %4284 = vmax.xlane.f32.xlu0 %v4283_v47  ;;  %v10822_v47 = vadd.f32 %v10703_v21, %v4055_v34 }
 0x91f   : > { %3735 = vst.msk [vmem:[#allocation2 + $0x58] sm:$0xf] %vm3712_vm3, %v3661_v19  ;;  %v4239_v19 = vpop.f32.mrf.mxu1 }
 0x925   : > { %4299 = vmax.xlane.f32.xlu2 %v4298_v51  ;;  %v4328_v51 = vsel %vm1371_vm1, %v10818_v62, -inf }
 0x926   : > { %v3673_v37 = vpop.permute.xlu2 %3672  ;;  %4287 = vmax.xlane.f32.xlu0 %v4286_v17  ;;  %v3657_v0 = vpop.permute.xlu0 %3656  ;;  %v4301_v17 = vsel %vm1371_vm1, %v10822_v47, -inf }
 0x927   : > { %3741 = vst.msk [vmem:[#allocation2 + $0x70] sm:$0xf] %vm3712_vm3, %v3673_v37  ;;  %v4177_v37 = vpop.f32.mrf.mxu3 }
 0x928   : > { %3733 = vst.msk [vmem:[#allocation2 + $0x50] sm:$0xf] %vm3712_vm3, %v3657_v0  ;;  %v10839_v34 = vadd.f32 %v10689_v6, %v4177_v37  ;;  %v10864_v37 = vadd.f32 %v10689_v6, %v10773_v43  ;;  %v10878_v43 = vadd.f32 %v10703_v21, %v10764_v11  ;;  %v10891_v11 = vadd.f32 %v10689_v6, %v10783_v45 }
 0x92a   : > { %4257 = vmax.xlane.f32.xlu1 %v4256_v63  ;;  %v10836_v63 = vadd.f32 %v10703_v21, %v4117_v14  ;;  %v4322_v14 = vsel %vm1371_vm1, %v10839_v34, -inf }
 0x92c   : > { %v4313_v36 = vsel %vm1371_vm1, %v10836_v63, -inf }
 0x92d   : > { %4320 = vmax.xlane.f32.xlu2 %v4319_v25  ;;  %v4262_v25 = vsel %vm1371_vm1, %v10830_v54, -inf }
 0x92e   : > { %4305 = vmax.xlane.f32.xlu0 %v4304_v27  ;;  %v3647_v42 = vpop.permute.xlu0 %3646  ;;  %v4210_v27 = vpop.f32.mrf.mxu0 }
 0x92f   : > { %v3659_v15 = vpop.permute.xlu1 %3658  ;;  %3728 = vst.msk [vmem:[#allocation2 + $0x3c] sm:$0xf] %vm3712_vm3, %v3647_v42  ;;  %v4241_v42 = vpop.f32.mrf.mxu1 }
 0x930   : > { %3734 = vst.msk [vmem:[#allocation2 + $0x54] sm:$0xf] %vm3712_vm3, %v3659_v15 }
 0x932   : > { %4254 = vmax.xlane.f32.xlu1 %v4253_v4  ;;  %v10853_v4 = vadd.f32 %v10703_v21, %v4210_v27  ;;  %v4316_v27 = vsel %vm1371_vm1, %v10864_v37, -inf }
 0x935   : > { %4329 = vmax.xlane.f32.xlu2 %v4328_v51  ;;  %v10856_v51 = vadd.f32 %v10703_v21, %v4241_v42  ;;  %v4289_v42 = vsel %vm1371_vm1, %v10878_v43, -inf }
 0x936   : > { %4302 = vmax.xlane.f32.xlu0 %v4301_v17  ;;  %v3669_v0 = vpop.permute.xlu0 %3668  ;;  %v4331_v17 = vsel %vm1371_vm1, %v10853_v4, -inf }
 0x937   : > { %3739 = vst.msk [vmem:[#allocation2 + $0x68] sm:$0xf] %vm3712_vm3, %v3669_v0  ;;  %v4337_v0 = vsel %vm1371_vm1, %v10856_v51, -inf }
 0x93a   : > { %4263 = vmax.xlane.f32.xlu1 %v4262_v25 }
 0x93d   : > { %4314 = vmax.xlane.f32.xlu2 %v4313_v36  ;;  %v10870_v36 = vadd.f32 %v10689_v6, %v4239_v19  ;;  %v10884_v19 = vadd.f32 %v10703_v21, %v10788_v26 }
 0x93e   : > { %4323 = vmax.xlane.f32.xlu0 %v4322_v14  ;;  %v3663_v15 = vpop.permute.xlu0 %3662 }
 0x93f   : > { %3736 = vst.msk [vmem:[#allocation2 + $0x5c] sm:$0xf] %vm3712_vm3, %v3663_v15  ;;  %v4334_v14 = vsel %vm1371_vm1, %v10870_v36, -inf  ;;  %v4307_v15 = vsel %vm1371_vm1, %v10884_v19, -inf }
 0x942   : > { %4278 = vmax.xlane.f32.xlu1 %v4277_v12 }
 0x945   : > { %4332 = vmax.xlane.f32.xlu2 %v4331_v17 }
 0x946   : > { %4338 = vmax.xlane.f32.xlu0 %v4337_v0  ;;  %v3675_v25 = vpop.permute.xlu0 %3674 }
 0x947   : > { %3742 = vst.msk [vmem:[#allocation2 + $0x74] sm:$0xf] %vm3712_vm3, %v3675_v25  ;;  %v4310_v25 = vsel %vm1371_vm1, %v10891_v11, -inf }
 0x94a   : > { %4317 = vmax.xlane.f32.xlu1 %v4316_v27  ;;  %v4179_v27 = vpop.f32.mrf.mxu3 }
 0x94d   : > { %4335 = vmax.xlane.f32.xlu2 %v4334_v14  ;;  %v10898_v14 = vadd.f32 %v10703_v21, %v4179_v27 }
 0x94f   : > { %v4325_v45 = vsel %vm1371_vm1, %v10898_v14, -inf }
 0x952   : > { %4290 = vmax.xlane.f32.xlu1 %v4289_v42 }
 0x95a   : > { %v4246_v12 = vpop.xlane.xlu1 %4245  ;;  %4308 = vmax.xlane.f32.xlu1 %v4307_v15 }
 0x95b   : > { %v4340_v17 = vsub.f32 %v10693_v24, %v4246_v12 }
 0x95d   : > { %v4372_v0 = vmul.f32 1.442695, %v4340_v17 }
 0x95f   : > { %7960 = vpow2.f32 %v4372_v0 }
 0x962   : > { %4311 = vmax.xlane.f32.xlu1 %v4310_v25 }
 0x965   : > { %v10895_v26 = vpop.eup %7960 }
 0x966   : > { %v4436_v42 = vsel %vm1371_vm1, %v10895_v26, 0.0 }
 0x967   : > { %4437 = vadd.xlane.f32.xlu0 %v4436_v42 }
 0x968   : > { %v4249_v24 = vpop.xlane.xlu2 %4248 }
 0x969   : > { %v4341_v6 = vsub.f32 %v10708_v50, %v4249_v24 }
 0x96a   : > { %4326 = vmax.xlane.f32.xlu1 %v4325_v45 }
 0x96b   : > { %v4374_v15 = vmul.f32 1.442695, %v4341_v6 }
 0x96d   : > { %7962 = vpow2.f32 %v4374_v15 }
 0x970   : > { %v4270_v12 = vpop.xlane.xlu2 %4269 }
 0x971   : > { %v4252_v17 = vpop.xlane.xlu0 %4251  ;;  %v4348_v27 = vsub.f32 %v10716_v13, %v4270_v12 }
 0x972   : > { %v3671_v0 = vpop.permute.xlu1 %3670  ;;  %v4342_v25 = vsub.f32 %v10721_v16, %v4252_v17 }
 0x973   : > { %v10906_v21 = vpop.eup %7962  ;;  %3740 = vst.msk [vmem:[#allocation2 + $0x6c] sm:$0xf] %vm3712_vm3, %v3671_v0  ;;  %v4388_v24 = vmul.f32 1.442695, %v4348_v27 }
 0x974   : > { %v4376_v42 = vmul.f32 1.442695, %v4342_v25  ;;  %v4439_v50 = vsel %vm1371_vm1, %v10906_v21, 0.0 }
 0x975   : > { %4440 = vadd.xlane.f32.xlu1 %v4439_v50 }
 0x976   : > { %7964 = vpow2.f32 %v4376_v42 }
 0x977   : > { %7966 = vpow2.f32 %v4388_v24 }
 0x978   : > { %v4261_v6 = vpop.xlane.xlu2 %4260 }
 0x979   : > { %v4273_v45 = vpop.xlane.xlu0 %4272  ;;  %v4345_v16 = vsub.f32 %v10730_v20, %v4261_v6 }
 0x97b   : > { %v4382_v0 = vmul.f32 1.442695, %v4345_v16 }
 0x97c   : > { %v10912_v15 = vpop.eup %7964 }
 0x97d   : > { %v4442_v17 = vsel %vm1371_vm1, %v10912_v15, 0.0  ;;  %v10918_v41 = vpop.eup %7966  ;;  %7968 = vpow2.f32 %v4382_v0 }
 0x97e   : > { %4443 = vadd.xlane.f32.xlu0 %v4442_v17  ;;  %v4460_v27 = vsel %vm1371_vm1, %v10918_v41, 0.0 }
 0x980   : > { %v4294_v13 = vpop.xlane.xlu2 %4293 }
 0x981   : > { %v4356_v12 = vsub.f32 %v10742_v55, %v4294_v13  ;;  %v4276_v25 = vpop.xlane.xlu0 %4275 }
 0x983   : > { %v4404_v42 = vmul.f32 1.442695, %v4356_v12  ;;  %v10924_v24 = vpop.eup %7968 }
 0x984   : > { %v4451_v0 = vsel %vm1371_vm1, %v10924_v24, 0.0 }
 0x985   : > { %7970 = vpow2.f32 %v4404_v42 }
 0x986   : > { %4461 = vadd.xlane.f32.xlu0 %v4460_v27 }
 0x988   : > { %v10922_v50 = vpop.xlane.xlu2 %4281 }
 0x989   : > { %v4297_v20 = vpop.xlane.xlu0 %4296 }
 0x98a   : > { %v4357_v6 = vsub.f32 %v10756_v10, %v4297_v20 }
 0x98b   : > { %v10927_v16 = vpop.eup %7970 }
 0x98c   : > { %v4406_v55 = vmul.f32 1.442695, %v4357_v6  ;;  %v4484_v17 = vsel %vm1371_vm1, %v10927_v16, 0.0 }
 0x98d   : > { %4485 = vadd.xlane.f32.xlu2 %v4484_v17 }
 0x98e   : > { %7972 = vpow2.f32 %v4406_v55  ;;  %4452 = vadd.xlane.f32.xlu0 %v4451_v0 }
 0x990   : > { %v4267_v13 = vpop.xlane.xlu2 %4266 }
 0x994   : > { %v10933_v12 = vpop.eup %7972 }
 0x995   : > { %v4487_v42 = vsel %vm1371_vm1, %v10933_v12, 0.0 }
 0x996   : > { %4488 = vadd.xlane.f32.xlu2 %v4487_v42 }
 0x998   : > { %v4300_v10 = vpop.xlane.xlu2 %4299 }
 0x999   : > { %v4358_v27 = vsub.f32 %v10781_v58, %v4300_v10  ;;  %v4285_v58 = vpop.xlane.xlu0 %4284 }
 0x99b   : > { %v4408_v20 = vmul.f32 1.442695, %v4358_v27 }
 0x99d   : > { %7974 = vpow2.f32 %v4408_v20  ;;  %v4258_v6 = vpop.xlane.xlu1 %4257 }
 0x99e   : > { %v4344_v17 = vsub.f32 %v10794_v5, %v4258_v6  ;;  %v4349_v5 = vsub.f32 %v10734_v52, %v4273_v45 }
 0x9a0   : > { %v4380_v3 = vmul.f32 1.442695, %v4344_v17  ;;  %v4321_v59 = vpop.xlane.xlu2 %4320 }
 0x9a1   : > { %v4365_v55 = vsub.f32 %v10800_v2, %v4321_v59  ;;  %v4390_v2 = vmul.f32 1.442695, %v4349_v5  ;;  %v10957_v52 = vpop.xlane.xlu0 %4287  ;;  %v4347_v5 = vsub.f32 %v10768_v40, %v4267_v13 }
 0x9a2   : > { %7976 = vpow2.f32 %v4380_v3 }
 0x9a3   : > { %v10940_v0 = vpop.eup %7974  ;;  %v4422_v30 = vmul.f32 1.442695, %v4365_v55 }
 0x9a4   : > { %v4490_v31 = vsel %vm1371_vm1, %v10940_v0, 0.0 }
 0x9a5   : > { %7978 = vpow2.f32 %v4422_v30  ;;  %v4255_v42 = vpop.xlane.xlu1 %4254  ;;  %4491 = vadd.xlane.f32.xlu2 %v4490_v31 }
 0x9a6   : > { %v4343_v10 = vsub.f32 %v10812_v61, %v4255_v42  ;;  %v4350_v61 = vsub.f32 %v10745_v56, %v4276_v25 }
 0x9a8   : > { %v10945_v27 = vpop.eup %7976  ;;  %v4378_v20 = vmul.f32 1.442695, %v4343_v10  ;;  %v4392_v17 = vmul.f32 1.442695, %v4350_v61 }
 0x9a9   : > { %v4448_v59 = vsel %vm1371_vm1, %v10945_v27, 0.0  ;;  %v4306_v25 = vpop.xlane.xlu0 %4305 }
 0x9aa   : > { %7980 = vpow2.f32 %v4378_v20  ;;  %4449 = vadd.xlane.f32.xlu1 %v4448_v59 }
 0x9ab   : > { %v10950_v3 = vpop.eup %7978  ;;  %7982 = vpow2.f32 %v4390_v2  ;;  %v4386_v2 = vmul.f32 1.442695, %v4347_v5 }
 0x9ac   : > { %v4511_v30 = vsel %vm1371_vm1, %v10950_v3, 0.0  ;;  %7984 = vpow2.f32 %v4392_v17 }
 0x9ad   : > { %v4264_v31 = vpop.xlane.xlu1 %4263  ;;  %4512 = vadd.xlane.f32.xlu2 %v4511_v30 }
 0x9ae   : > { %v4346_v20 = vsub.f32 %v10830_v54, %v4264_v31  ;;  %v4360_v54 = vsub.f32 %v10804_v22, %v4306_v25  ;;  %v4353_v22 = vsub.f32 %v10771_v23, %v4285_v58 }
 0x9b0   : > { %v10954_v6 = vpop.eup %7980  ;;  %v4384_v30 = vmul.f32 1.442695, %v4346_v20  ;;  %v4398_v25 = vmul.f32 1.442695, %v4353_v22 }
 0x9b1   : > { %v4445_v45 = vsel %vm1371_vm1, %v10954_v6, 0.0  ;;  %v10961_v42 = vpop.eup %7982 }
 0x9b2   : > { %4446 = vadd.xlane.f32.xlu1 %v4445_v45  ;;  %v4463_v56 = vsel %vm1371_vm1, %v10961_v42, 0.0  ;;  %v10968_v45 = vpop.eup %7984 }
 0x9b3   : > { %v4466_v31 = vsel %vm1371_vm1, %v10968_v45, 0.0 }
 0x9b5   : > { %v4279_v55 = vpop.xlane.xlu1 %4278 }
 0x9b6   : > { %v4351_v10 = vsub.f32 %v10847_v28, %v4279_v55  ;;  %v4352_v28 = vsub.f32 %v10753_v32, %v10922_v50  ;;  %v4412_v55 = vmul.f32 1.442695, %v4360_v54 }
 0x9b8   : > { %v4394_v59 = vmul.f32 1.442695, %v4351_v10  ;;  %v4396_v17 = vmul.f32 1.442695, %v4352_v28  ;;  %v4303_v10 = vpop.xlane.xlu0 %4302 }
 0x9b9   : > { %v4359_v20 = vsub.f32 %v10822_v47, %v4303_v10  ;;  %v4330_v10 = vpop.xlane.xlu2 %4329 }
 0x9ba   : > { %7986 = vpow2.f32 %v4394_v59  ;;  %4464 = vadd.xlane.f32.xlu1 %v4463_v56 }
 0x9bb   : > { %7988 = vpow2.f32 %v4386_v2 }
 0x9bc   : > { %7990 = vpow2.f32 %v4384_v30  ;;  %v4410_v30 = vmul.f32 1.442695, %v4359_v20 }
 0x9bd   : > { %v4318_v61 = vpop.xlane.xlu1 %4317  ;;  %7992 = vpow2.f32 %v4396_v17 }
 0x9be   : > { %7994 = vpow2.f32 %v4412_v55  ;;  %v4364_v47 = vsub.f32 %v10864_v37, %v4318_v61 }
 0x9bf   : > { %7996 = vpow2.f32 %v4398_v25 }
 0x9c0   : > { %v10972_v40 = vpop.eup %7986  ;;  %7998 = vpow2.f32 %v4410_v30  ;;  %v4420_v22 = vmul.f32 1.442695, %v4364_v47  ;;  %v4368_v30 = vsub.f32 %v10818_v62, %v4330_v10 }
 0x9c1   : > { %v4469_v13 = vsel %vm1371_vm1, %v10972_v40, 0.0  ;;  %v10979_v5 = vpop.eup %7988 }
 0x9c2   : > { %4470 = vadd.xlane.f32.xlu0 %v4469_v13  ;;  %4467 = vadd.xlane.f32.xlu1 %v4466_v31  ;;  %v10981_v50 = vpop.eup %7990  ;;  %v4457_v59 = vsel %vm1371_vm1, %v10979_v5, 0.0  ;;  %v4324_v13 = vpop.xlane.xlu0 %4323  ;;  %v4428_v47 = vmul.f32 1.442695, %v4368_v30 }
 0x9c3   : > { %v4454_v56 = vsel %vm1371_vm1, %v10981_v50, 0.0  ;;  %v10989_v2 = vpop.eup %7992 }
 0x9c4   : > { %v10991_v54 = vpop.eup %7994  ;;  %v4472_v17 = vsel %vm1371_vm1, %v10989_v2, 0.0 }
 0x9c5   : > { %v4291_v32 = vpop.xlane.xlu1 %4290  ;;  %v4496_v55 = vsel %vm1371_vm1, %v10991_v54, 0.0 }
 0x9c6   : > { %v4355_v31 = vsub.f32 %v10878_v43, %v4291_v32  ;;  %v4354_v32 = vsub.f32 %v10786_v39, %v10957_v52  ;;  %v4315_v52 = vpop.xlane.xlu2 %4314 }
 0x9c8   : > { %v4402_v20 = vmul.f32 1.442695, %v4355_v31  ;;  %v4400_v39 = vmul.f32 1.442695, %v4354_v32 }
 0x9ca   : > { %4458 = vadd.xlane.f32.xlu0 %v4457_v59  ;;  %4455 = vadd.xlane.f32.xlu1 %v4454_v56  ;;  %v11000_v59 = vpop.eup %7996  ;;  %v11009_v56 = vpop.xlane.xlu0 %4338 }
 0x9cb   : > { %v11003_v61 = vpop.eup %7998 }
 0x9cd   : > { %v4309_v28 = vpop.xlane.xlu1 %4308 }
 0x9ce   : > { %v4361_v23 = vsub.f32 %v10884_v19, %v4309_v28 }
 0x9d0   : > { %v4414_v58 = vmul.f32 1.442695, %v4361_v23  ;;  %v4493_v23 = vsel %vm1371_vm1, %v11003_v61, 0.0 }
 0x9d2   : > { %8000 = vpow2.f32 %v4414_v58  ;;  %4473 = vadd.xlane.f32.xlu1 %v4472_v17  ;;  %4497 = vadd.xlane.f32.xlu0 %v4496_v55  ;;  %v4363_v55 = vsub.f32 %v10836_v63, %v4315_v52 }
 0x9d3   : > { %8002 = vpow2.f32 %v4420_v22  ;;  %v4366_v22 = vsub.f32 %v10839_v34, %v4324_v13 }
 0x9d4   : > { %8004 = vpow2.f32 %v4402_v20 }
 0x9d5   : > { %v4312_v19 = vpop.xlane.xlu1 %4311 }
 0x9d6   : > { %v4362_v37 = vsub.f32 %v10891_v11, %v4312_v19  ;;  %v4475_v11 = vsel %vm1371_vm1, %v11000_v59, 0.0 }
 0x9d8   : > { %v11005_v43 = vpop.eup %8000  ;;  %v4416_v25 = vmul.f32 1.442695, %v4362_v37 }
 0x9d9   : > { %v4499_v28 = vsel %vm1371_vm1, %v11005_v43, 0.0  ;;  %v11018_v31 = vpop.eup %8002 }
 0x9da   : > { %8006 = vpow2.f32 %v4416_v25  ;;  %4500 = vadd.xlane.f32.xlu2 %v4499_v28  ;;  %4476 = vadd.xlane.f32.xlu1 %v4475_v11  ;;  %v11021_v17 = vpop.eup %8004  ;;  %v4438_v20 = vpop.xlane.xlu0 %4437  ;;  %v4508_v32 = vsel %vm1371_vm1, %v11018_v31, 0.0  ;;  %v4424_v25 = vmul.f32 1.442695, %v4366_v22 }
 0x9db   : > { %4494 = vadd.xlane.f32.xlu0 %v4493_v23  ;;  %8008 = vpow2.f32 %v4400_v39  ;;  %v4481_v63 = vsel %vm1371_vm1, %v11021_v17, 0.0 }
 0x9dc   : > { %8010 = vpow2.f32 %v4428_v47 }
 0x9dd   : > { %v4327_v58 = vpop.xlane.xlu1 %4326 }
 0x9de   : > { %v4367_v62 = vsub.f32 %v10898_v14, %v4327_v58  ;;  %v4418_v14 = vmul.f32 1.442695, %v4363_v55 }
 0x9e0   : > { %v11024_v10 = vpop.eup %8006  ;;  %v4426_v19 = vmul.f32 1.442695, %v4367_v62 }
 0x9e1   : > { %v4502_v37 = vsel %vm1371_vm1, %v11024_v10, 0.0  ;;  %v11033_v34 = vpop.eup %8008 }
 0x9e2   : > { %8012 = vpow2.f32 %v4426_v19  ;;  %4503 = vadd.xlane.f32.xlu2 %v4502_v37  ;;  %4509 = vadd.xlane.f32.xlu1 %v4508_v32  ;;  %v11035_v13 = vpop.eup %8010  ;;  %v4478_v39 = vsel %vm1371_vm1, %v11033_v34, 0.0 }
 0x9e3   : > { %8014 = vrcp.f32 %v4438_v20  ;;  %4482 = vadd.xlane.f32.xlu0 %v4481_v63  ;;  %v4520_v52 = vsel %vm1371_vm1, %v11035_v13, 0.0 }
 0x9e4   : > { %8016 = vpow2.f32 %v4418_v14 }
 0x9e5   : > { %8018 = vpow2.f32 %v4424_v25  ;;  %v12460_v25 = vld [vmem:[#allocation104_spill] sm:$0xff] }
 0x9e8   : > { %v11037_v30 = vpop.eup %8012  ;;  %v4441_v28 = vpop.xlane.xlu1 %4440 }
 0x9e9   : > { %v8015_v11 = vpop.eup %8014  ;;  %8020 = vrcp.f32 %v4441_v28  ;;  %v4517_v23 = vsel %vm1371_vm1, %v11037_v30, 0.0 }
 0x9ea   : > { %4518 = vadd.xlane.f32.xlu2 %v4517_v23  ;;  %4479 = vadd.xlane.f32.xlu1 %v4478_v39  ;;  %v4564_v47 = vmul.f32 %v8015_v11, %v10895_v26  ;;  %v11046_v58 = vpop.eup %8016  ;;  %v12461_v11 = vld [vmem:[#allocation26_spill] sm:$0xff]  ;;  %v12463_v23 = vld [vmem:[#allocation27_spill] sm:$0xff] }
 0x9eb   : > { %4521 = vadd.xlane.f32.xlu0 %v4520_v52  ;;  %v11048_v62 = vpop.eup %8018  ;;  %v4505_v32 = vsel %vm1371_vm1, %v11046_v58, 0.0  ;;  %v12464_v52 = vld [vmem:[#allocation33_spill] sm:$0xff] }
 0x9ec   : > { %v4596_v22 = vpack.c.bf16 %v4564_v47, %v4564_v47  ;;  %v4514_v19 = vsel %vm1371_vm1, %v11048_v62, 0.0  ;;  %v12465_v47 = vld [vmem:[#allocation35_spill] sm:$0xff] }
 0x9ee   : > { %v4630_v63 = vunpack.c.l.b16 %v4596_v22  ;;  %v12467_v22 = vld [vmem:[#allocation37_spill] sm:$0xff] }
 0x9ef   : > { %v8021_v55 = vpop.eup %8020 }
 0x9f0   : > { %v4565_v20 = vmul.f32 %v8021_v55, %v10906_v21  ;;  %v12462_v21 = vld [vmem:[#allocation24_spill] sm:$0xff]  ;;  %v12466_v55 = vld [vmem:[#allocation38_spill] sm:$0xff] }
 0x9f1   : > { %v4444_v28 = vpop.xlane.xlu0 %4443 }
 0x9f2   : > { %v4597_v37 = vpack.c.bf16 %v4565_v20, %v4565_v20  ;;  %4515 = vadd.xlane.f32.xlu1 %v4514_v19  ;;  %v11071_v19 = vpop.xlane.xlu2 %4332 }
 0x9f3   : > { %4506 = vadd.xlane.f32.xlu0 %v4505_v32  ;;  %v12469_v32 = vld [vmem:[#allocation8_spill] sm:$0xff] }
 0x9f4   : > { %v4631_v14 = vunpack.c.l.b16 %v4597_v37  ;;  %v12468_v37 = vld [vmem:[#allocation36_spill] sm:$0xff] }
 0x9f6   : > { %v4632_v26 = vpack.c.b16 %v4631_v14, %v4630_v63  ;;  %v12470_v63 = vld [vmem:[#allocation39_spill] sm:$0xff] }
 0x9f8   : > { %7359 = vmatmul.msk.bf16.vlgmr.msra.gmra.mxu2 %vm1371_vm1, %v4632_v26 }
 0x9f9   : > { %4846 = vmatpush.bf16.msra.mxu2 %v12460_v25  ;;  %v4462_v39 = vpop.xlane.xlu0 %4461  ;;  %v12471_v25 = vld [vmem:[#allocation4_spill] sm:$0xff] }
 0xa01   : > { %v4453_v20 = vpop.xlane.xlu0 %4452 }
 0xa02   : > { %5567 = vrot.lane.b32.xlu2 %v12461_v11, %s8227_s19  ;;  %8022 = vrcp.f32 %v4453_v20  ;;  %v11081_v11 = vpop.xlane.xlu2 %4335 }
 0xa07   : > { %5565 = vrot.lane.b32.xlu0 %v12462_v21, %s8227_s19 }
 0xa08   : > { %v8023_v26 = vpop.eup %8022 }
 0xa09   : > { %v4569_v21 = vmul.f32 %v8023_v26, %v10924_v24  ;;  %v12474_v26 = vld [vmem:[#allocation6_spill] sm:$0xff] }
 0xa0a   : > { %5571 = vrot.lane.b32.xlu2 %v12463_v23, %s8227_s19  ;;  %v12472_v23 = vld [vmem:[#allocation3_spill] sm:$0xff] }
 0xa0b   : > { %5658 = vrot.lane.b32.xlu1 %v12464_v52, %s8227_s19 }
 0xa0f   : > { %5660 = vrot.lane.b32.xlu0 %v12465_v47, %s8227_s19  ;;  %v4601_v47 = vpack.c.bf16 %v4569_v21, %v4569_v21 }
 0xa12   : > { %5691 = vrot.lane.b32.xlu2 %v12466_v55, %s8227_s19 }
 0xa13   : > { %5664 = vrot.lane.b32.xlu1 %v12467_v22, %s8227_s19 }
 0xa17   : > { %5689 = vrot.lane.b32.xlu0 %v12468_v37, %s8227_s19 }
 0xa1a   : > { %6209 = vrot.lane.b32.xlu2 %v12469_v32, %s8227_s19  ;;  %v12473_v32 = vld [vmem:[#allocation13_spill] sm:$0xff] }
 0xa1b   : > { %5695 = vrot.lane.b32.xlu1 %v12470_v63, %s8227_s19  ;;  %v4681_v63 = vunpack.c.l.b16 %v4601_v47 }
 0xa1d   : > { %v4450_v14 = vpop.xlane.xlu1 %4449 }
 0xa1e   : > { %8024 = vrcp.f32 %v4450_v14 }
 0xa1f   : > { %6134 = vrot.lane.b32.xlu0 %v12471_v25, %s8227_s19  ;;  %8026 = vrcp.f32 %v4444_v28  ;;  %v4486_v28 = vpop.xlane.xlu2 %4485 }
 0xa22   : > { %6234 = vrot.lane.b32.xlu2 %v8641_v49, %s8227_s19 }
 0xa23   : > { %6109 = vrot.lane.b32.xlu1 %v12472_v23, %s8227_s19 }
 0xa24   : > { %v8025_v52 = vpop.eup %8024 }
 0xa25   : > { %v4568_v55 = vmul.f32 %v8025_v52, %v10945_v27  ;;  %v4447_v22 = vpop.xlane.xlu1 %4446  ;;  %v8027_v20 = vpop.eup %8026 }
 0xa26   : > { %8028 = vrcp.f32 %v4447_v22  ;;  %v4566_v24 = vmul.f32 %v8027_v20, %v10912_v15  ;;  %v12475_v22 = vld [vmem:[#allocation10_spill] sm:$0xff] }
 0xa27   : > { %v4600_v37 = vpack.c.bf16 %v4568_v55, %v4568_v55  ;;  %6309 = vrot.lane.b32.xlu0 %v12473_v32, %s8227_s19  ;;  %8030 = vrcp.f32 %v4462_v39  ;;  %v4489_v55 = vpop.xlane.xlu2 %4488 }
 0xa28   : > { %v4598_v25 = vpack.c.bf16 %v4566_v24, %v4566_v24 }
 0xa29   : > { %v4680_v49 = vunpack.c.l.b16 %v4600_v37 }
 0xa2a   : > { %6409 = vrot.lane.b32.xlu2 %v8963_v53, %s8227_s19  ;;  %v4655_v53 = vunpack.c.l.b16 %v4598_v25 }
 0xa2b   : > { %v4682_v14 = vpack.c.b16 %v4681_v63, %v4680_v49  ;;  %6184 = vrot.lane.b32.xlu1 %v12474_v26, %s8227_s19 }
 0xa2c   : > { %v8029_v27 = vpop.eup %8028 }
 0xa2d   : > { %v4567_v21 = vmul.f32 %v8029_v27, %v10954_v6  ;;  %v4465_v23 = vpop.xlane.xlu1 %4464  ;;  %7361 = vmatmul.msk.bf16.vlgmr.msra.gmra.mxu0 %vm1371_vm1, %v4682_v14  ;;  %v8031_v39 = vpop.eup %8030 }
 0xa2e   : > { %8032 = vrcp.f32 %v4465_v23  ;;  %4896 = vmatpush.bf16.msra.mxu0 %v9716_v35  ;;  %v4572_v52 = vmul.f32 %v8031_v39, %v10918_v41 }
 0xa2f   : > { %v4599_v15 = vpack.c.bf16 %v4567_v21, %v4567_v21  ;;  %6284 = vrot.lane.b32.xlu0 %v8773_v46, %s8227_s19  ;;  %8034 = vrcp.f32 %v4489_v55  ;;  %v12476_v46 = vld [vmem:[#allocation93_spill] sm:$0xff]  ;;  %v4492_v14 = vpop.xlane.xlu2 %4491  ;;  %v12478_v55 = vld [vmem:[#allocation50_spill] sm:$0xff] }
 0xa30   : > { %v4604_v37 = vpack.c.bf16 %v4572_v52, %v4572_v52  ;;  %v12477_v52 = vld [vmem:[#allocation117_spill] sm:$0xff] }
 0xa31   : > { %v4656_v47 = vunpack.c.l.b16 %v4599_v15 }
 0xa32   : > { %6259 = vrot.lane.b32.xlu2 %v12475_v22, %s8227_s19  ;;  %v4730_v41 = vunpack.c.l.b16 %v4604_v37  ;;  %v5229_v22 = vrot.slane %v12478_v55, 4  ;;  %v12479_v37 = vld [vmem:[#allocation52_spill] sm:$0xff] }
 0xa33   : > { %v4657_v6 = vpack.c.b16 %v4656_v47, %v4655_v53 }
 0xa34   : > { %v8033_v20 = vpop.eup %8032 }
 0xa35   : > { %v4573_v32 = vmul.f32 %v8033_v20, %v10961_v42  ;;  %v4468_v24 = vpop.xlane.xlu1 %4467  ;;  %7360 = vmatmul.msk.bf16.vlgmr.msrb.gmra.mxu3 %vm1371_vm1, %v4657_v6  ;;  %v4471_v35 = vpop.xlane.xlu0 %4470 }
 0xa36   : > { %8036 = vrcp.f32 %v4468_v24  ;;  %4871 = vmatpush.bf16.msrb.mxu3 %v12476_v46  ;;  %v8035_v26 = vpop.eup %8034  ;;  %v4369_v24 = vsub.f32 %v10853_v4, %v11071_v19  ;;  %v12480_v4 = vld [vmem:[#allocation126_spill] sm:$0xff] }
 0xa37   : > { %v4605_v63 = vpack.c.bf16 %v4573_v32, %v4573_v32  ;;  %8038 = vrcp.f32 %v4471_v35  ;;  %6334 = vrot.lane.b32.xlu0 %v8833_v60, %s8227_s19  ;;  %v4581_v60 = vmul.f32 %v8035_v26, %v10933_v12  ;;  %v5228_v32 = vrot.slane %v12479_v37, 4  ;;  %v4513_v46 = vpop.xlane.xlu2 %4512 }
 0xa38   : > { %8040 = vrcp.f32 %v4486_v28  ;;  %v5233_v12 = vunpack.c.l.b16 %v5229_v22 }
 0xa39   : > { %v4731_v49 = vunpack.c.l.b16 %v4605_v63 }
 0xa3b   : > { %v4732_v27 = vpack.c.b16 %v4731_v49, %v4730_v41 }
 0xa3c   : > { %v8037_v25 = vpop.eup %8036 }
 0xa3d   : > { %v8039_v42 = vpop.eup %8038  ;;  %v4574_v21 = vmul.f32 %v8037_v25, %v10968_v45  ;;  %v4456_v23 = vpop.xlane.xlu1 %4455  ;;  %7363 = vmatmul.msk.bf16.vlgmr.msrb.gmra.mxu2 %vm1371_vm1, %v4732_v27 }
 0xa3e   : > { %v4459_v39 = vpop.xlane.xlu0 %4458  ;;  %v8041_v15 = vpop.eup %8040  ;;  %v4575_v53 = vmul.f32 %v8039_v42, %v10972_v40  ;;  %8042 = vrcp.f32 %v4456_v23  ;;  %4946 = vmatpush.bf16.msrb.mxu2 %v12477_v52  ;;  %v4613_v40 = vpack.c.bf16 %v4581_v60, %v4581_v60  ;;  %v5232_v42 = vunpack.c.l.b16 %v5228_v32 }
 0xa3f   : > { %v4606_v28 = vpack.c.bf16 %v4574_v21, %v4574_v21  ;;  %8044 = vrcp.f32 %v4459_v39  ;;  %v4580_v6 = vmul.f32 %v8041_v15, %v10927_v16  ;;  %v4430_v21 = vmul.f32 1.442695, %v4369_v24 }
 0xa40   : > { %v4607_v47 = vpack.c.bf16 %v4575_v53, %v4575_v53  ;;  %v4831_v23 = vunpack.c.l.b16 %v4613_v40  ;;  %v5234_v15 = vpack.c.b16 %v5233_v12, %v5232_v42  ;;  %v4371_v40 = vsub.f32 %v10856_v51, %v11009_v56  ;;  %v12483_v12 = vld [vmem:[#allocation172_spill] sm:$0xff] }
 0xa41   : > { %v4755_v45 = vunpack.c.l.b16 %v4606_v28  ;;  %v4612_v49 = vpack.c.bf16 %v4580_v6, %v4580_v6 }
 0xa42   : > { %v4756_v20 = vunpack.c.l.b16 %v4607_v47  ;;  %v5239_v22 = vsel %vm900_vm0, %v5234_v15, 0  ;;  %v12484_v15 = vld [vmem:[#allocation175_spill] sm:$0xff] }
 0xa43   : > { %v4830_v53 = vunpack.c.l.b16 %v4612_v49  ;;  %v5259_v49 = vrot.slane %v12483_v12, 4 }
 0xa44   : > { %v8043_v35 = vpop.eup %8042  ;;  %v4757_v63 = vpack.c.b16 %v4756_v20, %v4755_v45 }
 0xa45   : > { %v8045_v41 = vpop.eup %8044  ;;  %v4570_v26 = vmul.f32 %v8043_v35, %v10981_v50  ;;  %v4474_v27 = vpop.xlane.xlu1 %4473  ;;  %v4370_v50 = vsub.f32 %v10870_v36, %v11081_v11  ;;  %v12482_v11 = vld [vmem:[#allocation174_spill] sm:$0xff] }
 0xa46   : > { %v4498_v25 = vpop.xlane.xlu0 %4497  ;;  %v4571_v16 = vmul.f32 %v8045_v41, %v10979_v5  ;;  %7364 = vmatmul.msk.bf16.vlgmr.msra.gmra.mxu3 %vm1371_vm1, %v4757_v63  ;;  %8046 = vrcp.f32 %v4474_v27  ;;  %v4832_v5 = vpack.c.b16 %v4831_v23, %v4830_v53  ;;  %v5260_v32 = vrot.slane %v12482_v11, 4 }
 0xa47   : > { %v4602_v39 = vpack.c.bf16 %v4570_v26, %v4570_v26  ;;  %4971 = vmatpush.bf16.msra.mxu3 %v12480_v4  ;;  %8048 = vrcp.f32 %v4492_v14  ;;  %v4432_v20 = vmul.f32 1.442695, %v4370_v50  ;;  %v12481_v14 = vld [vmem:[#allocation127_spill] sm:$0xff]  ;;  %v5352_v53 = vrot.slane %v12484_v15, 4 }
 0xa48   : > { %v4603_v19 = vpack.c.bf16 %v4571_v16, %v4571_v16  ;;  %8050 = vpow2.f32 %v4430_v21  ;;  %v5264_v16 = vunpack.c.l.b16 %v5260_v32  ;;  %v4434_v21 = vmul.f32 1.442695, %v4371_v40 }
 0xa49   : > { %v4705_v52 = vunpack.c.l.b16 %v4602_v39 }
 0xa4a   : > { %v4706_v60 = vunpack.c.l.b16 %v4603_v19  ;;  %v5263_v19 = vunpack.c.l.b16 %v5259_v49 }
 0xa4c   : > { %v4707_v28 = vpack.c.b16 %v4706_v60, %v4705_v52  ;;  %v8047_v45 = vpop.eup %8046  ;;  %v12485_v60 = vld [vmem:[#allocation173_spill] sm:$0xff] }
 0xa4d   : > { %v4501_v47 = vpop.xlane.xlu2 %4500  ;;  %v4477_v55 = vpop.xlane.xlu1 %4476  ;;  %7367 = vmatmul.msk.bf16.vlgmr.msra.gmra.mxu2 %vm1371_vm1, %v4832_v5  ;;  %v4576_v24 = vmul.f32 %v8047_v45, %v10989_v2  ;;  %v5353_v50 = vrot.slane %v12485_v60, 4 }
 0xa4e   : > { %7362 = vmatmul.msk.bf16.vlgmr.msrb.gmra.mxu1 %vm1371_vm1, %v4707_v28  ;;  %5248 = vmatpush.bf16.xpose.msra.mxu2 %v5239_v22  ;;  %v4495_v6 = vpop.xlane.xlu0 %4494  ;;  %8052 = vrcp.f32 %v4477_v55  ;;  %v8049_v37 = vpop.eup %8048 }
 0xa4f   : > { %4921 = vmatpush.bf16.msrb.mxu1 %v12481_v14  ;;  %8054 = vrcp.f32 %v4495_v6  ;;  %v11129_v36 = vpop.eup %8050  ;;  %v4582_v35 = vmul.f32 %v8049_v37, %v10940_v0  ;;  %v4608_v42 = vpack.c.bf16 %v4576_v24, %v4576_v24 }
 0xa50   : > { %8056 = vrcp.f32 %v4513_v46  ;;  %v4523_v63 = vsel %vm1371_vm1, %v11129_v36, 0.0 }
 0xa51   : > { %8058 = vpow2.f32 %v4432_v20  ;;  %v4614_v0 = vpack.c.bf16 %v4582_v35, %v4582_v35  ;;  %v4780_v5 = vunpack.c.l.b16 %v4608_v42  ;;  %v5356_v20 = vunpack.c.l.b16 %v5352_v53 }
 0xa52   : > { %8060 = vrcp.f32 %v4501_v47  ;;  %v5265_v47 = vpack.c.b16 %v5264_v16, %v5263_v19 }
 0xa53   : > { %v4855_v55 = vunpack.c.l.b16 %v4614_v0 }
 0xa54   : > { %v8053_v41 = vpop.eup %8052 }
 0xa55   : > { %v11139_v26 = vpop.xlane.xlu2 %4503  ;;  %v4510_v27 = vpop.xlane.xlu1 %4509  ;;  %4524 = vadd.xlane.f32.xlu1 %v4523_v63  ;;  %v4577_v2 = vmul.f32 %v8053_v41, %v11000_v59  ;;  %v5357_v63 = vunpack.c.l.b16 %v5353_v50  ;;  %v5270_v41 = vsel %vm900_vm0, %v5265_v47, 0  ;;  %v5383_v50 = vrot.slane %v9947_v1, 4 }
 0xa56   : > { %v8055_v46 = vpop.eup %8054  ;;  %v4483_v51 = vpop.xlane.xlu0 %4482  ;;  %8062 = vrcp.f32 %v4510_v27 }
 0xa57   : > { %v8057_v56 = vpop.eup %8056  ;;  %v4583_v23 = vmul.f32 %v8055_v46, %v11003_v61  ;;  %8064 = vrcp.f32 %v4498_v25  ;;  %v4609_v39 = vpack.c.bf16 %v4577_v2, %v4577_v2  ;;  %v5290_v46 = vrot.slane %v9972_v48, 4 }
 0xa58   : > { %v11143_v4 = vpop.eup %8058  ;;  %8066 = vrcp.f32 %v4483_v51  ;;  %v4589_v59 = vmul.f32 %v8057_v56, %v10950_v3 }
 0xa59   : > { %v4615_v52 = vpack.c.bf16 %v4583_v23, %v4583_v23  ;;  %v4781_v28 = vunpack.c.l.b16 %v4609_v39  ;;  %8068 = vpow2.f32 %v4434_v21  ;;  %v8061_v22 = vpop.eup %8060  ;;  %v4526_v6 = vsel %vm1371_vm1, %v11143_v4, 0.0 }
 0xa5a   : > { %v4621_v24 = vpack.c.bf16 %v4589_v59, %v4589_v59  ;;  %v4585_v12 = vmul.f32 %v8061_v22, %v11005_v43  ;;  %v5294_v23 = vunpack.c.l.b16 %v5290_v46  ;;  %v5477_v59 = vrot.slane %v9949_v38, 4 }
 0xa5b   : > { %v4856_v61 = vunpack.c.l.b16 %v4615_v52  ;;  %v4782_v25 = vpack.c.b16 %v4781_v28, %v4780_v5 }
 0xa5c   : > { %v8063_v45 = vpop.eup %8062  ;;  %v4931_v16 = vunpack.c.l.b16 %v4621_v24  ;;  %v4617_v56 = vpack.c.bf16 %v4585_v12, %v4585_v12  ;;  %v12487_v24 = vld [vmem:[#allocation176_spill] sm:$0xff] }
 0xa5d   : > { %v4857_v14 = vpack.c.b16 %v4856_v61, %v4855_v55  ;;  %v4519_v37 = vpop.xlane.xlu2 %4518  ;;  %v4480_v11 = vpop.xlane.xlu1 %4479  ;;  %4527 = vadd.xlane.f32.xlu1 %v4526_v6  ;;  %v4588_v3 = vmul.f32 %v8063_v45, %v11018_v31  ;;  %7365 = vmatmul.msk.bf16.vlgmr.msrb.gmra.mxu0 %vm1371_vm1, %v4782_v25  ;;  %v5358_v31 = vpack.c.b16 %v5357_v63, %v5356_v20  ;;  %v5384_v61 = vrot.slane %v9829_v29, 4  ;;  %v12486_v25 = vld [vmem:[#allocation179_spill] sm:$0xff] }
 0xa5e   : > { %v8065_v32 = vpop.eup %8064  ;;  %v11152_v40 = vpop.xlane.xlu0 %4521  ;;  %8070 = vrcp.f32 %v4480_v11  ;;  %4996 = vmatpush.bf16.msrb.mxu0 %v9968_v44  ;;  %v5291_v44 = vrot.slane %v9900_v8, 4  ;;  %v4881_v52 = vunpack.c.l.b16 %v4617_v56  ;;  %v5476_v6 = vrot.slane %v12486_v25, 4 }
 0xa5f   : > { %v8067_v35 = vpop.eup %8066  ;;  %7368 = vmatmul.msk.bf16.vlgmr.msrb.gmra.mxu3 %vm1371_vm1, %v4857_v14  ;;  %v4620_v49 = vpack.c.bf16 %v4588_v3, %v4588_v3  ;;  %8072 = vrcp.f32 %v4519_v37  ;;  %v4584_v42 = vmul.f32 %v8065_v32, %v10991_v54  ;;  %v5363_v19 = vsel %vm900_vm0, %v5358_v31, 0 }
 0xa60   : > { %5279 = vmatpush.bf16.xpose.msrb.mxu3 %v5270_v41  ;;  %v11158_v27 = vpop.eup %8068  ;;  %v4579_v51 = vmul.f32 %v8067_v35, %v11021_v17  ;;  %v5295_v17 = vunpack.c.l.b16 %v5291_v44  ;;  %v5387_v37 = vunpack.c.l.b16 %v5383_v50  ;;  %v5481_v11 = vunpack.c.l.b16 %v5477_v59 }
 0xa61   : > { %v4930_v2 = vunpack.c.l.b16 %v4620_v49  ;;  %v4529_v43 = vsel %vm1371_vm1, %v11158_v27, 0.0  ;;  %v4616_v15 = vpack.c.bf16 %v4584_v42, %v4584_v42  ;;  %v5388_v32 = vunpack.c.l.b16 %v5384_v61  ;;  %v12489_v42 = vld [vmem:[#allocation177_spill] sm:$0xff] }
 0xa62   : > { %v4611_v53 = vpack.c.bf16 %v4579_v51, %v4579_v51  ;;  %v5296_v28 = vpack.c.b16 %v5295_v17, %v5294_v23  ;;  %v5480_v3 = vunpack.c.l.b16 %v5476_v6  ;;  %v12494_v17 = vld [vmem:[#allocation62_spill] sm:$0xff] }
 0xa63   : > { %v4932_v21 = vpack.c.b16 %v4931_v16, %v4930_v2  ;;  %v4880_v47 = vunpack.c.l.b16 %v4616_v15  ;;  %v5389_v63 = vpack.c.b16 %v5388_v32, %v5387_v37  ;;  %v5321_v2 = vrot.slane %v12489_v42, 4  ;;  %v12496_v6 = vld [vmem:[#allocation14_spill] sm:$0xff] }
 0xa64   : > { %v8071_v0 = vpop.eup %8070  ;;  %v5482_v31 = vpack.c.b16 %v5481_v11, %v5480_v3  ;;  %v5631_v11 = vrot.slane %v10530_v33, 4 }
 0xa65   : > { %v4516_v39 = vpop.xlane.xlu1 %4515  ;;  %4530 = vadd.xlane.f32.xlu1 %v4529_v43  ;;  %v8073_v48 = vpop.eup %8072  ;;  %v4578_v54 = vmul.f32 %v8071_v0, %v11033_v34  ;;  %7371 = vmatmul.msk.bf16.vlgmr.msrb.gmra.mxu2 %vm1371_vm1, %v4932_v21  ;;  %v4806_v34 = vunpack.c.l.b16 %v4611_v53  ;;  %v4882_v45 = vpack.c.b16 %v4881_v52, %v4880_v47  ;;  %v5394_v44 = vsel %vm900_vm0, %v5389_v63, 0  ;;  %v12490_v43 = vld [vmem:[#allocation171_spill] sm:$0xff]  ;;  %v12495_v47 = vld [vmem:[#allocation5_spill] sm:$0xff]  ;;  %v12498_v63 = vld [vmem:[#allocation152_spill] sm:$0xff] }
 0xa66   : > { %8074 = vrcp.f32 %v4516_v39  ;;  %v4507_v8 = vpop.xlane.xlu0 %4506  ;;  %5372 = vmatpush.bf16.xpose.msrb.mxu2 %v5363_v19  ;;  %v4591_v5 = vmul.f32 %v8073_v48, %v11037_v30  ;;  %v5301_v30 = vsel %vm900_vm0, %v5296_v28, 0  ;;  %v5325_v0 = vunpack.c.l.b16 %v5321_v2  ;;  %v12492_v48 = vld [vmem:[#allocation163_spill] sm:$0xff] }
 0xa67   : > { %8076 = vrcp.f32 %v4507_v8  ;;  %v4610_v60 = vpack.c.bf16 %v4578_v54, %v4578_v54  ;;  %v5601_v15 = vrot.slane %v12492_v48, 4  ;;  %v12493_v54 = vld [vmem:[#allocation75_spill] sm:$0xff]  ;;  %v5600_v52 = vrot.slane %v12494_v17, 4 }
 0xa68   : > { %8078 = vrcp.f32 %v11139_v26  ;;  %v4623_v1 = vpack.c.bf16 %v4591_v5, %v4591_v5  ;;  %v5508_v8 = vrot.slane %v12493_v54, 4  ;;  %v5635_v32 = vunpack.c.l.b16 %v5631_v11 }
 0xa69   : > { %v4805_v55 = vunpack.c.l.b16 %v4610_v60  ;;  %v5605_v5 = vunpack.c.l.b16 %v5601_v15  ;;  %8080 = vrcp.f32 %v11152_v40 }
 0xa6a   : > { %v4956_v41 = vunpack.c.l.b16 %v4623_v1  ;;  %v11209_v1 = vpop.permute.xlu2 %5567 }
 0xa6b   : > { %v4807_v20 = vpack.c.b16 %v4806_v34, %v4805_v55  ;;  %v5512_v34 = vunpack.c.l.b16 %v5508_v8  ;;  %v5604_v55 = vunpack.c.l.b16 %v5600_v52 }
 0xa6c   : > { %v8075_v22 = vpop.eup %8074 }
 0xa6d   : > { %v8077_v14 = vpop.eup %8076  ;;  %v4590_v38 = vmul.f32 %v8075_v22, %v11048_v62  ;;  %7366 = vmatmul.msk.bf16.vlgmr.msra.gmra.mxu1 %vm1371_vm1, %v4807_v20  ;;  %7369 = vmatmul.msk.bf16.vlgmr.msra.gmra.mxu0 %vm1371_vm1, %v4882_v45  ;;  %v12488_v62 = vld [vmem:[#allocation178_spill] sm:$0xff]  ;;  %v5606_v22 = vpack.c.b16 %v5605_v5, %v5604_v55  ;;  %v5539_v55 = vrot.slane %v10660_v7, 4 }
 0xa6e   : > { %v8079_v26 = vpop.eup %8078  ;;  %5021 = vmatpush.bf16.msra.mxu1 %v12487_v24  ;;  %5310 = vmatpush.bf16.xpose.msra.mxu0 %v5301_v30  ;;  %v4587_v35 = vmul.f32 %v8077_v14, %v11046_v58  ;;  %v5322_v49 = vrot.slane %v12488_v62, 4  ;;  %v5487_v58 = vsel %vm900_vm0, %v5482_v31, 0  ;;  %v12497_v20 = vld [vmem:[#allocation18_spill] sm:$0xff] }
 0xa6f   : > { %v4622_v29 = vpack.c.bf16 %v4590_v38, %v4590_v38  ;;  %v4586_v46 = vmul.f32 %v8079_v26, %v11024_v10  ;;  %v12491_v10 = vld [vmem:[#allocation7_spill] sm:$0xff]  ;;  %v5611_v14 = vsel %vm900_vm0, %v5606_v22, 0  ;;  %v5632_v38 = vrot.slane %v10537_v9, 4  ;;  %v12508_v22 = vld [vmem:[#allocation21_spill] sm:$0xff] }
 0xa70   : > { %v4619_v51 = vpack.c.bf16 %v4587_v35, %v4587_v35  ;;  %v5326_v56 = vunpack.c.l.b16 %v5322_v49  ;;  %v5507_v39 = vrot.slane %v12491_v10, 4  ;;  %v12500_v49 = vld [vmem:[#allocation168_spill] sm:$0xff] }
 0xa71   : > { %v4955_v12 = vunpack.c.l.b16 %v4622_v29  ;;  %v4618_v21 = vpack.c.bf16 %v4586_v46, %v4586_v46  ;;  %v5636_v30 = vunpack.c.l.b16 %v5632_v38 }
 0xa72   : > { %v4906_v23 = vunpack.c.l.b16 %v4619_v51  ;;  %v5327_v19 = vpack.c.b16 %v5326_v56, %v5325_v0  ;;  %v5511_v50 = vunpack.c.l.b16 %v5507_v39  ;;  %v11217_v3 = vpop.permute.xlu2 %5571  ;;  %v8081_v56 = vpop.eup %8080 }
 0xa73   : > { %v4957_v16 = vpack.c.b16 %v4956_v41, %v4955_v12  ;;  %v4905_v53 = vunpack.c.l.b16 %v4618_v21  ;;  %v5637_v29 = vpack.c.b16 %v5636_v30, %v5635_v32  ;;  %v12499_v12 = vld [vmem:[#allocation15_spill] sm:$0xff]  ;;  %v5543_v30 = vunpack.c.l.b16 %v5539_v55 }
 0xa74   : > { %v5332_v28 = vsel %vm900_vm0, %v5327_v19, 0  ;;  %v5513_v61 = vpack.c.b16 %v5512_v34, %v5511_v50 }
 0xa75   : > { %7372 = vmatmul.msk.bf16.vlgmr.msra.gmra.mxu3 %vm1371_vm1, %v4957_v16  ;;  %7377 = vmatmul.msk.bf16.vlgmr.msra.gmra.mxu2 %vm900_vm0, %v12490_v43  ;;  %v4907_v60 = vpack.c.b16 %v4906_v23, %v4905_v53  ;;  %v5642_v41 = vsel %vm900_vm0, %v5637_v29, 0  ;;  %v12502_v43 = vld [vmem:[#allocation63_spill] sm:$0xff]  ;;  %v12504_v23 = vld [vmem:[#allocation20_spill] sm:$0xff] }
 0xa76   : > { %5403 = vmatpush.bf16.xpose.msra.mxu3 %v5394_v44  ;;  %5496 = vmatpush.bf16.xpose.msra.mxu2 %v5487_v58  ;;  %v5518_v45 = vsel %vm900_vm0, %v5513_v61, 0  ;;  %v5414_v58 = vrot.slane %v12502_v43, 4  ;;  %v5415_v10 = vrot.slane %v12504_v23, 4  ;;  %v5570_v23 = vrot.slane %v11209_v1, 4  ;;  %v12515_v1 = vld [vmem:[#allocation11_spill] sm:$0xff] }
 0xa78   : > { %v5418_v19 = vunpack.c.l.b16 %v5414_v58  ;;  %v5419_v53 = vunpack.c.l.b16 %v5415_v10 }
 0xa79   : > { %v11207_v37 = vpop.permute.xlu0 %5565 }
 0xa7a   : > { %v11226_v9 = vpop.permute.xlu2 %5691  ;;  %v5420_v8 = vpack.c.b16 %v5419_v53, %v5418_v19  ;;  %v5569_v58 = vrot.slane %v11207_v37, 4  ;;  %v11289_v37 = vld [vmem:[%s12070_s5 + $0x30] sm:$0xff] }
 0xa7b   : > { %v11232_v46 = vpop.f32.mrf.mxu2 }
 0xa7d   : > { %v11193_v59 = vpop.permute.xlu1 %5658  ;;  %7370 = vmatmul.msk.bf16.vlgmr.msrb.gmra.mxu1 %vm1371_vm1, %v4907_v60 }
 0xa7e   : > { %6159 = vrot.lane.b32.xlu1 %v12495_v47, %s8227_s19  ;;  %5341 = vmatpush.bf16.xpose.msrb.mxu1 %v5332_v28  ;;  %v5425_v28 = vsel %vm900_vm0, %v5420_v8, 0  ;;  %v5662_v10 = vrot.slane %v11193_v59, 4  ;;  %v12516_v59 = vld [vmem:[#allocation29_spill] sm:$0xff] }
 0xa80   : > { %v5666_v53 = vunpack.c.l.b16 %v5662_v10 }
 0xa81   : > { %v11215_v24 = vpop.permute.xlu0 %5660 }
 0xa82   : > { %v6210_v31 = vpop.permute.xlu2 %6209 }
 0xa83   : > { %v11236_v42 = vpop.f32.mrf.mxu2 }
 0xa85   : > { %v11199_v25 = vpop.permute.xlu1 %5664  ;;  %7378 = vmatmul.msk.bf16.vlgmr.msrb.gmra.mxu3 %vm900_vm0, %v12496_v6  ;;  %7381 = vmatmul.msk.bf16.vlgmr.msrb.gmra.mxu2 %vm900_vm0, %v12497_v20  ;;  %v5445_v6 = vrot.slane %v12508_v22, 4 }
 0xa86   : > { %5527 = vmatpush.bf16.xpose.msrb.mxu3 %v5518_v45  ;;  %5620 = vmatpush.bf16.xpose.msrb.mxu2 %v5611_v14  ;;  %v12509_v45 = vld [vmem:[#allocation54_spill] sm:$0xff] }
 0xa87   : > { %v5538_v20 = vrot.slane %v12509_v45, 4 }
 0xa89   : > { %v11224_v33 = vpop.permute.xlu0 %5689 }
 0xa8a   : > { %v6235_v16 = vpop.permute.xlu2 %6234 }
 0xa8d   : > { %v11213_v26 = vpop.permute.xlu1 %5695 }
 0xa91   : > { %v6135_v62 = vpop.permute.xlu0 %6134 }
 0xa95   : > { %v6110_v35 = vpop.permute.xlu1 %6109  ;;  %7382 = vmatmul.msk.bf16.vlgmr.msra.gmra.mxu3 %vm900_vm0, %v12498_v63  ;;  %7385 = vmatmul.msk.bf16.vlgmr.msra.gmra.mxu2 %vm900_vm0, %v12499_v12  ;;  %v5449_v63 = vunpack.c.l.b16 %v5445_v6 }
 0xa96   : > { %5651 = vmatpush.bf16.xpose.msra.mxu3 %v5642_v41  ;;  %6122 = vmatpush.bf16.msra.mxu2 %v6110_v35  ;;  %v5542_v41 = vunpack.c.l.b16 %v5538_v20 }
 0xa99   : > { %v11352_v10 = vpop.permute.xlu0 %6309 }
 0xa9d   : > { %v11238_v2 = vpop.permute.xlu1 %6184 }
 0xaa5   : > { %7386 = vmatmul.msk.bf16.vlgmr.msrb.gmra.mxu3 %vm900_vm0, %v12500_v49  ;;  %7389 = vmatmul.msk.bf16.vlgmr.msrb.gmra.mxu2 %vm900_vm0, %v10542_v57 }
 0xaa6   : > { %6147 = vmatpush.bf16.msrb.mxu3 %v6135_v62  ;;  %6222 = vmatpush.bf16.msrb.mxu2 %v6210_v31  ;;  %v5544_v62 = vpack.c.b16 %v5543_v30, %v5542_v41  ;;  %v12519_v30 = vld [vmem:[#allocation72_spill] sm:$0xff] }
 0xab5   : > { %7390 = vmatmul.msk.bf16.vlgmr.msra.gmra.mxu3 %vm900_vm0, %v10639_v18  ;;  %v4592_v18 = vmul.f32 %v8081_v56, %v11035_v13 }
 0xab6   : > { %6247 = vmatpush.bf16.msra.mxu3 %v6235_v16 }
 0xab7   : > { %v4624_v48 = vpack.c.bf16 %v4592_v18, %v4592_v18  ;;  %v5663_v18 = vrot.slane %v11215_v24, 4 }
 0xab8   : > { %v11240_v51 = vpop.f32.mrf.mxu3 }
 0xab9   : > { %v4980_v17 = vunpack.c.l.b16 %v4624_v48  ;;  %v5667_v19 = vunpack.c.l.b16 %v5663_v18 }
 0xabb   : > { %v5668_v8 = vpack.c.b16 %v5667_v19, %v5666_v53 }
 0xac0   : > { %v11243_v44 = vpop.f32.mrf.mxu2  ;;  %v11245_v21 = vpop.f32.mrf.mxu3 }
 0xac1   : > { %12501 = vst [vmem:[#allocation81_spill] sm:$0xff] %v11243_v44 }
 0xac8   : > { %v4525_v57 = vpop.xlane.xlu1 %4524  ;;  %v11249_v0 = vpop.f32.mrf.mxu2 }
 0xac9   : > { %8082 = vrcp.f32 %v4525_v57  ;;  %12503 = vst [vmem:[#allocation83_spill] sm:$0xff] %v11249_v0  ;;  %v11253_v60 = vpop.f32.mrf.mxu3  ;;  %v12512_v57 = vld [vmem:[#allocation48_spill] sm:$0xff] }
 0xaca   : > { %12505 = vst [vmem:[#allocation89_spill] sm:$0xff] %v11253_v60 }
 0xacf   : > { %v8083_v39 = vpop.eup %8082 }
 0xad0   : > { %v4593_v40 = vmul.f32 %v8083_v39, %v11129_v36  ;;  %v4528_v15 = vpop.xlane.xlu1 %4527  ;;  %v11255_v13 = vpop.f32.mrf.mxu2  ;;  %v12507_v36 = vld [vmem:[#allocation9_spill] sm:$0xff]  ;;  %v5573_v39 = vunpack.c.l.b16 %v5569_v58 }
 0xad1   : > { %8084 = vrcp.f32 %v4528_v15  ;;  %12506 = vst [vmem:[#allocation87_spill] sm:$0xff] %v11255_v13  ;;  %v5446_v34 = vrot.slane %v12507_v36, 4  ;;  %v11264_v14 = vpop.f32.mrf.mxu3  ;;  %v5574_v15 = vunpack.c.l.b16 %v5570_v23  ;;  %v5694_v36 = vrot.slane %v11226_v9, 4  ;;  %v11350_v23 = vpop.f32.mrf.mxu0 }
 0xad2   : > { %v4625_v54 = vpack.c.bf16 %v4593_v40, %v4593_v40  ;;  %12510 = vst [vmem:[#allocation97_spill] sm:$0xff] %v11264_v14 }
 0xad3   : > { %v5450_v11 = vunpack.c.l.b16 %v5446_v34  ;;  %v11309_v34 = vld [vmem:[%s12070_s5 + $0x38] sm:$0xff]  ;;  %v5698_v6 = vunpack.c.l.b16 %v5694_v36 }
 0xad4   : > { %v4981_v52 = vunpack.c.l.b16 %v4625_v54  ;;  %v5575_v54 = vpack.c.b16 %v5574_v15, %v5573_v39 }
 0xad5   : > { %v5451_v7 = vpack.c.b16 %v5450_v11, %v5449_v63  ;;  %v12518_v11 = vld [vmem:[#allocation17_spill] sm:$0xff] }
 0xad6   : > { %v4982_v50 = vpack.c.b16 %v4981_v52, %v4980_v17  ;;  %v5580_v17 = vsel %vm900_vm0, %v5575_v54, 0  ;;  %v5673_v52 = vsel %vm900_vm0, %v5668_v8, 0 }
 0xad7   : > { %v8085_v47 = vpop.eup %8084  ;;  %v5456_v56 = vsel %vm900_vm0, %v5451_v7, 0 }
 0xad8   : > { %v4531_v5 = vpop.xlane.xlu1 %4530  ;;  %7373 = vmatmul.msk.bf16.vlgmr.msrb.gmra.mxu0 %vm1371_vm1, %v4982_v50  ;;  %v4594_v61 = vmul.f32 %v8085_v47, %v11143_v4  ;;  %v11267_v35 = vpop.f32.mrf.mxu2 }
 0xad9   : > { %8086 = vrcp.f32 %v4531_v5  ;;  %5434 = vmatpush.bf16.xpose.msrb.mxu0 %v5425_v28  ;;  %v5693_v28 = vrot.slane %v11224_v33, 4  ;;  %v11354_v39 = vpop.f32.mrf.mxu0 }
 0xada   : > { %v4626_v32 = vpack.c.bf16 %v4594_v61, %v4594_v61  ;;  %12520 = vst [vmem:[#allocation118_spill] sm:$0xff] %v11354_v39 }
 0xadb   : > { %v5697_v55 = vunpack.c.l.b16 %v5693_v28 }
 0xadc   : > { %v5005_v4 = vunpack.c.l.b16 %v4626_v32 }
 0xadd   : > { %v5699_v33 = vpack.c.b16 %v5698_v6, %v5697_v55 }
 0xadf   : > { %v8087_v38 = vpop.eup %8086  ;;  %v5704_v32 = vsel %vm900_vm0, %v5699_v33, 0 }
 0xae0   : > { %v4595_v29 = vmul.f32 %v8087_v38, %v11158_v27  ;;  %v5549_v27 = vsel %vm900_vm0, %v5544_v62, 0  ;;  %v11333_v62 = vpop.permute.xlu2 %6409 }
 0xae1   : > { %v11360_v19 = vpop.f32.mrf.mxu0 }
 0xae2   : > { %v4627_v12 = vpack.c.bf16 %v4595_v29, %v4595_v29  ;;  %v11269_v16 = vpop.f32.mrf.mxu3  ;;  %12521 = vst [vmem:[#allocation129_spill] sm:$0xff] %v11360_v19 }
 0xae3   : > { %12511 = vst [vmem:[#allocation108_spill] sm:$0xff] %v11269_v16 }
 0xae4   : > { %v5006_v49 = vunpack.c.l.b16 %v4627_v12 }
 0xae6   : > { %v5007_v31 = vpack.c.b16 %v5006_v49, %v5005_v4 }
 0xae8   : > { %7374 = vmatmul.msk.bf16.vlgmr.msra.gmra.mxu1 %vm1371_vm1, %v5007_v31  ;;  %7379 = vmatmul.msk.bf16.vlgmr.msra.gmra.mxu0 %vm900_vm0, %v12512_v57  ;;  %v11276_v43 = vpop.f32.mrf.mxu2 }
 0xae9   : > { %5465 = vmatpush.bf16.xpose.msra.mxu1 %v5456_v56  ;;  %5558 = vmatpush.bf16.xpose.msra.mxu0 %v5549_v27  ;;  %v6260_v56 = vpop.permute.xlu2 %6259  ;;  %v11364_v15 = vpop.f32.mrf.mxu0 }
 0xaea   : > { %v11282_v48 = vpop.f32.mrf.mxu3  ;;  %12523 = vst [vmem:[#allocation141_spill] sm:$0xff] %v11364_v15 }
 0xaf0   : > { %v11284_v40 = vpop.f32.mrf.mxu2  ;;  %v6160_v38 = vpop.permute.xlu1 %6159 }
 0xaf1   : > { %12513 = vst [vmem:[#allocation112_spill] sm:$0xff] %v11284_v40  ;;  %v11368_v54 = vpop.f32.mrf.mxu0 }
 0xaf2   : > { %12524 = vst [vmem:[#allocation139_spill] sm:$0xff] %v11368_v54 }
 0xaf8   : > { %v11291_v24 = vpop.f32.mrf.mxu3  ;;  %7380 = vmatmul.msk.bf16.vlgmr.msrb.gmra.mxu1 %vm900_vm0, %v12515_v1  ;;  %7383 = vmatmul.msk.bf16.vlgmr.msrb.gmra.mxu0 %vm900_vm0, %v12516_v59  ;;  %v5250_v50 = vpop.f32.mrf.mxu2 }
 0xaf9   : > { %12514 = vst [vmem:[#allocation111_spill] sm:$0xff] %v11291_v24  ;;  %5589 = vmatpush.bf16.xpose.msrb.mxu1 %v5580_v17  ;;  %5682 = vmatpush.bf16.xpose.msrb.mxu0 %v5673_v52  ;;  %v11300_v5 = vadd.f32 %v11289_v37, %v5250_v50  ;;  %v11372_v1 = vpop.f32.mrf.mxu0 }
 0xafb   : > { %v5720_v47 = vsel %vm1371_vm1, %v11300_v5, -inf }
 0xafc   : > { %5721 = vmax.xlane.f32.xlu0 %v5720_v47 }
 0xb00   : > { %v11311_v61 = vpop.f32.mrf.mxu3  ;;  %v5252_v22 = vpop.f32.mrf.mxu2 }
 0xb01   : > { %12517 = vst [vmem:[#allocation120_spill] sm:$0xff] %v11311_v61  ;;  %v11314_v45 = vadd.f32 %v11309_v34, %v5252_v22 }
 0xb03   : > { %v5723_v20 = vsel %vm1371_vm1, %v11314_v45, -inf }
 0xb04   : > { %5724 = vmax.xlane.f32.xlu2 %v5723_v20 }
 0xb08   : > { %v5281_v9 = vpop.f32.mrf.mxu3  ;;  %7384 = vmatmul.msk.bf16.vlgmr.msra.gmra.mxu1 %vm900_vm0, %v12518_v11  ;;  %7387 = vmatmul.msk.bf16.vlgmr.msra.gmra.mxu0 %vm900_vm0, %v12519_v30  ;;  %v5374_v63 = vpop.f32.mrf.mxu2 }
 0xb09   : > { %v11324_v29 = vadd.f32 %v11289_v37, %v5281_v9  ;;  %5713 = vmatpush.bf16.xpose.msra.mxu1 %v5704_v32  ;;  %6172 = vmatpush.bf16.msra.mxu0 %v6160_v38  ;;  %v11327_v41 = vadd.f32 %v11289_v37, %v5374_v63 }
 0xb0b   : > { %v5726_v12 = vsel %vm1371_vm1, %v11324_v29, -inf  ;;  %v5744_v7 = vsel %vm1371_vm1, %v11327_v41, -inf }
 0xb0c   : > { %5727 = vmax.xlane.f32.xlu1 %v5726_v12  ;;  %5745 = vmax.xlane.f32.xlu0 %v5744_v7 }
 0xb10   : > { %v5283_v4 = vpop.f32.mrf.mxu3  ;;  %v5376_v49 = vpop.f32.mrf.mxu2 }
 0xb11   : > { %v11336_v31 = vadd.f32 %v11309_v34, %v5376_v49  ;;  %v11390_v55 = vadd.f32 %v11309_v34, %v5283_v4 }
 0xb13   : > { %v5747_v57 = vsel %vm1371_vm1, %v11336_v31, -inf  ;;  %v5729_v38 = vsel %vm1371_vm1, %v11390_v55, -inf }
 0xb14   : > { %5748 = vmax.xlane.f32.xlu1 %v5747_v57 }
 0xb18   : > { %v5405_v27 = vpop.f32.mrf.mxu3  ;;  %7388 = vmatmul.msk.bf16.vlgmr.msrb.gmra.mxu1 %vm900_vm0, %v11217_v3  ;;  %7391 = vmatmul.msk.bf16.vlgmr.msrb.gmra.mxu0 %vm900_vm0, %v11199_v25  ;;  %v6285_v3 = vpop.permute.xlu0 %6284 }
 0xb19   : > { %v11345_v58 = vadd.f32 %v11289_v37, %v5405_v27  ;;  %6197 = vmatpush.bf16.msrb.mxu1 %v11238_v2  ;;  %6272 = vmatpush.bf16.msrb.mxu0 %v6260_v56  ;;  %v11358_v25 = vpop.f32.mrf.mxu1  ;;  %v5498_v30 = vpop.f32.mrf.mxu2 }
 0xb1a   : > { %v11412_v49 = vadd.f32 %v11289_v37, %v5498_v30 }
 0xb1b   : > { %v5750_v18 = vsel %vm1371_vm1, %v11345_v58, -inf }
 0xb1c   : > { %5751 = vmax.xlane.f32.xlu1 %v5750_v18 }
 0xb20   : > { %v5407_v4 = vpop.f32.mrf.mxu3 }
 0xb21   : > { %v11362_v2 = vpop.f32.mrf.mxu1  ;;  %v11415_v57 = vadd.f32 %v11309_v34, %v5407_v4 }
 0xb22   : > { %12522 = vst [vmem:[#allocation53_spill] sm:$0xff] %v11362_v2 }
 0xb28   : > { %7392 = vmatmul.msk.bf16.vlgmr.msra.gmra.mxu1 %vm900_vm0, %v11213_v26  ;;  %v5529_v30 = vpop.f32.mrf.mxu3 }
 0xb29   : > { %6297 = vmatpush.bf16.msra.mxu1 %v6285_v3  ;;  %v11366_v53 = vpop.f32.mrf.mxu1  ;;  %v5500_v3 = vpop.f32.mrf.mxu2 }
 0xb31   : > { %v11370_v8 = vpop.f32.mrf.mxu1 }
 0xb39   : > { %v11374_v59 = vpop.f32.mrf.mxu1 }
 0xb3a   : > { %12525 = vst [vmem:[#allocation61_spill] sm:$0xff] %v11374_v59 }
 0xb41   : > { %v11378_v17 = vpop.f32.mrf.mxu1 }
 0xb42   : > { %12527 = vst [vmem:[#allocation144_spill] sm:$0xff] %v11378_v17  ;;  %v11477_v17 = vpop.permute.xlu0 %6334 }
 0xb55   : > { %v11376_v26 = vpop.f32.mrf.mxu0 }
 0xb56   : > { %12526 = vst [vmem:[#allocation73_spill] sm:$0xff] %v11376_v26 }
 0xb5d   : > { %v11380_v52 = vpop.f32.mrf.mxu0 }
 0xb5e   : > { %12528 = vst [vmem:[#allocation147_spill] sm:$0xff] %v11380_v52 }
 0xb65   : > { %v11382_v50 = vpop.f32.mrf.mxu1  ;;  %v5312_v28 = vpop.f32.mrf.mxu0 }
 0xb66   : > { %12529 = vst [vmem:[#allocation153_spill] sm:$0xff] %v11382_v50  ;;  %v11385_v47 = vadd.f32 %v11289_v37, %v5312_v28 }
 0xb68   : > { %v5732_v36 = vsel %vm1371_vm1, %v11385_v47, -inf }
 0xb69   : > { %5733 = vmax.xlane.f32.xlu2 %v5732_v36  ;;  %v5768_v36 = vsel %vm1371_vm1, %v11412_v49, -inf }
 0xb6d   : > { %v11392_v22 = vpop.f32.mrf.mxu1  ;;  %v5314_v6 = vpop.f32.mrf.mxu0 }
 0xb6e   : > { %12530 = vst [vmem:[#allocation162_spill] sm:$0xff] %v11392_v22  ;;  %v11395_v33 = vadd.f32 %v11309_v34, %v5314_v6  ;;  %v5753_v6 = vsel %vm1371_vm1, %v11415_v57, -inf }
 0xb6f   : > { %v5722_v52 = vpop.xlane.xlu0 %5721 }
 0xb70   : > { %v5735_v20 = vsel %vm1371_vm1, %v11395_v33, -inf  ;;  %v5816_v61 = vsub.f32 %v11300_v5, %v5722_v52 }
 0xb71   : > { %5736 = vmax.xlane.f32.xlu0 %v5735_v20  ;;  %5730 = vmax.xlane.f32.xlu2 %v5729_v38  ;;  %v11427_v20 = vadd.f32 %v11309_v34, %v5500_v3  ;;  %v5622_v3 = vpop.f32.mrf.mxu2 }
 0xb72   : > { %v5848_v16 = vmul.f32 1.442695, %v5816_v61 }
 0xb75   : > { %v5343_v9 = vpop.f32.mrf.mxu1  ;;  %v5436_v11 = vpop.f32.mrf.mxu0 }
 0xb76   : > { %v11402_v32 = vadd.f32 %v11289_v37, %v5343_v9  ;;  %v11405_v63 = vadd.f32 %v11289_v37, %v5436_v11 }
 0xb78   : > { %v5756_v12 = vsel %vm1371_vm1, %v11405_v63, -inf  ;;  %v5738_v7 = vsel %vm1371_vm1, %v11402_v32, -inf }
 0xb79   : > { %5757 = vmax.xlane.f32.xlu0 %v5756_v12  ;;  %5739 = vmax.xlane.f32.xlu2 %v5738_v7  ;;  %v5771_v7 = vsel %vm1371_vm1, %v11427_v20, -inf }
 0xb7d   : > { %v5345_v56 = vpop.f32.mrf.mxu1  ;;  %v5438_v27 = vpop.f32.mrf.mxu0 }
 0xb7e   : > { %v11418_v18 = vadd.f32 %v11309_v34, %v5438_v27  ;;  %v11430_v38 = vadd.f32 %v11309_v34, %v5345_v56  ;;  %v11442_v56 = vadd.f32 %v11289_v37, %v5529_v30 }
 0xb80   : > { %v5759_v28 = vsel %vm1371_vm1, %v11418_v18, -inf  ;;  %v5741_v4 = vsel %vm1371_vm1, %v11430_v38, -inf }
 0xb81   : > { %5760 = vmax.xlane.f32.xlu1 %v5759_v28  ;;  %5769 = vmax.xlane.f32.xlu0 %v5768_v36  ;;  %v11448_v36 = vadd.f32 %v11289_v37, %v5622_v3 }
 0xb82   : > { %5754 = vmax.xlane.f32.xlu2 %v5753_v6 }
 0xb83   : > { %v5792_v30 = vsel %vm1371_vm1, %v11448_v36, -inf }
 0xb85   : > { %v5467_v9 = vpop.f32.mrf.mxu1  ;;  %v5560_v11 = vpop.f32.mrf.mxu0 }
 0xb86   : > { %v11433_v12 = vadd.f32 %v11289_v37, %v5560_v11  ;;  %v11445_v28 = vadd.f32 %v11289_v37, %v5467_v9  ;;  %v5531_v11 = vpop.f32.mrf.mxu3 }
 0xb87   : > { %v11457_v9 = vadd.f32 %v11309_v34, %v5531_v11 }
 0xb88   : > { %v5780_v27 = vsel %vm1371_vm1, %v11433_v12, -inf  ;;  %v5762_v15 = vsel %vm1371_vm1, %v11445_v28, -inf }
 0xb89   : > { %5772 = vmax.xlane.f32.xlu1 %v5771_v7  ;;  %5742 = vmax.xlane.f32.xlu0 %v5741_v4  ;;  %v5774_v7 = vsel %vm1371_vm1, %v11442_v56, -inf  ;;  %v5777_v50 = vsel %vm1371_vm1, %v11457_v9, -inf }
 0xb8a   : > { %5781 = vmax.xlane.f32.xlu2 %v5780_v27 }
 0xb8d   : > { %v5469_v6 = vpop.f32.mrf.mxu1  ;;  %v5562_v4 = vpop.f32.mrf.mxu0 }
 0xb8e   : > { %v11460_v27 = vadd.f32 %v11309_v34, %v5562_v4  ;;  %v11463_v3 = vadd.f32 %v11309_v34, %v5469_v6 }
 0xb90   : > { %v5765_v11 = vsel %vm1371_vm1, %v11463_v3, -inf }
 0xb91   : > { %5763 = vmax.xlane.f32.xlu1 %v5762_v15  ;;  %5775 = vmax.xlane.f32.xlu0 %v5774_v7  ;;  %v5783_v15 = vsel %vm1371_vm1, %v11460_v27, -inf  ;;  %v5624_v7 = vpop.f32.mrf.mxu2 }
 0xb92   : > { %5793 = vmax.xlane.f32.xlu2 %v5792_v30  ;;  %v5653_v30 = vpop.f32.mrf.mxu3  ;;  %v11472_v4 = vadd.f32 %v11309_v34, %v5624_v7 }
 0xb93   : > { %v11480_v22 = vadd.f32 %v11289_v37, %v5653_v30 }
 0xb95   : > { %v5591_v19 = vpop.f32.mrf.mxu1  ;;  %v5684_v14 = vpop.f32.mrf.mxu0  ;;  %v5798_v7 = vsel %vm1371_vm1, %v11480_v22, -inf }
 0xb96   : > { %v11475_v6 = vadd.f32 %v11289_v37, %v5591_v19  ;;  %v5725_v19 = vpop.xlane.xlu2 %5724 }
 0xb97   : > { %v5817_v0 = vsub.f32 %v11314_v45, %v5725_v19 }
 0xb99   : > { %5778 = vmax.xlane.f32.xlu1 %v5777_v50  ;;  %5784 = vmax.xlane.f32.xlu0 %v5783_v15  ;;  %v5795_v50 = vsel %vm1371_vm1, %v11472_v4, -inf  ;;  %v5786_v15 = vsel %vm1371_vm1, %v11475_v6, -inf }
 0xb9a   : > { %5766 = vmax.xlane.f32.xlu2 %v5765_v11  ;;  %v11489_v11 = vadd.f32 %v11289_v37, %v5684_v14  ;;  %v5850_v14 = vmul.f32 1.442695, %v5817_v0  ;;  %v5655_v0 = vpop.f32.mrf.mxu3 }
 0xb9c   : > { %8088 = vpow2.f32 %v5850_v14  ;;  %v5728_v14 = vpop.xlane.xlu1 %5727 }
 0xb9d   : > { %v5593_v59 = vpop.f32.mrf.mxu1  ;;  %8090 = vpow2.f32 %v5848_v16 }
 0xb9e   : > { %v11492_v30 = vadd.f32 %v11309_v34, %v5593_v59 }
 0xba1   : > { %5796 = vmax.xlane.f32.xlu0 %v5795_v50  ;;  %5787 = vmax.xlane.f32.xlu1 %v5786_v15  ;;  %v5789_v50 = vsel %vm1371_vm1, %v11492_v30, -inf  ;;  %v5804_v15 = vsel %vm1371_vm1, %v11489_v11, -inf }
 0xba2   : > { %5799 = vmax.xlane.f32.xlu2 %v5798_v7  ;;  %v5686_v7 = vpop.f32.mrf.mxu0 }
 0xba3   : > { %v11501_v59 = vadd.f32 %v11309_v34, %v5686_v7 }
 0xba5   : > { %v5715_v54 = vpop.f32.mrf.mxu1  ;;  %v5807_v52 = vsel %vm1371_vm1, %v11501_v59, -inf }
 0xba6   : > { %v11504_v2 = vadd.f32 %v11289_v37, %v5715_v54  ;;  %v11516_v37 = vadd.f32 %v11309_v34, %v5655_v0  ;;  %v11518_v54 = vpop.eup %8088 }
 0xba8   : > { %v5810_v61 = vsel %vm1371_vm1, %v11504_v2, -inf  ;;  %v5801_v16 = vsel %vm1371_vm1, %v11516_v37, -inf }
 0xba9   : > { %5790 = vmax.xlane.f32.xlu0 %v5789_v50  ;;  %5805 = vmax.xlane.f32.xlu1 %v5804_v15  ;;  %v11520_v50 = vpop.eup %8090  ;;  %v5915_v15 = vsel %vm1371_vm1, %v11518_v54, 0.0 }
 0xbaa   : > { %v5912_v7 = vsel %vm1371_vm1, %v11520_v50, 0.0 }
 0xbad   : > { %v5717_v45 = vpop.f32.mrf.mxu1 }
 0xbae   : > { %v11507_v5 = vadd.f32 %v11309_v34, %v5717_v45  ;;  %v5746_v45 = vpop.xlane.xlu0 %5745 }
 0xbb0   : > { %v5813_v19 = vsel %vm1371_vm1, %v11507_v5, -inf }
 0xbb1   : > { %5808 = vmax.xlane.f32.xlu0 %v5807_v52  ;;  %5814 = vmax.xlane.f32.xlu2 %v5813_v19  ;;  %v5818_v19 = vsub.f32 %v11324_v29, %v5728_v14 }
 0xbb2   : > { %5811 = vmax.xlane.f32.xlu1 %v5810_v61  ;;  %v5749_v61 = vpop.xlane.xlu1 %5748 }
 0xbb3   : > { %v5852_v40 = vmul.f32 1.442695, %v5818_v19 }
 0xbb9   : > { %5802 = vmax.xlane.f32.xlu0 %v5801_v16  ;;  %5916 = vadd.xlane.f32.xlu2 %v5915_v15 }
 0xbba   : > { %5913 = vadd.xlane.f32.xlu1 %v5912_v7  ;;  %v5824_v7 = vsub.f32 %v11327_v41, %v5746_v45  ;;  %v5752_v14 = vpop.xlane.xlu1 %5751 }
 0xbbc   : > { %v5864_v29 = vmul.f32 1.442695, %v5824_v7 }
 0xbdc   : > { %v5734_v34 = vpop.xlane.xlu2 %5733 }
 0xbdd   : > { %v5820_v52 = vsub.f32 %v11385_v47, %v5734_v34 }
 0xbdf   : > { %v5856_v0 = vmul.f32 1.442695, %v5820_v52 }
 0xbe1   : > { %8092 = vpow2.f32 %v5856_v0 }
 0xbe2   : > { %8094 = vpow2.f32 %v5852_v40 }
 0xbe4   : > { %v5731_v13 = vpop.xlane.xlu2 %5730  ;;  %v5737_v60 = vpop.xlane.xlu0 %5736 }
 0xbe5   : > { %v5821_v16 = vsub.f32 %v11395_v33, %v5737_v60  ;;  %v5819_v26 = vsub.f32 %v11390_v55, %v5731_v13  ;;  %v5825_v13 = vsub.f32 %v11336_v31, %v5749_v61 }
 0xbe7   : > { %v11531_v15 = vpop.eup %8092  ;;  %v5858_v39 = vmul.f32 1.442695, %v5821_v16  ;;  %v5854_v34 = vmul.f32 1.442695, %v5819_v26 }
 0xbe8   : > { %v5924_v47 = vsel %vm1371_vm1, %v11531_v15, 0.0  ;;  %v11537_v0 = vpop.eup %8094 }
 0xbe9   : > { %5925 = vadd.xlane.f32.xlu2 %v5924_v47  ;;  %8096 = vpow2.f32 %v5858_v39  ;;  %v5918_v39 = vsel %vm1371_vm1, %v11537_v0, 0.0 }
 0xbea   : > { %8098 = vpow2.f32 %v5864_v29 }
 0xbeb   : > { %8100 = vpow2.f32 %v5854_v34  ;;  %v5826_v34 = vsub.f32 %v11345_v58, %v5752_v14 }
 0xbec   : > { %v5740_v52 = vpop.xlane.xlu2 %5739  ;;  %v5758_v19 = vpop.xlane.xlu0 %5757 }
 0xbed   : > { %v5822_v60 = vsub.f32 %v11402_v32, %v5740_v52  ;;  %v5828_v41 = vsub.f32 %v11405_v63, %v5758_v19  ;;  %v5866_v32 = vmul.f32 1.442695, %v5825_v13 }
 0xbef   : > { %v5860_v40 = vmul.f32 1.442695, %v5822_v60  ;;  %v11541_v33 = vpop.eup %8096  ;;  %v5872_v55 = vmul.f32 1.442695, %v5828_v41  ;;  %v5868_v60 = vmul.f32 1.442695, %v5826_v34 }
 0xbf0   : > { %v5927_v26 = vsel %vm1371_vm1, %v11541_v33, 0.0  ;;  %v11548_v7 = vpop.eup %8098 }
 0xbf1   : > { %8102 = vpow2.f32 %v5860_v40  ;;  %5919 = vadd.xlane.f32.xlu2 %v5918_v39  ;;  %5928 = vadd.xlane.f32.xlu0 %v5927_v26  ;;  %v11551_v31 = vpop.eup %8100  ;;  %v5936_v19 = vsel %vm1371_vm1, %v11548_v7, 0.0 }
 0xbf2   : > { %8104 = vpow2.f32 %v5872_v55 }
 0xbf3   : > { %8106 = vpow2.f32 %v5866_v32 }
 0xbf4   : > { %v5761_v45 = vpop.xlane.xlu1 %5760  ;;  %v5770_v16 = vpop.xlane.xlu0 %5769 }
 0xbf5   : > { %v5755_v63 = vpop.xlane.xlu2 %5754  ;;  %v5832_v47 = vsub.f32 %v11412_v49, %v5770_v16  ;;  %v5921_v49 = vsel %vm1371_vm1, %v11551_v31, 0.0 }
 0xbf7   : > { %v11553_v61 = vpop.eup %8102  ;;  %v5880_v29 = vmul.f32 1.442695, %v5832_v47 }
 0xbf8   : > { %v5930_v52 = vsel %vm1371_vm1, %v11553_v61, 0.0  ;;  %v11562_v13 = vpop.eup %8104 }
 0xbf9   : > { %5931 = vadd.xlane.f32.xlu1 %v5930_v52  ;;  %5937 = vadd.xlane.f32.xlu2 %v5936_v19  ;;  %8108 = vpow2.f32 %v5880_v29  ;;  %v11568_v26 = vpop.eup %8106  ;;  %v5948_v16 = vsel %vm1371_vm1, %v11562_v13, 0.0  ;;  %v5829_v29 = vsub.f32 %v11418_v18, %v5761_v45 }
 0xbfa   : > { %5922 = vadd.xlane.f32.xlu0 %v5921_v49  ;;  %8110 = vpow2.f32 %v5868_v60 }
 0xbfb   : > { %v5874_v19 = vmul.f32 1.442695, %v5829_v29 }
 0xbfc   : > { %v5773_v40 = vpop.xlane.xlu1 %5772  ;;  %v5743_v41 = vpop.xlane.xlu0 %5742 }
 0xbfd   : > { %v5833_v58 = vsub.f32 %v11427_v20, %v5773_v40  ;;  %v11565_v14 = vpop.xlane.xlu2 %5781  ;;  %v5823_v39 = vsub.f32 %v11430_v38, %v5743_v41  ;;  %v5939_v20 = vsel %vm1371_vm1, %v11568_v26, 0.0 }
 0xbff   : > { %v5882_v55 = vmul.f32 1.442695, %v5833_v58  ;;  %v5862_v32 = vmul.f32 1.442695, %v5823_v39  ;;  %v11572_v47 = vpop.eup %8108 }
 0xc00   : > { %v5960_v38 = vsel %vm1371_vm1, %v11572_v47, 0.0  ;;  %v11580_v40 = vpop.eup %8110 }
 0xc01   : > { %8112 = vpow2.f32 %v5882_v55  ;;  %5949 = vadd.xlane.f32.xlu2 %v5948_v16  ;;  %5961 = vadd.xlane.f32.xlu1 %v5960_v38  ;;  %v5942_v16 = vsel %vm1371_vm1, %v11580_v40, 0.0 }
 0xc02   : > { %5940 = vadd.xlane.f32.xlu0 %v5939_v20  ;;  %8114 = vpow2.f32 %v5862_v32  ;;  %v5827_v32 = vsub.f32 %v11415_v57, %v5755_v63 }
 0xc03   : > { %8116 = vpow2.f32 %v5874_v19 }
 0xc04   : > { %v5764_v34 = vpop.xlane.xlu1 %5763  ;;  %v5776_v52 = vpop.xlane.xlu0 %5775  ;;  %v5870_v29 = vmul.f32 1.442695, %v5827_v32 }
 0xc05   : > { %v5794_v49 = vpop.xlane.xlu2 %5793  ;;  %v5834_v60 = vsub.f32 %v11442_v56, %v5776_v52 }
 0xc06   : > { %v5840_v18 = vsub.f32 %v11448_v36, %v5794_v49 }
 0xc07   : > { %v11583_v45 = vpop.eup %8112  ;;  %v5884_v41 = vmul.f32 1.442695, %v5834_v60  ;;  %v5830_v60 = vsub.f32 %v11445_v28, %v5764_v34  ;;  %v5836_v28 = vsub.f32 %v11433_v12, %v11565_v14 }
 0xc08   : > { %v5896_v58 = vmul.f32 1.442695, %v5840_v18  ;;  %v5963_v39 = vsel %vm1371_vm1, %v11583_v45, 0.0  ;;  %v11587_v55 = vpop.eup %8114 }
 0xc09   : > { %v5933_v56 = vsel %vm1371_vm1, %v11587_v55, 0.0  ;;  %5964 = vadd.xlane.f32.xlu1 %v5963_v39  ;;  %v11595_v52 = vpop.eup %8116  ;;  %v5876_v39 = vmul.f32 1.442695, %v5830_v60 }
 0xc0a   : > { %8118 = vpow2.f32 %v5896_v58  ;;  %5943 = vadd.xlane.f32.xlu0 %v5942_v16  ;;  %5934 = vadd.xlane.f32.xlu2 %v5933_v56 }
 0xc0b   : > { %8120 = vpow2.f32 %v5884_v41 }
 0xc0c   : > { %v5779_v36 = vpop.xlane.xlu1 %5778  ;;  %v11599_v63 = vpop.xlane.xlu0 %5784  ;;  %8122 = vpow2.f32 %v5870_v29 }
 0xc0d   : > { %v5767_v20 = vpop.xlane.xlu2 %5766  ;;  %v5835_v12 = vsub.f32 %v11457_v9, %v5779_v36  ;;  %v12533_v9 = vld [vmem:[#allocation19_spill] sm:$0xff] }
 0xc0e   : > { %v5831_v38 = vsub.f32 %v11463_v3, %v5767_v20  ;;  %v5951_v3 = vsel %vm1371_vm1, %v11595_v52, 0.0 }
 0xc10   : > { %v11597_v19 = vpop.eup %8118  ;;  %v5878_v57 = vmul.f32 1.442695, %v5831_v38 }
 0xc11   : > { %12531 = vst [vmem:[#allocation92_spill] sm:$0xff] %v11597_v19  ;;  %v11601_v49 = vpop.eup %8120  ;;  %v5984_v18 = vsel %vm1371_vm1, %v11597_v19, 0.0 }
 0xc12   : > { %8124 = vpow2.f32 %v5878_v57  ;;  %5985 = vadd.xlane.f32.xlu0 %v5984_v18  ;;  %v5966_v41 = vsel %vm1371_vm1, %v11601_v49, 0.0  ;;  %5952 = vadd.xlane.f32.xlu2 %v5951_v3  ;;  %v11612_v32 = vpop.eup %8122  ;;  %v5888_v57 = vmul.f32 1.442695, %v5836_v28 }
 0xc13   : > { %5967 = vadd.xlane.f32.xlu1 %v5966_v41  ;;  %8126 = vpow2.f32 %v5876_v39  ;;  %v5945_v29 = vsel %vm1371_vm1, %v11612_v32, 0.0  ;;  %v5886_v41 = vmul.f32 1.442695, %v5835_v12  ;;  %v12534_v12 = vld [vmem:[#allocation41_spill] sm:$0xff] }
 0xc14   : > { %v11610_v58 = vpop.xlane.xlu1 %5787  ;;  %v5797_v56 = vpop.xlane.xlu0 %5796  ;;  %8128 = vpow2.f32 %v5888_v57 }
 0xc15   : > { %v11622_v20 = vpop.xlane.xlu2 %5799  ;;  %8130 = vpow2.f32 %v5886_v41 }
 0xc18   : > { %v11614_v16 = vpop.eup %8124 }
 0xc19   : > { %v5957_v34 = vsel %vm1371_vm1, %v11614_v16, 0.0  ;;  %v11626_v60 = vpop.eup %8126 }
 0xc1a   : > { %5958 = vadd.xlane.f32.xlu0 %v5957_v34  ;;  %5946 = vadd.xlane.f32.xlu2 %v5945_v29  ;;  %v5954_v14 = vsel %vm1371_vm1, %v11626_v60, 0.0  ;;  %v11635_v34 = vpop.eup %8128 }
 0xc1b   : > { %12532 = vst [vmem:[#allocation101_spill] sm:$0xff] %v11635_v34  ;;  %v5972_v29 = vsel %vm1371_vm1, %v11635_v34, 0.0  ;;  %v11644_v44 = vpop.eup %8130 }
 0xc1c   : > { %v11624_v38 = vpop.xlane.xlu1 %5805  ;;  %v5791_v18 = vpop.xlane.xlu0 %5790 }
 0xc1d   : > { %v5839_v28 = vsub.f32 %v11492_v30, %v5791_v18  ;;  %v5969_v18 = vsel %vm1371_vm1, %v11644_v44, 0.0 }
 0xc1f   : > { %v5894_v57 = vmul.f32 1.442695, %v5839_v28 }
 0xc22   : > { %5955 = vadd.xlane.f32.xlu2 %v5954_v14 }
 0xc24   : > { %v11631_v3 = vpop.xlane.xlu2 %5814  ;;  %v5809_v19 = vpop.xlane.xlu0 %5808 }
 0xc25   : > { %v11633_v39 = vpop.xlane.xlu1 %5811  ;;  %v5845_v30 = vsub.f32 %v11501_v59, %v5809_v19 }
 0xc2a   : > { %5973 = vadd.xlane.f32.xlu2 %v5972_v29 }
 0xc2c   : > { %6359 = vrot.lane.b32.xlu1 %v12533_v9, %s8227_s19  ;;  %v5917_v36 = vpop.xlane.xlu2 %5916  ;;  %v5906_v9 = vmul.f32 1.442695, %v5845_v30  ;;  %v5837_v30 = vsub.f32 %v11460_v27, %v11599_v63  ;;  %v5844_v27 = vsub.f32 %v11489_v11, %v11624_v38  ;;  %v5842_v11 = vsub.f32 %v11480_v22, %v11622_v20 }
 0xc2d   : > { %8132 = vrcp.f32 %v5917_v36  ;;  %v5914_v14 = vpop.xlane.xlu1 %5913 }
 0xc2e   : > { %8134 = vrcp.f32 %v5914_v14  ;;  %6434 = vrot.lane.b32.xlu0 %v12534_v12, %s8227_s19  ;;  %v5904_v63 = vmul.f32 1.442695, %v5844_v27 }
 0xc2f   : > { %8136 = vpow2.f32 %v5894_v57 }
 0xc30   : > { %8138 = vpow2.f32 %v5906_v9 }
 0xc32   : > { %5970 = vadd.xlane.f32.xlu2 %v5969_v18  ;;  %v5838_v18 = vsub.f32 %v11475_v6, %v11610_v58  ;;  %v12535_v58 = vld [vmem:[#allocation28_spill] sm:$0xff] }
 0xc33   : > { %v8133_v41 = vpop.eup %8132 }
 0xc34   : > { %v8135_v29 = vpop.eup %8134  ;;  %v6041_v28 = vmul.f32 %v8133_v41, %v11518_v54  ;;  %v5890_v41 = vmul.f32 1.442695, %v5837_v30 }
 0xc35   : > { %v6040_v36 = vmul.f32 %v8135_v29, %v11520_v50  ;;  %v11651_v34 = vpop.eup %8136  ;;  %v5892_v29 = vmul.f32 1.442695, %v5838_v18 }
 0xc36   : > { %v6073_v14 = vpack.c.bf16 %v6041_v28, %v6041_v28  ;;  %v5981_v59 = vsel %vm1371_vm1, %v11651_v34, 0.0  ;;  %v11657_v54 = vpop.eup %8138  ;;  %8140 = vpow2.f32 %v5890_v41  ;;  %v5841_v28 = vsub.f32 %v11472_v4, %v5797_v56 }
 0xc37   : > { %v6072_v12 = vpack.c.bf16 %v6040_v36, %v6040_v36  ;;  %v5999_v50 = vsel %vm1371_vm1, %v11657_v54, 0.0  ;;  %8142 = vpow2.f32 %v5892_v29 }
 0xc38   : > { %v6107_v24 = vunpack.c.l.b16 %v6073_v14  ;;  %v5898_v9 = vmul.f32 1.442695, %v5841_v28 }
 0xc39   : > { %v6106_v57 = vunpack.c.l.b16 %v6072_v12 }
 0xc3a   : > { %5982 = vadd.xlane.f32.xlu2 %v5981_v59  ;;  %8144 = vpow2.f32 %v5898_v9 }
 0xc3b   : > { %v6108_v19 = vpack.c.b16 %v6107_v24, %v6106_v57  ;;  %v5803_v24 = vpop.xlane.xlu0 %5802 }
 0xc3c   : > { %v11667_v36 = vpop.eup %8140 }
 0xc3d   : > { %7393 = vmatmul.msk.bf16.vlgmr.msra.gmra.mxu2 %vm1371_vm1, %v6108_v19  ;;  %v11669_v12 = vpop.eup %8142  ;;  %v5975_v6 = vsel %vm1371_vm1, %v11667_v36, 0.0  ;;  %v5900_v19 = vmul.f32 1.442695, %v5842_v11 }
 0xc3e   : > { %6322 = vmatpush.bf16.msra.mxu2 %v11352_v10  ;;  %v5843_v10 = vsub.f32 %v11516_v37, %v5803_v24  ;;  %v5978_v4 = vsel %vm1371_vm1, %v11669_v12, 0.0 }
 0xc40   : > { %v5902_v14 = vmul.f32 1.442695, %v5843_v10  ;;  %v11677_v37 = vpop.eup %8144 }
 0xc41   : > { %v5987_v57 = vsel %vm1371_vm1, %v11677_v37, 0.0 }
 0xc42   : > { %6000 = vadd.xlane.f32.xlu2 %v5999_v50  ;;  %8146 = vpow2.f32 %v5902_v14 }
 0xc43   : > { %8148 = vpow2.f32 %v5904_v63 }
 0xc48   : > { %v11681_v56 = vpop.eup %8146 }
 0xc49   : > { %v5993_v59 = vsel %vm1371_vm1, %v11681_v56, 0.0  ;;  %v11689_v50 = vpop.eup %8148 }
 0xc4a   : > { %v5996_v18 = vsel %vm1371_vm1, %v11689_v50, 0.0 }
 0xc56   : > { %5976 = vadd.xlane.f32.xlu1 %v5975_v6 }
 0xc58   : > { %5979 = vadd.xlane.f32.xlu0 %v5978_v4 }
 0xc5a   : > { %6384 = vrot.lane.b32.xlu2 %v12535_v58, %s8227_s19 }
 0xc5c   : > { %v5926_v38 = vpop.xlane.xlu2 %5925 }
 0xc5d   : > { %8150 = vrcp.f32 %v5926_v38 }
 0xc5e   : > { %5988 = vadd.xlane.f32.xlu1 %v5987_v57  ;;  %8152 = vpow2.f32 %v5900_v19 }
 0xc60   : > { %5994 = vadd.xlane.f32.xlu0 %v5993_v59  ;;  %v12536_v59 = vld [vmem:[#allocation43_spill] sm:$0xff] }
 0xc63   : > { %v8151_v20 = vpop.eup %8150 }
 0xc64   : > { %v5920_v30 = vpop.xlane.xlu2 %5919  ;;  %v5929_v22 = vpop.xlane.xlu0 %5928  ;;  %v6044_v41 = vmul.f32 %v8151_v20, %v11531_v15  ;;  %v5846_v15 = vsub.f32 %v11504_v2, %v11633_v39  ;;  %v5028_v39 = vpack.c.bf16 %v11232_v46, %v11232_v46 }
 0xc65   : > { %8154 = vrcp.f32 %v5929_v22  ;;  %v11694_v29 = vpop.eup %8152 }
 0xc66   : > { %5997 = vadd.xlane.f32.xlu1 %v5996_v18  ;;  %8156 = vrcp.f32 %v5920_v30  ;;  %v6076_v9 = vpack.c.bf16 %v6044_v41, %v6044_v41  ;;  %v5990_v27 = vsel %vm1371_vm1, %v11694_v29, 0.0  ;;  %v5908_v30 = vmul.f32 1.442695, %v5846_v15 }
 0xc68   : > { %v6156_v58 = vunpack.c.l.b16 %v6076_v9 }
 0xc6b   : > { %v8155_v24 = vpop.eup %8154 }
 0xc6c   : > { %v5932_v28 = vpop.xlane.xlu1 %5931  ;;  %v5938_v10 = vpop.xlane.xlu2 %5937  ;;  %v6045_v14 = vmul.f32 %v8155_v24, %v11541_v33 }
 0xc6d   : > { %v5923_v6 = vpop.xlane.xlu0 %5922  ;;  %v8157_v4 = vpop.eup %8156 }
 0xc6e   : > { %5991 = vadd.xlane.f32.xlu1 %v5990_v27  ;;  %v6077_v63 = vpack.c.bf16 %v6045_v14, %v6045_v14  ;;  %8158 = vrcp.f32 %v5923_v6  ;;  %v6042_v38 = vmul.f32 %v8157_v4, %v11537_v0 }
 0xc6f   : > { %8160 = vrcp.f32 %v5938_v10 }
 0xc70   : > { %v6157_v11 = vunpack.c.l.b16 %v6077_v63  ;;  %v6074_v20 = vpack.c.bf16 %v6042_v38, %v6042_v38 }
 0xc72   : > { %v6158_v57 = vpack.c.b16 %v6157_v11, %v6156_v58  ;;  %v6131_v10 = vunpack.c.l.b16 %v6074_v20 }
 0xc74   : > { %6459 = vrot.lane.b32.xlu0 %v12536_v59, %s8227_s19  ;;  %v5950_v33 = vpop.xlane.xlu2 %5949  ;;  %v8159_v19 = vpop.eup %8158  ;;  %7395 = vmatmul.msk.bf16.vlgmr.msra.gmra.mxu0 %vm1371_vm1, %v6158_v57 }
 0xc75   : > { %v5941_v18 = vpop.xlane.xlu0 %5940  ;;  %v8161_v22 = vpop.eup %8160  ;;  %v6043_v41 = vmul.f32 %v8159_v19, %v11551_v31 }
 0xc76   : > { %v5962_v24 = vpop.xlane.xlu1 %5961  ;;  %8162 = vrcp.f32 %v5941_v18  ;;  %v6048_v0 = vmul.f32 %v8161_v22, %v11548_v7 }
 0xc77   : > { %v6075_v2 = vpack.c.bf16 %v6043_v41, %v6043_v41  ;;  %8164 = vpow2.f32 %v5908_v30  ;;  %v12537_v41 = vld [vmem:[#allocation90_spill] sm:$0xff] }
 0xc78   : > { %8166 = vrcp.f32 %v5932_v28  ;;  %v6080_v6 = vpack.c.bf16 %v6048_v0, %v6048_v0  ;;  %v5031_v0 = vpack.c.bf16 %v11245_v21, %v11245_v21 }
 0xc79   : > { %v6132_v9 = vunpack.c.l.b16 %v6075_v2  ;;  %8168 = vrcp.f32 %v5962_v24 }
 0xc7a   : > { %v6206_v28 = vunpack.c.l.b16 %v6080_v6 }
 0xc7b   : > { %v6133_v27 = vpack.c.b16 %v6132_v9, %v6131_v10 }
 0xc7c   : > { %v8163_v14 = vpop.eup %8162  ;;  %5092 = vrot.lane.b32.xlu0 %v5028_v39, %s8225_s15 }
 0xc7d   : > { %v6049_v4 = vmul.f32 %v8163_v14, %v11568_v26  ;;  %v5944_v31 = vpop.xlane.xlu0 %5943  ;;  %v5935_v15 = vpop.xlane.xlu2 %5934  ;;  %7394 = vmatmul.msk.bf16.vlgmr.msrb.gmra.mxu3 %vm1371_vm1, %v6133_v27  ;;  %v5029_v26 = vpack.c.bf16 %v11236_v42, %v11236_v42 }
 0xc7e   : > { %v5965_v63 = vpop.xlane.xlu1 %5964  ;;  %v11712_v7 = vpop.eup %8164  ;;  %6347 = vmatpush.bf16.msrb.mxu3 %v11477_v17 }
 0xc7f   : > { %v6081_v58 = vpack.c.bf16 %v6049_v4, %v6049_v4  ;;  %8170 = vrcp.f32 %v5965_v63  ;;  %v8167_v46 = vpop.eup %8166  ;;  %v6002_v59 = vsel %vm1371_vm1, %v11712_v7, 0.0 }
 0xc80   : > { %8172 = vrcp.f32 %v5935_v15  ;;  %v6046_v38 = vmul.f32 %v8167_v46, %v11553_v61  ;;  %v8169_v19 = vpop.eup %8168 }
 0xc81   : > { %8174 = vrcp.f32 %v5950_v33  ;;  %v6207_v11 = vunpack.c.l.b16 %v6081_v58  ;;  %v6056_v24 = vmul.f32 %v8169_v19, %v11572_v47 }
 0xc82   : > { %v6078_v22 = vpack.c.bf16 %v6046_v38, %v6046_v38 }
 0xc83   : > { %v6208_v57 = vpack.c.b16 %v6207_v11, %v6206_v28  ;;  %6003 = vadd.xlane.f32.xlu2 %v6002_v59  ;;  %v6088_v14 = vpack.c.bf16 %v6056_v24, %v6056_v24 }
 0xc84   : > { %5094 = vrot.lane.b32.xlu0 %v5029_v26, %s8225_s15 }
 0xc85   : > { %v8171_v30 = vpop.eup %8170  ;;  %7397 = vmatmul.msk.bf16.vlgmr.msrb.gmra.mxu2 %vm1371_vm1, %v6208_v57  ;;  %v11722_v17 = vpop.xlane.xlu0 %5985  ;;  %v6306_v15 = vunpack.c.l.b16 %v6088_v14 }
 0xc86   : > { %v8173_v33 = vpop.eup %8172  ;;  %v5953_v18 = vpop.xlane.xlu2 %5952  ;;  %6422 = vmatpush.bf16.msrb.mxu2 %v11333_v62  ;;  %v6057_v61 = vmul.f32 %v8171_v30, %v11583_v45  ;;  %v6181_v62 = vunpack.c.l.b16 %v6078_v22 }
 0xc87   : > { %v8175_v42 = vpop.eup %8174  ;;  %v6047_v20 = vmul.f32 %v8173_v33, %v11587_v55  ;;  %8176 = vrcp.f32 %v5953_v18  ;;  %6484 = vrot.lane.b32.xlu1 %v12537_v41, %s8227_s19  ;;  %v5042_v55 = vpack.c.bf16 %v11366_v53, %v11366_v53  ;;  %v5043_v53 = vpack.c.bf16 %v11370_v8, %v11370_v8  ;;  %v5968_v57 = vpop.xlane.xlu1 %5967 }
 0xc88   : > { %8178 = vrcp.f32 %v5944_v31  ;;  %v6052_v39 = vmul.f32 %v8175_v42, %v11562_v13  ;;  %v6089_v10 = vpack.c.bf16 %v6057_v61, %v6057_v61  ;;  %v5030_v33 = vpack.c.bf16 %v11240_v51, %v11240_v51 }
 0xc89   : > { %v6079_v2 = vpack.c.bf16 %v6047_v20, %v6047_v20 }
 0xc8a   : > { %v6084_v6 = vpack.c.bf16 %v6052_v39, %v6052_v39  ;;  %v6307_v21 = vunpack.c.l.b16 %v6089_v10 }
 0xc8b   : > { %v6182_v9 = vunpack.c.l.b16 %v6079_v2 }
 0xc8c   : > { %5098 = vrot.lane.b32.xlu0 %v5031_v0, %s8225_s15  ;;  %v6256_v58 = vunpack.c.l.b16 %v6084_v6  ;;  %v5052_v0 = vpack.c.bf16 %v11276_v43, %v11276_v43  ;;  %v5047_v43 = vpack.c.bf16 %v11282_v48, %v11282_v48 }
 0xc8d   : > { %v8177_v45 = vpop.eup %8176  ;;  %v6183_v27 = vpack.c.b16 %v6182_v9, %v6181_v62  ;;  %v5959_v31 = vpop.xlane.xlu0 %5958 }
 0xc8e   : > { %v6053_v47 = vmul.f32 %v8177_v45, %v11595_v52  ;;  %v5947_v4 = vpop.xlane.xlu2 %5946  ;;  %v8179_v63 = vpop.eup %8178  ;;  %v6308_v52 = vpack.c.b16 %v6307_v21, %v6306_v15  ;;  %v5847_v45 = vsub.f32 %v11507_v5, %v11631_v3  ;;  %v12538_v3 = vld [vmem:[#allocation111_spill] sm:$0xff] }
 0xc8f   : > { %7396 = vmatmul.msk.bf16.vlgmr.msrb.gmra.mxu1 %vm1371_vm1, %v6183_v27  ;;  %8180 = vrcp.f32 %v5947_v4  ;;  %5120 = vrot.lane.b32.xlu1 %v5042_v55, %s8225_s15  ;;  %v6050_v46 = vmul.f32 %v8179_v63, %v11580_v40  ;;  %v5032_v40 = vpack.c.bf16 %v11350_v23, %v11350_v23  ;;  %v5054_v48 = vpack.c.bf16 %v12538_v3, %v12538_v3  ;;  %v12546_v3 = vld [vmem:[#allocation112_spill] sm:$0xff] }
 0xc90   : > { %v6085_v13 = vpack.c.bf16 %v6053_v47, %v6053_v47  ;;  %8182 = vrcp.f32 %v5959_v31  ;;  %v5910_v14 = vmul.f32 1.442695, %v5847_v45 }
 0xc91   : > { %v6082_v38 = vpack.c.bf16 %v6050_v46, %v6050_v46 }
 0xc92   : > { %v6257_v28 = vunpack.c.l.b16 %v6085_v13 }
 0xc93   : > { %v6231_v18 = vunpack.c.l.b16 %v6082_v38 }
 0xc94   : > { %v6258_v11 = vpack.c.b16 %v6257_v28, %v6256_v58  ;;  %5122 = vrot.lane.b32.xlu0 %v5043_v53, %s8225_s15  ;;  %v12540_v58 = vld [vmem:[#allocation73_spill] sm:$0xff] }
 0xc95   : > { %v8181_v26 = vpop.eup %8180  ;;  %7401 = vmatmul.msk.bf16.vlgmr.msra.gmra.mxu2 %vm1371_vm1, %v6308_v52  ;;  %v5056_v46 = vpack.c.bf16 %v12540_v58, %v12540_v58  ;;  %v12547_v58 = vld [vmem:[#allocation53_spill] sm:$0xff] }
 0xc96   : > { %v6051_v59 = vmul.f32 %v8181_v26, %v11612_v32  ;;  %v5956_v19 = vpop.xlane.xlu2 %5955  ;;  %7399 = vmatmul.msk.bf16.vlgmr.msrb.gmra.mxu0 %vm1371_vm1, %v6258_v11  ;;  %v8183_v30 = vpop.eup %8182 }
 0xc97   : > { %8184 = vrcp.f32 %v5956_v19  ;;  %v6055_v22 = vmul.f32 %v8183_v30, %v11614_v16  ;;  %v5045_v16 = vpack.c.bf16 %v11267_v35, %v11267_v35  ;;  %v5034_v35 = vpack.c.bf16 %v11358_v25, %v11358_v25 }
 0xc98   : > { %v6083_v8 = vpack.c.bf16 %v6051_v59, %v6051_v59  ;;  %8186 = vrcp.f32 %v5968_v57  ;;  %v5049_v25 = vpack.c.bf16 %v11372_v1, %v11372_v1  ;;  %v12539_v1 = vld [vmem:[#allocation81_spill] sm:$0xff] }
 0xc99   : > { %v6087_v20 = vpack.c.bf16 %v6055_v22, %v6055_v22  ;;  %v5036_v15 = vpack.c.bf16 %v12539_v1, %v12539_v1  ;;  %v12541_v59 = vld [vmem:[#allocation101_spill] sm:$0xff] }
 0xc9a   : > { %v6232_v42 = vunpack.c.l.b16 %v6083_v8 }
 0xc9b   : > { %5096 = vrot.lane.b32.xlu2 %v5030_v33, %s8225_s15  ;;  %v6282_v39 = vunpack.c.l.b16 %v6087_v20 }
 0xc9c   : > { %v6233_v61 = vpack.c.b16 %v6232_v42, %v6231_v18  ;;  %5100 = vrot.lane.b32.xlu0 %v5032_v40, %s8225_s15  ;;  %v12542_v40 = vld [vmem:[#allocation118_spill] sm:$0xff] }
 0xc9d   : > { %v8185_v32 = vpop.eup %8184  ;;  %v5033_v33 = vpack.c.bf16 %v12542_v40, %v12542_v40 }
 0xc9e   : > { %v6054_v41 = vmul.f32 %v8185_v32, %v11626_v60  ;;  %v5974_v24 = vpop.xlane.xlu2 %5973  ;;  %v6360_v2 = vpop.permute.xlu1 %6359  ;;  %7398 = vmatmul.msk.bf16.vlgmr.msra.gmra.mxu3 %vm1371_vm1, %v6233_v61 }
 0xc9f   : > { %6372 = vmatpush.bf16.msra.mxu0 %v6360_v2  ;;  %v8187_v9 = vpop.eup %8186  ;;  %v12544_v2 = vld [vmem:[#allocation92_spill] sm:$0xff] }
 0xca0   : > { %v6086_v23 = vpack.c.bf16 %v6054_v41, %v6054_v41  ;;  %v6435_v51 = vpop.permute.xlu0 %6434  ;;  %v6058_v55 = vmul.f32 %v8187_v9, %v11601_v49 }
 0xca1   : > { %6447 = vmatpush.bf16.msra.mxu3 %v6435_v51 }
 0xca2   : > { %v6281_v62 = vunpack.c.l.b16 %v6086_v23  ;;  %v6090_v6 = vpack.c.bf16 %v6058_v55, %v6058_v55 }
 0xca3   : > { %5126 = vrot.lane.b32.xlu2 %v5045_v16, %s8225_s15 }
 0xca4   : > { %v6283_v10 = vpack.c.b16 %v6282_v39, %v6281_v62  ;;  %5140 = vrot.lane.b32.xlu0 %v5052_v0, %s8225_s15  ;;  %v6331_v31 = vunpack.c.l.b16 %v6090_v6 }
 0xca6   : > { %v5971_v60 = vpop.xlane.xlu2 %5970  ;;  %7400 = vmatmul.msk.bf16.vlgmr.msra.gmra.mxu1 %vm1371_vm1, %v6283_v10 }
 0xca7   : > { %8188 = vrcp.f32 %v5971_v60  ;;  %v12545_v60 = vld [vmem:[#allocation87_spill] sm:$0xff] }
 0xca8   : > { %8190 = vpow2.f32 %v5910_v14  ;;  %v5044_v9 = vpack.c.bf16 %v12545_v60, %v12545_v60 }
 0xca9   : > { %8192 = vrcp.f32 %v5974_v24 }
 0xcab   : > { %5130 = vrot.lane.b32.xlu2 %v5047_v43, %s8225_s15 }
 0xcac   : > { %5104 = vrot.lane.b32.xlu0 %v5034_v35, %s8225_s15 }
 0xcad   : > { %v8189_v27 = vpop.eup %8188 }
 0xcae   : > { %v6059_v47 = vmul.f32 %v8189_v27, %v11644_v44  ;;  %v5983_v4 = vpop.xlane.xlu2 %5982  ;;  %v11778_v21 = vpop.eup %8190 }
 0xcaf   : > { %v6005_v44 = vsel %vm1371_vm1, %v11778_v21, 0.0  ;;  %8194 = vrcp.f32 %v5983_v4  ;;  %v8193_v11 = vpop.eup %8192 }
 0xcb0   : > { %v6091_v5 = vpack.c.bf16 %v6059_v47, %v6059_v47  ;;  %v6060_v19 = vmul.f32 %v8193_v11, %v12541_v59  ;;  %v12548_v59 = vld [vmem:[#allocation108_spill] sm:$0xff] }
 0xcb2   : > { %v6332_v49 = vunpack.c.l.b16 %v6091_v5  ;;  %v6092_v42 = vpack.c.bf16 %v6060_v19, %v6060_v19  ;;  %v5046_v19 = vpack.c.bf16 %v12548_v59, %v12548_v59 }
 0xcb3   : > { %5134 = vrot.lane.b32.xlu2 %v5049_v25, %s8225_s15 }
 0xcb4   : > { %v6333_v63 = vpack.c.b16 %v6332_v49, %v6331_v31  ;;  %5144 = vrot.lane.b32.xlu0 %v5054_v48, %s8225_s15  ;;  %v6356_v51 = vunpack.c.l.b16 %v6092_v42 }
 0xcb5   : > { %v8195_v57 = vpop.eup %8194 }
 0xcb6   : > { %v6001_v13 = vpop.xlane.xlu2 %6000  ;;  %7402 = vmatmul.msk.bf16.vlgmr.msrb.gmra.mxu3 %vm1371_vm1, %v6333_v63  ;;  %v6063_v30 = vmul.f32 %v8195_v57, %v11651_v34 }
 0xcb8   : > { %v6095_v41 = vpack.c.bf16 %v6063_v30, %v6063_v30 }
 0xcb9   : > { %6006 = vadd.xlane.f32.xlu1 %v6005_v44 }
 0xcba   : > { %v6382_v0 = vunpack.c.l.b16 %v6095_v41 }
 0xcbc   : > { %5108 = vrot.lane.b32.xlu0 %v5036_v15, %s8225_s15 }
 0xcbe   : > { %v6385_v53 = vpop.permute.xlu2 %6384 }
 0xcbf   : > { %6397 = vmatpush.bf16.msrb.mxu1 %v6385_v53 }
 0xcc0   : > { %v6124_v28 = vpop.f32.mrf.mxu2 }
 0xcc1   : > { %v6504_v26 = vpack.c.bf16 %v6124_v28, %v6124_v28 }
 0xcc4   : > { %5148 = vrot.lane.b32.xlu0 %v5056_v46, %s8225_s15  ;;  %v5035_v46 = vpack.c.bf16 %v12547_v58, %v12547_v58 }
 0xcc9   : > { %v5977_v52 = vpop.xlane.xlu1 %5976 }
 0xcca   : > { %8196 = vrcp.f32 %v5977_v52 }
 0xccb   : > { %8198 = vrcp.f32 %v11722_v17  ;;  %v5980_v38 = vpop.xlane.xlu0 %5979  ;;  %v12543_v17 = vld [vmem:[#allocation89_spill] sm:$0xff] }
 0xccc   : > { %8200 = vrcp.f32 %v5980_v38  ;;  %6568 = vrot.lane.b32.xlu0 %v6504_v26, %s8226_s16  ;;  %v5038_v20 = vpack.c.bf16 %v12543_v17, %v12543_v17 }
 0xcd0   : > { %v8197_v8 = vpop.eup %8196 }
 0xcd1   : > { %v8199_v18 = vpop.eup %8198  ;;  %v6061_v22 = vmul.f32 %v8197_v8, %v11667_v36  ;;  %v5989_v61 = vpop.xlane.xlu1 %5988 }
 0xcd2   : > { %v8201_v32 = vpop.eup %8200  ;;  %8202 = vrcp.f32 %v5989_v61  ;;  %5102 = vrot.lane.b32.xlu1 %v5033_v33, %s8225_s15  ;;  %v6064_v23 = vmul.f32 %v8199_v18, %v12544_v2  ;;  %v12549_v33 = vld [vmem:[#allocation120_spill] sm:$0xff] }
 0xcd3   : > { %v6093_v24 = vpack.c.bf16 %v6061_v22, %v6061_v22  ;;  %v6062_v34 = vmul.f32 %v8201_v32, %v11669_v12  ;;  %8204 = vrcp.f32 %v6001_v13  ;;  %v5995_v12 = vpop.xlane.xlu0 %5994  ;;  %v5055_v18 = vpack.c.bf16 %v12549_v33, %v12549_v33  ;;  %v7572_v33 = vld [vmem:[%s12068_s3 + $0x38] sm:$0xff] }
 0xcd4   : > { %5112 = vrot.lane.b32.xlu0 %v5038_v20, %s8225_s15  ;;  %v6096_v45 = vpack.c.bf16 %v6064_v23, %v6064_v23  ;;  %v12550_v20 = vld [vmem:[#allocation83_spill] sm:$0xff]  ;;  %7676 = vmatpush.bf16.msra.mxu2 %v7572_v33 }
 0xcd5   : > { %v6357_v16 = vunpack.c.l.b16 %v6093_v24  ;;  %v6094_v36 = vpack.c.bf16 %v6062_v34, %v6062_v34  ;;  %v5037_v41 = vpack.c.bf16 %v12550_v20, %v12550_v20  ;;  %v6126_v24 = vpop.f32.mrf.mxu2  ;;  %7677 = vmatpush.bf16.msrb.mxu3 %v7572_v33 }
 0xcd6   : > { %v6406_v6 = vunpack.c.l.b16 %v6096_v45 }
 0xcd7   : > { %v6358_v39 = vpack.c.b16 %v6357_v16, %v6356_v51  ;;  %v6381_v62 = vunpack.c.l.b16 %v6094_v36  ;;  %v12551_v16 = vld [vmem:[#allocation139_spill] sm:$0xff] }
 0xcd8   : > { %v8203_v10 = vpop.eup %8202  ;;  %v5048_v36 = vpack.c.bf16 %v12551_v16, %v12551_v16 }
 0xcd9   : > { %v6383_v35 = vpack.c.b16 %v6382_v0, %v6381_v62  ;;  %v6065_v43 = vmul.f32 %v8203_v10, %v11677_v37  ;;  %v5998_v55 = vpop.xlane.xlu1 %5997  ;;  %7403 = vmatmul.msk.bf16.vlgmr.msra.gmra.mxu0 %vm1371_vm1, %v6358_v39  ;;  %v8205_v14 = vpop.eup %8204  ;;  %v5053_v37 = vpack.c.bf16 %v12546_v3, %v12546_v3 }
 0xcda   : > { %8206 = vrcp.f32 %v5998_v55  ;;  %5124 = vrot.lane.b32.xlu1 %v5044_v9, %s8225_s15  ;;  %v6069_v4 = vmul.f32 %v8205_v14, %v11657_v54 }
 0xcdb   : > { %v6097_v27 = vpack.c.bf16 %v6065_v43, %v6065_v43  ;;  %7404 = vmatmul.msk.bf16.vlgmr.msrb.gmra.mxu1 %vm1371_vm1, %v6383_v35  ;;  %8208 = vrcp.f32 %v5995_v12  ;;  %v6505_v35 = vpack.c.bf16 %v6126_v24, %v6126_v24  ;;  %v7569_v24 = vld [vmem:[%s12068_s3 + $0x20] sm:$0xff] }
 0xcdc   : > { %v6101_v63 = vpack.c.bf16 %v6069_v4, %v6069_v4 }
 0xcdd   : > { %v6407_v47 = vunpack.c.l.b16 %v6097_v27 }
 0xcde   : > { %v6457_v54 = vunpack.c.l.b16 %v6101_v63 }
 0xcdf   : > { %v6408_v5 = vpack.c.b16 %v6407_v47, %v6406_v6  ;;  %v12552_v47 = vld [vmem:[#allocation147_spill] sm:$0xff] }
 0xce0   : > { %v8207_v25 = vpop.eup %8206  ;;  %v5057_v4 = vpack.c.bf16 %v12552_v47, %v12552_v47 }
 0xce1   : > { %v6068_v48 = vmul.f32 %v8207_v25, %v11689_v50  ;;  %v5992_v31 = vpop.xlane.xlu1 %5991  ;;  %7405 = vmatmul.msk.bf16.vlgmr.msrb.gmra.mxu2 %vm1371_vm1, %v6408_v5  ;;  %v8209_v49 = vpop.eup %8208 }
 0xce2   : > { %8210 = vrcp.f32 %v5992_v31  ;;  %5142 = vrot.lane.b32.xlu1 %v5053_v37, %s8225_s15  ;;  %v6067_v44 = vmul.f32 %v8209_v49, %v11681_v56 }
 0xce3   : > { %v6100_v13 = vpack.c.bf16 %v6068_v48, %v6068_v48 }
 0xce4   : > { %v6099_v28 = vpack.c.bf16 %v6067_v44, %v6067_v44 }
 0xce5   : > { %v6456_v1 = vunpack.c.l.b16 %v6100_v13 }
 0xce6   : > { %v6460_v15 = vpop.permute.xlu0 %6459  ;;  %v6432_v26 = vunpack.c.l.b16 %v6099_v28 }
 0xce7   : > { %6472 = vmatpush.bf16.msrb.mxu0 %v6460_v15  ;;  %v6458_v50 = vpack.c.b16 %v6457_v54, %v6456_v1 }
 0xce8   : > { %v8211_v53 = vpop.eup %8210 }
 0xce9   : > { %v6066_v52 = vmul.f32 %v8211_v53, %v11694_v29 }
 0xcea   : > { %5106 = vrot.lane.b32.xlu1 %v5035_v46, %s8225_s15  ;;  %7407 = vmatmul.msk.bf16.vlgmr.msrb.gmra.mxu0 %vm1371_vm1, %v6458_v50  ;;  %v12553_v46 = vld [vmem:[#allocation97_spill] sm:$0xff] }
 0xceb   : > { %v6098_v11 = vpack.c.bf16 %v6066_v52, %v6066_v52  ;;  %v5039_v50 = vpack.c.bf16 %v12553_v46, %v12553_v46  ;;  %6893 = vmatpush.bf16.msra.mxu0 %v7572_v33  ;;  %v12559_v33 = vld [vmem:[#allocation153_spill] sm:$0xff] }
 0xced   : > { %v6431_v56 = vunpack.c.l.b16 %v6098_v11 }
 0xcee   : > { %v5093_v38 = vpop.permute.xlu0 %5092 }
 0xcef   : > { %v6433_v57 = vpack.c.b16 %v6432_v26, %v6431_v56  ;;  %5189 = vst.msk [vmem:[#allocation2] sm:$0xf] %vm5188_vm4, %v5093_v38 }
 0xcf1   : > { %7406 = vmatmul.msk.bf16.vlgmr.msra.gmra.mxu3 %vm1371_vm1, %v6433_v57  ;;  %v6174_v29 = vpop.f32.mrf.mxu0 }
 0xcf2   : > { %5128 = vrot.lane.b32.xlu1 %v5046_v19, %s8225_s15  ;;  %v6508_v30 = vpack.c.bf16 %v6174_v29, %v6174_v29 }
 0xcf4   : > { %6576 = vrot.lane.b32.xlu2 %v6508_v30, %s8226_s16 }
 0xcf6   : > { %v5095_v8 = vpop.permute.xlu0 %5094  ;;  %v11826_v40 = vpop.xlane.xlu2 %6003 }
 0xcf7   : > { %5190 = vst.msk [vmem:[#allocation2 + $0x4] sm:$0xf] %vm5188_vm4, %v5095_v8  ;;  %8212 = vrcp.f32 %v11826_v40 }
 0xcf9   : > { %v6485_v42 = vpop.permute.xlu1 %6484  ;;  %v6176_v22 = vpop.f32.mrf.mxu0 }
 0xcfa   : > { %5146 = vrot.lane.b32.xlu1 %v5055_v18, %s8225_s15  ;;  %6497 = vmatpush.bf16.msra.mxu1 %v6485_v42  ;;  %v6509_v61 = vpack.c.bf16 %v6176_v22, %v6176_v22  ;;  %v7571_v22 = vld [vmem:[%s12068_s3 + $0x30] sm:$0xff] }
 0xcfb   : > { %6894 = vmatpush.bf16.msra.mxu0 %v7571_v22  ;;  %7678 = vmatpush.bf16.msra.mxu2 %v7571_v22 }
 0xcfc   : > { %6578 = vrot.lane.b32.xlu0 %v6509_v61, %s8226_s16  ;;  %7679 = vmatpush.bf16.msrb.mxu3 %v7571_v22 }
 0xcfd   : > { %v8213_v53 = vpop.eup %8212 }
 0xcfe   : > { %v5099_v32 = vpop.permute.xlu0 %5098  ;;  %v5097_v17 = vpop.permute.xlu2 %5096  ;;  %v6070_v28 = vmul.f32 %v8213_v53, %v11712_v7 }
 0xcff   : > { %5192 = vst.msk [vmem:[#allocation2 + $0xc] sm:$0xf] %vm5188_vm4, %v5099_v32 }
 0xd00   : > { %5191 = vst.msk [vmem:[#allocation2 + $0x8] sm:$0xf] %vm5188_vm4, %v5097_v17  ;;  %v6149_v2 = vpop.f32.mrf.mxu3  ;;  %v6102_v11 = vpack.c.bf16 %v6070_v28, %v6070_v28  ;;  %v7570_v17 = vld [vmem:[%s12068_s3 + $0x28] sm:$0xff] }
 0xd01   : > { %v5121_v34 = vpop.permute.xlu1 %5120  ;;  %v6506_v48 = vpack.c.bf16 %v6149_v2, %v6149_v2  ;;  %6895 = vmatpush.bf16.msra.mxu0 %v7570_v17  ;;  %7680 = vmatpush.bf16.msra.mxu2 %v7570_v17 }
 0xd02   : > { %5203 = vst.msk [vmem:[#allocation2 + $0x38] sm:$0xf] %vm5188_vm4, %v5121_v34  ;;  %5110 = vrot.lane.b32.xlu1 %v5037_v41, %s8225_s15  ;;  %v6481_v57 = vunpack.c.l.b16 %v6102_v11  ;;  %7681 = vmatpush.bf16.msrb.mxu3 %v7570_v17 }
 0xd05   : > { %6896 = vmatpush.bf16.msra.mxu0 %v7569_v24  ;;  %7682 = vmatpush.bf16.msra.mxu2 %v7569_v24 }
 0xd06   : > { %v5123_v23 = vpop.permute.xlu0 %5122  ;;  %v5127_v51 = vpop.permute.xlu2 %5126  ;;  %7683 = vmatpush.bf16.msrb.mxu3 %v7569_v24 }
 0xd07   : > { %5204 = vst.msk [vmem:[#allocation2 + $0x3c] sm:$0xf] %vm5188_vm4, %v5123_v23 }
 0xd08   : > { %5206 = vst.msk [vmem:[#allocation2 + $0x44] sm:$0xf] %vm5188_vm4, %v5127_v51  ;;  %v6224_v0 = vpop.f32.mrf.mxu2  ;;  %v6151_v39 = vpop.f32.mrf.mxu3  ;;  %v7568_v51 = vld [vmem:[%s12068_s3 + $0x18] sm:$0xff] }
 0xd09   : > { %v6512_v62 = vpack.c.bf16 %v6224_v0, %v6224_v0  ;;  %v6507_v10 = vpack.c.bf16 %v6151_v39, %v6151_v39  ;;  %6897 = vmatpush.bf16.msra.mxu0 %v7568_v51  ;;  %7684 = vmatpush.bf16.msra.mxu2 %v7568_v51  ;;  %v7567_v0 = vld [vmem:[%s12068_s3 + $0x10] sm:$0xff] }
 0xd0a   : > { %5132 = vrot.lane.b32.xlu1 %v5048_v36, %s8225_s15  ;;  %7685 = vmatpush.bf16.msrb.mxu3 %v7568_v51 }
 0xd0b   : > { %6584 = vrot.lane.b32.xlu2 %v6512_v62, %s8226_s16  ;;  %6574 = vrot.lane.b32.xlu0 %v6507_v10, %s8226_s16 }
 0xd0c   : > { %v6199_v60 = vpop.f32.mrf.mxu1 }
 0xd0d   : > { %v6510_v12 = vpack.c.bf16 %v6199_v60, %v6199_v60  ;;  %6898 = vmatpush.bf16.msra.mxu0 %v7567_v0  ;;  %7686 = vmatpush.bf16.msra.mxu2 %v7567_v0 }
 0xd0e   : > { %v5101_v9 = vpop.permute.xlu0 %5100  ;;  %v5131_v45 = vpop.permute.xlu2 %5130  ;;  %7687 = vmatpush.bf16.msrb.mxu3 %v7567_v0 }
 0xd0f   : > { %5193 = vst.msk [vmem:[#allocation2 + $0x10] sm:$0xf] %vm5188_vm4, %v5101_v9 }
 0xd10   : > { %5208 = vst.msk [vmem:[#allocation2 + $0x4c] sm:$0xf] %vm5188_vm4, %v5131_v45  ;;  %v6226_v43 = vpop.f32.mrf.mxu2  ;;  %v7566_v45 = vld [vmem:[%s12068_s3 + $0x8] sm:$0xff] }
 0xd11   : > { %v6513_v55 = vpack.c.bf16 %v6226_v43, %v6226_v43  ;;  %6899 = vmatpush.bf16.msra.mxu0 %v7566_v45  ;;  %7688 = vmatpush.bf16.msra.mxu2 %v7566_v45 }
 0xd12   : > { %6570 = vrot.lane.b32.xlu1 %v6505_v35, %s8226_s16  ;;  %7689 = vmatpush.bf16.msrb.mxu3 %v7566_v45 }
 0xd13   : > { %6580 = vrot.lane.b32.xlu2 %v6510_v12, %s8226_s16  ;;  %6586 = vrot.lane.b32.xlu0 %v6513_v55, %s8226_s16  ;;  %v11874_v7 = vpop.f32.mrf.mxu0  ;;  %v7565_v55 = vld [vmem:[%s12068_s3] sm:$0xff] }
 0xd14   : > { %v6201_v27 = vpop.f32.mrf.mxu1 }
 0xd15   : > { %v6511_v3 = vpack.c.bf16 %v6201_v27, %v6201_v27  ;;  %6900 = vmatpush.bf16.msra.mxu0 %v7565_v55  ;;  %7690 = vmatpush.bf16.msra.mxu2 %v7565_v55 }
 0xd16   : > { %v5141_v14 = vpop.permute.xlu0 %5140  ;;  %v5135_v6 = vpop.permute.xlu2 %5134  ;;  %7691 = vmatpush.bf16.msrb.mxu3 %v7565_v55 }
 0xd17   : > { %5213 = vst.msk [vmem:[#allocation2 + $0x60] sm:$0xf] %vm5188_vm4, %v5141_v14 }
 0xd18   : > { %5210 = vst.msk [vmem:[#allocation2 + $0x54] sm:$0xf] %vm5188_vm4, %v5135_v6  ;;  %v6324_v5 = vpop.f32.mrf.mxu2 }
 0xd19   : > { %v6520_v25 = vpack.c.bf16 %v6324_v5, %v6324_v5 }
 0xd1a   : > { %5150 = vrot.lane.b32.xlu1 %v5057_v4, %s8225_s15 }
 0xd1b   : > { %6600 = vrot.lane.b32.xlu2 %v6520_v25, %s8226_s16  ;;  %6582 = vrot.lane.b32.xlu0 %v6511_v3, %s8226_s16  ;;  %v11879_v40 = vpop.f32.mrf.mxu0 }
 0xd1e   : > { %v5105_v37 = vpop.permute.xlu0 %5104 }
 0xd1f   : > { %5195 = vst.msk [vmem:[#allocation2 + $0x18] sm:$0xf] %vm5188_vm4, %v5105_v37 }
 0xd20   : > { %v6326_v31 = vpop.f32.mrf.mxu2 }
 0xd21   : > { %v6249_v49 = vpop.f32.mrf.mxu3  ;;  %v6521_v63 = vpack.c.bf16 %v6326_v31, %v6326_v31 }
 0xd22   : > { %v6514_v13 = vpack.c.bf16 %v6249_v49, %v6249_v49  ;;  %6572 = vrot.lane.b32.xlu1 %v6506_v48, %s8226_s16 }
 0xd23   : > { %6602 = vrot.lane.b32.xlu0 %v6521_v63, %s8226_s16  ;;  %v6299_v44 = vpop.f32.mrf.mxu1  ;;  %v12554_v63 = vld [vmem:[#allocation61_spill] sm:$0xff] }
 0xd24   : > { %6588 = vrot.lane.b32.xlu2 %v6514_v13, %s8226_s16  ;;  %v6518_v54 = vpack.c.bf16 %v6299_v44, %v6299_v44  ;;  %v5050_v13 = vpack.c.bf16 %v12554_v63, %v12554_v63 }
 0xd26   : > { %v5145_v1 = vpop.permute.xlu0 %5144 }
 0xd27   : > { %5215 = vst.msk [vmem:[#allocation2 + $0x68] sm:$0xf] %vm5188_vm4, %v5145_v1 }
 0xd29   : > { %v11885_v42 = vpop.f32.mrf.mxu3 }
 0xd2a   : > { %6596 = vrot.lane.b32.xlu1 %v6518_v54, %s8226_s16  ;;  %v6515_v4 = vpack.c.bf16 %v11885_v42, %v11885_v42 }
 0xd2b   : > { %v6301_v34 = vpop.f32.mrf.mxu1 }
 0xd2c   : > { %v6007_v15 = vpop.xlane.xlu1 %6006  ;;  %v6519_v16 = vpack.c.bf16 %v6301_v34, %v6301_v34 }
 0xd2d   : > { %8214 = vrcp.f32 %v6007_v15  ;;  %v12555_v15 = vld [vmem:[#allocation12_spill] sm:$0xff] }
 0xd2e   : > { %v5109_v58 = vpop.permute.xlu0 %5108  ;;  %v3582_v53 = vpack.c.bf16 %v12555_v15, %v12555_v15 }
 0xd2f   : > { %5197 = vst.msk [vmem:[#allocation2 + $0x20] sm:$0xf] %vm5188_vm4, %v5109_v58 }
 0xd32   : > { %5114 = vrot.lane.b32.xlu1 %v5039_v50, %s8225_s15  ;;  %v12556_v50 = vld [vmem:[#allocation162_spill] sm:$0xff] }
 0xd33   : > { %v8215_v52 = vpop.eup %8214  ;;  %v5059_v28 = vpack.c.bf16 %v12556_v50, %v12556_v50 }
 0xd34   : > { %v6071_v26 = vmul.f32 %v8215_v52, %v11778_v21 }
 0xd36   : > { %v6103_v56 = vpack.c.bf16 %v6071_v26, %v6071_v26  ;;  %v5149_v38 = vpop.permute.xlu0 %5148  ;;  %v12557_v26 = vld [vmem:[#allocation144_spill] sm:$0xff] }
 0xd37   : > { %5217 = vst.msk [vmem:[#allocation2 + $0x70] sm:$0xf] %vm5188_vm4, %v5149_v38 }
 0xd38   : > { %v6482_v59 = vunpack.c.l.b16 %v6103_v56  ;;  %v5051_v56 = vpack.c.bf16 %v12557_v26, %v12557_v26 }
 0xd39   : > { %v6349_v41 = vpop.f32.mrf.mxu3 }
 0xd3a   : > { %v6483_v19 = vpack.c.b16 %v6482_v59, %v6481_v57  ;;  %v6522_v35 = vpack.c.bf16 %v6349_v41, %v6349_v41  ;;  %v12558_v57 = vld [vmem:[#allocation74_spill] sm:$0xff]  ;;  %v12560_v41 = vld [vmem:[#allocation129_spill] sm:$0xff] }
 0xd3b   : > { %v3583_v59 = vpack.c.bf16 %v12558_v57, %v12558_v57  ;;  %v5040_v24 = vpack.c.bf16 %v12560_v41, %v12560_v41 }
 0xd3c   : > { %7408 = vmatmul.msk.bf16.vlgmr.msra.gmra.mxu1 %vm1371_vm1, %v6483_v19 }
 0xd3e   : > { %v6569_v29 = vpop.permute.xlu0 %6568 }
 0xd3f   : > { %6665 = vst.msk [vmem:[#allocation2] sm:$0xf] %vm6664_vm5, %v6569_v29 }
 0xd41   : > { %v6351_v39 = vpop.f32.mrf.mxu3 }
 0xd42   : > { %v6523_v43 = vpack.c.bf16 %v6351_v39, %v6351_v39 }
 0xd44   : > { %v5103_v30 = vpop.permute.xlu1 %5102 }
 0xd45   : > { %5194 = vst.msk [vmem:[#allocation2 + $0x14] sm:$0xf] %vm5188_vm4, %v5103_v30 }
 0xd46   : > { %v5113_v8 = vpop.permute.xlu0 %5112 }
 0xd47   : > { %5199 = vst.msk [vmem:[#allocation2 + $0x28] sm:$0xf] %vm5188_vm4, %v5113_v8 }
 0xd4c   : > { %v5125_v21 = vpop.permute.xlu1 %5124 }
 0xd4d   : > { %5205 = vst.msk [vmem:[#allocation2 + $0x40] sm:$0xf] %vm5188_vm4, %v5125_v21 }
 0xd4e   : > { %v6577_v18 = vpop.permute.xlu2 %6576 }
 0xd4f   : > { %6669 = vst.msk [vmem:[#allocation2 + $0x10] sm:$0xf] %vm6664_vm5, %v6577_v18  ;;  %v5058_v18 = vpack.c.bf16 %v12559_v33, %v12559_v33 }
 0xd54   : > { %v5143_v61 = vpop.permute.xlu1 %5142 }
 0xd55   : > { %5214 = vst.msk [vmem:[#allocation2 + $0x64] sm:$0xf] %vm5188_vm4, %v5143_v61 }
 0xd56   : > { %v6374_v32 = vpop.f32.mrf.mxu0 }
 0xd57   : > { %v6524_v20 = vpack.c.bf16 %v6374_v32, %v6374_v32 }
 0xd58   : > { %v6399_v19 = vpop.f32.mrf.mxu1 }
 0xd59   : > { %6608 = vrot.lane.b32.xlu2 %v6524_v20, %s8226_s16  ;;  %v6526_v8 = vpack.c.bf16 %v6399_v19, %v6399_v19 }
 0xd5c   : > { %v5107_v2 = vpop.permute.xlu1 %5106 }
 0xd5d   : > { %5196 = vst.msk [vmem:[#allocation2 + $0x1c] sm:$0xf] %vm5188_vm4, %v5107_v2  ;;  %v6517_v2 = vpack.c.bf16 %v11879_v40, %v11879_v40 }
 0xd5e   : > { %v6376_v23 = vpop.f32.mrf.mxu0 }
 0xd5f   : > { %v6525_v36 = vpack.c.bf16 %v6376_v23, %v6376_v23 }
 0xd60   : > { %v6401_v42 = vpop.f32.mrf.mxu1 }
 0xd61   : > { %6610 = vrot.lane.b32.xlu0 %v6525_v36, %s8226_s16  ;;  %6598 = vrot.lane.b32.xlu2 %v6519_v16, %s8226_s16  ;;  %v6527_v32 = vpack.c.bf16 %v6401_v42, %v6401_v42 }
 0xd64   : > { %v5129_v62 = vpop.permute.xlu1 %5128  ;;  %v6424_v10 = vpop.f32.mrf.mxu2 }
 0xd65   : > { %5207 = vst.msk [vmem:[#allocation2 + $0x48] sm:$0xf] %vm5188_vm4, %v5129_v62  ;;  %v6528_v60 = vpack.c.bf16 %v6424_v10, %v6424_v10  ;;  %v6585_v9 = vpop.permute.xlu2 %6584  ;;  %v12561_v10 = vld [vmem:[#allocation141_spill] sm:$0xff] }
 0xd66   : > { %6673 = vst.msk [vmem:[#allocation2 + $0x20] sm:$0xf] %vm6664_vm5, %v6585_v9  ;;  %v5041_v40 = vpack.c.bf16 %v12561_v10, %v12561_v10 }
 0xd67   : > { %6616 = vrot.lane.b32.xlu1 %v6528_v60, %s8226_s16  ;;  %v6474_v12 = vpop.f32.mrf.mxu0 }
 0xd68   : > { %v6532_v6 = vpack.c.bf16 %v6474_v12, %v6474_v12 }
 0xd69   : > { %6606 = vrot.lane.b32.xlu0 %v6523_v43, %s8226_s16  ;;  %6604 = vrot.lane.b32.xlu2 %v6522_v35, %s8226_s16  ;;  %v6516_v35 = vpack.c.bf16 %v11874_v7, %v11874_v7 }
 0xd6c   : > { %v5147_v14 = vpop.permute.xlu1 %5146  ;;  %v6426_v27 = vpop.f32.mrf.mxu2 }
 0xd6d   : > { %5216 = vst.msk [vmem:[#allocation2 + $0x6c] sm:$0xf] %vm5188_vm4, %v5147_v14  ;;  %v6581_v47 = vpop.permute.xlu2 %6580  ;;  %v6529_v5 = vpack.c.bf16 %v6426_v27, %v6426_v27 }
 0xd6e   : > { %6671 = vst.msk [vmem:[#allocation2 + $0x18] sm:$0xf] %vm6664_vm5, %v6581_v47  ;;  %v6579_v25 = vpop.permute.xlu0 %6578 }
 0xd6f   : > { %6624 = vrot.lane.b32.xlu1 %v6532_v6, %s8226_s16  ;;  %6670 = vst.msk [vmem:[#allocation2 + $0x14] sm:$0xf] %vm6664_vm5, %v6579_v25  ;;  %v6476_v3 = vpop.f32.mrf.mxu0 }
 0xd70   : > { %v6533_v44 = vpack.c.bf16 %v6476_v3, %v6476_v3 }
 0xd71   : > { %6590 = vrot.lane.b32.xlu0 %v6515_v4, %s8226_s16  ;;  %6618 = vrot.lane.b32.xlu2 %v6529_v5, %s8226_s16 }
 0xd74   : > { %v5111_v37 = vpop.permute.xlu1 %5110  ;;  %v6449_v48 = vpop.f32.mrf.mxu3 }
 0xd75   : > { %5198 = vst.msk [vmem:[#allocation2 + $0x24] sm:$0xf] %vm5188_vm4, %v5111_v37  ;;  %v6530_v31 = vpack.c.bf16 %v6449_v48, %v6449_v48  ;;  %v6601_v49 = vpop.permute.xlu2 %6600 }
 0xd76   : > { %6681 = vst.msk [vmem:[#allocation2 + $0x40] sm:$0xf] %vm6664_vm5, %v6601_v49  ;;  %v7551_v23 = vld [vmem:[#allocation2 + $0x10] sm:$0xff] }
 0xd77   : > { %6620 = vrot.lane.b32.xlu1 %v6530_v31, %s8226_s16 }
 0xd79   : > { %5136 = vrot.lane.b32.xlu0 %v5050_v13, %s8225_s15  ;;  %6626 = vrot.lane.b32.xlu2 %v6533_v44, %s8226_s16 }
 0xd7c   : > { %v5133_v1 = vpop.permute.xlu1 %5132  ;;  %v6451_v54 = vpop.f32.mrf.mxu3 }
 0xd7d   : > { %5209 = vst.msk [vmem:[#allocation2 + $0x50] sm:$0xf] %vm5188_vm4, %v5133_v1  ;;  %v6575_v46 = vpop.permute.xlu0 %6574  ;;  %v6531_v52 = vpack.c.bf16 %v6451_v54, %v6451_v54 }
 0xd7e   : > { %v6589_v58 = vpop.permute.xlu2 %6588  ;;  %6668 = vst.msk [vmem:[#allocation2 + $0xc] sm:$0xf] %vm6664_vm5, %v6575_v46 }
 0xd7f   : > { %6675 = vst.msk [vmem:[#allocation2 + $0x28] sm:$0xf] %vm6664_vm5, %v6589_v58  ;;  %3676 = vrot.lane.b32.xlu1 %v3582_v53, %s8227_s19 }
 0xd81   : > { %5154 = vrot.lane.b32.xlu0 %v5059_v28, %s8225_s15  ;;  %6622 = vrot.lane.b32.xlu2 %v6531_v52, %s8226_s16 }
 0xd84   : > { %v6571_v11 = vpop.permute.xlu1 %6570 }
 0xd85   : > { %6666 = vst.msk [vmem:[#allocation2 + $0x4] sm:$0xf] %vm6664_vm5, %v6571_v11  ;;  %v6587_v38 = vpop.permute.xlu0 %6586  ;;  %v12000_v11 = vld [vmem:[%s12069_s4] ss:$0 sm:$0xff] }
 0xd86   : > { %6674 = vst.msk [vmem:[#allocation2 + $0x24] sm:$0xf] %vm6664_vm5, %v6587_v38 }
 0xd87   : > { %5138 = vrot.lane.b32.xlu1 %v5051_v56, %s8225_s15 }
 0xd89   : > { %3678 = vrot.lane.b32.xlu2 %v3583_v59, %s8227_s19 }
 0xd8c   : > { %v5151_v29 = vpop.permute.xlu1 %5150  ;;  %v7549_v30 = vld [vmem:[#allocation2] sm:$0xff] }
 0xd8d   : > { %5218 = vst.msk [vmem:[#allocation2 + $0x74] sm:$0xf] %vm5188_vm4, %v5151_v29  ;;  %v6583_v21 = vpop.permute.xlu0 %6582  ;;  %6901 = vmatmul.bf16.vlgmr.msra.gmra.mxu0 %v7549_v30  ;;  %v7553_v12 = vld [vmem:[#allocation2 + $0x20] sm:$0xff] }
 0xd8e   : > { %6672 = vst.msk [vmem:[#allocation2 + $0x1c] sm:$0xf] %vm6664_vm5, %v6583_v21 }
 0xd8f   : > { %6612 = vrot.lane.b32.xlu1 %v6526_v8, %s8226_s16 }
 0xd91   : > { %5152 = vrot.lane.b32.xlu2 %v5058_v18, %s8225_s15 }
 0xd94   : > { %v6573_v22 = vpop.permute.xlu1 %6572 }
 0xd95   : > { %6667 = vst.msk [vmem:[#allocation2 + $0x8] sm:$0xf] %vm6664_vm5, %v6573_v22  ;;  %v6603_v61 = vpop.permute.xlu0 %6602  ;;  %v7552_v39 = vld [vmem:[#allocation2 + $0x18] sm:$0xff] }
 0xd96   : > { %6682 = vst.msk [vmem:[#allocation2 + $0x44] sm:$0xf] %vm6664_vm5, %v6603_v61 }
 0xd99   : > { %6614 = vrot.lane.b32.xlu2 %v6527_v32, %s8226_s16 }
 0xd9c   : > { %v6597_v17 = vpop.permute.xlu1 %6596  ;;  %v7550_v20 = vld [vmem:[#allocation2 + $0x8] sm:$0xff] }
 0xd9d   : > { %6679 = vst.msk [vmem:[#allocation2 + $0x38] sm:$0xf] %vm6664_vm5, %v6597_v17  ;;  %6906 = vmatmul.bf16.gmra.mxu0 %v7550_v20  ;;  %v7557_v27 = vld [vmem:[#allocation2 + $0x40] sm:$0xff] }
 0xda1   : > { %5116 = vrot.lane.b32.xlu2 %v5040_v24, %s8225_s15 }
 0xda4   : > { %v5115_v34 = vpop.permute.xlu1 %5114 }
 0xda5   : > { %5200 = vst.msk [vmem:[#allocation2 + $0x2c] sm:$0xf] %vm5188_vm4, %v5115_v34 }
 0xda9   : > { %6594 = vrot.lane.b32.xlu2 %v6517_v2, %s8226_s16 }
 0xdad   : > { %6911 = vmatmul.bf16.gmra.mxu0 %v7551_v23 }
 0xdb3   : > { %v6609_v51 = vpop.permute.xlu2 %6608 }
 0xdb4   : > { %6685 = vst.msk [vmem:[#allocation2 + $0x50] sm:$0xf] %vm6664_vm5, %v6609_v51 }
 0xdb9   : > { %v6499_v16 = vpop.f32.mrf.mxu1 }
 0xdba   : > { %v6534_v36 = vpack.c.bf16 %v6499_v16, %v6499_v16 }
 0xdbb   : > { %v6599_v0 = vpop.permute.xlu2 %6598 }
 0xdbc   : > { %6680 = vst.msk [vmem:[#allocation2 + $0x3c] sm:$0xf] %vm6664_vm5, %v6599_v0  ;;  %6628 = vrot.lane.b32.xlu0 %v6534_v36, %s8226_s16 }
 0xdbd   : > { %6916 = vmatmul.bf16.gmra.mxu0 %v7552_v39 }
 0xdc1   : > { %v6501_v62 = vpop.f32.mrf.mxu1 }
 0xdc2   : > { %v6535_v60 = vpack.c.bf16 %v6501_v62, %v6501_v62 }
 0xdc3   : > { %v6605_v9 = vpop.permute.xlu2 %6604  ;;  %v7556_v45 = vld [vmem:[#allocation2 + $0x38] sm:$0xff] }
 0xdc4   : > { %6683 = vst.msk [vmem:[#allocation2 + $0x48] sm:$0xf] %vm6664_vm5, %v6605_v9  ;;  %5118 = vrot.lane.b32.xlu0 %v5041_v40, %s8225_s15  ;;  %6630 = vrot.lane.b32.xlu1 %v6535_v60, %s8226_s16 }
 0xdc5   : > { %6936 = vmatmul.bf16.vlgmr.msra.gmra.mxu2 %v7556_v45 }
 0xdcb   : > { %v6619_v43 = vpop.permute.xlu2 %6618 }
 0xdcc   : > { %6690 = vst.msk [vmem:[#allocation2 + $0x64] sm:$0xf] %vm6664_vm5, %v6619_v43  ;;  %6592 = vrot.lane.b32.xlu1 %v6516_v35, %s8226_s16 }
 0xdcd   : > { %6921 = vmatmul.bf16.gmra.mxu0 %v7553_v12 }
 0xdd3   : > { %v6627_v55 = vpop.permute.xlu2 %6626  ;;  %v6611_v14 = vpop.permute.xlu0 %6610 }
 0xdd4   : > { %6694 = vst.msk [vmem:[#allocation2 + $0x74] sm:$0xf] %vm6664_vm5, %v6627_v55 }
 0xdd5   : > { %6686 = vst.msk [vmem:[#allocation2 + $0x54] sm:$0xf] %vm6664_vm5, %v6611_v14  ;;  %6941 = vmatmul.bf16.gmra.mxu2 %v7557_v27 }
 0xdd9   : > { %v6617_v6 = vpop.permute.xlu1 %6616 }
 0xdda   : > { %6689 = vst.msk [vmem:[#allocation2 + $0x60] sm:$0xf] %vm6664_vm5, %v6617_v6 }
 0xddb   : > { %v6623_v47 = vpop.permute.xlu2 %6622  ;;  %v6607_v7 = vpop.permute.xlu0 %6606 }
 0xddc   : > { %6692 = vst.msk [vmem:[#allocation2 + $0x6c] sm:$0xf] %vm6664_vm5, %v6623_v47  ;;  %v7559_v15 = vld [vmem:[#allocation2 + $0x50] sm:$0xff] }
 0xddd   : > { %6684 = vst.msk [vmem:[#allocation2 + $0x4c] sm:$0xf] %vm6664_vm5, %v6607_v7 }
 0xde1   : > { %v6625_v4 = vpop.permute.xlu1 %6624  ;;  %v7561_v5 = vld [vmem:[#allocation2 + $0x60] sm:$0xff] }
 0xde2   : > { %6693 = vst.msk [vmem:[#allocation2 + $0x70] sm:$0xf] %vm6664_vm5, %v6625_v4  ;;  %6961 = vmatmul.bf16.vlgmr.msrb.gmra.mxu3 %v7561_v5 }
 0xde3   : > { %v3679_v25 = vpop.permute.xlu2 %3678  ;;  %v6591_v3 = vpop.permute.xlu0 %6590 }
 0xde4   : > { %3744 = vst.msk [vmem:[#allocation2 + $0x7c] sm:$0xf] %vm3712_vm3, %v3679_v25  ;;  %v7558_v37 = vld [vmem:[#allocation2 + $0x48] sm:$0xff] }
 0xde5   : > { %6676 = vst.msk [vmem:[#allocation2 + $0x2c] sm:$0xf] %vm6664_vm5, %v6591_v3  ;;  %6946 = vmatmul.bf16.gmra.mxu2 %v7558_v37 }
 0xde9   : > { %v6621_v48 = vpop.permute.xlu1 %6620  ;;  %v7563_v50 = vld [vmem:[#allocation2 + $0x70] sm:$0xff] }
 0xdea   : > { %6691 = vst.msk [vmem:[#allocation2 + $0x68] sm:$0xf] %vm6664_vm5, %v6621_v48 }
 0xdeb   : > { %v5153_v31 = vpop.permute.xlu2 %5152  ;;  %v5137_v49 = vpop.permute.xlu0 %5136 }
 0xdec   : > { %5211 = vst.msk [vmem:[#allocation2 + $0x58] sm:$0xf] %vm5188_vm4, %v5137_v49  ;;  %v7554_v63 = vld [vmem:[#allocation2 + $0x28] sm:$0xff] }
 0xded   : > { %6926 = vmatmul.bf16.gmra.mxu0 %v7554_v63 }
 0xdf1   : > { %v3677_v13 = vpop.permute.xlu1 %3676  ;;  %v7562_v44 = vld [vmem:[#allocation2 + $0x68] sm:$0xff] }
 0xdf2   : > { %3743 = vst.msk [vmem:[#allocation2 + $0x78] sm:$0xf] %vm3712_vm3, %v3677_v13  ;;  %6966 = vmatmul.bf16.gmra.mxu3 %v7562_v44 }
 0xdf3   : > { %5219 = vst.msk [vmem:[#allocation2 + $0x78] sm:$0xf] %vm5188_vm4, %v5153_v31  ;;  %v6615_v1 = vpop.permute.xlu2 %6614  ;;  %v5155_v54 = vpop.permute.xlu0 %5154 }
 0xdf4   : > { %5220 = vst.msk [vmem:[#allocation2 + $0x7c] sm:$0xf] %vm5188_vm4, %v5155_v54 }
 0xdf5   : > { %6951 = vmatmul.bf16.gmra.mxu2 %v7559_v15 }
 0xdf9   : > { %v5139_v53 = vpop.permute.xlu1 %5138 }
 0xdfa   : > { %5212 = vst.msk [vmem:[#allocation2 + $0x5c] sm:$0xf] %vm5188_vm4, %v5139_v53 }
 0xdfb   : > { %6688 = vst.msk [vmem:[#allocation2 + $0x5c] sm:$0xf] %vm6664_vm5, %v6615_v1  ;;  %v5117_v58 = vpop.permute.xlu2 %5116 }
 0xdfc   : > { %5201 = vst.msk [vmem:[#allocation2 + $0x30] sm:$0xf] %vm5188_vm4, %v5117_v58 }
 0xe01   : > { %v6613_v46 = vpop.permute.xlu1 %6612 }
 0xe02   : > { %6687 = vst.msk [vmem:[#allocation2 + $0x58] sm:$0xf] %vm6664_vm5, %v6613_v46  ;;  %6971 = vmatmul.bf16.gmra.mxu3 %v7563_v50 }
 0xe03   : > { %v6595_v20 = vpop.permute.xlu2 %6594 }
 0xe09   : > { %v7560_v28 = vld [vmem:[#allocation2 + $0x58] sm:$0xff] }
 0xe0a   : > { %v6902_v52 = vpop.f32.mrf.mxu0  ;;  %6956 = vmatmul.bf16.gmra.mxu2 %v7560_v28 }
 0xe0b   : > { %v6903_v56 = vadd.f32 %v12000_v11, %v6902_v52 }
 0xe12   : > { %v6904_v26 = vpop.f32.mrf.mxu0 }
 0xe13   : > { %v6905_v38 = vadd.f32 %v12000_v11, %v6904_v26 }
 0xe15   : > { %v7576_v57 = vpack.c.bf16 %v6905_v38, %v6903_v56 }
 0xe17   : > { %7577 = vst [vmem:[%s12009_s14] sm:$0xff] %v7576_v57  }
 0xe1a   : > { %v6907_v59 = vpop.f32.mrf.mxu0 }
 0xe1b   : > { %v6908_v29 = vadd.f32 %v12000_v11, %v6907_v59 }
 0xe22   : > { %v6909_v19 = vpop.f32.mrf.mxu0 }
 0xe23   : > { %v6910_v30 = vadd.f32 %v12000_v11, %v6909_v19 }
 0xe25   : > { %v7581_v8 = vpack.c.bf16 %v6910_v30, %v6908_v29 }
 0xe27   : > { %7653 = vst [vmem:[%s12009_s14 + $0x8] sm:$0xff] %v7581_v8  }
 0xe2a   : > { %v6912_v21 = vpop.f32.mrf.mxu0 }
 0xe2b   : > { %v6913_v42 = vadd.f32 %v12000_v11, %v6912_v21 }
 0xe2e   : > { %v6629_v33 = vpop.permute.xlu0 %6628 }
 0xe2f   : > { %6695 = vst.msk [vmem:[#allocation2 + $0x78] sm:$0xf] %vm6664_vm5, %v6629_v33 }
 0xe32   : > { %v6914_v18 = vpop.f32.mrf.mxu0 }
 0xe33   : > { %v6915_v22 = vadd.f32 %v12000_v11, %v6914_v18 }
 0xe35   : > { %v7586_v61 = vpack.c.bf16 %v6915_v22, %v6913_v42 }
 0xe36   : > { %v6631_v32 = vpop.permute.xlu1 %6630  ;;  %v5119_v17 = vpop.permute.xlu0 %5118 }
 0xe37   : > { %6696 = vst.msk [vmem:[#allocation2 + $0x7c] sm:$0xf] %vm6664_vm5, %v6631_v32 }
 0xe38   : > { %7654 = vst [vmem:[%s12009_s14 + $0x10] sm:$0xff] %v7586_v61  }
 0xe39   : > { %5202 = vst.msk [vmem:[#allocation2 + $0x34] sm:$0xf] %vm5188_vm4, %v5119_v17 }
 0xe3a   : > { %6678 = vst.msk [vmem:[#allocation2 + $0x34] sm:$0xf] %vm6664_vm5, %v6595_v20  ;;  %v6917_v41 = vpop.f32.mrf.mxu0 }
 0xe3b   : > { %v6918_v23 = vadd.f32 %v12000_v11, %v6917_v41 }
 0xe3e   : > { %v6593_v24 = vpop.permute.xlu1 %6592  ;;  %v7564_v34 = vld [vmem:[#allocation2 + $0x78] sm:$0xff] }
 0xe3f   : > { %6677 = vst.msk [vmem:[#allocation2 + $0x30] sm:$0xf] %vm6664_vm5, %v6593_v24  ;;  %6976 = vmatmul.bf16.gmra.mxu3 %v7564_v34 }
 0xe42   : > { %v6919_v2 = vpop.f32.mrf.mxu0 }
 0xe43   : > { %v6920_v51 = vadd.f32 %v12000_v11, %v6919_v2 }
 0xe45   : > { %v7591_v16 = vpack.c.bf16 %v6920_v51, %v6918_v23 }
 0xe46   : > { %v7555_v36 = vld [vmem:[#allocation2 + $0x30] sm:$0xff] }
 0xe47   : > { %7655 = vst [vmem:[%s12009_s14 + $0x18] sm:$0xff] %v7591_v16   ;;  %6931 = vmatmul.bf16.gmra.mxu0 %v7555_v36 }
 0xe48   : > { %v6937_v0 = vpop.f32.mrf.mxu2 }
 0xe49   : > { %v6938_v10 = vadd.f32 %v12000_v11, %v6937_v0 }
 0xe4a   : > { %v6922_v39 = vpop.f32.mrf.mxu0 }
 0xe4b   : > { %v6923_v45 = vadd.f32 %v12000_v11, %v6922_v39 }
 0xe50   : > { %v6939_v62 = vpop.f32.mrf.mxu2 }
 0xe51   : > { %v6940_v40 = vadd.f32 %v12000_v11, %v6939_v62 }
 0xe52   : > { %v6924_v9 = vpop.f32.mrf.mxu0 }
 0xe53   : > { %v7611_v60 = vpack.c.bf16 %v6940_v40, %v6938_v10  ;;  %v6925_v35 = vadd.f32 %v12000_v11, %v6924_v9 }
 0xe55   : > { %7659 = vst [vmem:[%s12009_s14 + $0x38] sm:$0xff] %v7611_v60   ;;  %v7596_v43 = vpack.c.bf16 %v6925_v35, %v6923_v45 }
 0xe57   : > { %7656 = vst [vmem:[%s12009_s14 + $0x20] sm:$0xff] %v7596_v43  }
 0xe58   : > { %v6942_v12 = vpop.f32.mrf.mxu2 }
 0xe59   : > { %v6943_v14 = vadd.f32 %v12000_v11, %v6942_v12 }
 0xe60   : > { %v6944_v55 = vpop.f32.mrf.mxu2 }
 0xe61   : > { %v6945_v27 = vadd.f32 %v12000_v11, %v6944_v55 }
 0xe63   : > { %v7616_v6 = vpack.c.bf16 %v6945_v27, %v6943_v14 }
 0xe65   : > { %7660 = vst [vmem:[%s12009_s14 + $0x40] sm:$0xff] %v7616_v6   ;;  %v6962_v47 = vpop.f32.mrf.mxu3 }
 0xe66   : > { %v6963_v25 = vadd.f32 %v12000_v11, %v6962_v47 }
 0xe68   : > { %v6947_v7 = vpop.f32.mrf.mxu2 }
 0xe69   : > { %v6948_v31 = vadd.f32 %v12000_v11, %v6947_v7 }
 0xe6a   : > { %v6927_v4 = vpop.f32.mrf.mxu0 }
 0xe6b   : > { %v6928_v13 = vadd.f32 %v12000_v11, %v6927_v4 }
 0xe6d   : > { %v6964_v5 = vpop.f32.mrf.mxu3 }
 0xe6e   : > { %v6965_v3 = vadd.f32 %v12000_v11, %v6964_v5 }
 0xe70   : > { %v7636_v37 = vpack.c.bf16 %v6965_v3, %v6963_v25  ;;  %v6949_v48 = vpop.f32.mrf.mxu2 }
 0xe71   : > { %v6950_v49 = vadd.f32 %v12000_v11, %v6949_v48 }
 0xe72   : > { %7664 = vst [vmem:[%s12009_s14 + $0x60] sm:$0xff] %v7636_v37   ;;  %v6929_v63 = vpop.f32.mrf.mxu0 }
 0xe73   : > { %v7621_v44 = vpack.c.bf16 %v6950_v49, %v6948_v31  ;;  %v6930_v1 = vadd.f32 %v12000_v11, %v6929_v63 }
 0xe75   : > { %7661 = vst [vmem:[%s12009_s14 + $0x48] sm:$0xff] %v7621_v44   ;;  %v7601_v54 = vpack.c.bf16 %v6930_v1, %v6928_v13  ;;  %v6967_v15 = vpop.f32.mrf.mxu3 }
 0xe76   : > { %v6968_v46 = vadd.f32 %v12000_v11, %v6967_v15 }
 0xe77   : > { %7657 = vst [vmem:[%s12009_s14 + $0x28] sm:$0xff] %v7601_v54  }
 0xe78   : > { %v6952_v53 = vpop.f32.mrf.mxu2 }
 0xe79   : > { %v6953_v26 = vadd.f32 %v12000_v11, %v6952_v53 }
 0xe7d   : > { %v6969_v58 = vpop.f32.mrf.mxu3 }
 0xe7e   : > { %v6970_v50 = vadd.f32 %v12000_v11, %v6969_v58 }
 0xe80   : > { %v7641_v28 = vpack.c.bf16 %v6970_v50, %v6968_v46  ;;  %v6954_v52 = vpop.f32.mrf.mxu2 }
 0xe81   : > { %v6955_v56 = vadd.f32 %v12000_v11, %v6954_v52 }
 0xe82   : > { %7665 = vst [vmem:[%s12009_s14 + $0x68] sm:$0xff] %v7641_v28  }
 0xe83   : > { %v7626_v38 = vpack.c.bf16 %v6955_v56, %v6953_v26 }
 0xe85   : > { %7662 = vst [vmem:[%s12009_s14 + $0x50] sm:$0xff] %v7626_v38   ;;  %v6972_v57 = vpop.f32.mrf.mxu3 }
 0xe86   : > { %v6973_v29 = vadd.f32 %v12000_v11, %v6972_v57 }
 0xe8d   : > { %v6957_v59 = vpop.f32.mrf.mxu2  ;;  %v6974_v19 = vpop.f32.mrf.mxu3 }
 0xe8e   : > { %v6975_v30 = vadd.f32 %v12000_v11, %v6974_v19  ;;  %v6958_v33 = vadd.f32 %v12000_v11, %v6957_v59 }
 0xe90   : > { %v7646_v8 = vpack.c.bf16 %v6975_v30, %v6973_v29 }
 0xe92   : > { %7666 = vst [vmem:[%s12009_s14 + $0x70] sm:$0xff] %v7646_v8  }
 0xe95   : > { %v6959_v21 = vpop.f32.mrf.mxu2 }
 0xe96   : > { %v6960_v18 = vadd.f32 %v12000_v11, %v6959_v21 }
 0xe98   : > { %v7631_v42 = vpack.c.bf16 %v6960_v18, %v6958_v33 }
 0xe9a   : > { %7663 = vst [vmem:[%s12009_s14 + $0x58] sm:$0xff] %v7631_v42  }
 0xec2   : > { %v6977_v22 = vpop.f32.mrf.mxu3 }
 0xec3   : > { %v6978_v17 = vadd.f32 %v12000_v11, %v6977_v22 }
 0xec4   : > { %v6932_v61 = vpop.f32.mrf.mxu0 }
 0xec5   : > { %v6933_v24 = vadd.f32 %v12000_v11, %v6932_v61 }
 0xeca   : > { %v6979_v32 = vpop.f32.mrf.mxu3 }
 0xecb   : > { %v6980_v20 = vadd.f32 %v12000_v11, %v6979_v32 }
 0xecc   : > { %v6934_v41 = vpop.f32.mrf.mxu0 }
 0xecd   : > { %v7651_v34 = vpack.c.bf16 %v6980_v20, %v6978_v17  ;;  %v6935_v2 = vadd.f32 %v12000_v11, %v6934_v41 }
 0xecf   : > { %7667 = vst [vmem:[%s12009_s14 + $0x78] sm:$0xff] %v7651_v34   ;;  %v7606_v23 = vpack.c.bf16 %v6935_v2, %v6933_v24 }
 0xed1   : > { %7658 = vst [vmem:[%s12009_s14 + $0x30] sm:$0xff] %v7606_v23  }
 0xed2 PF: > { %s16_s21 = sadd.s32 1, %s8223_s21  }
 0xed3   : > { %p13_p4 = scmp.ge.s32.totalorder %s16_s21, 4  }
 0xed5   :  { %15 = sbr.rel (!%p13_p4) target bundleno = 1 (0x1), region = 77 }

</bundles_post_ra>
